<compile_context>
chip_gen: v5e
topology: v5e:2x2
jax: 0.10.0
libtpu: 0.0.40
codegen_flags: <defaults>
</compile_context>

<pallas_src>
import jax
import jax.numpy as jnp
from jax import lax
from jax.experimental import pallas as pl
from jax.experimental.pallas import tpu as pltpu


def _make_fused_kernel(B, ch=256, c3_out=1024):
    """conv1/2/3 + BN + ReLU + fused global max-pool + FC head (last step)."""
    assert c3_out % ch == 0
    n_chunks = c3_out // ch

    def kernel(x_ref,
               w1_ref, c1_ref,
               w2_ref, c2_ref,
               w3_ref, c3_ref,
               w4_ref, c4_ref,
               w5_ref, c5_ref,
               w6_ref, c6_ref,
               out_ref,
               g_ref):
        ni = pl.program_id(0)
        last = pl.num_programs(0) - 1

        # Reset the running max on the first point tile.  conv3 outputs are
        # post-ReLU (>= 0), so zero is a valid identity for the max.
        @pl.when(ni == 0)
        def _init():
            g_ref[...] = jnp.zeros_like(g_ref)

        # ---- conv1 / conv2 per batch element --------------------------------
        h2_bf16 = []
        for b in range(B):                                 # static, tiny batch
            xb = x_ref[b]                                  # (3, tn) f32
            # conv1 (K=3 contraction) as 3 VPU broadcast-FMAs; BN scale is
            # folded into w1, so only shift + ReLU remain.
            z1 = (w1_ref[:, 0:1] * xb[0:1, :]
                  + w1_ref[:, 1:2] * xb[1:2, :]
                  + w1_ref[:, 2:3] * xb[2:3, :])           # (64, tn)
            h1 = jnp.maximum(z1 + c1_ref[...], 0.0)

            # conv2 on the MXU: (128, 64) bf16 @ (64, tn) bf16 -> f32.
            z2 = jnp.dot(w2_ref[...], h1.astype(jnp.bfloat16),
                         preferred_element_type=jnp.float32)
            h2 = jnp.maximum(z2 + c2_ref[...], 0.0)        # (128, tn) f32
            h2_bf16.append(h2.astype(jnp.bfloat16))

        # ---- conv3 in `ch`-row chunks, max-pooled over points immediately ---
        def chunk_body(ci, carry):
            r = pl.multiple_of(ci * ch, ch)
            w3c = w3_ref[pl.ds(r, ch), :]                  # (ch, 128) bf16
            c3c = c3_ref[pl.ds(r, ch), :]                  # (ch, 1)   f32
            for b in range(B):
                h3c = jnp.maximum(
                    jnp.dot(w3c, h2_bf16[b],
                            preferred_element_type=jnp.float32) + c3c, 0.0)
                col = jnp.max(h3c, axis=1, keepdims=True)  # (ch, 1)
                g_ref[pl.ds(r, ch), b:b + 1] = jnp.maximum(
                    g_ref[pl.ds(r, ch), b:b + 1], col)
            return carry

        lax.fori_loop(0, n_chunks, chunk_body, 0, unroll=True)

        # ---- FC head, fused into the final grid step -------------------------
        @pl.when(ni == last)
        def _head():
            g = g_ref[...].astype(jnp.bfloat16)            # (1024, B)
            f1 = jnp.maximum(
                jnp.dot(w4_ref[...], g,
                        preferred_element_type=jnp.float32) + c4_ref[...],
                0.0)                                       # (512, B)
            f2 = jnp.maximum(
                jnp.dot(w5_ref[...], f1.astype(jnp.bfloat16),
                        preferred_element_type=jnp.float32) + c5_ref[...],
                0.0)                                       # (256, B)
            out_ref[...] = jnp.dot(w6_ref[...], f2,
                                   preferred_element_type=jnp.float32) + c6_ref[...]

    return kernel


def stn3d_forward(x, params, *, tn=None, ch=256):
    B, C, N = x.shape
    assert C == 3
    (w1, s1, c1, w2, s2, c2, w3, s3, c3,
     w4, s4, c4, w5, s5, c5, w6, c6) = params

    # Point tile (lane axis of the conv activations).  If N has no 128-aligned
    # divisor, fall back to a single full-extent tile (no alignment needed).
    if tn is None:
        if N % 512 == 0:
            tn = 512
        elif N % 128 == 0:
            tn = 128
        else:
            tn = N
    assert N % tn == 0
    nn = N // tn

    # Fold BN scale into the weight rows (w' = s*w) and pre-cast the big MXU
    # operands to bf16 (f32 accumulation happens inside the kernel).
    bf16 = jnp.bfloat16
    w1f = (s1 * w1).astype(jnp.float32)        # conv1 stays on the VPU in f32
    w2f = (s2 * w2).astype(bf16)
    w3f = (s3 * w3).astype(bf16)
    w4f = (s4 * w4).astype(bf16)
    w5f = (s5 * w5).astype(bf16)

    weights = (w1f, c1, w2f, c2, w3f, c3, w4f, c4, w5f, c5, w6, c6)

    flops = (2 * B * N * (3 * 64 + 64 * 128 + 128 * 1024)
             + 2 * B * (1024 * 512 + 512 * 256 + 256 * 9))
    bytes_accessed = (4 * 3 * B * N
                      + sum(int(p.size) * p.dtype.itemsize for p in weights)
                      + 4 * 9 * B)

    out9 = pl.pallas_call(
        _make_fused_kernel(B, ch=ch),
        out_shape=jax.ShapeDtypeStruct((9, B), jnp.float32),
        grid_spec=pltpu.PrefetchScalarGridSpec(
            num_scalar_prefetch=0,
            grid=(nn,),                                    # point-tile reduction axis
            in_specs=[pl.BlockSpec((B, 3, tn), lambda ni: (0, 0, ni))]
                     + [pl.BlockSpec(p.shape, lambda ni: (0, 0)) for p in weights],
            out_specs=pl.BlockSpec((9, B), lambda ni: (0, 0)),
            scratch_shapes=[pltpu.VMEM((1024, B), jnp.float32)],
        ),
        compiler_params=pltpu.CompilerParams(
            dimension_semantics=("arbitrary",),            # running-max accumulator
            vmem_limit_bytes=32 << 20),
        cost_estimate=pl.CostEstimate(
            flops=flops, transcendentals=0, bytes_accessed=bytes_accessed),
    )(x, *weights)

    # (9, B) -> (B, 3, 3): tiny layout glue in plain JAX.
    return out9.T.reshape(B, 3, 3)


def init_params(key):
    """Deterministic synthetic parameters; BN (eval mode) folded to scale/shift."""
    eps = 1e-5
    keys = jax.random.split(key, 32)
    layer_dims = [(64, 3), (128, 64), (1024, 128), (512, 1024), (256, 512)]
    params = []
    ki = 0

    def rnd(k, shape, scale=0.1):
        return scale * jax.random.normal(k, shape, dtype=jnp.float32)

    for (cout, cin) in layer_dims:
        w = rnd(keys[ki], (cout, cin)); ki += 1
        b = rnd(keys[ki], (cout,)); ki += 1
        gamma = 1.0 + 0.1 * jax.random.normal(keys[ki], (cout,), dtype=jnp.float32); ki += 1
        beta = rnd(keys[ki], (cout,)); ki += 1
        mean = rnd(keys[ki], (cout,)); ki += 1
        var = jax.random.uniform(keys[ki], (cout,), minval=0.5, maxval=1.5,
                                 dtype=jnp.float32); ki += 1
        scale = gamma / jnp.sqrt(var + eps)
        shift = beta - mean * scale + b * scale        # fold conv/fc bias + BN shift
        params += [w,
                   scale.reshape(cout, 1).astype(jnp.float32),
                   shift.reshape(cout, 1).astype(jnp.float32)]

    # fc3 (no BN); identity matrix folded into the bias
    w6 = rnd(keys[ki], (9, 256)); ki += 1
    b6 = rnd(keys[ki], (9,)); ki += 1
    iden = jnp.eye(3, dtype=jnp.float32).reshape(9)
    c6 = (b6 + iden).reshape(9, 1)
    params += [w6, c6]
    return tuple(params)


def ref_forward(x, params):
    """Pure-JAX f32 reference with identical semantics (for verification)."""
    (w1, s1, c1, w2, s2, c2, w3, s3, c3,
     w4, s4, c4, w5, s5, c5, w6, c6) = params

    def conv_bn_relu(h, w, s, c):
        z = jnp.einsum('oc,bcn->bon', w, h)
        return jnp.maximum(s[None] * z + c[None], 0.0)

    h = conv_bn_relu(x, w1, s1, c1)
    h = conv_bn_relu(h, w2, s2, c2)
    h = conv_bn_relu(h, w3, s3, c3)
    g = jnp.max(h, axis=2)                              # (B, 1024)

    def fc_bn_relu(v, w, s, c):
        z = v @ w.T
        return jnp.maximum(s[:, 0][None] * z + c[:, 0][None], 0.0)

    f = fc_bn_relu(g, w4, s4, c4)
    f = fc_bn_relu(f, w5, s5, c5)
    out = f @ w6.T + c6[:, 0][None]
    return out.reshape(-1, 3, 3)


if __name__ == "__main__":
    key = jax.random.PRNGKey(0)
    kx, kp = jax.random.split(key)
    B, N = 2, 128                      # batch=2, 128 points, 3 input channels
    x = jax.random.normal(kx, (B, 3, N), dtype=jnp.float32)
    params = init_params(kp)

    out = stn3d_forward(x, params)
    out = jax.block_until_ready(out)

    ref = ref_forward(x, params)
    assert out.shape == (B, 3, 3)
    # bf16 MXU operands (f32 accumulate) vs. pure-f32 reference: compare at a
    # few percent of the output scale.
    tol = 4e-2 * float(jnp.max(jnp.abs(ref))) + 4e-2
    assert jnp.allclose(out, ref, atol=tol, rtol=0.0), \
        float(jnp.max(jnp.abs(out - ref)))
    print("KERNEL_OK")
</pallas_src>

<mosaic_0001>
module attributes {stable_mosaic.version = 11 : i64} {
  func.func @kernel(%arg0: i32, %arg1: memref<2x3x128xf32, #tpu.memory_space<vmem>>, %arg2: memref<64x3xf32, #tpu.memory_space<vmem>>, %arg3: memref<64x1xf32, #tpu.memory_space<vmem>>, %arg4: memref<128x64xbf16, #tpu.memory_space<vmem>>, %arg5: memref<128x1xf32, #tpu.memory_space<vmem>>, %arg6: memref<1024x128xbf16, #tpu.memory_space<vmem>>, %arg7: memref<1024x1xf32, #tpu.memory_space<vmem>>, %arg8: memref<512x1024xbf16, #tpu.memory_space<vmem>>, %arg9: memref<512x1xf32, #tpu.memory_space<vmem>>, %arg10: memref<256x512xbf16, #tpu.memory_space<vmem>>, %arg11: memref<256x1xf32, #tpu.memory_space<vmem>>, %arg12: memref<9x256xf32, #tpu.memory_space<vmem>>, %arg13: memref<9x1xf32, #tpu.memory_space<vmem>>, %arg14: memref<9x2xf32, #tpu.memory_space<vmem>>, %arg15: memref<1024x2xf32, #tpu.memory_space<vmem>>) attributes {dimension_semantics = [#tpu.dimension_semantics<arbitrary>], iteration_bounds = array<i64: 1>, scalar_prefetch = 0 : i64, scratch_operands = 1 : i64, tpu.core_type = #tpu.core_type<tc>, window_params = [{transform_indices = @transform_0, window_bounds = array<i64: 2, 3, 128>}, {pipeline_mode = #tpu.pipeline_mode<synchronous>, transform_indices = @transform_1, window_bounds = array<i64: 64, 3>}, {pipeline_mode = #tpu.pipeline_mode<synchronous>, transform_indices = @transform_2, window_bounds = array<i64: 64, 1>}, {pipeline_mode = #tpu.pipeline_mode<synchronous>, transform_indices = @transform_3, window_bounds = array<i64: 128, 64>}, {pipeline_mode = #tpu.pipeline_mode<synchronous>, transform_indices = @transform_4, window_bounds = array<i64: 128, 1>}, {pipeline_mode = #tpu.pipeline_mode<synchronous>, transform_indices = @transform_5, window_bounds = array<i64: 1024, 128>}, {pipeline_mode = #tpu.pipeline_mode<synchronous>, transform_indices = @transform_6, window_bounds = array<i64: 1024, 1>}, {pipeline_mode = #tpu.pipeline_mode<synchronous>, transform_indices = @transform_7, window_bounds = array<i64: 512, 1024>}, {pipeline_mode = #tpu.pipeline_mode<synchronous>, transform_indices = @transform_8, window_bounds = array<i64: 512, 1>}, {pipeline_mode = #tpu.pipeline_mode<synchronous>, transform_indices = @transform_9, window_bounds = array<i64: 256, 512>}, {pipeline_mode = #tpu.pipeline_mode<synchronous>, transform_indices = @transform_10, window_bounds = array<i64: 256, 1>}, {pipeline_mode = #tpu.pipeline_mode<synchronous>, transform_indices = @transform_11, window_bounds = array<i64: 9, 256>}, {pipeline_mode = #tpu.pipeline_mode<synchronous>, transform_indices = @transform_12, window_bounds = array<i64: 9, 1>}, {pipeline_mode = #tpu.pipeline_mode<synchronous>, transform_indices = @transform_13, window_bounds = array<i64: 9, 2>}]} {
    %c0_i32 = arith.constant 0 : i32
    %0 = arith.cmpi eq, %arg0, %c0_i32 : i32
    %1 = arith.extui %0 : i1 to i32
    %c0_i32_0 = arith.constant 0 : i32
    %2 = arith.cmpi ne, %1, %c0_i32_0 : i32
    scf.if %2 {
      %cst_87 = arith.constant 0.000000e+00 : f32
      %192 = vector.broadcast %cst_87 : f32 to vector<1024x2xf32>
      %c0_88 = arith.constant 0 : index
      %c0_89 = arith.constant 0 : index
      %193 = vector.load %arg15[%c0_88, %c0_89] : memref<1024x2xf32, #tpu.memory_space<vmem>>, vector<1024x2xf32>
      tpu.vector_store %arg15[%c0_88, %c0_89], %192 {strides = array<i32>} : memref<1024x2xf32, #tpu.memory_space<vmem>>, vector<1024x2xf32>,
    } else {
    }
    %c0 = arith.constant 0 : index
    %c0_1 = arith.constant 0 : index
    %c0_2 = arith.constant 0 : index
    %3 = vector.load %arg1[%c0, %c0_1, %c0_2] : memref<2x3x128xf32, #tpu.memory_space<vmem>>, vector<1x3x128xf32>
    %4 = vector.shape_cast %3 : vector<1x3x128xf32> to vector<3x128xf32>
    %c0_3 = arith.constant 0 : index
    %c0_4 = arith.constant 0 : index
    %5 = vector.load %arg2[%c0_3, %c0_4] : memref<64x3xf32, #tpu.memory_space<vmem>>, vector<64x1xf32>
    %6 = vector.extract_strided_slice %4 {offsets = [0, 0], sizes = [1, 128], strides = [1, 1]} : vector<3x128xf32> to vector<1x128xf32>
    %7 = vector.broadcast %5 : vector<64x1xf32> to vector<64x128xf32>
    %8 = vector.broadcast %6 : vector<1x128xf32> to vector<64x128xf32>
    %9 = arith.mulf %7, %8 : vector<64x128xf32>
    %c0_5 = arith.constant 0 : index
    %c1 = arith.constant 1 : index
    %10 = vector.load %arg2[%c0_5, %c1] : memref<64x3xf32, #tpu.memory_space<vmem>>, vector<64x1xf32>
    %11 = vector.extract_strided_slice %4 {offsets = [1, 0], sizes = [1, 128], strides = [1, 1]} : vector<3x128xf32> to vector<1x128xf32>
    %12 = vector.broadcast %10 : vector<64x1xf32> to vector<64x128xf32>
    %13 = vector.broadcast %11 : vector<1x128xf32> to vector<64x128xf32>
    %14 = arith.mulf %12, %13 : vector<64x128xf32>
    %15 = arith.addf %9, %14 : vector<64x128xf32>
    %c0_6 = arith.constant 0 : index
    %c2 = arith.constant 2 : index
    %16 = vector.load %arg2[%c0_6, %c2] : memref<64x3xf32, #tpu.memory_space<vmem>>, vector<64x1xf32>
    %17 = vector.extract_strided_slice %4 {offsets = [2, 0], sizes = [1, 128], strides = [1, 1]} : vector<3x128xf32> to vector<1x128xf32>
    %18 = vector.broadcast %16 : vector<64x1xf32> to vector<64x128xf32>
    %19 = vector.broadcast %17 : vector<1x128xf32> to vector<64x128xf32>
    %20 = arith.mulf %18, %19 : vector<64x128xf32>
    %21 = arith.addf %15, %20 : vector<64x128xf32>
    %c0_7 = arith.constant 0 : index
    %c0_8 = arith.constant 0 : index
    %22 = vector.load %arg3[%c0_7, %c0_8] : memref<64x1xf32, #tpu.memory_space<vmem>>, vector<64x1xf32>
    %23 = vector.broadcast %22 : vector<64x1xf32> to vector<64x128xf32>
    %24 = arith.addf %21, %23 : vector<64x128xf32>
    %cst = arith.constant 0.000000e+00 : f32
    %25 = vector.broadcast %cst : f32 to vector<64x128xf32>
    %26 = arith.maximumf %24, %25 : vector<64x128xf32>
    %c0_9 = arith.constant 0 : index
    %c0_10 = arith.constant 0 : index
    %27 = vector.load %arg4[%c0_9, %c0_10] : memref<128x64xbf16, #tpu.memory_space<vmem>>, vector<128x64xbf16>
    %28 = arith.truncf %26 : vector<64x128xf32> to vector<64x128xbf16>
    %cst_11 = arith.constant dense<0.000000e+00> : vector<128x128xf32>
    %29 = tpu.matmul %27, %28, %cst_11 {dimension_numbers = #tpu.dot_dimension_numbers<[1], [0], [0], [1], [0, 0, 1, 1], [], []>} : vector<128x64xbf16>, vector<64x128xbf16>, vector<128x128xf32> -> vector<128x128xf32>
    %c0_12 = arith.constant 0 : index
    %c0_13 = arith.constant 0 : index
    %30 = vector.load %arg5[%c0_12, %c0_13] : memref<128x1xf32, #tpu.memory_space<vmem>>, vector<128x1xf32>
    %31 = vector.broadcast %30 : vector<128x1xf32> to vector<128x128xf32>
    %32 = arith.addf %29, %31 : vector<128x128xf32>
    %cst_14 = arith.constant 0.000000e+00 : f32
    %33 = vector.broadcast %cst_14 : f32 to vector<128x128xf32>
    %34 = arith.maximumf %32, %33 : vector<128x128xf32>
    %35 = arith.truncf %34 : vector<128x128xf32> to vector<128x128xbf16>
    %c1_15 = arith.constant 1 : index
    %c0_16 = arith.constant 0 : index
    %c0_17 = arith.constant 0 : index
    %36 = vector.load %arg1[%c1_15, %c0_16, %c0_17] : memref<2x3x128xf32, #tpu.memory_space<vmem>>, vector<1x3x128xf32>
    %37 = vector.shape_cast %36 : vector<1x3x128xf32> to vector<3x128xf32>
    %c0_18 = arith.constant 0 : index
    %c0_19 = arith.constant 0 : index
    %38 = vector.load %arg2[%c0_18, %c0_19] : memref<64x3xf32, #tpu.memory_space<vmem>>, vector<64x1xf32>
    %39 = vector.extract_strided_slice %37 {offsets = [0, 0], sizes = [1, 128], strides = [1, 1]} : vector<3x128xf32> to vector<1x128xf32>
    %40 = vector.broadcast %38 : vector<64x1xf32> to vector<64x128xf32>
    %41 = vector.broadcast %39 : vector<1x128xf32> to vector<64x128xf32>
    %42 = arith.mulf %40, %41 : vector<64x128xf32>
    %c0_20 = arith.constant 0 : index
    %c1_21 = arith.constant 1 : index
    %43 = vector.load %arg2[%c0_20, %c1_21] : memref<64x3xf32, #tpu.memory_space<vmem>>, vector<64x1xf32>
    %44 = vector.extract_strided_slice %37 {offsets = [1, 0], sizes = [1, 128], strides = [1, 1]} : vector<3x128xf32> to vector<1x128xf32>
    %45 = vector.broadcast %43 : vector<64x1xf32> to vector<64x128xf32>
    %46 = vector.broadcast %44 : vector<1x128xf32> to vector<64x128xf32>
    %47 = arith.mulf %45, %46 : vector<64x128xf32>
    %48 = arith.addf %42, %47 : vector<64x128xf32>
    %c0_22 = arith.constant 0 : index
    %c2_23 = arith.constant 2 : index
    %49 = vector.load %arg2[%c0_22, %c2_23] : memref<64x3xf32, #tpu.memory_space<vmem>>, vector<64x1xf32>
    %50 = vector.extract_strided_slice %37 {offsets = [2, 0], sizes = [1, 128], strides = [1, 1]} : vector<3x128xf32> to vector<1x128xf32>
    %51 = vector.broadcast %49 : vector<64x1xf32> to vector<64x128xf32>
    %52 = vector.broadcast %50 : vector<1x128xf32> to vector<64x128xf32>
    %53 = arith.mulf %51, %52 : vector<64x128xf32>
    %54 = arith.addf %48, %53 : vector<64x128xf32>
    %c0_24 = arith.constant 0 : index
    %c0_25 = arith.constant 0 : index
    %55 = vector.load %arg3[%c0_24, %c0_25] : memref<64x1xf32, #tpu.memory_space<vmem>>, vector<64x1xf32>
    %56 = vector.broadcast %55 : vector<64x1xf32> to vector<64x128xf32>
    %57 = arith.addf %54, %56 : vector<64x128xf32>
    %cst_26 = arith.constant 0.000000e+00 : f32
    %58 = vector.broadcast %cst_26 : f32 to vector<64x128xf32>
    %59 = arith.maximumf %57, %58 : vector<64x128xf32>
    %c0_27 = arith.constant 0 : index
    %c0_28 = arith.constant 0 : index
    %60 = vector.load %arg4[%c0_27, %c0_28] : memref<128x64xbf16, #tpu.memory_space<vmem>>, vector<128x64xbf16>
    %61 = arith.truncf %59 : vector<64x128xf32> to vector<64x128xbf16>
    %cst_29 = arith.constant dense<0.000000e+00> : vector<128x128xf32>
    %62 = tpu.matmul %60, %61, %cst_29 {dimension_numbers = #tpu.dot_dimension_numbers<[1], [0], [0], [1], [0, 0, 1, 1], [], []>} : vector<128x64xbf16>, vector<64x128xbf16>, vector<128x128xf32> -> vector<128x128xf32>
    %c0_30 = arith.constant 0 : index
    %c0_31 = arith.constant 0 : index
    %63 = vector.load %arg5[%c0_30, %c0_31] : memref<128x1xf32, #tpu.memory_space<vmem>>, vector<128x1xf32>
    %64 = vector.broadcast %63 : vector<128x1xf32> to vector<128x128xf32>
    %65 = arith.addf %62, %64 : vector<128x128xf32>
    %cst_32 = arith.constant 0.000000e+00 : f32
    %66 = vector.broadcast %cst_32 : f32 to vector<128x128xf32>
    %67 = arith.maximumf %65, %66 : vector<128x128xf32>
    %68 = arith.truncf %67 : vector<128x128xf32> to vector<128x128xbf16>
    %c0_i32_33 = arith.constant 0 : i32
    %c256_i32 = arith.constant 256 : i32
    %69 = arith.muli %c0_i32_33, %c256_i32 : i32
    %70 = tpu.assume_multiple %69, 256 : i32
    %71 = arith.index_cast %70 : i32 to index
    %c0_34 = arith.constant 0 : index
    %72 = vector.load %arg6[%71, %c0_34] : memref<1024x128xbf16, #tpu.memory_space<vmem>>, vector<256x128xbf16>
    %73 = arith.index_cast %70 : i32 to index
    %c0_35 = arith.constant 0 : index
    %74 = vector.load %arg7[%73, %c0_35] : memref<1024x1xf32, #tpu.memory_space<vmem>>, vector<256x1xf32>
    %cst_36 = arith.constant dense<0.000000e+00> : vector<256x128xf32>
    %75 = tpu.matmul %72, %35, %cst_36 {dimension_numbers = #tpu.dot_dimension_numbers<[1], [0], [0], [1], [0, 0, 1, 1], [], []>} : vector<256x128xbf16>, vector<128x128xbf16>, vector<256x128xf32> -> vector<256x128xf32>
    %76 = vector.broadcast %74 : vector<256x1xf32> to vector<256x128xf32>
    %77 = arith.addf %75, %76 : vector<256x128xf32>
    %cst_37 = arith.constant 0.000000e+00 : f32
    %78 = vector.broadcast %cst_37 : f32 to vector<256x128xf32>
    %79 = arith.maximumf %77, %78 : vector<256x128xf32>
    %cst_38 = arith.constant dense<0xFF800000> : vector<256xf32>
    %80 = vector.multi_reduction <maximumf>, %79, %cst_38 [1] : vector<256x128xf32> to vector<256xf32>
    %81 = vector.shape_cast %80 : vector<256xf32> to vector<256x1xf32>
    %82 = arith.index_cast %70 : i32 to index
    %c0_39 = arith.constant 0 : index
    %83 = vector.load %arg15[%82, %c0_39] : memref<1024x2xf32, #tpu.memory_space<vmem>>, vector<256x1xf32>
    %84 = arith.maximumf %83, %81 : vector<256x1xf32>
    %85 = arith.index_cast %70 : i32 to index
    %c0_40 = arith.constant 0 : index
    %86 = vector.load %arg15[%85, %c0_40] : memref<1024x2xf32, #tpu.memory_space<vmem>>, vector<256x1xf32>
    tpu.vector_store %arg15[%85, %c0_40], %84 {strides = array<i32>} : memref<1024x2xf32, #tpu.memory_space<vmem>>, vector<256x1xf32>,
    %cst_41 = arith.constant dense<0.000000e+00> : vector<256x128xf32>
    %87 = tpu.matmul %72, %68, %cst_41 {dimension_numbers = #tpu.dot_dimension_numbers<[1], [0], [0], [1], [0, 0, 1, 1], [], []>} : vector<256x128xbf16>, vector<128x128xbf16>, vector<256x128xf32> -> vector<256x128xf32>
    %88 = vector.broadcast %74 : vector<256x1xf32> to vector<256x128xf32>
    %89 = arith.addf %87, %88 : vector<256x128xf32>
    %cst_42 = arith.constant 0.000000e+00 : f32
    %90 = vector.broadcast %cst_42 : f32 to vector<256x128xf32>
    %91 = arith.maximumf %89, %90 : vector<256x128xf32>
    %cst_43 = arith.constant dense<0xFF800000> : vector<256xf32>
    %92 = vector.multi_reduction <maximumf>, %91, %cst_43 [1] : vector<256x128xf32> to vector<256xf32>
    %93 = vector.shape_cast %92 : vector<256xf32> to vector<256x1xf32>
    %94 = arith.index_cast %70 : i32 to index
    %c1_44 = arith.constant 1 : index
    %95 = vector.load %arg15[%94, %c1_44] : memref<1024x2xf32, #tpu.memory_space<vmem>>, vector<256x1xf32>
    %96 = arith.maximumf %95, %93 : vector<256x1xf32>
    %97 = arith.index_cast %70 : i32 to index
    %c1_45 = arith.constant 1 : index
    %98 = vector.load %arg15[%97, %c1_45] : memref<1024x2xf32, #tpu.memory_space<vmem>>, vector<256x1xf32>
    tpu.vector_store %arg15[%97, %c1_45], %96 {strides = array<i32>} : memref<1024x2xf32, #tpu.memory_space<vmem>>, vector<256x1xf32>,
    %c1_i32 = arith.constant 1 : i32
    %c256_i32_46 = arith.constant 256 : i32
    %99 = arith.muli %c1_i32, %c256_i32_46 : i32
    %100 = tpu.assume_multiple %99, 256 : i32
    %101 = arith.index_cast %100 : i32 to index
    %c0_47 = arith.constant 0 : index
    %102 = vector.load %arg6[%101, %c0_47] : memref<1024x128xbf16, #tpu.memory_space<vmem>>, vector<256x128xbf16>
    %103 = arith.index_cast %100 : i32 to index
    %c0_48 = arith.constant 0 : index
    %104 = vector.load %arg7[%103, %c0_48] : memref<1024x1xf32, #tpu.memory_space<vmem>>, vector<256x1xf32>
    %cst_49 = arith.constant dense<0.000000e+00> : vector<256x128xf32>
    %105 = tpu.matmul %102, %35, %cst_49 {dimension_numbers = #tpu.dot_dimension_numbers<[1], [0], [0], [1], [0, 0, 1, 1], [], []>} : vector<256x128xbf16>, vector<128x128xbf16>, vector<256x128xf32> -> vector<256x128xf32>
    %106 = vector.broadcast %104 : vector<256x1xf32> to vector<256x128xf32>
    %107 = arith.addf %105, %106 : vector<256x128xf32>
    %cst_50 = arith.constant 0.000000e+00 : f32
    %108 = vector.broadcast %cst_50 : f32 to vector<256x128xf32>
    %109 = arith.maximumf %107, %108 : vector<256x128xf32>
    %cst_51 = arith.constant dense<0xFF800000> : vector<256xf32>
    %110 = vector.multi_reduction <maximumf>, %109, %cst_51 [1] : vector<256x128xf32> to vector<256xf32>
    %111 = vector.shape_cast %110 : vector<256xf32> to vector<256x1xf32>
    %112 = arith.index_cast %100 : i32 to index
    %c0_52 = arith.constant 0 : index
    %113 = vector.load %arg15[%112, %c0_52] : memref<1024x2xf32, #tpu.memory_space<vmem>>, vector<256x1xf32>
    %114 = arith.maximumf %113, %111 : vector<256x1xf32>
    %115 = arith.index_cast %100 : i32 to index
    %c0_53 = arith.constant 0 : index
    %116 = vector.load %arg15[%115, %c0_53] : memref<1024x2xf32, #tpu.memory_space<vmem>>, vector<256x1xf32>
    tpu.vector_store %arg15[%115, %c0_53], %114 {strides = array<i32>} : memref<1024x2xf32, #tpu.memory_space<vmem>>, vector<256x1xf32>,
    %cst_54 = arith.constant dense<0.000000e+00> : vector<256x128xf32>
    %117 = tpu.matmul %102, %68, %cst_54 {dimension_numbers = #tpu.dot_dimension_numbers<[1], [0], [0], [1], [0, 0, 1, 1], [], []>} : vector<256x128xbf16>, vector<128x128xbf16>, vector<256x128xf32> -> vector<256x128xf32>
    %118 = vector.broadcast %104 : vector<256x1xf32> to vector<256x128xf32>
    %119 = arith.addf %117, %118 : vector<256x128xf32>
    %cst_55 = arith.constant 0.000000e+00 : f32
    %120 = vector.broadcast %cst_55 : f32 to vector<256x128xf32>
    %121 = arith.maximumf %119, %120 : vector<256x128xf32>
    %cst_56 = arith.constant dense<0xFF800000> : vector<256xf32>
    %122 = vector.multi_reduction <maximumf>, %121, %cst_56 [1] : vector<256x128xf32> to vector<256xf32>
    %123 = vector.shape_cast %122 : vector<256xf32> to vector<256x1xf32>
    %124 = arith.index_cast %100 : i32 to index
    %c1_57 = arith.constant 1 : index
    %125 = vector.load %arg15[%124, %c1_57] : memref<1024x2xf32, #tpu.memory_space<vmem>>, vector<256x1xf32>
    %126 = arith.maximumf %125, %123 : vector<256x1xf32>
    %127 = arith.index_cast %100 : i32 to index
    %c1_58 = arith.constant 1 : index
    %128 = vector.load %arg15[%127, %c1_58] : memref<1024x2xf32, #tpu.memory_space<vmem>>, vector<256x1xf32>
    tpu.vector_store %arg15[%127, %c1_58], %126 {strides = array<i32>} : memref<1024x2xf32, #tpu.memory_space<vmem>>, vector<256x1xf32>,
    %c2_i32 = arith.constant 2 : i32
    %c256_i32_59 = arith.constant 256 : i32
    %129 = arith.muli %c2_i32, %c256_i32_59 : i32
    %130 = tpu.assume_multiple %129, 256 : i32
    %131 = arith.index_cast %130 : i32 to index
    %c0_60 = arith.constant 0 : index
    %132 = vector.load %arg6[%131, %c0_60] : memref<1024x128xbf16, #tpu.memory_space<vmem>>, vector<256x128xbf16>
    %133 = arith.index_cast %130 : i32 to index
    %c0_61 = arith.constant 0 : index
    %134 = vector.load %arg7[%133, %c0_61] : memref<1024x1xf32, #tpu.memory_space<vmem>>, vector<256x1xf32>
    %cst_62 = arith.constant dense<0.000000e+00> : vector<256x128xf32>
    %135 = tpu.matmul %132, %35, %cst_62 {dimension_numbers = #tpu.dot_dimension_numbers<[1], [0], [0], [1], [0, 0, 1, 1], [], []>} : vector<256x128xbf16>, vector<128x128xbf16>, vector<256x128xf32> -> vector<256x128xf32>
    %136 = vector.broadcast %134 : vector<256x1xf32> to vector<256x128xf32>
    %137 = arith.addf %135, %136 : vector<256x128xf32>
    %cst_63 = arith.constant 0.000000e+00 : f32
    %138 = vector.broadcast %cst_63 : f32 to vector<256x128xf32>
    %139 = arith.maximumf %137, %138 : vector<256x128xf32>
    %cst_64 = arith.constant dense<0xFF800000> : vector<256xf32>
    %140 = vector.multi_reduction <maximumf>, %139, %cst_64 [1] : vector<256x128xf32> to vector<256xf32>
    %141 = vector.shape_cast %140 : vector<256xf32> to vector<256x1xf32>
    %142 = arith.index_cast %130 : i32 to index
    %c0_65 = arith.constant 0 : index
    %143 = vector.load %arg15[%142, %c0_65] : memref<1024x2xf32, #tpu.memory_space<vmem>>, vector<256x1xf32>
    %144 = arith.maximumf %143, %141 : vector<256x1xf32>
    %145 = arith.index_cast %130 : i32 to index
    %c0_66 = arith.constant 0 : index
    %146 = vector.load %arg15[%145, %c0_66] : memref<1024x2xf32, #tpu.memory_space<vmem>>, vector<256x1xf32>
    tpu.vector_store %arg15[%145, %c0_66], %144 {strides = array<i32>} : memref<1024x2xf32, #tpu.memory_space<vmem>>, vector<256x1xf32>,
    %cst_67 = arith.constant dense<0.000000e+00> : vector<256x128xf32>
    %147 = tpu.matmul %132, %68, %cst_67 {dimension_numbers = #tpu.dot_dimension_numbers<[1], [0], [0], [1], [0, 0, 1, 1], [], []>} : vector<256x128xbf16>, vector<128x128xbf16>, vector<256x128xf32> -> vector<256x128xf32>
    %148 = vector.broadcast %134 : vector<256x1xf32> to vector<256x128xf32>
    %149 = arith.addf %147, %148 : vector<256x128xf32>
    %cst_68 = arith.constant 0.000000e+00 : f32
    %150 = vector.broadcast %cst_68 : f32 to vector<256x128xf32>
    %151 = arith.maximumf %149, %150 : vector<256x128xf32>
    %cst_69 = arith.constant dense<0xFF800000> : vector<256xf32>
    %152 = vector.multi_reduction <maximumf>, %151, %cst_69 [1] : vector<256x128xf32> to vector<256xf32>
    %153 = vector.shape_cast %152 : vector<256xf32> to vector<256x1xf32>
    %154 = arith.index_cast %130 : i32 to index
    %c1_70 = arith.constant 1 : index
    %155 = vector.load %arg15[%154, %c1_70] : memref<1024x2xf32, #tpu.memory_space<vmem>>, vector<256x1xf32>
    %156 = arith.maximumf %155, %153 : vector<256x1xf32>
    %157 = arith.index_cast %130 : i32 to index
    %c1_71 = arith.constant 1 : index
    %158 = vector.load %arg15[%157, %c1_71] : memref<1024x2xf32, #tpu.memory_space<vmem>>, vector<256x1xf32>
    tpu.vector_store %arg15[%157, %c1_71], %156 {strides = array<i32>} : memref<1024x2xf32, #tpu.memory_space<vmem>>, vector<256x1xf32>,
    %c3_i32 = arith.constant 3 : i32
    %c256_i32_72 = arith.constant 256 : i32
    %159 = arith.muli %c3_i32, %c256_i32_72 : i32
    %160 = tpu.assume_multiple %159, 256 : i32
    %161 = arith.index_cast %160 : i32 to index
    %c0_73 = arith.constant 0 : index
    %162 = vector.load %arg6[%161, %c0_73] : memref<1024x128xbf16, #tpu.memory_space<vmem>>, vector<256x128xbf16>
    %163 = arith.index_cast %160 : i32 to index
    %c0_74 = arith.constant 0 : index
    %164 = vector.load %arg7[%163, %c0_74] : memref<1024x1xf32, #tpu.memory_space<vmem>>, vector<256x1xf32>
    %cst_75 = arith.constant dense<0.000000e+00> : vector<256x128xf32>
    %165 = tpu.matmul %162, %35, %cst_75 {dimension_numbers = #tpu.dot_dimension_numbers<[1], [0], [0], [1], [0, 0, 1, 1], [], []>} : vector<256x128xbf16>, vector<128x128xbf16>, vector<256x128xf32> -> vector<256x128xf32>
    %166 = vector.broadcast %164 : vector<256x1xf32> to vector<256x128xf32>
    %167 = arith.addf %165, %166 : vector<256x128xf32>
    %cst_76 = arith.constant 0.000000e+00 : f32
    %168 = vector.broadcast %cst_76 : f32 to vector<256x128xf32>
    %169 = arith.maximumf %167, %168 : vector<256x128xf32>
    %cst_77 = arith.constant dense<0xFF800000> : vector<256xf32>
    %170 = vector.multi_reduction <maximumf>, %169, %cst_77 [1] : vector<256x128xf32> to vector<256xf32>
    %171 = vector.shape_cast %170 : vector<256xf32> to vector<256x1xf32>
    %172 = arith.index_cast %160 : i32 to index
    %c0_78 = arith.constant 0 : index
    %173 = vector.load %arg15[%172, %c0_78] : memref<1024x2xf32, #tpu.memory_space<vmem>>, vector<256x1xf32>
    %174 = arith.maximumf %173, %171 : vector<256x1xf32>
    %175 = arith.index_cast %160 : i32 to index
    %c0_79 = arith.constant 0 : index
    %176 = vector.load %arg15[%175, %c0_79] : memref<1024x2xf32, #tpu.memory_space<vmem>>, vector<256x1xf32>
    tpu.vector_store %arg15[%175, %c0_79], %174 {strides = array<i32>} : memref<1024x2xf32, #tpu.memory_space<vmem>>, vector<256x1xf32>,
    %cst_80 = arith.constant dense<0.000000e+00> : vector<256x128xf32>
    %177 = tpu.matmul %162, %68, %cst_80 {dimension_numbers = #tpu.dot_dimension_numbers<[1], [0], [0], [1], [0, 0, 1, 1], [], []>} : vector<256x128xbf16>, vector<128x128xbf16>, vector<256x128xf32> -> vector<256x128xf32>
    %178 = vector.broadcast %164 : vector<256x1xf32> to vector<256x128xf32>
    %179 = arith.addf %177, %178 : vector<256x128xf32>
    %cst_81 = arith.constant 0.000000e+00 : f32
    %180 = vector.broadcast %cst_81 : f32 to vector<256x128xf32>
    %181 = arith.maximumf %179, %180 : vector<256x128xf32>
    %cst_82 = arith.constant dense<0xFF800000> : vector<256xf32>
    %182 = vector.multi_reduction <maximumf>, %181, %cst_82 [1] : vector<256x128xf32> to vector<256xf32>
    %183 = vector.shape_cast %182 : vector<256xf32> to vector<256x1xf32>
    %184 = arith.index_cast %160 : i32 to index
    %c1_83 = arith.constant 1 : index
    %185 = vector.load %arg15[%184, %c1_83] : memref<1024x2xf32, #tpu.memory_space<vmem>>, vector<256x1xf32>
    %186 = arith.maximumf %185, %183 : vector<256x1xf32>
    %187 = arith.index_cast %160 : i32 to index
    %c1_84 = arith.constant 1 : index
    %188 = vector.load %arg15[%187, %c1_84] : memref<1024x2xf32, #tpu.memory_space<vmem>>, vector<256x1xf32>
    tpu.vector_store %arg15[%187, %c1_84], %186 {strides = array<i32>} : memref<1024x2xf32, #tpu.memory_space<vmem>>, vector<256x1xf32>,
    %c4_i32 = arith.constant 4 : i32
    %c0_i32_85 = arith.constant 0 : i32
    %189 = arith.cmpi eq, %arg0, %c0_i32_85 : i32
    %190 = arith.extui %189 : i1 to i32
    %c0_i32_86 = arith.constant 0 : i32
    %191 = arith.cmpi ne, %190, %c0_i32_86 : i32
    scf.if %191 {
      %c0_87 = arith.constant 0 : index
      %c0_88 = arith.constant 0 : index
      %192 = vector.load %arg15[%c0_87, %c0_88] : memref<1024x2xf32, #tpu.memory_space<vmem>>, vector<1024x2xf32>
      %193 = arith.truncf %192 : vector<1024x2xf32> to vector<1024x2xbf16>
      %c0_89 = arith.constant 0 : index
      %c0_90 = arith.constant 0 : index
      %194 = vector.load %arg8[%c0_89, %c0_90] : memref<512x1024xbf16, #tpu.memory_space<vmem>>, vector<512x1024xbf16>
      %cst_91 = arith.constant dense<0.000000e+00> : vector<512x2xf32>
      %195 = tpu.matmul %194, %193, %cst_91 {dimension_numbers = #tpu.dot_dimension_numbers<[1], [0], [0], [1], [0, 0, 1, 1], [], []>} : vector<512x1024xbf16>, vector<1024x2xbf16>, vector<512x2xf32> -> vector<512x2xf32>
      %c0_92 = arith.constant 0 : index
      %c0_93 = arith.constant 0 : index
      %196 = vector.load %arg9[%c0_92, %c0_93] : memref<512x1xf32, #tpu.memory_space<vmem>>, vector<512x1xf32>
      %197 = vector.broadcast %196 : vector<512x1xf32> to vector<512x2xf32>
      %198 = arith.addf %195, %197 : vector<512x2xf32>
      %cst_94 = arith.constant 0.000000e+00 : f32
      %199 = vector.broadcast %cst_94 : f32 to vector<512x2xf32>
      %200 = arith.maximumf %198, %199 : vector<512x2xf32>
      %c0_95 = arith.constant 0 : index
      %c0_96 = arith.constant 0 : index
      %201 = vector.load %arg10[%c0_95, %c0_96] : memref<256x512xbf16, #tpu.memory_space<vmem>>, vector<256x512xbf16>
      %202 = arith.truncf %200 : vector<512x2xf32> to vector<512x2xbf16>
      %cst_97 = arith.constant dense<0.000000e+00> : vector<256x2xf32>
      %203 = tpu.matmul %201, %202, %cst_97 {dimension_numbers = #tpu.dot_dimension_numbers<[1], [0], [0], [1], [0, 0, 1, 1], [], []>} : vector<256x512xbf16>, vector<512x2xbf16>, vector<256x2xf32> -> vector<256x2xf32>
      %c0_98 = arith.constant 0 : index
      %c0_99 = arith.constant 0 : index
      %204 = vector.load %arg11[%c0_98, %c0_99] : memref<256x1xf32, #tpu.memory_space<vmem>>, vector<256x1xf32>
      %205 = vector.broadcast %204 : vector<256x1xf32> to vector<256x2xf32>
      %206 = arith.addf %203, %205 : vector<256x2xf32>
      %cst_100 = arith.constant 0.000000e+00 : f32
      %207 = vector.broadcast %cst_100 : f32 to vector<256x2xf32>
      %208 = arith.maximumf %206, %207 : vector<256x2xf32>
      %c0_101 = arith.constant 0 : index
      %c0_102 = arith.constant 0 : index
      %209 = vector.load %arg12[%c0_101, %c0_102] : memref<9x256xf32, #tpu.memory_space<vmem>>, vector<9x256xf32>
      %cst_103 = arith.constant dense<0.000000e+00> : vector<9x2xf32>
      %210 = tpu.matmul %209, %208, %cst_103 {dimension_numbers = #tpu.dot_dimension_numbers<[1], [0], [0], [1], [0, 0, 1, 1], [], []>} : vector<9x256xf32>, vector<256x2xf32>, vector<9x2xf32> -> vector<9x2xf32>
      %c0_104 = arith.constant 0 : index
      %c0_105 = arith.constant 0 : index
      %211 = vector.load %arg13[%c0_104, %c0_105] : memref<9x1xf32, #tpu.memory_space<vmem>>, vector<9x1xf32>
      %212 = vector.broadcast %211 : vector<9x1xf32> to vector<9x2xf32>
      %213 = arith.addf %210, %212 : vector<9x2xf32>
      %c0_106 = arith.constant 0 : index
      %c0_107 = arith.constant 0 : index
      %214 = vector.load %arg14[%c0_106, %c0_107] : memref<9x2xf32, #tpu.memory_space<vmem>>, vector<9x2xf32>
      tpu.vector_store %arg14[%c0_106, %c0_107], %213 {strides = array<i32>} : memref<9x2xf32, #tpu.memory_space<vmem>>, vector<9x2xf32>,
    } else {
    }
    return
  }
  func.func @transform_0(%arg0: i32) -> (i32, i32, i32) {
    %c0_i32 = arith.constant 0 : i32
    %c0_i32_0 = arith.constant 0 : i32
    %c0_i32_1 = arith.constant 0 : i32
    return %c0_i32, %c0_i32_0, %arg0 : i32, i32, i32
  }
  func.func @transform_1(%arg0: i32) -> (i32, i32) {
    %c0_i32 = arith.constant 0 : i32
    %c0_i32_0 = arith.constant 0 : i32
    %c0_i32_1 = arith.constant 0 : i32
    return %c0_i32, %c0_i32_0 : i32, i32
  }
  func.func @transform_2(%arg0: i32) -> (i32, i32) {
    %c0_i32 = arith.constant 0 : i32
    %c0_i32_0 = arith.constant 0 : i32
    %c0_i32_1 = arith.constant 0 : i32
    return %c0_i32, %c0_i32_0 : i32, i32
  }
  func.func @transform_3(%arg0: i32) -> (i32, i32) {
    %c0_i32 = arith.constant 0 : i32
    %c0_i32_0 = arith.constant 0 : i32
    %c0_i32_1 = arith.constant 0 : i32
    return %c0_i32, %c0_i32_0 : i32, i32
  }
  func.func @transform_4(%arg0: i32) -> (i32, i32) {
    %c0_i32 = arith.constant 0 : i32
    %c0_i32_0 = arith.constant 0 : i32
    %c0_i32_1 = arith.constant 0 : i32
    return %c0_i32, %c0_i32_0 : i32, i32
  }
  func.func @transform_5(%arg0: i32) -> (i32, i32) {
    %c0_i32 = arith.constant 0 : i32
    %c0_i32_0 = arith.constant 0 : i32
    %c0_i32_1 = arith.constant 0 : i32
    return %c0_i32, %c0_i32_0 : i32, i32
  }
  func.func @transform_6(%arg0: i32) -> (i32, i32) {
    %c0_i32 = arith.constant 0 : i32
    %c0_i32_0 = arith.constant 0 : i32
    %c0_i32_1 = arith.constant 0 : i32
    return %c0_i32, %c0_i32_0 : i32, i32
  }
  func.func @transform_7(%arg0: i32) -> (i32, i32) {
    %c0_i32 = arith.constant 0 : i32
    %c0_i32_0 = arith.constant 0 : i32
    %c0_i32_1 = arith.constant 0 : i32
    return %c0_i32, %c0_i32_0 : i32, i32
  }
  func.func @transform_8(%arg0: i32) -> (i32, i32) {
    %c0_i32 = arith.constant 0 : i32
    %c0_i32_0 = arith.constant 0 : i32
    %c0_i32_1 = arith.constant 0 : i32
    return %c0_i32, %c0_i32_0 : i32, i32
  }
  func.func @transform_9(%arg0: i32) -> (i32, i32) {
    %c0_i32 = arith.constant 0 : i32
    %c0_i32_0 = arith.constant 0 : i32
    %c0_i32_1 = arith.constant 0 : i32
    return %c0_i32, %c0_i32_0 : i32, i32
  }
  func.func @transform_10(%arg0: i32) -> (i32, i32) {
    %c0_i32 = arith.constant 0 : i32
    %c0_i32_0 = arith.constant 0 : i32
    %c0_i32_1 = arith.constant 0 : i32
    return %c0_i32, %c0_i32_0 : i32, i32
  }
  func.func @transform_11(%arg0: i32) -> (i32, i32) {
    %c0_i32 = arith.constant 0 : i32
    %c0_i32_0 = arith.constant 0 : i32
    %c0_i32_1 = arith.constant 0 : i32
    return %c0_i32, %c0_i32_0 : i32, i32
  }
  func.func @transform_12(%arg0: i32) -> (i32, i32) {
    %c0_i32 = arith.constant 0 : i32
    %c0_i32_0 = arith.constant 0 : i32
    %c0_i32_1 = arith.constant 0 : i32
    return %c0_i32, %c0_i32_0 : i32, i32
  }
  func.func @transform_13(%arg0: i32) -> (i32, i32) {
    %c0_i32 = arith.constant 0 : i32
    %c0_i32_0 = arith.constant 0 : i32
    %c0_i32_1 = arith.constant 0 : i32
    return %c0_i32, %c0_i32_0 : i32, i32
  }
}

</mosaic_0001>

<bundles_post_ra>
// kernel: tpu_custom_call.1
= control target key start
LH: loop header
LB: loop body
LE: loop exit
PB: predicated region body
PF: predicated region fallthrough
CT: control target
= control target key end

     0   :  { %18 = vsyncpa [#allocation4], 0  ;;  %s17011_s0 = inlined_call_operand.vmem [shape: f32[2,3,128], index: 0, kind: input, shape index: {}]   ;;  %s17012_s1 = inlined_call_operand.vmem [shape: f32[64,3], index: 1, kind: input, shape index: {}]   ;;  %s17013_s2 = inlined_call_operand.vmem [shape: f32[64,1], index: 2, kind: input, shape index: {}]   ;;  %s17014_s3 = inlined_call_operand.vmem [shape: bf16[128,64], index: 3, kind: input, shape index: {}]   ;;  %s17015_s4 = inlined_call_operand.vmem [shape: f32[128,1], index: 4, kind: input, shape index: {}]   ;;  %s17016_s5 = inlined_call_operand.hbm [shape: bf16[1024,128], index: 5, kind: input, shape index: {}]   ;;  %s17017_s6 = inlined_call_operand.vmem [shape: f32[1024,1], index: 6, kind: input, shape index: {}]   ;;  %s17018_s7 = inlined_call_operand.vmem [shape: bf16[512,1024], index: 7, kind: input, shape index: {}]   ;;  %s17019_s8 = inlined_call_operand.vmem [shape: f32[512,1], index: 8, kind: input, shape index: {}]   ;;  %s17020_s9 = inlined_call_operand.hbm [shape: bf16[256,512], index: 9, kind: input, shape index: {}]   ;;  %s17021_s10 = inlined_call_operand.vmem [shape: f32[256,1], index: 10, kind: input, shape index: {}]   ;;  %s17022_s11 = inlined_call_operand.vmem [shape: f32[9,256], index: 11, kind: input, shape index: {}]   ;;  %s17023_s12 = inlined_call_operand.vmem [shape: f32[9,1], index: 12, kind: input, shape index: {}]   ;;  %s17024_s13 = inlined_call_operand.vmem [shape: f32[9,2], index: 13, kind: output, shape index: {}]  }
   0x1   :  { %s34_s27 = sshll.u32 %s17016_s5, 4  ;;  %s35_s27 = int_to_ptr.hbm [resolvable:$true] %s34_s27 }
   0x2   :  { %19 = vsyncpa [#allocation6], 0  ;;  %s11124_s28 = smov [#allocation3]   ;;  %s53_s15 = sshll.u32 %s17020_s9, 4  ;;  %s54_s15 = int_to_ptr.hbm [resolvable:$true] %s53_s15 }
   0x3   :  { %s36_s29 = sshll.u32 %s11124_s28, 4  ;;  %s11125_s16 = smov 64   ;;  %s37_s29 = int_to_ptr.vmem [resolvable:$true] %s36_s29 }
   0x4   :  { %s11126_s17 = smov 4   ;;  %s11127_s18 = smov [#allocation5]  }
   0x5   :  { %42 = dma.hbm_to_vmem [thread:$0]  %s35_s27, 8192, %s37_s29, [#allocation4], %s11125_s16, %s11125_s16, %s11126_s17  }
   0x6   :  { %s55_s19 = sshll.u32 %s11127_s18, 4  ;;  %s11128_s20 = smov 256   ;;  %s56_s19 = int_to_ptr.vmem [resolvable:$true] %s55_s19 }
   0x7   :  { %s11129_s21 = smov 16  }
   0x8   :  { %61 = dma.hbm_to_vmem [thread:$0]  %s54_s15, 8192, %s56_s19, [#allocation6], %s11128_s20, %s11128_s20, %s11129_s21  }
   0x9   :  { %11120 = dma.done.wait [#allocation4], 8192  }
   0xa   :  { %11121 = vsyncadd [#allocation4], 4294959104 }
   0xb   :  { %11122 = dma.done.wait [#allocation6], 8192  }
   0xc   :  { %11123 = vsyncadd [#allocation6], 4294959104  ;;  %v11130_v0 = vmov 2   ;;  %v11131_v1 = vmov 1   ;;  %v217_v2 = vld [vmem:[%s17012_s1 + $0x30] sm:$0xff]  ;;  %v214_v3 = vld [vmem:[%s17012_s1 + $0x18] sm:$0xff] }
   0xd   :  { %11062 = vset.pattern.permute.xlu0 %v11130_v0  ;;  %11052 = vset.pattern.permute.xlu2 %v11130_v0  ;;  %v218_v4 = vld [vmem:[%s17012_s1 + $0x38] sm:$0xff]  ;;  %v216_v5 = vld [vmem:[%s17012_s1 + $0x28] sm:$0xff]  ;;  %v215_v6 = vld [vmem:[%s17012_s1 + $0x20] sm:$0xff]  ;;  %v11132_v8 = vmov 0   ;;  %vm586_vm0 = vcmask 523264   ;;  %vm81_vm1 = vcmask 15360  }
   0xe   :  { %11051 = vset.pattern.permute.xlu1 %v11131_v1  ;;  %342 = vperm.xlu2 %11052, %v217_v2   ;;  %v211_v7 = vld [vmem:[%s17012_s1] sm:$0xff]  ;;  %v372_v9 = vld [vmem:[%s17013_s2 + $0x30] sm:$0xff]  ;;  %v373_v10 = vld [vmem:[%s17013_s2 + $0x38] sm:$0xff]  ;;  %vm1391_vm2 = vcmask 7168   ;;  %vm1673_vm3 = vcmask 15368   ;;  %vm8952_vm4 = vcmask 8192  }
   0xf   :  { %293 = vperm.xlu1 %11051, %v217_v2   ;;  %330 = vperm.xlu0 %11062, %v214_v3   ;;  %v213_v11 = vld [vmem:[%s17012_s1 + $0x10] sm:$0xff]  ;;  %v369_v12 = vld [vmem:[%s17013_s2 + $0x18] sm:$0xff]  ;;  %v370_v13 = vld [vmem:[%s17013_s2 + $0x20] sm:$0xff] }
  0x10   :  { %v371_v14 = vld [vmem:[%s17013_s2 + $0x28] sm:$0xff]  ;;  %v462_v15 = vld [vmem:[%s17015_s4 + $0x60] sm:$0xff]  ;;  %v461_v17 = vld [vmem:[%s17015_s4 + $0x58] sm:$0xff] }
  0x11   :  { %v212_v16 = vld [vmem:[%s17012_s1 + $0x8] sm:$0xff]  ;;  %v456_v18 = vld [vmem:[%s17015_s4 + $0x30] sm:$0xff]  ;;  %v366_v23 = vld [vmem:[%s17013_s2] sm:$0xff] }
  0x12   :  { %v368_v19 = vld [vmem:[%s17013_s2 + $0x10] sm:$0xff]  ;;  %v455_v20 = vld [vmem:[%s17015_s4 + $0x28] sm:$0xff]  ;;  %v450_v24 = vld [vmem:[%s17015_s4] sm:$0xff] }
  0x13   :  { %v367_v22 = vld [vmem:[%s17013_s2 + $0x8] sm:$0xff]  ;;  %v465_v26 = vld [vmem:[%s17015_s4 + $0x78] sm:$0xff]  ;;  %v464_v27 = vld [vmem:[%s17015_s4 + $0x70] sm:$0xff] }
  0x14   :  { %v855_v28 = vld [vmem:[%s17017_s6 + $0x8] sm:$0xff]  ;;  %v460_v30 = vld [vmem:[%s17015_s4 + $0x50] sm:$0xff]  ;;  %v858_v32 = vld [vmem:[%s17017_s6 + $0x20] sm:$0xff] }
  0x15   :  { %v463_v31 = vld [vmem:[%s17015_s4 + $0x68] sm:$0xff]  ;;  %v458_v37 = vld [vmem:[%s17015_s4 + $0x40] sm:$0xff]  ;;  %v861_v38 = vld [vmem:[%s17017_s6 + $0x38] sm:$0xff] }
  0x16   :  { %346 = vperm.xlu2 %11052, %v218_v4   ;;  %v459_v36 = vld [vmem:[%s17015_s4 + $0x48] sm:$0xff]  ;;  %v454_v42 = vld [vmem:[%s17015_s4 + $0x20] sm:$0xff]  ;;  %v457_v43 = vld [vmem:[%s17015_s4 + $0x38] sm:$0xff] }
  0x17   :  { %297 = vperm.xlu1 %11051, %v218_v4   ;;  %11063 = vset.pattern.permute.xlu0 %v11131_v1  ;;  %v864_v44 = vld [vmem:[%s17017_s6 + $0x50] sm:$0xff]  ;;  %v453_v47 = vld [vmem:[%s17015_s4 + $0x18] sm:$0xff]  ;;  %v867_v50 = vld [vmem:[%s17017_s6 + $0x68] sm:$0xff] }
  0x18   :  { %289 = vperm.xlu0 %11063, %v216_v5   ;;  %v452_v48 = vld [vmem:[%s17015_s4 + $0x10] sm:$0xff]  ;;  %v9000_v51 = vld [vmem:[%s17011_s0 + $0x4] sm:$0x7]  ;;  %v210_v52 = vld [vmem:[%s17011_s0] sm:$0x7] }
  0x19   :  { %v11353_v55 = vperm.slane %v9000_v51, 1  ;;  %v11355_v56 = vperm.slane %v210_v52, 1  ;;  %v11357_v57 = vperm.slane %v9000_v51, 0  ;;  %v11359_v58 = vperm.slane %v210_v52, 0  ;;  %v854_v59 = vld [vmem:[%s17017_s6] sm:$0xff]  ;;  %v451_v60 = vld [vmem:[%s17015_s4 + $0x8] sm:$0xff] }
  0x1e   :  { %11054 = vset.pattern.permute.xlu2 %v11131_v1 }
  0x1f   :  { %11053 = vset.pattern.permute.xlu1 %v11132_v8  ;;  %285 = vperm.xlu2 %11054, %v215_v6  }
  0x20   :  { %246 = vperm.xlu1 %11053, %v216_v5   ;;  %269 = vperm.xlu0 %11063, %v211_v7  }
  0x27   :  { %11056 = vset.pattern.permute.xlu2 %v11130_v0 }
  0x28   :  { %11055 = vset.pattern.permute.xlu1 %v11130_v0  ;;  %11066 = vset.pattern.permute.xlu0 %v11132_v8 }
  0x29   :  { %334 = vperm.xlu1 %11055, %v215_v6   ;;  %338 = vperm.xlu2 %11056, %v216_v5  }
  0x2a   :  { %251 = vperm.xlu0 %11066, %v217_v2   ;;  %v11376_v2 = vperm.slane %v210_v52, 2 }
  0x31   :  { %11057 = vset.pattern.permute.xlu1 %v11132_v8  ;;  %11058 = vset.pattern.permute.xlu2 %v11132_v8 }
  0x32   :  { %256 = vperm.xlu0 %11066, %v218_v4   ;;  %406 = vperm.xlu1 %11057, %v372_v9  }
  0x33   :  { %411 = vperm.xlu2 %11058, %v373_v10  }
  0x3a   :  { %241 = vperm.xlu0 %11066, %v215_v6   ;;  %236 = vperm.xlu1 %11057, %v214_v3  }
  0x3b   :  { %11059 = vset.pattern.permute.xlu2 %v11131_v1 }
  0x3c   :  { %277 = vperm.xlu2 %11059, %v213_v11  }
  0x42   :  { %231 = vperm.xlu0 %11066, %v213_v11   ;;  %11060 = vset.pattern.permute.xlu1 %v11131_v1 }
  0x43   :  { %281 = vperm.xlu1 %11060, %v214_v3  }
  0x44   :  { %11061 = vset.pattern.permute.xlu2 %v11130_v0 }
  0x45   :  { %326 = vperm.xlu2 %11061, %v213_v11  }
  0x4a   :  { %391 = vperm.xlu0 %11066, %v369_v12  }
  0x4b   :  { %11064 = vset.pattern.permute.xlu1 %v11132_v8 }
  0x4c   :  { %396 = vperm.xlu1 %11064, %v370_v13  }
  0x4d   :  { %11065 = vset.pattern.permute.xlu2 %v11132_v8 }
  0x4e   :  { %401 = vperm.xlu2 %11065, %v371_v14  }
  0x52   :  { %528 = vperm.xlu0 %11066, %v462_v15   ;;  %v857_v15 = vld [vmem:[%s17017_s6 + $0x18] sm:$0xff] }
  0x54   :  { %221 = vperm.xlu1 %11064, %v211_v7  }
  0x56   :  { %226 = vperm.xlu2 %11065, %v212_v16  }
  0x5a   :  { %523 = vperm.xlu0 %11066, %v461_v17  }
  0x5c   :  { %11067 = vset.pattern.permute.xlu1 %v11131_v1  ;;  %v11374_v1 = vperm.slane %v9000_v51, 2 }
  0x5d   :  { %273 = vperm.xlu1 %11067, %v212_v16  }
  0x5e   :  { %11068 = vset.pattern.permute.xlu2 %v11130_v0 }
  0x5f   :  { %318 = vperm.xlu2 %11068, %v211_v7  }
  0x62   :  { %498 = vperm.xlu0 %11066, %v456_v18  }
  0x65   :  { %11069 = vset.pattern.permute.xlu1 %v11130_v0  ;;  %v870_v0 = vld [vmem:[%s17017_s6 + $0x80] sm:$0xff] }
  0x66   :  { %322 = vperm.xlu1 %11069, %v212_v16   ;;  %v856_v16 = vld [vmem:[%s17017_s6 + $0x10] sm:$0xff] }
  0x67   :  { %11070 = vset.pattern.permute.xlu2 %v11132_v8 }
  0x68   :  { %386 = vperm.xlu2 %11070, %v368_v19   ;;  %v11271_v21 = vpop.permute.xlu2 %342 }
  0x69   :  { %v356_v7 = vmul.f32 %v11376_v2, %v11271_v21 }
  0x6a   :  { %493 = vperm.xlu0 %11066, %v455_v20  }
  0x6e   :  { %11071 = vset.pattern.permute.xlu1 %v11132_v8  ;;  %v719_v8 = vmul.f32 %v11374_v1, %v11271_v21 }
  0x6f   :  { %376 = vperm.xlu1 %11071, %v366_v23   ;;  %v873_v23 = vld [vmem:[%s17017_s6 + $0x98] sm:$0xff] }
  0x70   :  { %381 = vperm.xlu2 %11070, %v367_v22   ;;  %v11282_v25 = vpop.permute.xlu2 %346 }
  0x71   :  { %v357_v17 = vmul.f32 %v11376_v2, %v11282_v25  ;;  %v720_v18 = vmul.f32 %v11374_v1, %v11282_v25 }
  0x72   :  { %468 = vperm.xlu0 %11066, %v450_v24  }
  0x77   :  { %538 = vperm.xlu1 %11071, %v464_v27  }
  0x78   :  { %543 = vperm.xlu2 %11070, %v465_v26  }
  0x79   :  { %v11293_v29 = vpop.permute.xlu2 %285 }
  0x7a   :  { %893 = vperm.xlu0 %11066, %v855_v28  }
  0x7f   :  { %533 = vperm.xlu1 %11071, %v463_v31  }
  0x80   :  { %518 = vperm.xlu2 %11070, %v460_v30  }
  0x81   :  { %v294_v33 = vpop.permute.xlu1 %293  ;;  %v11304_v34 = vpop.permute.xlu0 %330 }
  0x82   :  { %908 = vperm.xlu0 %11066, %v858_v32   ;;  %v307_v3 = vmul.f32 %v11355_v56, %v294_v33  ;;  %v702_v4 = vmul.f32 %v11353_v55, %v294_v33 }
  0x83   :  { %v11306_v35 = vpop.permute.xlu2 %338 }
  0x87   :  { %508 = vperm.xlu1 %11071, %v458_v37   ;;  %v859_v37 = vld [vmem:[%s17017_s6 + $0x28] sm:$0xff] }
  0x88   :  { %513 = vperm.xlu2 %11070, %v459_v36   ;;  %v860_v36 = vld [vmem:[%s17017_s6 + $0x30] sm:$0xff] }
  0x89   :  { %v298_v39 = vpop.permute.xlu1 %297 }
  0x8a   :  { %923 = vperm.xlu0 %11066, %v861_v38   ;;  %v11317_v40 = vpop.permute.xlu0 %289  ;;  %v308_v10 = vmul.f32 %v11355_v56, %v298_v39  ;;  %v703_v11 = vmul.f32 %v11353_v55, %v298_v39 }
  0x8b   :  { %v701_v51 = vmul.f32 %v11353_v55, %v11317_v40 }
  0x8d   :  { %v11319_v41 = vpop.permute.xlu2 %411 }
  0x8f   :  { %503 = vperm.xlu1 %11071, %v457_v43  }
  0x90   :  { %488 = vperm.xlu2 %11070, %v454_v42  }
  0x92   :  { %938 = vperm.xlu0 %11066, %v864_v44   ;;  %v11330_v45 = vpop.permute.xlu1 %246  ;;  %v11332_v46 = vpop.permute.xlu0 %269 }
  0x93   :  { %v265_v52 = vmul.f32 %v11359_v58, %v11330_v45 }
  0x96   :  { %v11340_v49 = vpop.permute.xlu2 %277 }
  0x97   :  { %478 = vperm.xlu1 %11071, %v452_v48  }
  0x98   :  { %483 = vperm.xlu2 %11070, %v453_v47  }
  0x9a   :  { %953 = vperm.xlu0 %11066, %v867_v50   ;;  %v306_v50 = vmul.f32 %v11355_v56, %v11317_v40  ;;  %v863_v40 = vld [vmem:[%s17017_s6 + $0x48] sm:$0xff] }
  0x9b   :  { %v11351_v53 = vpop.permute.xlu1 %334 }
  0x9c   :  { %v252_v54 = vpop.permute.xlu0 %251 }
  0x9d   :  { %v266_v61 = vmul.f32 %v11359_v58, %v252_v54  ;;  %v693_v62 = vmul.f32 %v11357_v57, %v252_v54  ;;  %v692_v54 = vmul.f32 %v11357_v57, %v11330_v45 }
  0x9f   :  { %v11369_v63 = vpop.permute.xlu2 %326  ;;  %473 = vperm.xlu1 %11071, %v451_v60   ;;  %v315_v5 = vadd.f32 %v307_v3, %v266_v61  ;;  %v710_v6 = vadd.f32 %v702_v4, %v693_v62  ;;  %v355_v60 = vmul.f32 %v11376_v2, %v11306_v35  ;;  %v718_v61 = vmul.f32 %v11374_v1, %v11306_v35  ;;  %v862_v62 = vld [vmem:[%s17017_s6 + $0x40] sm:$0xff] }
  0xa0   :  { %888 = vperm.xlu2 %11070, %v854_v59   ;;  %v709_v45 = vadd.f32 %v701_v51, %v692_v54 }
  0xa1   :  { %v364_v21 = vadd.f32 %v356_v7, %v315_v5  ;;  %v727_v22 = vadd.f32 %v719_v8, %v710_v6 }
  0xa2   :  { %968 = vperm.xlu0 %11066, %v870_v0   ;;  %v314_v0 = vadd.f32 %v306_v50, %v265_v52 }
  0xa4   :  { %v257_v9 = vpop.permute.xlu0 %256  ;;  %v407_v14 = vpop.permute.xlu1 %406 }
  0xa5   :  { %v267_v12 = vmul.f32 %v11359_v58, %v257_v9  ;;  %v694_v13 = vmul.f32 %v11357_v57, %v257_v9  ;;  %v420_v26 = vadd.f32 %v407_v14, %v364_v21  ;;  %v735_v27 = vadd.f32 %v727_v22, %v407_v14 }
  0xa6   :  { %v305_v9 = vmul.f32 %v11355_v56, %v11293_v29  ;;  %v698_v21 = vmul.f32 %v11353_v55, %v11340_v49  ;;  %v726_v22 = vadd.f32 %v718_v61, %v709_v45  ;;  %v869_v45 = vld [vmem:[%s17017_s6 + $0x78] sm:$0xff] }
  0xa7   :  { %v316_v19 = vadd.f32 %v308_v10, %v267_v12  ;;  %v711_v20 = vadd.f32 %v703_v11, %v694_v13  ;;  %898 = vperm.xlu1 %11071, %v856_v16   ;;  %v428_v38 = vmax.f32 %v420_v26, 0.0  ;;  %v743_v42 = vmax.f32 %v735_v27, 0.0  ;;  %v879_v11 = vld [vmem:[%s17017_s6 + $0xc8] sm:$0xff] }
  0xa8   :  { %v11401_v24 = vpop.permute.xlu2 %401  ;;  %903 = vperm.xlu2 %11070, %v857_v15   ;;  %v700_v10 = vmul.f32 %v11353_v55, %v11293_v29  ;;  %v716_v29 = vmul.f32 %v11374_v1, %v11304_v34  ;;  %v354_v26 = vmul.f32 %v11376_v2, %v11351_v53  ;;  %v717_v27 = vmul.f32 %v11374_v1, %v11351_v53 }
  0xa9   :  { %v365_v28 = vadd.f32 %v357_v17, %v316_v19  ;;  %v728_v30 = vadd.f32 %v720_v18, %v711_v20  ;;  %v353_v17 = vmul.f32 %v11376_v2, %v11304_v34  ;;  %v303_v20 = vmul.f32 %v11355_v56, %v11340_v49  ;;  %v866_v49 = vld [vmem:[%s17017_s6 + $0x60] sm:$0xff] }
  0xaa   :  { %983 = vperm.xlu0 %11066, %v873_v23   ;;  %v363_v23 = vadd.f32 %v355_v60, %v314_v0  ;;  %v352_v34 = vmul.f32 %v11376_v2, %v11369_v63 }
  0xab   :  { %v421_v31 = vadd.f32 %v11319_v41, %v365_v28  ;;  %v736_v25 = vadd.f32 %v728_v30, %v11319_v41  ;;  %v876_v41 = vld [vmem:[%s17017_s6 + $0xb0] sm:$0xff]  ;;  %v715_v28 = vmul.f32 %v11374_v1, %v11369_v63 }
  0xac   :  { %v242_v32 = vpop.permute.xlu0 %241  ;;  %v237_v33 = vpop.permute.xlu1 %236  ;;  %v419_v53 = vadd.f32 %v11401_v24, %v363_v23 }
  0xad   :  { %v429_v39 = vmax.f32 %v421_v31, 0.0  ;;  %v744_v43 = vmax.f32 %v736_v25, 0.0  ;;  %v264_v3 = vmul.f32 %v11359_v58, %v242_v32  ;;  %v691_v4 = vmul.f32 %v11357_v57, %v242_v32 }
  0xae   :  { %v263_v6 = vmul.f32 %v11359_v58, %v237_v33  ;;  %v690_v7 = vmul.f32 %v11357_v57, %v237_v33  ;;  %v865_v33 = vld [vmem:[%s17017_s6 + $0x58] sm:$0xff] }
  0xaf   :  { %v449_v44 = vpack.c.bf16 %v429_v39, %v428_v38  ;;  %v748_v47 = vpack.c.bf16 %v744_v43, %v743_v42  ;;  %913 = vperm.xlu1 %11071, %v859_v37   ;;  %v313_v18 = vadd.f32 %v305_v9, %v264_v3  ;;  %v708_v19 = vadd.f32 %v700_v10, %v691_v4  ;;  %v868_v3 = vld [vmem:[%s17017_s6 + $0x70] sm:$0xff]  ;;  %v885_v10 = vld [vmem:[%s17017_s6 + $0xf8] sm:$0xff] }
  0xb0   :  { %918 = vperm.xlu2 %11070, %v860_v36   ;;  %v11411_v48 = vpop.permute.xlu2 %226  ;;  %v734_v36 = vadd.f32 %v726_v22, %v11401_v24 }
  0xb1   :  { %615 = vmatpush.bf16.msra.mxu0 %v449_v44  ;;  %11033 = vmatpush.bf16.msra.mxu2 %v449_v44  ;;  %v362_v38 = vadd.f32 %v354_v26, %v313_v18  ;;  %v725_v39 = vadd.f32 %v717_v27, %v708_v19  ;;  %v882_v44 = vld [vmem:[%s17017_s6 + $0xe0] sm:$0xff] }
  0xb2   :  { %753 = vmatpush.bf16.msra.mxu1 %v748_v47  ;;  %11037 = vmatpush.bf16.msra.mxu3 %v748_v47  ;;  %v742_v60 = vmax.f32 %v734_v36, 0.0  ;;  %v9085_v19 = vld [vmem:[%s17017_s6 + $0x160] sm:$0xff] }
  0xb3   :  { %998 = vperm.xlu0 %11066, %v876_v41  }
  0xb4   :  { %v232_v59 = vpop.permute.xlu0 %231 }
  0xb5   :  { %v282_v5 = vpop.permute.xlu1 %281  ;;  %v262_v12 = vmul.f32 %v11359_v58, %v232_v59  ;;  %v689_v13 = vmul.f32 %v11357_v57, %v232_v59  ;;  %v427_v59 = vmax.f32 %v419_v53, 0.0 }
  0xb6   :  { %v304_v35 = vmul.f32 %v11355_v56, %v282_v5  ;;  %v699_v8 = vmul.f32 %v11353_v55, %v282_v5 }
  0xb7   :  { %928 = vperm.xlu1 %11071, %v862_v62   ;;  %v311_v30 = vadd.f32 %v303_v20, %v262_v12  ;;  %v706_v31 = vadd.f32 %v698_v21, %v689_v13  ;;  %v871_v12 = vld [vmem:[%s17017_s6 + $0x88] sm:$0xff]  ;;  %v261_v20 = vmul.f32 %v11359_v58, %v11411_v48  ;;  %v688_v21 = vmul.f32 %v11357_v57, %v11411_v48 }
  0xb8   :  { %933 = vperm.xlu2 %11070, %v863_v40   ;;  %v312_v14 = vadd.f32 %v304_v35, %v263_v6  ;;  %v707_v15 = vadd.f32 %v699_v8, %v690_v7 }
  0xb9   :  { %v11449_v16 = vpop.permute.xlu2 %318  ;;  %v360_v50 = vadd.f32 %v352_v34, %v311_v30  ;;  %v723_v51 = vadd.f32 %v715_v28, %v706_v31  ;;  %v301_v28 = vmul.f32 %v11355_v56, %v11332_v46  ;;  %v696_v30 = vmul.f32 %v11353_v55, %v11332_v46  ;;  %v877_v46 = vld [vmem:[%s17017_s6 + $0xb8] sm:$0xff] }
  0xba   :  { %v724_v25 = vadd.f32 %v716_v29, %v707_v15  ;;  %v361_v32 = vadd.f32 %v353_v17, %v312_v14  ;;  %v9103_v14 = vld [vmem:[%s17017_s6 + $0x1f0] sm:$0xff]  ;;  %v875_v15 = vld [vmem:[%s17017_s6 + $0xa8] sm:$0xff]  ;;  %v874_v17 = vld [vmem:[%s17017_s6 + $0xa0] sm:$0xff]  ;;  %v350_v48 = vmul.f32 %v11376_v2, %v11449_v16 }
  0xbb   :  { %1013 = vperm.xlu0 %11066, %v879_v11   ;;  %v872_v11 = vld [vmem:[%s17017_s6 + $0x90] sm:$0xff] }
  0xbc   :  { %v392_v37 = vpop.permute.xlu0 %391 }
  0xbd   :  { %v417_v47 = vadd.f32 %v392_v37, %v361_v32  ;;  %v732_v41 = vadd.f32 %v724_v25, %v392_v37 }
  0xbe   :  { %v397_v63 = vpop.permute.xlu1 %396 }
  0xbf   :  { %v418_v42 = vadd.f32 %v397_v63, %v362_v38  ;;  %v733_v43 = vadd.f32 %v725_v39, %v397_v63  ;;  %943 = vperm.xlu1 %11071, %v865_v33   ;;  %v425_v5 = vmax.f32 %v417_v47, 0.0  ;;  %v740_v7 = vmax.f32 %v732_v41, 0.0  ;;  %v881_v63 = vld [vmem:[%s17017_s6 + $0xd8] sm:$0xff] }
  0xc0   :  { %948 = vperm.xlu2 %11070, %v866_v49  }
  0xc1   :  { %v426_v54 = vmax.f32 %v418_v42, 0.0  ;;  %v741_v24 = vmax.f32 %v733_v43, 0.0  ;;  %v880_v42 = vld [vmem:[%s17017_s6 + $0xd0] sm:$0xff] }
  0xc2   :  { %v387_v52 = vpop.permute.xlu2 %386 }
  0xc3   :  { %v416_v61 = vadd.f32 %v387_v52, %v360_v50  ;;  %v731_v40 = vadd.f32 %v723_v51, %v387_v52  ;;  %1028 = vperm.xlu0 %11066, %v882_v44   ;;  %v448_v62 = vpack.c.bf16 %v427_v59, %v426_v54  ;;  %v747_v0 = vpack.c.bf16 %v742_v60, %v741_v24  ;;  %v9099_v52 = vld [vmem:[%s17017_s6 + $0x1d0] sm:$0xff]  ;;  %v10641_v54 = vld [vmem:[%s17014_s3] sm:$0xff]  ;;  %v10646_v59 = vld [vmem:[%s17014_s3 + $0x28] sm:$0xff] }
  0xc4   :  { %v884_v24 = vld [vmem:[%s17017_s6 + $0xf0] sm:$0xff]  ;;  %v883_v60 = vld [vmem:[%s17017_s6 + $0xe8] sm:$0xff] }
  0xc5   :  { %v424_v4 = vmax.f32 %v416_v61, 0.0  ;;  %v739_v6 = vmax.f32 %v731_v40, 0.0  ;;  %616 = vmatpush.bf16.msra.mxu0 %v448_v62  ;;  %11034 = vmatpush.bf16.msra.mxu2 %v448_v62  ;;  %v9082_v61 = vld [vmem:[%s17017_s6 + $0x148] sm:$0xff]  ;;  %v9088_v40 = vld [vmem:[%s17017_s6 + $0x178] sm:$0xff]  ;;  %v9087_v62 = vld [vmem:[%s17017_s6 + $0x170] sm:$0xff] }
  0xc6   :  { %754 = vmatpush.bf16.msra.mxu1 %v747_v0  ;;  %11038 = vmatpush.bf16.msra.mxu3 %v747_v0  ;;  %v222_v35 = vpop.permute.xlu1 %221  ;;  %v9079_v0 = vld [vmem:[%s17017_s6 + $0x130] sm:$0xff] }
  0xc7   :  { %v447_v8 = vpack.c.bf16 %v425_v5, %v424_v4  ;;  %v746_v9 = vpack.c.bf16 %v740_v7, %v739_v6  ;;  %958 = vperm.xlu1 %11071, %v868_v3   ;;  %v260_v22 = vmul.f32 %v11359_v58, %v222_v35  ;;  %v687_v23 = vmul.f32 %v11357_v57, %v222_v35  ;;  %v10647_v3 = vld [vmem:[%s17014_s3 + $0x30] sm:$0xff]  ;;  %v9086_v4 = vld [vmem:[%s17017_s6 + $0x168] sm:$0xff]  ;;  %v9104_v5 = vld [vmem:[%s17017_s6 + $0x1f8] sm:$0xff] }
  0xc8   :  { %963 = vperm.xlu2 %11070, %v869_v45   ;;  %v713_v57 = vmul.f32 %v11374_v1, %v11449_v16  ;;  %v10642_v45 = vld [vmem:[%s17014_s3 + $0x8] sm:$0xff]  ;;  %v9096_v6 = vld [vmem:[%s17017_s6 + $0x1b8] sm:$0xff]  ;;  %v9083_v7 = vld [vmem:[%s17017_s6 + $0x150] sm:$0xff] }
  0xc9   :  { %617 = vmatpush.bf16.msra.mxu0 %v447_v8  ;;  %11035 = vmatpush.bf16.msra.mxu2 %v447_v8  ;;  %v309_v58 = vadd.f32 %v301_v28, %v260_v22  ;;  %v704_v32 = vadd.f32 %v696_v30, %v687_v23  ;;  %v9101_v35 = vld [vmem:[%s17017_s6 + $0x1e0] sm:$0xff]  ;;  %v9095_v22 = vld [vmem:[%s17017_s6 + $0x1b0] sm:$0xff]  ;;  %v9074_v30 = vld [vmem:[%s17017_s6 + $0x108] sm:$0xff] }
  0xca   :  { %755 = vmatpush.bf16.msra.mxu1 %v746_v9  ;;  %11039 = vmatpush.bf16.msra.mxu3 %v746_v9  ;;  %v9093_v8 = vld [vmem:[%s17017_s6 + $0x1a0] sm:$0xff]  ;;  %v10643_v9 = vld [vmem:[%s17014_s3 + $0x10] sm:$0xff] }
  0xcb   :  { %1043 = vperm.xlu0 %11066, %v885_v10   ;;  %v358_v16 = vadd.f32 %v350_v48, %v309_v58  ;;  %v10648_v10 = vld [vmem:[%s17014_s3 + $0x38] sm:$0xff]  ;;  %v10645_v23 = vld [vmem:[%s17014_s3 + $0x20] sm:$0xff]  ;;  %v9075_v28 = vld [vmem:[%s17017_s6 + $0x110] sm:$0xff]  ;;  %v529_v48 = vpop.permute.xlu0 %528 }
  0xcf   :  { %973 = vperm.xlu1 %11071, %v871_v12   ;;  %v274_v13 = vpop.permute.xlu1 %273  ;;  %v9084_v12 = vld [vmem:[%s17017_s6 + $0x158] sm:$0xff] }
  0xd0   :  { %978 = vperm.xlu2 %11070, %v872_v11   ;;  %v302_v29 = vmul.f32 %v11355_v56, %v274_v13  ;;  %v697_v18 = vmul.f32 %v11353_v55, %v274_v13  ;;  %v878_v56 = vld [vmem:[%s17017_s6 + $0xc0] sm:$0xff]  ;;  %v382_v55 = vpop.permute.xlu2 %381  ;;  %v9100_v11 = vld [vmem:[%s17017_s6 + $0x1d8] sm:$0xff] }
  0xd1   :  { %v9076_v13 = vld [vmem:[%s17017_s6 + $0x118] sm:$0xff] }
  0xd2   :  { %v310_v31 = vadd.f32 %v302_v29, %v261_v20  ;;  %v705_v25 = vadd.f32 %v697_v18, %v688_v21  ;;  %v10644_v29 = vld [vmem:[%s17014_s3 + $0x18] sm:$0xff]  ;;  %v9090_v20 = vld [vmem:[%s17017_s6 + $0x188] sm:$0xff]  ;;  %v9077_v21 = vld [vmem:[%s17017_s6 + $0x120] sm:$0xff] }
  0xd3   :  { %1924 = vperm.xlu0 %11066, %v9103_v14   ;;  %v9097_v14 = vld [vmem:[%s17017_s6 + $0x1c0] sm:$0xff]  ;;  %v9080_v18 = vld [vmem:[%s17017_s6 + $0x138] sm:$0xff] }
  0xd7   :  { %988 = vperm.xlu1 %11071, %v874_v17   ;;  %v9073_v17 = vld [vmem:[%s17017_s6 + $0x100] sm:$0xff] }
  0xd8   :  { %993 = vperm.xlu2 %11070, %v875_v15   ;;  %v323_v26 = vpop.permute.xlu1 %322  ;;  %v9081_v15 = vld [vmem:[%s17017_s6 + $0x140] sm:$0xff]  ;;  %v544_v58 = vpop.permute.xlu2 %543 }
  0xd9   :  { %v351_v27 = vmul.f32 %v11376_v2, %v323_v26  ;;  %v714_v34 = vmul.f32 %v11374_v1, %v323_v26  ;;  %v9102_v2 = vld [vmem:[%s17017_s6 + $0x1e8] sm:$0xff]  ;;  %v721_v1 = vadd.f32 %v713_v57, %v704_v32  ;;  %v524_v57 = vpop.permute.xlu0 %523 }
  0xda   :  { %v9094_v26 = vld [vmem:[%s17017_s6 + $0x1a8] sm:$0xff] }
  0xdb   :  { %1834 = vperm.xlu0 %11066, %v9085_v19   ;;  %v359_v49 = vadd.f32 %v351_v27, %v310_v31  ;;  %v722_v33 = vadd.f32 %v714_v34, %v705_v25  ;;  %v9098_v19 = vld [vmem:[%s17017_s6 + $0x1c8] sm:$0xff]  ;;  %v9091_v34 = vld [vmem:[%s17017_s6 + $0x190] sm:$0xff]  ;;  %v9092_v31 = vld [vmem:[%s17017_s6 + $0x198] sm:$0xff] }
  0xdc   :  { %v9078_v27 = vld [vmem:[%s17017_s6 + $0x128] sm:$0xff]  ;;  %v9089_v25 = vld [vmem:[%s17017_s6 + $0x180] sm:$0xff] }
  0xdd   :  { %v415_v53 = vadd.f32 %v382_v55, %v359_v49  ;;  %v730_v36 = vadd.f32 %v722_v33, %v382_v55 }
  0xdf   :  { %1003 = vperm.xlu1 %11071, %v877_v46   ;;  %v423_v44 = vmax.f32 %v415_v53, 0.0  ;;  %v738_v41 = vmax.f32 %v730_v36, 0.0 }
  0xe0   :  { %1008 = vperm.xlu2 %11070, %v878_v56   ;;  %v11673_v49 = vpop.permute.xlu2 %518 }
  0xe1   :  { %v377_v37 = vpop.permute.xlu1 %376  ;;  %v11671_v32 = vpop.permute.xlu0 %498 }
  0xe2   :  { %v414_v38 = vadd.f32 %v377_v37, %v358_v16  ;;  %v729_v39 = vadd.f32 %v721_v1, %v377_v37 }
  0xe3   :  { %1919 = vperm.xlu0 %11066, %v9102_v2  }
  0xe4   :  { %v422_v43 = vmax.f32 %v414_v38, 0.0  ;;  %v737_v47 = vmax.f32 %v729_v39, 0.0 }
  0xe6   :  { %v446_v50 = vpack.c.bf16 %v423_v44, %v422_v43  ;;  %v745_v51 = vpack.c.bf16 %v738_v41, %v737_v47 }
  0xe7   :  { %1018 = vperm.xlu1 %11071, %v880_v42  }
  0xe8   :  { %1023 = vperm.xlu2 %11070, %v881_v63   ;;  %618 = vmatpush.bf16.msra.mxu0 %v446_v50  ;;  %v11681_v1 = vpop.permute.xlu2 %513 }
  0xe9   :  { %11036 = vmatpush.bf16.msra.mxu2 %v446_v50  ;;  %756 = vmatpush.bf16.msra.mxu1 %v745_v51  ;;  %v11679_v46 = vpop.permute.xlu0 %493  ;;  %v539_v55 = vpop.permute.xlu1 %538 }
  0xea   :  { %11040 = vmatpush.bf16.msra.mxu3 %v745_v51 }
  0xeb   :  { %1904 = vperm.xlu0 %11066, %v9099_v52   ;;  %8992 = vmatmul.msk.bf16.vlgmr.msra.gmra.mxu0 %vm586_vm0, %v10641_v54 }
  0xec   :  { %8997 = vmatmul.msk.bf16.vlgmr.msra.gmra.mxu2 %vm586_vm0, %v10646_v59  ;;  %9001 = vmatmul.msk.bf16.vlgmr.msra.gmra.mxu1 %vm586_vm0, %v10641_v54 }
  0xed   :  { %9006 = vmatmul.msk.bf16.vlgmr.msra.gmra.mxu3 %vm586_vm0, %v10646_v59 }
  0xef   :  { %1033 = vperm.xlu1 %11071, %v883_v60  }
  0xf0   :  { %1038 = vperm.xlu2 %11070, %v884_v24   ;;  %v11691_v43 = vpop.permute.xlu2 %488 }
  0xf1   :  { %v11687_v37 = vpop.permute.xlu0 %468  ;;  %v534_v38 = vpop.permute.xlu1 %533 }
  0xf3   :  { %1819 = vperm.xlu0 %11066, %v9082_v61  }
  0xf7   :  { %1844 = vperm.xlu1 %11071, %v9087_v62  }
  0xf8   :  { %1849 = vperm.xlu2 %11070, %v9088_v40   ;;  %v11703_v59 = vpop.permute.xlu2 %483 }
  0xf9   :  { %v11695_v41 = vpop.permute.xlu0 %893  ;;  %v11697_v51 = vpop.permute.xlu1 %508 }
  0xfb   :  { %1804 = vperm.xlu0 %11066, %v9079_v0   ;;  %8993 = vmatmul.msk.bf16.gmra.mxu0 %vm586_vm0, %v10642_v45 }
  0xfc   :  { %8998 = vmatmul.msk.bf16.gmra.mxu2 %vm586_vm0, %v10647_v3  ;;  %9002 = vmatmul.msk.bf16.gmra.mxu1 %vm586_vm0, %v10642_v45 }
  0xfd   :  { %9007 = vmatmul.msk.bf16.gmra.mxu3 %vm586_vm0, %v10647_v3 }
  0xff   :  { %1929 = vperm.xlu1 %11071, %v9104_v5  }
 0x100   :  { %1839 = vperm.xlu2 %11070, %v9086_v4   ;;  %v11713_v45 = vpop.permute.xlu2 %888 }
 0x101   :  { %v11707_v40 = vpop.permute.xlu0 %908  ;;  %v11711_v0 = vpop.permute.xlu1 %503 }
 0x103   :  { %1889 = vperm.xlu0 %11066, %v9096_v6  }
 0x107   :  { %1914 = vperm.xlu1 %11071, %v9101_v35  }
 0x108   :  { %1824 = vperm.xlu2 %11070, %v9083_v7  }
 0x109   :  { %v11719_v7 = vpop.permute.xlu0 %923  ;;  %v11721_v35 = vpop.permute.xlu1 %478 }
 0x10b   :  { %1874 = vperm.xlu0 %11066, %v9093_v8   ;;  %8994 = vmatmul.msk.bf16.gmra.mxu0 %vm586_vm0, %v10643_v9 }
 0x10c   :  { %8999 = vmatmul.msk.bf16.gmra.mxu2 %vm586_vm0, %v10648_v10  ;;  %9003 = vmatmul.msk.bf16.gmra.mxu1 %vm586_vm0, %v10643_v9 }
 0x10d   :  { %9008 = vmatmul.msk.bf16.gmra.mxu3 %vm586_vm0, %v10648_v10 }
 0x10f   :  { %1829 = vperm.xlu1 %11071, %v9084_v12  }
 0x110   :  { %1909 = vperm.xlu2 %11070, %v9100_v11   ;;  %v11723_v11 = vpop.permute.xlu2 %903 }
 0x113   :  { %1789 = vperm.xlu0 %11066, %v9076_v13  }
 0x117   :  { %1814 = vperm.xlu1 %11071, %v9081_v15  }
 0x118   :  { %1894 = vperm.xlu2 %11070, %v9097_v14  }
 0x11b   :  { %1774 = vperm.xlu0 %11066, %v9073_v17   ;;  %8995 = vmatmul.msk.bf16.gmra.mxu0 %vm586_vm0, %v10644_v29 }
 0x11c   :  { %9004 = vmatmul.msk.bf16.gmra.mxu1 %vm586_vm0, %v10644_v29 }
 0x11f   :  { %1899 = vperm.xlu1 %11071, %v9098_v19  }
 0x120   :  { %1809 = vperm.xlu2 %11070, %v9080_v18  }
 0x123   :  { %1859 = vperm.xlu0 %11066, %v9090_v20  }
 0x127   :  { %1884 = vperm.xlu1 %11071, %v9095_v22  }
 0x128   :  { %1794 = vperm.xlu2 %11070, %v9077_v21  }
 0x12b   :  { %8996 = vmatmul.msk.bf16.gmra.mxu0 %vm586_vm0, %v10645_v23 }
 0x12c   :  { %9005 = vmatmul.msk.bf16.gmra.mxu1 %vm586_vm0, %v10645_v23 }
 0x12f   :  { %1799 = vperm.xlu1 %11071, %v9078_v27  }
 0x130   :  { %1879 = vperm.xlu2 %11070, %v9094_v26  }
 0x137   :  { %1784 = vperm.xlu1 %11071, %v9075_v28  }
 0x138   :  { %1864 = vperm.xlu2 %11070, %v9091_v34  }
 0x13f   :  { %1869 = vperm.xlu1 %11071, %v9092_v31  }
 0x140   :  { %1779 = vperm.xlu2 %11070, %v9074_v30  }
 0x147   :  { %1854 = vperm.xlu1 %11071, %v9089_v25  }
 0x168   :  { %v11675_v33 = vpop.f32.mrf.mxu0 }
 0x169   :  { %v11677_v56 = vpop.f32.mrf.mxu1 }
 0x16f   :  { %v645_v2 = vpop.f32.mrf.mxu2 }
 0x170   :  { %v783_v16 = vpop.f32.mrf.mxu3  ;;  %v11683_v53 = vpop.f32.mrf.mxu0 }
 0x171   :  { %v11685_v36 = vpop.f32.mrf.mxu1 }
 0x177   :  { %v647_v39 = vpop.f32.mrf.mxu2 }
 0x178   :  { %v785_v63 = vpop.f32.mrf.mxu3  ;;  %v11689_v42 = vpop.f32.mrf.mxu0  ;;  %v648_v27 = vadd.f32 %v647_v39, %v524_v57  ;;  %v784_v39 = vadd.f32 %v783_v16, %v11673_v49 }
 0x179   :  { %v11693_v44 = vpop.f32.mrf.mxu1  ;;  %v786_v30 = vadd.f32 %v785_v63, %v524_v57 }
 0x17a   :  { %v671_v57 = vmax.f32 %v648_v27, 0.0 }
 0x17f   :  { %v650_v47 = vpop.f32.mrf.mxu2 }
 0x180   :  { %v788_v50 = vpop.f32.mrf.mxu3  ;;  %v11699_v52 = vpop.f32.mrf.mxu0  ;;  %v651_v18 = vadd.f32 %v650_v47, %v529_v48 }
 0x181   :  { %v11701_v54 = vpop.f32.mrf.mxu1  ;;  %v789_v22 = vadd.f32 %v788_v50, %v529_v48  ;;  %v11734_v48 = vpop.permute.xlu1 %473  ;;  %v809_v50 = vmax.f32 %v786_v30, 0.0 }
 0x183   :  { %v810_v47 = vmax.f32 %v789_v22, 0.0 }
 0x187   :  { %v652_v24 = vpop.f32.mrf.mxu2 }
 0x188   :  { %v790_v60 = vpop.f32.mrf.mxu3  ;;  %v11705_v61 = vpop.f32.mrf.mxu0  ;;  %v653_v12 = vadd.f32 %v652_v24, %v534_v38 }
 0x189   :  { %v11709_v62 = vpop.f32.mrf.mxu1  ;;  %v791_v15 = vadd.f32 %v790_v60, %v534_v38  ;;  %v672_v38 = vmax.f32 %v651_v18, 0.0  ;;  %v11743_v60 = vpop.permute.xlu2 %918 }
 0x18a   :  { %v673_v34 = vmax.f32 %v653_v12, 0.0 }
 0x18b   :  { %v811_v31 = vmax.f32 %v791_v15, 0.0 }
 0x18c   :  { %v11739_v63 = vpack.c.bf16 %v673_v34, %v672_v38 }
 0x18d   :  { %v11741_v24 = vpack.c.bf16 %v811_v31, %v810_v47 }
 0x18f   :  { %v655_v3 = vpop.f32.mrf.mxu2 }
 0x190   :  { %v793_v4 = vpop.f32.mrf.mxu3  ;;  %v11715_v5 = vpop.f32.mrf.mxu0  ;;  %v656_v8 = vadd.f32 %v655_v3, %v539_v55 }
 0x191   :  { %v11717_v6 = vpop.f32.mrf.mxu1  ;;  %v794_v9 = vadd.f32 %v793_v4, %v539_v55  ;;  %v11729_v55 = vpop.permute.xlu0 %938 }
 0x192   :  { %v674_v19 = vmax.f32 %v656_v8, 0.0 }
 0x193   :  { %v812_v23 = vmax.f32 %v794_v9, 0.0 }
 0x197   :  { %v657_v10 = vpop.f32.mrf.mxu2 }
 0x198   :  { %v658_v13 = vadd.f32 %v657_v10, %v544_v58  ;;  %v795_v14 = vpop.f32.mrf.mxu3  ;;  %v635_v29 = vpop.f32.mrf.mxu0 }
 0x199   :  { %v796_v17 = vadd.f32 %v795_v14, %v544_v58  ;;  %v773_v21 = vpop.f32.mrf.mxu1  ;;  %v646_v58 = vadd.f32 %v645_v2, %v11673_v49  ;;  %v808_v49 = vmax.f32 %v784_v39, 0.0  ;;  %v11757_v9 = vpop.permute.xlu0 %953  ;;  %v636_v30 = vadd.f32 %v635_v29, %v11671_v32 }
 0x19a   :  { %v675_v20 = vmax.f32 %v658_v13, 0.0  ;;  %v11759_v10 = vpop.permute.xlu1 %898  ;;  %v11761_v14 = vpop.permute.xlu2 %933  ;;  %v631_v29 = vadd.f32 %v11705_v61, %v11691_v43  ;;  %v766_v61 = vadd.f32 %v11701_v54, %v11703_v59 }
 0x19b   :  { %v813_v26 = vmax.f32 %v796_v17, 0.0  ;;  %v670_v3 = vmax.f32 %v646_v58, 0.0  ;;  %v11751_v8 = vpack.c.bf16 %v809_v50, %v808_v49 }
 0x19c   :  { %v11725_v28 = vpack.c.bf16 %v675_v20, %v674_v19 }
 0x19d   :  { %v11727_v25 = vpack.c.bf16 %v813_v26, %v812_v23  ;;  %v11749_v16 = vpack.c.bf16 %v671_v57, %v670_v3  ;;  %v633_v57 = vadd.f32 %v11715_v5, %v11679_v46  ;;  %v769_v5 = vadd.f32 %v11709_v62, %v11691_v43 }
 0x19e   :  { %1142 = vmatpush.bf16.msrb.mxu2 %v11725_v28  ;;  %2028 = vmatpush.bf16.msrb.mxu0 %v11725_v28  ;;  %v626_v43 = vadd.f32 %v11689_v42, %v11721_v35  ;;  %v664_v62 = vmax.f32 %v631_v29, 0.0  ;;  %v623_v42 = vadd.f32 %v11683_v53, %v11734_v48  ;;  %v759_v53 = vadd.f32 %v11677_v56, %v11687_v37  ;;  %v10651_v29 = vld [vmem:[#allocation3 + $0x10] sm:$0xff] }
 0x19f   :  { %1424 = vmatpush.bf16.msrb.mxu3 %v11727_v25  ;;  %2310 = vmatpush.bf16.msrb.mxu1 %v11727_v25 }
 0x1a0   :  { %v637_v2 = vpop.f32.mrf.mxu0 }
 0x1a1   :  { %v775_v4 = vpop.f32.mrf.mxu1  ;;  %v638_v19 = vadd.f32 %v637_v2, %v11711_v0  ;;  %v11767_v23 = vpop.permute.xlu0 %968 }
 0x1a2   :  { %1143 = vmatpush.bf16.msrb.mxu2 %v11739_v63  ;;  %2029 = vmatpush.bf16.msrb.mxu0 %v11739_v63  ;;  %v11769_v26 = vpop.permute.xlu1 %913  ;;  %v776_v27 = vadd.f32 %v775_v4, %v11711_v0  ;;  %v11775_v47 = vpop.permute.xlu2 %948  ;;  %v771_v0 = vadd.f32 %v11717_v6, %v11679_v46  ;;  %v628_v46 = vadd.f32 %v11699_v52, %v11703_v59  ;;  %v665_v6 = vmax.f32 %v633_v57, 0.0 }
 0x1a3   :  { %1425 = vmatpush.bf16.msrb.mxu3 %v11741_v24  ;;  %2311 = vmatpush.bf16.msrb.mxu1 %v11741_v24  ;;  %v667_v50 = vmax.f32 %v638_v19, 0.0  ;;  %v801_v19 = vmax.f32 %v766_v61, 0.0 }
 0x1a4   :  { %v803_v49 = vmax.f32 %v771_v0, 0.0  ;;  %v663_v54 = vmax.f32 %v628_v46, 0.0  ;;  %v11815_v59 = vpack.c.bf16 %v665_v6, %v664_v62  ;;  %v10652_v6 = vld [vmem:[#allocation3 + $0x18] sm:$0xff] }
 0x1a6   :  { %1144 = vmatpush.bf16.msrb.mxu2 %v11749_v16  ;;  %2030 = vmatpush.bf16.msrb.mxu0 %v11749_v16 }
 0x1a7   :  { %1426 = vmatpush.bf16.msrb.mxu3 %v11751_v8  ;;  %2312 = vmatpush.bf16.msrb.mxu1 %v11751_v8 }
 0x1a8   :  { %v640_v12 = vpop.f32.mrf.mxu0 }
 0x1a9   :  { %v778_v13 = vpop.f32.mrf.mxu1  ;;  %v641_v15 = vadd.f32 %v640_v12, %v11697_v51 }
 0x1aa   :  { %v779_v17 = vadd.f32 %v778_v13, %v11697_v51  ;;  %v774_v51 = vadd.f32 %v773_v21, %v11671_v32  ;;  %v666_v32 = vmax.f32 %v636_v30, 0.0  ;;  %v11805_v13 = vpop.permute.xlu0 %983  ;;  %v11807_v52 = vpop.permute.xlu1 %928 }
 0x1ab   :  { %v668_v31 = vmax.f32 %v641_v15, 0.0  ;;  %v764_v15 = vadd.f32 %v11693_v44, %v11721_v35  ;;  %v621_v44 = vadd.f32 %v11675_v33, %v11687_v37  ;;  %v662_v35 = vmax.f32 %v626_v43, 0.0  ;;  %v10649_v37 = vld [vmem:[#allocation3] sm:$0xff] }
 0x1ac   :  { %v806_v38 = vmax.f32 %v779_v17, 0.0  ;;  %v804_v21 = vmax.f32 %v774_v51, 0.0  ;;  %v11795_v4 = vpack.c.bf16 %v667_v50, %v666_v32  ;;  %v802_v17 = vmax.f32 %v769_v5, 0.0  ;;  %v10667_v32 = vld [vmem:[#allocation3 + $0x90] sm:$0xff] }
 0x1ad   :  { %v798_v33 = vmax.f32 %v759_v53, 0.0 }
 0x1b0   :  { %v642_v18 = vpop.f32.mrf.mxu0 }
 0x1b1   :  { %v643_v20 = vadd.f32 %v642_v18, %v11681_v1  ;;  %v780_v22 = vpop.f32.mrf.mxu1  ;;  %v761_v18 = vadd.f32 %v11685_v36, %v11734_v48  ;;  %v661_v36 = vmax.f32 %v623_v42, 0.0  ;;  %v677_v48 = vpack.c.bf16 %v663_v54, %v662_v35  ;;  %v10669_v42 = vld [vmem:[#allocation3 + $0xa0] sm:$0xff]  ;;  %v10670_v35 = vld [vmem:[#allocation3 + $0xa8] sm:$0xff] }
 0x1b2   :  { %v781_v34 = vadd.f32 %v780_v22, %v11681_v1  ;;  %v805_v1 = vmax.f32 %v776_v27, 0.0  ;;  %v11821_v22 = vpop.permute.xlu2 %963  ;;  %v800_v27 = vmax.f32 %v764_v15, 0.0  ;;  %v11831_v51 = vpop.permute.xlu0 %998 }
 0x1b3   :  { %v669_v58 = vmax.f32 %v643_v20, 0.0  ;;  %v11819_v20 = vpack.c.bf16 %v803_v49, %v802_v17  ;;  %v10668_v49 = vld [vmem:[#allocation3 + $0x98] sm:$0xff]  ;;  %v10653_v17 = vld [vmem:[#allocation3 + $0x20] sm:$0xff] }
 0x1b4   :  { %v807_v39 = vmax.f32 %v781_v34, 0.0  ;;  %v11799_v12 = vpack.c.bf16 %v805_v1, %v804_v21  ;;  %v799_v34 = vmax.f32 %v761_v18, 0.0  ;;  %v815_v30 = vpack.c.bf16 %v801_v19, %v800_v27 }
 0x1b5   :  { %v11779_v2 = vpack.c.bf16 %v669_v58, %v668_v31  ;;  %v660_v31 = vmax.f32 %v621_v44, 0.0  ;;  %v10654_v44 = vld [vmem:[#allocation3 + $0x28] sm:$0xff] }
 0x1b6   :  { %v11783_v3 = vpack.c.bf16 %v807_v39, %v806_v38  ;;  %v11833_v38 = vpop.permute.xlu1 %943  ;;  %v814_v56 = vpack.c.bf16 %v799_v34, %v798_v33  ;;  %v10665_v39 = vld [vmem:[#allocation3 + $0x80] sm:$0xff]  ;;  %v10655_v34 = vld [vmem:[#allocation3 + $0x30] sm:$0xff] }
 0x1b7   :  { %1145 = vmatpush.bf16.msrb.mxu2 %v11779_v2  ;;  %2031 = vmatpush.bf16.msrb.mxu0 %v11779_v2  ;;  %v676_v58 = vpack.c.bf16 %v661_v36, %v660_v31 }
 0x1b8   :  { %1427 = vmatpush.bf16.msrb.mxu3 %v11783_v3  ;;  %2313 = vmatpush.bf16.msrb.mxu1 %v11783_v3 }
 0x1ba   :  { %v11835_v57 = vpop.permute.xlu2 %978  ;;  %v11845_v50 = vpop.permute.xlu0 %1013 }
 0x1bb   :  { %1146 = vmatpush.bf16.msrb.mxu2 %v11795_v4  ;;  %2032 = vmatpush.bf16.msrb.mxu0 %v11795_v4  ;;  %17056 = vst [vmem:[#allocation9_spill] sm:$0xff] %v11845_v50 }
 0x1bc   :  { %1428 = vmatpush.bf16.msrb.mxu3 %v11799_v12  ;;  %2314 = vmatpush.bf16.msrb.mxu1 %v11799_v12 }
 0x1be   :  { %v11847_v0 = vpop.permute.xlu1 %958 }
 0x1bf   :  { %1147 = vmatpush.bf16.msrb.mxu2 %v11815_v59  ;;  %2033 = vmatpush.bf16.msrb.mxu0 %v11815_v59 }
 0x1c0   :  { %1429 = vmatpush.bf16.msrb.mxu3 %v11819_v20  ;;  %2315 = vmatpush.bf16.msrb.mxu1 %v11819_v20 }
 0x1c3   :  { %1148 = vmatpush.bf16.msrb.mxu2 %v677_v48  ;;  %2034 = vmatpush.bf16.msrb.mxu0 %v677_v48 }
 0x1c4   :  { %1430 = vmatpush.bf16.msrb.mxu3 %v815_v30  ;;  %2316 = vmatpush.bf16.msrb.mxu1 %v815_v30 }
 0x1c7   :  { %1149 = vmatpush.bf16.msrb.mxu2 %v676_v58  ;;  %2035 = vmatpush.bf16.msrb.mxu0 %v676_v58 }
 0x1c8   :  { %1431 = vmatpush.bf16.msrb.mxu3 %v814_v56  ;;  %2317 = vmatpush.bf16.msrb.mxu1 %v814_v56 }
 0x1ca   :  { %1150 = vmatmul.bf16.vlgmr.msrb.gmra.mxu2 %v10649_v37  ;;  %2036 = vmatmul.bf16.vlgmr.msrb.gmra.mxu0 %v10665_v39 }
 0x1cb   :  { %2913 = vmatpush.bf16.msra.mxu2 %v11725_v28  ;;  %3798 = vmatpush.bf16.msra.mxu0 %v11725_v28  ;;  %v11853_v28 = vpop.permute.xlu2 %993 }
 0x1cc   :  { %3195 = vmatpush.bf16.msra.mxu3 %v11727_v25  ;;  %4080 = vmatpush.bf16.msra.mxu1 %v11727_v25  ;;  %v10650_v25 = vld [vmem:[#allocation3 + $0x8] sm:$0xff] }
 0x1cd   :  { %1432 = vmatmul.bf16.vlgmr.msrb.gmra.mxu3 %v10649_v37  ;;  %2318 = vmatmul.bf16.vlgmr.msrb.gmra.mxu1 %v10665_v39 }
 0x1cf   :  { %2914 = vmatpush.bf16.msra.mxu2 %v11739_v63  ;;  %3799 = vmatpush.bf16.msra.mxu0 %v11739_v63  ;;  %v10666_v63 = vld [vmem:[#allocation3 + $0x88] sm:$0xff] }
 0x1d0   :  { %3196 = vmatpush.bf16.msra.mxu3 %v11741_v24  ;;  %4081 = vmatpush.bf16.msra.mxu1 %v11741_v24  ;;  %v11861_v24 = vpop.permute.xlu0 %1028 }
 0x1d1   :  { %17057 = vst [vmem:[#allocation10_spill] sm:$0xff] %v11861_v24 }
 0x1d3   :  { %2915 = vmatpush.bf16.msra.mxu2 %v11749_v16  ;;  %3800 = vmatpush.bf16.msra.mxu0 %v11749_v16  ;;  %v11863_v16 = vpop.permute.xlu1 %973 }
 0x1d4   :  { %3197 = vmatpush.bf16.msra.mxu3 %v11751_v8  ;;  %4082 = vmatpush.bf16.msra.mxu1 %v11751_v8  ;;  %v11867_v8 = vpop.permute.xlu2 %1008 }
 0x1d7   :  { %2916 = vmatpush.bf16.msra.mxu2 %v11779_v2  ;;  %3801 = vmatpush.bf16.msra.mxu0 %v11779_v2 }
 0x1d8   :  { %3198 = vmatpush.bf16.msra.mxu3 %v11783_v3  ;;  %4083 = vmatpush.bf16.msra.mxu1 %v11783_v3  ;;  %v11873_v2 = vpop.permute.xlu0 %1043 }
 0x1d9   :  { %17058 = vst [vmem:[#allocation11_spill] sm:$0xff] %v11873_v2 }
 0x1da   :  { %1155 = vmatmul.bf16.gmra.mxu2 %v10650_v25  ;;  %2041 = vmatmul.bf16.gmra.mxu0 %v10666_v63 }
 0x1db   :  { %2917 = vmatpush.bf16.msra.mxu2 %v11795_v4  ;;  %3802 = vmatpush.bf16.msra.mxu0 %v11795_v4  ;;  %v11875_v1 = vpop.permute.xlu1 %988 }
 0x1dc   :  { %3199 = vmatpush.bf16.msra.mxu3 %v11799_v12  ;;  %4084 = vmatpush.bf16.msra.mxu1 %v11799_v12  ;;  %v11877_v3 = vpop.permute.xlu2 %1023 }
 0x1dd   :  { %1437 = vmatmul.bf16.gmra.mxu3 %v10650_v25  ;;  %2323 = vmatmul.bf16.gmra.mxu1 %v10666_v63  ;;  %17059 = vst [vmem:[#allocation12_spill] sm:$0xff] %v11877_v3  ;;  %v10656_v25 = vld [vmem:[#allocation3 + $0x38] sm:$0xff]  ;;  %v10674_v3 = vld [vmem:[#allocation3 + $0xc8] sm:$0xff] }
 0x1de   :  { %v10672_v63 = vld [vmem:[#allocation3 + $0xb8] sm:$0xff] }
 0x1df   :  { %2918 = vmatpush.bf16.msra.mxu2 %v11815_v59  ;;  %3803 = vmatpush.bf16.msra.mxu0 %v11815_v59 }
 0x1e0   :  { %3200 = vmatpush.bf16.msra.mxu3 %v11819_v20  ;;  %4085 = vmatpush.bf16.msra.mxu1 %v11819_v20  ;;  %v11879_v5 = vpop.permute.xlu0 %1924 }
 0x1e1   :  { %17060 = vst [vmem:[#allocation13_spill] sm:$0xff] %v11879_v5 }
 0x1e3   :  { %2919 = vmatpush.bf16.msra.mxu2 %v677_v48  ;;  %3804 = vmatpush.bf16.msra.mxu0 %v677_v48  ;;  %v11881_v21 = vpop.permute.xlu1 %1003 }
 0x1e4   :  { %3201 = vmatpush.bf16.msra.mxu3 %v815_v30  ;;  %4086 = vmatpush.bf16.msra.mxu1 %v815_v30  ;;  %v11883_v46 = vpop.permute.xlu2 %1038  ;;  %v10671_v30 = vld [vmem:[#allocation3 + $0xb0] sm:$0xff] }
 0x1e5   :  { %17061 = vst [vmem:[#allocation14_spill] sm:$0xff] %v11883_v46 }
 0x1e7   :  { %2920 = vmatpush.bf16.msra.mxu2 %v676_v58  ;;  %3805 = vmatpush.bf16.msra.mxu0 %v676_v58 }
 0x1e8   :  { %3202 = vmatpush.bf16.msra.mxu3 %v814_v56  ;;  %4087 = vmatpush.bf16.msra.mxu1 %v814_v56  ;;  %v11885_v4 = vpop.permute.xlu0 %1834 }
 0x1ea   :  { %1160 = vmatmul.bf16.gmra.mxu2 %v10651_v29  ;;  %2046 = vmatmul.bf16.gmra.mxu0 %v10667_v32 }
 0x1eb   :  { %v11887_v61 = vpop.permute.xlu1 %1018 }
 0x1ec   :  { %17062 = vst [vmem:[#allocation15_spill] sm:$0xff] %v11887_v61  ;;  %v11889_v12 = vpop.permute.xlu2 %1849 }
 0x1ed   :  { %1442 = vmatmul.bf16.gmra.mxu3 %v10651_v29  ;;  %2328 = vmatmul.bf16.gmra.mxu1 %v10667_v32 }
 0x1f0   :  { %v11891_v43 = vpop.permute.xlu0 %1919 }
 0x1f1   :  { %17063 = vst [vmem:[#allocation16_spill] sm:$0xff] %v11891_v43 }
 0x1f3   :  { %v11893_v62 = vpop.permute.xlu1 %1033 }
 0x1f4   :  { %17064 = vst [vmem:[#allocation17_spill] sm:$0xff] %v11893_v62  ;;  %v11895_v15 = vpop.permute.xlu2 %1839 }
 0x1f8   :  { %v11897_v54 = vpop.permute.xlu0 %1904 }
 0x1f9   :  { %17065 = vst [vmem:[#allocation18_spill] sm:$0xff] %v11897_v54 }
 0x1fa   :  { %1165 = vmatmul.bf16.gmra.mxu2 %v10652_v6  ;;  %2051 = vmatmul.bf16.gmra.mxu0 %v10668_v49 }
 0x1fb   :  { %v11899_v59 = vpop.permute.xlu1 %1844 }
 0x1fc   :  { %v11901_v18 = vpop.permute.xlu2 %1824 }
 0x1fd   :  { %1447 = vmatmul.bf16.gmra.mxu3 %v10652_v6  ;;  %2333 = vmatmul.bf16.gmra.mxu1 %v10668_v49  ;;  %v10657_v49 = vld [vmem:[#allocation3 + $0x40] sm:$0xff] }
 0x200   :  { %v11903_v19 = vpop.permute.xlu0 %1819 }
 0x203   :  { %v11905_v20 = vpop.permute.xlu1 %1929 }
 0x204   :  { %17066 = vst [vmem:[#allocation19_spill] sm:$0xff] %v11905_v20  ;;  %v11907_v53 = vpop.permute.xlu2 %1909 }
 0x205   :  { %17067 = vst [vmem:[#allocation20_spill] sm:$0xff] %v11907_v53 }
 0x208   :  { %v11909_v27 = vpop.permute.xlu0 %1804 }
 0x20a   :  { %1170 = vmatmul.bf16.gmra.mxu2 %v10653_v17  ;;  %2056 = vmatmul.bf16.gmra.mxu0 %v10669_v42 }
 0x20b   :  { %v11911_v36 = vpop.permute.xlu1 %1914 }
 0x20c   :  { %17068 = vst [vmem:[#allocation21_spill] sm:$0xff] %v11911_v36  ;;  %v11913_v48 = vpop.permute.xlu2 %1894 }
 0x20d   :  { %1452 = vmatmul.bf16.gmra.mxu3 %v10653_v17  ;;  %2338 = vmatmul.bf16.gmra.mxu1 %v10669_v42 }
 0x210   :  { %v11915_v31 = vpop.permute.xlu0 %1889 }
 0x213   :  { %v11917_v33 = vpop.permute.xlu1 %1829 }
 0x214   :  { %v11919_v58 = vpop.permute.xlu2 %1809 }
 0x218   :  { %v11921_v56 = vpop.permute.xlu0 %1874 }
 0x21a   :  { %1175 = vmatmul.bf16.gmra.mxu2 %v10654_v44  ;;  %2061 = vmatmul.bf16.gmra.mxu0 %v10670_v35 }
 0x21b   :  { %v11923_v37 = vpop.permute.xlu1 %1814 }
 0x21c   :  { %v11925_v39 = vpop.permute.xlu2 %1794 }
 0x21d   :  { %1457 = vmatmul.bf16.gmra.mxu3 %v10654_v44  ;;  %2343 = vmatmul.bf16.gmra.mxu1 %v10670_v35  ;;  %v10673_v44 = vld [vmem:[#allocation3 + $0xc0] sm:$0xff] }
 0x220   :  { %v11927_v29 = vpop.permute.xlu0 %1789 }
 0x223   :  { %v11929_v32 = vpop.permute.xlu1 %1899 }
 0x224   :  { %v11931_v6 = vpop.permute.xlu2 %1879 }
 0x228   :  { %v1775_v17 = vpop.permute.xlu0 %1774 }
 0x22a   :  { %1180 = vmatmul.bf16.gmra.mxu2 %v10655_v34  ;;  %2066 = vmatmul.bf16.gmra.mxu0 %v10671_v30 }
 0x22b   :  { %v11933_v42 = vpop.permute.xlu1 %1884 }
 0x22c   :  { %v11935_v20 = vpop.permute.xlu2 %1864 }
 0x22d   :  { %1462 = vmatmul.bf16.gmra.mxu3 %v10655_v34  ;;  %2348 = vmatmul.bf16.gmra.mxu1 %v10671_v30 }
 0x23a   :  { %1185 = vmatmul.bf16.gmra.mxu2 %v10656_v25  ;;  %2071 = vmatmul.bf16.gmra.mxu0 %v10672_v63 }
 0x23d   :  { %1467 = vmatmul.bf16.gmra.mxu3 %v10656_v25  ;;  %2353 = vmatmul.bf16.gmra.mxu1 %v10672_v63 }
 0x247   :  { %v2037_v35 = vpop.f32.mrf.mxu0 }
 0x248   :  { %v2038_v30 = vadd.f32 %v2037_v35, %v1775_v17 }
 0x24a   :  { %v2319_v34 = vpop.f32.mrf.mxu1  ;;  %1190 = vmatmul.bf16.gmra.mxu2 %v10657_v49  ;;  %v2117_v25 = vmax.f32 %v2038_v30, 0.0  ;;  %2076 = vmatmul.bf16.gmra.mxu0 %v10673_v44 }
 0x24b   :  { %v2320_v2 = vadd.f32 %v2319_v34, %v1775_v17  ;;  %v11939_v17 = vpop.permute.xlu1 %1799 }
 0x24c   :  { %2149 = vmax.xlane.f32.xlu0 %v2117_v25 }
 0x24d   :  { %1472 = vmatmul.bf16.gmra.mxu3 %v10657_v49  ;;  %v2399_v63 = vmax.f32 %v2320_v2, 0.0  ;;  %2358 = vmatmul.bf16.gmra.mxu1 %v10673_v44  ;;  %v1151_v5 = vpop.f32.mrf.mxu2  ;;  %v1780_v49 = vpop.permute.xlu2 %1779 }
 0x24e   :  { %v1152_v62 = vadd.f32 %v1151_v5, %v11713_v45 }
 0x24f   :  { %2431 = vmax.xlane.f32.xlu2 %v2399_v63  ;;  %v2039_v36 = vpop.f32.mrf.mxu0  ;;  %v10658_v63 = vld [vmem:[#allocation3 + $0x48] sm:$0xff] }
 0x250   :  { %v1433_v46 = vpop.f32.mrf.mxu3  ;;  %v1231_v24 = vmax.f32 %v1152_v62, 0.0  ;;  %v2040_v53 = vadd.f32 %v2039_v36, %v1780_v49 }
 0x251   :  { %v1434_v43 = vadd.f32 %v1433_v46, %v11713_v45 }
 0x252   :  { %v2321_v35 = vpop.f32.mrf.mxu1  ;;  %1263 = vmax.xlane.f32.xlu1 %v1231_v24  ;;  %v2118_v24 = vmax.f32 %v2040_v53, 0.0  ;;  %v10659_v53 = vld [vmem:[#allocation3 + $0x50] sm:$0xff] }
 0x253   :  { %v1513_v34 = vmax.f32 %v1434_v43, 0.0  ;;  %v2322_v44 = vadd.f32 %v2321_v35, %v1780_v49  ;;  %v1785_v62 = vpop.permute.xlu1 %1784 }
 0x255   :  { %v1153_v2 = vpop.f32.mrf.mxu2  ;;  %v2400_v46 = vmax.f32 %v2322_v44, 0.0 }
 0x257   :  { %1545 = vmax.xlane.f32.xlu2 %v1513_v34  ;;  %v2042_v5 = vpop.f32.mrf.mxu0 }
 0x258   :  { %v1435_v30 = vpop.f32.mrf.mxu3  ;;  %v2043_v34 = vadd.f32 %v2042_v5, %v1785_v62  ;;  %v10675_v5 = vld [vmem:[#allocation3 + $0xd0] sm:$0xff] }
 0x259   :  { %v1436_v25 = vadd.f32 %v1435_v30, %v11695_v41  ;;  %v1154_v30 = vadd.f32 %v1153_v2, %v11695_v41 }
 0x25a   :  { %v2324_v61 = vpop.f32.mrf.mxu1  ;;  %2081 = vmatmul.bf16.gmra.mxu0 %v10674_v3  ;;  %1195 = vmatmul.bf16.gmra.mxu2 %v10658_v63  ;;  %v2119_v50 = vmax.f32 %v2043_v34, 0.0 }
 0x25b   :  { %v1514_v45 = vmax.f32 %v1436_v25, 0.0  ;;  %v2325_v43 = vadd.f32 %v2324_v61, %v1785_v62  ;;  %2433 = vmax.xlane.f32.xlu1 %v2400_v46 }
 0x25d   :  { %1477 = vmatmul.bf16.gmra.mxu3 %v10658_v63  ;;  %1547 = vmax.xlane.f32.xlu0 %v1514_v45  ;;  %v1156_v36 = vpop.f32.mrf.mxu2  ;;  %v2401_v49 = vmax.f32 %v2325_v43, 0.0  ;;  %v1232_v45 = vmax.f32 %v1154_v30, 0.0 }
 0x25e   :  { %2363 = vmatmul.bf16.gmra.mxu1 %v10674_v3  ;;  %v1157_v44 = vadd.f32 %v1156_v36, %v11759_v10 }
 0x25f   :  { %2151 = vmax.xlane.f32.xlu2 %v2118_v24  ;;  %v2044_v25 = vpop.f32.mrf.mxu0 }
 0x260   :  { %v1438_v35 = vpop.f32.mrf.mxu3  ;;  %v1233_v46 = vmax.f32 %v1157_v44, 0.0  ;;  %v2045_v43 = vadd.f32 %v2044_v25, %v11927_v29  ;;  %v10660_v44 = vld [vmem:[#allocation3 + $0x58] sm:$0xff] }
 0x261   :  { %v1439_v61 = vadd.f32 %v1438_v35, %v11759_v10 }
 0x262   :  { %v2326_v54 = vpop.f32.mrf.mxu1  ;;  %v2120_v34 = vmax.f32 %v2045_v43, 0.0 }
 0x263   :  { %2153 = vmax.xlane.f32.xlu1 %v2119_v50  ;;  %v2327_v63 = vadd.f32 %v2326_v54, %v11927_v29  ;;  %v1515_v2 = vmax.f32 %v1439_v61, 0.0 }
 0x265   :  { %2435 = vmax.xlane.f32.xlu0 %v2401_v49  ;;  %v1158_v41 = vpop.f32.mrf.mxu2  ;;  %v2402_v24 = vmax.f32 %v2327_v63, 0.0 }
 0x266   :  { %v1159_v54 = vadd.f32 %v1158_v41, %v11723_v11 }
 0x267   :  { %1265 = vmax.xlane.f32.xlu2 %v1232_v45  ;;  %v2047_v50 = vpop.f32.mrf.mxu0 }
 0x268   :  { %v1440_v3 = vpop.f32.mrf.mxu3  ;;  %v1234_v49 = vmax.f32 %v1159_v54, 0.0 }
 0x269   :  { %v1441_v61 = vadd.f32 %v1440_v3, %v11723_v11 }
 0x26a   :  { %v2329_v62 = vpop.f32.mrf.mxu1  ;;  %2086 = vmatmul.bf16.gmra.mxu0 %v10675_v5  ;;  %1200 = vmatmul.bf16.gmra.mxu2 %v10659_v53 }
 0x26b   :  { %1549 = vmax.xlane.f32.xlu1 %v1515_v2  ;;  %v2330_v35 = vadd.f32 %v2329_v62, %v11925_v39  ;;  %v1516_v2 = vmax.f32 %v1441_v61, 0.0 }
 0x26d   :  { %1482 = vmatmul.bf16.gmra.mxu3 %v10659_v53  ;;  %1267 = vmax.xlane.f32.xlu0 %v1233_v46  ;;  %v2403_v30 = vmax.f32 %v2330_v35, 0.0  ;;  %v1161_v36 = vpop.f32.mrf.mxu2 }
 0x26e   :  { %2368 = vmatmul.bf16.gmra.mxu1 %v10675_v5  ;;  %v1162_v29 = vadd.f32 %v1161_v36, %v11707_v40  ;;  %v10676_v5 = vld [vmem:[#allocation3 + $0xd8] sm:$0xff] }
 0x26f   :  { %2437 = vmax.xlane.f32.xlu2 %v2402_v24  ;;  %v2049_v25 = vpop.f32.mrf.mxu0  ;;  %v2048_v24 = vadd.f32 %v2047_v50, %v11925_v39 }
 0x270   :  { %v1443_v10 = vpop.f32.mrf.mxu3  ;;  %v1235_v41 = vmax.f32 %v1162_v29, 0.0 }
 0x271   :  { %v1444_v45 = vadd.f32 %v1443_v10, %v11707_v40  ;;  %v2050_v40 = vadd.f32 %v2049_v25, %v11939_v17 }
 0x272   :  { %v2331_v53 = vpop.f32.mrf.mxu1 }
 0x273   :  { %2439 = vmax.xlane.f32.xlu1 %v2403_v30  ;;  %v1517_v46 = vmax.f32 %v1444_v45, 0.0  ;;  %v2332_v62 = vadd.f32 %v2331_v53, %v11939_v17  ;;  %v2122_v54 = vmax.f32 %v2050_v40, 0.0  ;;  %v10677_v17 = vld [vmem:[#allocation3 + $0xe0] sm:$0xff] }
 0x275   :  { %2155 = vmax.xlane.f32.xlu0 %v2120_v34  ;;  %v1163_v11 = vpop.f32.mrf.mxu2  ;;  %v2404_v43 = vmax.f32 %v2332_v62, 0.0  ;;  %v2121_v34 = vmax.f32 %v2048_v24, 0.0 }
 0x276   :  { %v1164_v45 = vadd.f32 %v1163_v11, %v11769_v26 }
 0x277   :  { %1269 = vmax.xlane.f32.xlu2 %v1234_v49  ;;  %v2052_v3 = vpop.f32.mrf.mxu0  ;;  %v10661_v49 = vld [vmem:[#allocation3 + $0x60] sm:$0xff] }
 0x278   :  { %v1445_v63 = vpop.f32.mrf.mxu3  ;;  %v2053_v30 = vadd.f32 %v2052_v3, %v11909_v27  ;;  %v1236_v61 = vmax.f32 %v1164_v45, 0.0  ;;  %v10662_v3 = vld [vmem:[#allocation3 + $0x68] sm:$0xff] }
 0x279   :  { %v1446_v36 = vadd.f32 %v1445_v63, %v11769_v26 }
 0x27a   :  { %2091 = vmatmul.bf16.gmra.mxu0 %v10676_v5  ;;  %1205 = vmatmul.bf16.gmra.mxu2 %v10660_v44  ;;  %v2334_v10 = vpop.f32.mrf.mxu1  ;;  %v2123_v29 = vmax.f32 %v2053_v30, 0.0  ;;  %v10678_v30 = vld [vmem:[#allocation3 + $0xe8] sm:$0xff] }
 0x27b   :  { %1271 = vmax.xlane.f32.xlu1 %v1235_v41  ;;  %v1518_v50 = vmax.f32 %v1446_v36, 0.0  ;;  %v2335_v26 = vadd.f32 %v2334_v10, %v11909_v27  ;;  %v11133_v10 = vmov 0.0  }
 0x27c   :  { %114 = vst.msk [vmem:[#allocation2 + $0x100] sm:$0xff] %vm81_vm1, %v11133_v10 }
 0x27d   :  { %1487 = vmatmul.bf16.gmra.mxu3 %v10660_v44  ;;  %1553 = vmax.xlane.f32.xlu0 %v1517_v46  ;;  %v1166_v39 = vpop.f32.mrf.mxu2  ;;  %82 = vst.msk [vmem:[#allocation2] sm:$0xff] %vm81_vm1, %v11133_v10 }
 0x27e   :  { %2373 = vmatmul.bf16.gmra.mxu1 %v10676_v5  ;;  %v1167_v53 = vadd.f32 %v1166_v39, %v11743_v60  ;;  %83 = vst.msk [vmem:[#allocation2 + $0x8] sm:$0xff] %vm81_vm1, %v11133_v10 }
 0x27f   :  { %1551 = vmax.xlane.f32.xlu2 %v1516_v2  ;;  %v2054_v5 = vpop.f32.mrf.mxu0  ;;  %v2405_v2 = vmax.f32 %v2335_v26, 0.0  ;;  %84 = vst.msk [vmem:[#allocation2 + $0x10] sm:$0xff] %vm81_vm1, %v11133_v10 }
 0x280   :  { %v1448_v35 = vpop.f32.mrf.mxu3  ;;  %v1237_v46 = vmax.f32 %v1167_v53, 0.0  ;;  %85 = vst.msk [vmem:[#allocation2 + $0x18] sm:$0xff] %vm81_vm1, %v11133_v10 }
 0x281   :  { %86 = vst.msk [vmem:[#allocation2 + $0x20] sm:$0xff] %vm81_vm1, %v11133_v10 }
 0x282   :  { %v2336_v25 = vpop.f32.mrf.mxu1  ;;  %87 = vst.msk [vmem:[#allocation2 + $0x28] sm:$0xff] %vm81_vm1, %v11133_v10 }
 0x283   :  { %2159 = vmax.xlane.f32.xlu1 %v2122_v54  ;;  %v2337_v63 = vadd.f32 %v2336_v25, %v11919_v58  ;;  %88 = vst.msk [vmem:[#allocation2 + $0x30] sm:$0xff] %vm81_vm1, %v11133_v10 }
 0x284   :  { %89 = vst.msk [vmem:[#allocation2 + $0x38] sm:$0xff] %vm81_vm1, %v11133_v10 }
 0x285   :  { %2441 = vmax.xlane.f32.xlu0 %v2404_v43  ;;  %v2406_v41 = vmax.f32 %v2337_v63, 0.0  ;;  %v1168_v62 = vpop.f32.mrf.mxu2  ;;  %v1449_v43 = vadd.f32 %v1448_v35, %v11743_v60  ;;  %v2055_v35 = vadd.f32 %v2054_v5, %v11919_v58  ;;  %90 = vst.msk [vmem:[#allocation2 + $0x40] sm:$0xff] %vm81_vm1, %v11133_v10  ;;  %v10679_v5 = vld [vmem:[#allocation3 + $0xf0] sm:$0xff] }
 0x286   :  { %v1169_v11 = vadd.f32 %v1168_v62, %v11719_v7  ;;  %91 = vst.msk [vmem:[#allocation2 + $0x48] sm:$0xff] %vm81_vm1, %v11133_v10 }
 0x287   :  { %2157 = vmax.xlane.f32.xlu2 %v2121_v34  ;;  %v2057_v54 = vpop.f32.mrf.mxu0  ;;  %v2124_v58 = vmax.f32 %v2055_v35, 0.0  ;;  %92 = vst.msk [vmem:[#allocation2 + $0x50] sm:$0xff] %vm81_vm1, %v11133_v10  ;;  %v12041_v35 = vpop.permute.xlu0 %1859 }
 0x288   :  { %v1450_v44 = vpop.f32.mrf.mxu3  ;;  %v1238_v27 = vmax.f32 %v1169_v11, 0.0  ;;  %v2058_v60 = vadd.f32 %v2057_v54, %v11923_v37  ;;  %93 = vst.msk [vmem:[#allocation2 + $0x58] sm:$0xff] %vm81_vm1, %v11133_v10 }
 0x289   :  { %v1451_v40 = vadd.f32 %v1450_v44, %v11719_v7  ;;  %94 = vst.msk [vmem:[#allocation2 + $0x60] sm:$0xff] %vm81_vm1, %v11133_v10 }
 0x28a   :  { %2096 = vmatmul.bf16.gmra.mxu0 %v10677_v17  ;;  %1210 = vmatmul.bf16.gmra.mxu2 %v10661_v49  ;;  %v2339_v34 = vpop.f32.mrf.mxu1  ;;  %95 = vst.msk [vmem:[#allocation2 + $0x68] sm:$0xff] %vm81_vm1, %v11133_v10 }
 0x28b   :  { %1555 = vmax.xlane.f32.xlu1 %v1518_v50  ;;  %v1520_v36 = vmax.f32 %v1451_v40, 0.0  ;;  %v2340_v7 = vadd.f32 %v2339_v34, %v11923_v37  ;;  %v2125_v37 = vmax.f32 %v2058_v60, 0.0  ;;  %96 = vst.msk [vmem:[#allocation2 + $0x70] sm:$0xff] %vm81_vm1, %v11133_v10  ;;  %v10680_v60 = vld [vmem:[#allocation3 + $0xf8] sm:$0xff] }
 0x28c   :  { %97 = vst.msk [vmem:[#allocation2 + $0x78] sm:$0xff] %vm81_vm1, %v11133_v10 }
 0x28d   :  { %1492 = vmatmul.bf16.gmra.mxu3 %v10661_v49  ;;  %2161 = vmax.xlane.f32.xlu0 %v2123_v29  ;;  %v1519_v49 = vmax.f32 %v1449_v43, 0.0  ;;  %v1171_v45 = vpop.f32.mrf.mxu2  ;;  %v2407_v29 = vmax.f32 %v2340_v7, 0.0  ;;  %98 = vst.msk [vmem:[#allocation2 + $0x80] sm:$0xff] %vm81_vm1, %v11133_v10 }
 0x28e   :  { %2378 = vmatmul.bf16.gmra.mxu1 %v10677_v17  ;;  %v1172_v53 = vadd.f32 %v1171_v45, %v11807_v52  ;;  %99 = vst.msk [vmem:[#allocation2 + $0x88] sm:$0xff] %vm81_vm1, %v11133_v10 }
 0x28f   :  { %1273 = vmax.xlane.f32.xlu2 %v1236_v61  ;;  %v2059_v39 = vpop.f32.mrf.mxu0  ;;  %v10663_v61 = vld [vmem:[#allocation3 + $0x70] sm:$0xff]  ;;  %100 = vst.msk [vmem:[#allocation2 + $0x90] sm:$0xff] %vm81_vm1, %v11133_v10 }
 0x290   :  { %v1453_v24 = vpop.f32.mrf.mxu3  ;;  %v2060_v25 = vadd.f32 %v2059_v39, %v11903_v19  ;;  %101 = vst.msk [vmem:[#allocation2 + $0x98] sm:$0xff] %vm81_vm1, %v11133_v10 }
 0x291   :  { %v1454_v44 = vadd.f32 %v1453_v24, %v11807_v52  ;;  %v1239_v52 = vmax.f32 %v1172_v53, 0.0  ;;  %102 = vst.msk [vmem:[#allocation2 + $0xa0] sm:$0xff] %vm81_vm1, %v11133_v10 }
 0x292   :  { %v2341_v50 = vpop.f32.mrf.mxu1  ;;  %v2126_v63 = vmax.f32 %v2060_v25, 0.0  ;;  %103 = vst.msk [vmem:[#allocation2 + $0xa8] sm:$0xff] %vm81_vm1, %v11133_v10 }
 0x293   :  { %2445 = vmax.xlane.f32.xlu1 %v2406_v41  ;;  %v1521_v41 = vmax.f32 %v1454_v44, 0.0  ;;  %v2342_v24 = vadd.f32 %v2341_v50, %v11903_v19  ;;  %104 = vst.msk [vmem:[#allocation2 + $0xb0] sm:$0xff] %vm81_vm1, %v11133_v10 }
 0x294   :  { %105 = vst.msk [vmem:[#allocation2 + $0xb8] sm:$0xff] %vm81_vm1, %v11133_v10 }
 0x295   :  { %1275 = vmax.xlane.f32.xlu0 %v1237_v46  ;;  %v1173_v26 = vpop.f32.mrf.mxu2  ;;  %v2408_v54 = vmax.f32 %v2342_v24, 0.0  ;;  %106 = vst.msk [vmem:[#allocation2 + $0xc0] sm:$0xff] %vm81_vm1, %v11133_v10 }
 0x296   :  { %v1174_v62 = vadd.f32 %v1173_v26, %v11761_v14  ;;  %107 = vst.msk [vmem:[#allocation2 + $0xc8] sm:$0xff] %vm81_vm1, %v11133_v10 }
 0x297   :  { %2443 = vmax.xlane.f32.xlu2 %v2405_v2  ;;  %v2062_v11 = vpop.f32.mrf.mxu0  ;;  %108 = vst.msk [vmem:[#allocation2 + $0xd0] sm:$0xff] %vm81_vm1, %v11133_v10 }
 0x298   :  { %v11977_v17 = vpop.f32.mrf.mxu3  ;;  %v2063_v19 = vadd.f32 %v2062_v11, %v11901_v18  ;;  %109 = vst.msk [vmem:[#allocation2 + $0xd8] sm:$0xff] %vm81_vm1, %v11133_v10 }
 0x299   :  { %110 = vst.msk [vmem:[#allocation2 + $0xe0] sm:$0xff] %vm81_vm1, %v11133_v10 }
 0x29a   :  { %2101 = vmatmul.bf16.gmra.mxu0 %v10678_v30  ;;  %1215 = vmatmul.bf16.gmra.mxu2 %v10662_v3  ;;  %v2344_v2 = vpop.f32.mrf.mxu1  ;;  %111 = vst.msk [vmem:[#allocation2 + $0xe8] sm:$0xff] %vm81_vm1, %v11133_v10 }
 0x29b   :  { %1277 = vmax.xlane.f32.xlu1 %v1238_v27  ;;  %v2345_v40 = vadd.f32 %v2344_v2, %v11901_v18  ;;  %v10664_v27 = vld [vmem:[#allocation3 + $0x78] sm:$0xff]  ;;  %v2127_v18 = vmax.f32 %v2063_v19, 0.0  ;;  %112 = vst.msk [vmem:[#allocation2 + $0xf0] sm:$0xff] %vm81_vm1, %v11133_v10 }
 0x29c   :  { %113 = vst.msk [vmem:[#allocation2 + $0xf8] sm:$0xff] %vm81_vm1, %v11133_v10 }
 0x29d   :  { %1497 = vmatmul.bf16.gmra.mxu3 %v10662_v3  ;;  %1559 = vmax.xlane.f32.xlu0 %v1520_v36  ;;  %v1240_v3 = vmax.f32 %v1174_v62, 0.0  ;;  %v2409_v43 = vmax.f32 %v2345_v40, 0.0  ;;  %v1176_v34 = vpop.f32.mrf.mxu2  ;;  %115 = vst.msk [vmem:[#allocation2 + $0x108] sm:$0xff] %vm81_vm1, %v11133_v10 }
 0x29e   :  { %2383 = vmatmul.bf16.gmra.mxu1 %v10678_v30  ;;  %v1177_v36 = vadd.f32 %v1176_v34, %v11729_v55  ;;  %116 = vst.msk [vmem:[#allocation2 + $0x110] sm:$0xff] %vm81_vm1, %v11133_v10 }
 0x29f   :  { %1557 = vmax.xlane.f32.xlu2 %v1519_v49  ;;  %v1456_v49 = vadd.f32 %v11977_v17, %v11761_v14  ;;  %v2064_v45 = vpop.f32.mrf.mxu0  ;;  %117 = vst.msk [vmem:[#allocation2 + $0x118] sm:$0xff] %vm81_vm1, %v11133_v10 }
 0x2a0   :  { %v1458_v46 = vpop.f32.mrf.mxu3  ;;  %118 = vst.msk [vmem:[#allocation2 + $0x120] sm:$0xff] %vm81_vm1, %v11133_v10 }
 0x2a1   :  { %v1522_v14 = vmax.f32 %v1456_v49, 0.0  ;;  %v1459_v17 = vadd.f32 %v1458_v46, %v11729_v55  ;;  %v2214_v55 = vld [vmem:[#allocation2 + $0x100] sm:$0xff]  ;;  %119 = vst.msk [vmem:[#allocation2 + $0x128] sm:$0xff] %vm81_vm1, %v11133_v10 }
 0x2a2   :  { %v2346_v7 = vpop.f32.mrf.mxu1  ;;  %120 = vst.msk [vmem:[#allocation2 + $0x130] sm:$0xff] %vm81_vm1, %v11133_v10 }
 0x2a3   :  { %2165 = vmax.xlane.f32.xlu1 %v2125_v37  ;;  %v1523_v25 = vmax.f32 %v1459_v17, 0.0  ;;  %121 = vst.msk [vmem:[#allocation2 + $0x138] sm:$0xff] %vm81_vm1, %v11133_v10  ;;  %v2347_v46 = vadd.f32 %v2346_v7, %v11917_v33 }
 0x2a4   :  { %122 = vst.msk [vmem:[#allocation2 + $0x140] sm:$0xff] %vm81_vm1, %v11133_v10 }
 0x2a5   :  { %2447 = vmax.xlane.f32.xlu0 %v2407_v29  ;;  %v1241_v29 = vmax.f32 %v1177_v36, 0.0  ;;  %v1178_v50 = vpop.f32.mrf.mxu2  ;;  %123 = vst.msk [vmem:[#allocation2 + $0x148] sm:$0xff] %vm81_vm1, %v11133_v10  ;;  %v2410_v62 = vmax.f32 %v2347_v46, 0.0 }
 0x2a6   :  { %124 = vst.msk [vmem:[#allocation2 + $0x150] sm:$0xff] %vm81_vm1, %v11133_v10 }
 0x2a7   :  { %2163 = vmax.xlane.f32.xlu2 %v2124_v58  ;;  %v2065_v58 = vadd.f32 %v2064_v45, %v11917_v33  ;;  %v2067_v26 = vpop.f32.mrf.mxu0  ;;  %125 = vst.msk [vmem:[#allocation2 + $0x158] sm:$0xff] %vm81_vm1, %v11133_v10 }
 0x2a8   :  { %v1460_v30 = vpop.f32.mrf.mxu3  ;;  %126 = vst.msk [vmem:[#allocation2 + $0x160] sm:$0xff] %vm81_vm1, %v11133_v10 }
 0x2a9   :  { %v1461_v37 = vadd.f32 %v1460_v30, %v11833_v38  ;;  %127 = vst.msk [vmem:[#allocation2 + $0x168] sm:$0xff] %vm81_vm1, %v11133_v10 }
 0x2aa   :  { %2106 = vmatmul.bf16.gmra.mxu0 %v10679_v5  ;;  %1220 = vmatmul.bf16.gmra.mxu2 %v10663_v61  ;;  %v2349_v44 = vpop.f32.mrf.mxu1  ;;  %128 = vst.msk [vmem:[#allocation2 + $0x170] sm:$0xff] %vm81_vm1, %v11133_v10 }
 0x2ab   :  { %1561 = vmax.xlane.f32.xlu1 %v1521_v41  ;;  %v1524_v53 = vmax.f32 %v1461_v37, 0.0  ;;  %v2068_v41 = vadd.f32 %v2067_v26, %v11885_v4  ;;  %129 = vst.msk [vmem:[#allocation2 + $0x178] sm:$0xff] %vm81_vm1, %v11133_v10  ;;  %v2350_v30 = vadd.f32 %v2349_v44, %v11885_v4 }
 0x2ac   :  { %130 = vst.msk [vmem:[#allocation2 + $0x180] sm:$0xff] %vm81_vm1, %v11133_v10 }
 0x2ad   :  { %1502 = vmatmul.bf16.gmra.mxu3 %v10663_v61  ;;  %2167 = vmax.xlane.f32.xlu0 %v2126_v63  ;;  %v2128_v63 = vmax.f32 %v2065_v58, 0.0  ;;  %v1181_v33 = vpop.f32.mrf.mxu2  ;;  %v2129_v40 = vmax.f32 %v2068_v41, 0.0  ;;  %131 = vst.msk [vmem:[#allocation2 + $0x188] sm:$0xff] %vm81_vm1, %v11133_v10  ;;  %v2411_v7 = vmax.f32 %v2350_v30, 0.0 }
 0x2ae   :  { %2388 = vmatmul.bf16.gmra.mxu1 %v10679_v5  ;;  %132 = vst.msk [vmem:[#allocation2 + $0x190] sm:$0xff] %vm81_vm1, %v11133_v10 }
 0x2af   :  { %1279 = vmax.xlane.f32.xlu2 %v1239_v52  ;;  %v1179_v52 = vadd.f32 %v1178_v50, %v11833_v38  ;;  %133 = vst.msk [vmem:[#allocation2 + $0x198] sm:$0xff] %vm81_vm1, %v11133_v10 }
 0x2b0   :  { %v12052_v39 = vpop.f32.mrf.mxu3  ;;  %134 = vst.msk [vmem:[#allocation2 + $0x1a0] sm:$0xff] %vm81_vm1, %v11133_v10 }
 0x2b1   :  { %v1242_v24 = vmax.f32 %v1179_v52, 0.0  ;;  %135 = vst.msk [vmem:[#allocation2 + $0x1a8] sm:$0xff] %vm81_vm1, %v11133_v10  ;;  %v1464_v4 = vadd.f32 %v12052_v39, %v11775_v47 }
 0x2b2   :  { %v2351_v11 = vpop.f32.mrf.mxu1  ;;  %136 = vst.msk [vmem:[#allocation2 + $0x1b0] sm:$0xff] %vm81_vm1, %v11133_v10 }
 0x2b3   :  { %2451 = vmax.xlane.f32.xlu1 %v2409_v43  ;;  %v1182_v43 = vadd.f32 %v1181_v33, %v11775_v47  ;;  %v2352_v34 = vadd.f32 %v2351_v11, %v11895_v15  ;;  %137 = vst.msk [vmem:[#allocation2 + $0x1b8] sm:$0xff] %vm81_vm1, %v11133_v10  ;;  %v1525_v47 = vmax.f32 %v1464_v4, 0.0 }
 0x2b4   :  { %138 = vst.msk [vmem:[#allocation2 + $0x1c0] sm:$0xff] %vm81_vm1, %v11133_v10 }
 0x2b5   :  { %1281 = vmax.xlane.f32.xlu0 %v1240_v3  ;;  %v1243_v19 = vmax.f32 %v1182_v43, 0.0  ;;  %v1183_v49 = vpop.f32.mrf.mxu2  ;;  %139 = vst.msk [vmem:[#allocation2 + $0x1c8] sm:$0xff] %vm81_vm1, %v11133_v10 }
 0x2b6   :  { %140 = vst.msk [vmem:[#allocation2 + $0x1d0] sm:$0xff] %vm81_vm1, %v11133_v10 }
 0x2b7   :  { %2449 = vmax.xlane.f32.xlu2 %v2408_v54  ;;  %141 = vst.msk [vmem:[#allocation2 + $0x1d8] sm:$0xff] %vm81_vm1, %v11133_v10 }
 0x2b8   :  { %v1465_v2 = vpop.f32.mrf.mxu3  ;;  %142 = vst.msk [vmem:[#allocation2 + $0x1e0] sm:$0xff] %vm81_vm1, %v11133_v10 }
 0x2b9   :  { %v1466_v45 = vadd.f32 %v1465_v2, %v11757_v9  ;;  %143 = vst.msk [vmem:[#allocation2 + $0x1e8] sm:$0xff] %vm81_vm1, %v11133_v10 }
 0x2ba   :  { %2111 = vmatmul.bf16.gmra.mxu0 %v10680_v60  ;;  %1225 = vmatmul.bf16.gmra.mxu2 %v10664_v27  ;;  %144 = vst.msk [vmem:[#allocation2 + $0x1f0] sm:$0xff] %vm81_vm1, %v11133_v10 }
 0x2bb   :  { %1283 = vmax.xlane.f32.xlu1 %v1241_v29  ;;  %145 = vst.msk [vmem:[#allocation2 + $0x1f8] sm:$0xff] %vm81_vm1, %v11133_v10 }
 0x2bc   :  { %146 = vst.msk [vmem:[#allocation2 + $0x200] sm:$0xff] %vm81_vm1, %v11133_v10 }
 0x2bd   :  { %1507 = vmatmul.bf16.gmra.mxu3 %v10664_v27  ;;  %2169 = vmax.xlane.f32.xlu0 %v2127_v18  ;;  %v2412_v27 = vmax.f32 %v2352_v34, 0.0  ;;  %v2069_v18 = vpop.f32.mrf.mxu0  ;;  %v1186_v39 = vpop.f32.mrf.mxu2  ;;  %147 = vst.msk [vmem:[#allocation2 + $0x208] sm:$0xff] %vm81_vm1, %v11133_v10 }
 0x2be   :  { %2393 = vmatmul.bf16.gmra.mxu1 %v10680_v60  ;;  %v1184_v60 = vadd.f32 %v1183_v49, %v11757_v9  ;;  %v2070_v17 = vadd.f32 %v2069_v18, %v11895_v15  ;;  %148 = vst.msk [vmem:[#allocation2 + $0x210] sm:$0xff] %vm81_vm1, %v11133_v10  ;;  %v1187_v37 = vadd.f32 %v1186_v39, %v11847_v0 }
 0x2bf   :  { %1563 = vmax.xlane.f32.xlu2 %v1522_v14  ;;  %v2150_v61 = vpop.xlane.xlu0 %2149  ;;  %v1526_v14 = vmax.f32 %v1466_v45, 0.0  ;;  %149 = vst.msk [vmem:[#allocation2 + $0x218] sm:$0xff] %vm81_vm1, %v11133_v10 }
 0x2c0   :  { %v2246_v5 = vmax.f32 %v2214_v55, %v2150_v61  ;;  %v1468_v36 = vpop.f32.mrf.mxu3  ;;  %v1244_v29 = vmax.f32 %v1184_v60, 0.0  ;;  %v2130_v15 = vmax.f32 %v2070_v17, 0.0  ;;  %150 = vst.msk [vmem:[#allocation2 + $0x220] sm:$0xff] %vm81_vm1, %v11133_v10  ;;  %v12150_v61 = vpop.permute.xlu1 %1869 }
 0x2c1   :  { %151 = vst.msk [vmem:[#allocation2 + $0x228] sm:$0xff] %vm81_vm1, %v11133_v10 }
 0x2c2   :  { %2278 = vst.msk [vmem:[#allocation2 + $0x100] sm:$0xff] %vm1391_vm2, %v2246_v5  ;;  %v2432_v38 = vpop.xlane.xlu2 %2431 }
 0x2c3   :  { %1567 = vmax.xlane.f32.xlu1 %v1524_v53  ;;  %152 = vst.msk [vmem:[#allocation2 + $0x230] sm:$0xff] %vm81_vm1, %v11133_v10  ;;  %v1469_v53 = vadd.f32 %v1468_v36, %v11847_v0 }
 0x2c4   :  { %153 = vst.msk [vmem:[#allocation2 + $0x238] sm:$0xff] %vm81_vm1, %v11133_v10 }
 0x2c5   :  { %1565 = vmax.xlane.f32.xlu0 %v1523_v25  ;;  %v2072_v58 = vpop.f32.mrf.mxu0  ;;  %v1245_v25 = vmax.f32 %v1187_v37, 0.0  ;;  %154 = vst.msk [vmem:[#allocation2 + $0x240] sm:$0xff] %vm81_vm1, %v11133_v10  ;;  %v1527_v26 = vmax.f32 %v1469_v53, 0.0 }
 0x2c6   :  { %v2073_v44 = vadd.f32 %v2072_v58, %v11899_v59  ;;  %155 = vst.msk [vmem:[#allocation2 + $0x248] sm:$0xff] %vm81_vm1, %v11133_v10  ;;  %v10682_v58 = vld [vmem:[#allocation3 + $0x108] sm:$0xff] }
 0x2c7   :  { %2171 = vmax.xlane.f32.xlu2 %v2128_v63  ;;  %156 = vst.msk [vmem:[#allocation2 + $0x250] sm:$0xff] %vm81_vm1, %v11133_v10  ;;  %v2354_v63 = vpop.f32.mrf.mxu1 }
 0x2c8   :  { %v1470_v9 = vpop.f32.mrf.mxu3  ;;  %157 = vst.msk [vmem:[#allocation2 + $0x258] sm:$0xff] %vm81_vm1, %v11133_v10  ;;  %v2131_v5 = vmax.f32 %v2073_v44, 0.0  ;;  %v2355_v0 = vadd.f32 %v2354_v63, %v11899_v59  ;;  %v1855_v52 = vpop.permute.xlu1 %1854 }
 0x2c9   :  { %v2495_v3 = vld [vmem:[#allocation2 + $0x100] sm:$0xff]  ;;  %v1471_v50 = vadd.f32 %v1470_v9, %v11821_v22  ;;  %158 = vst.msk [vmem:[#allocation2 + $0x260] sm:$0xff] %vm81_vm1, %v11133_v10  ;;  %v1188_v59 = vpop.f32.mrf.mxu2 }
 0x2ca   :  { %v2527_v54 = vmax.f32 %v2495_v3, %v2432_v38  ;;  %159 = vst.msk [vmem:[#allocation2 + $0x268] sm:$0xff] %vm81_vm1, %v11133_v10  ;;  %v2413_v2 = vmax.f32 %v2355_v0, 0.0 }
 0x2cb   :  { %2173 = vmax.xlane.f32.xlu1 %v2129_v40  ;;  %v1528_v55 = vmax.f32 %v1471_v50, 0.0  ;;  %160 = vst.msk [vmem:[#allocation2 + $0x270] sm:$0xff] %vm81_vm1, %v11133_v10  ;;  %v1189_v40 = vadd.f32 %v1188_v59, %v11821_v22 }
 0x2cc   :  { %2559 = vst.msk [vmem:[#allocation2 + $0x100] sm:$0xff] %vm1673_vm3, %v2527_v54  ;;  %v10681_v54 = vld [vmem:[#allocation3 + $0x100] sm:$0xff] }
 0x2cd   :  { %2453 = vmax.xlane.f32.xlu0 %v2410_v62  ;;  %161 = vst.msk [vmem:[#allocation2 + $0x278] sm:$0xff] %vm81_vm1, %v11133_v10  ;;  %v2074_v46 = vpop.f32.mrf.mxu0  ;;  %v1246_v11 = vmax.f32 %v1189_v40, 0.0  ;;  %2921 = vmatmul.bf16.vlgmr.msra.gmra.mxu2 %v10681_v54  ;;  %v1327_v40 = vld [vmem:[#allocation2] sm:$0xff] }
 0x2ce   :  { %162 = vst.msk [vmem:[#allocation2 + $0x280] sm:$0xff] %vm81_vm1, %v11133_v10  ;;  %v2075_v41 = vadd.f32 %v2074_v46, %v11889_v12  ;;  %3203 = vmatmul.bf16.vlgmr.msra.gmra.mxu3 %v10681_v54  ;;  %v1328_v54 = vld [vmem:[#allocation2 + $0x8] sm:$0xff] }
 0x2cf   :  { %1285 = vmax.xlane.f32.xlu2 %v1242_v24  ;;  %163 = vst.msk [vmem:[#allocation2 + $0x288] sm:$0xff] %vm81_vm1, %v11133_v10  ;;  %v2356_v62 = vpop.f32.mrf.mxu1 }
 0x2d0   :  { %164 = vst.msk [vmem:[#allocation2 + $0x290] sm:$0xff] %vm81_vm1, %v11133_v10  ;;  %v2132_v33 = vmax.f32 %v2075_v41, 0.0  ;;  %v2357_v24 = vadd.f32 %v2356_v62, %v11889_v12  ;;  %v12195_v38 = vpop.xlane.xlu1 %1263  ;;  %v12203_v12 = vpop.xlane.xlu2 %1545 }
 0x2d1   :  { %165 = vst.msk [vmem:[#allocation2 + $0x298] sm:$0xff] %vm81_vm1, %v11133_v10  ;;  %v12217_v36 = vpop.xlane.xlu0 %1547  ;;  %v1191_v49 = vpop.f32.mrf.mxu2 }
 0x2d2   :  { %166 = vst.msk [vmem:[#allocation2 + $0x2a0] sm:$0xff] %vm81_vm1, %v11133_v10  ;;  %v2414_v22 = vmax.f32 %v2357_v24, 0.0  ;;  %v1192_v4 = vadd.f32 %v1191_v49, %v11767_v23 }
 0x2d3   :  { %2457 = vmax.xlane.f32.xlu1 %v2412_v27  ;;  %167 = vst.msk [vmem:[#allocation2 + $0x2a8] sm:$0xff] %vm81_vm1, %v11133_v10 }
 0x2d4   :  { %168 = vst.msk [vmem:[#allocation2 + $0x2b0] sm:$0xff] %vm81_vm1, %v11133_v10 }
 0x2d5   :  { %1287 = vmax.xlane.f32.xlu0 %v1243_v19  ;;  %169 = vst.msk [vmem:[#allocation2 + $0x2b8] sm:$0xff] %vm81_vm1, %v11133_v10  ;;  %v2077_v43 = vpop.f32.mrf.mxu0  ;;  %v1473_v19 = vpop.f32.mrf.mxu3 }
 0x2d6   :  { %170 = vst.msk [vmem:[#allocation2 + $0x2c0] sm:$0xff] %vm81_vm1, %v11133_v10  ;;  %v2078_v34 = vadd.f32 %v2077_v43, %v1855_v52  ;;  %v1474_v27 = vadd.f32 %v1473_v19, %v11767_v23  ;;  %v1359_v43 = vmax.f32 %v1327_v40, %v12195_v38 }
 0x2d7   :  { %2455 = vmax.xlane.f32.xlu2 %v2411_v7  ;;  %171 = vst.msk [vmem:[#allocation2 + $0x2c8] sm:$0xff] %vm81_vm1, %v11133_v10  ;;  %v2359_v3 = vpop.f32.mrf.mxu1 }
 0x2d8   :  { %172 = vst.msk [vmem:[#allocation2 + $0x2d0] sm:$0xff] %vm81_vm1, %v11133_v10  ;;  %v2133_v30 = vmax.f32 %v2078_v34, 0.0  ;;  %v12222_v7 = vpop.xlane.xlu1 %2433  ;;  %v12227_v60 = vpop.xlane.xlu2 %2151  ;;  %v2360_v18 = vadd.f32 %v2359_v3, %v1855_v52  ;;  %v1529_v45 = vmax.f32 %v1474_v27, 0.0  ;;  %v2216_v3 = vld [vmem:[#allocation2 + $0x110] sm:$0xff] }
 0x2d9   :  { %173 = vst.msk [vmem:[#allocation2 + $0x2d8] sm:$0xff] %vm81_vm1, %v11133_v10  ;;  %v12242_v39 = vpop.xlane.xlu0 %2435  ;;  %v1193_v37 = vpop.f32.mrf.mxu2  ;;  %v1329_v27 = vld [vmem:[#allocation2 + $0x10] sm:$0xff] }
 0x2da   :  { %174 = vst.msk [vmem:[#allocation2 + $0x2e0] sm:$0xff] %vm81_vm1, %v11133_v10  ;;  %v2415_v23 = vmax.f32 %v2360_v18, 0.0  ;;  %v10698_v18 = vld [vmem:[#allocation3 + $0x188] sm:$0xff]  ;;  %v1194_v38 = vadd.f32 %v1193_v37, %v11863_v16 }
 0x2db   :  { %1289 = vmax.xlane.f32.xlu1 %v1244_v29  ;;  %175 = vst.msk [vmem:[#allocation2 + $0x2e8] sm:$0xff] %vm81_vm1, %v11133_v10  ;;  %v1247_v29 = vmax.f32 %v1192_v4, 0.0 }
 0x2dc   :  { %176 = vst.msk [vmem:[#allocation2 + $0x2f0] sm:$0xff] %vm81_vm1, %v11133_v10 }
 0x2dd   :  { %1569 = vmax.xlane.f32.xlu0 %v1525_v47  ;;  %177 = vst.msk [vmem:[#allocation2 + $0x2f8] sm:$0xff] %vm81_vm1, %v11133_v10  ;;  %v2079_v47 = vpop.f32.mrf.mxu0  ;;  %v1475_v17 = vpop.f32.mrf.mxu3  ;;  %2926 = vmatmul.bf16.gmra.mxu2 %v10682_v58 }
 0x2de   :  { %178 = vst.msk [vmem:[#allocation2 + $0x300] sm:$0xff] %vm81_vm1, %v11133_v10  ;;  %v2080_v9 = vadd.f32 %v2079_v47, %v12041_v35  ;;  %v1476_v50 = vadd.f32 %v1475_v17, %v11863_v16  ;;  %3208 = vmatmul.bf16.gmra.mxu3 %v10682_v58  ;;  %v1248_v58 = vmax.f32 %v1194_v38, 0.0  ;;  %v2218_v38 = vld [vmem:[#allocation2 + $0x120] sm:$0xff] }
 0x2df   :  { %1571 = vmax.xlane.f32.xlu2 %v1526_v14  ;;  %179 = vst.msk [vmem:[#allocation2 + $0x308] sm:$0xff] %vm81_vm1, %v11133_v10  ;;  %v2361_v14 = vpop.f32.mrf.mxu1 }
 0x2e0   :  { %180 = vst.msk [vmem:[#allocation2 + $0x310] sm:$0xff] %vm81_vm1, %v11133_v10  ;;  %v2134_v53 = vmax.f32 %v2080_v9, 0.0  ;;  %v2362_v41 = vadd.f32 %v2361_v14, %v12041_v35 }
 0x2e1   :  { %181 = vst.msk [vmem:[#allocation2 + $0x318] sm:$0xff] %vm81_vm1, %v11133_v10  ;;  %v12266_v46 = vpop.xlane.xlu0 %1267  ;;  %v1196_v52 = vpop.f32.mrf.mxu2 }
 0x2e2   :  { %182 = vst.msk [vmem:[#allocation2 + $0x320] sm:$0xff] %vm81_vm1, %v11133_v10  ;;  %v1197_v59 = vadd.f32 %v1196_v52, %v11835_v57  ;;  %v1361_v9 = vmax.f32 %v1329_v27, %v12266_v46 }
 0x2e3   :  { %1575 = vmax.xlane.f32.xlu1 %v1528_v55  ;;  %183 = vst.msk [vmem:[#allocation2 + $0x328] sm:$0xff] %vm81_vm1, %v11133_v10  ;;  %v12251_v55 = vpop.xlane.xlu2 %1265 }
 0x2e4   :  { %184 = vst.msk [vmem:[#allocation2 + $0x330] sm:$0xff] %vm81_vm1, %v11133_v10  ;;  %v1249_v35 = vmax.f32 %v1197_v59, 0.0 }
 0x2e5   :  { %2175 = vmax.xlane.f32.xlu0 %v2130_v15  ;;  %185 = vst.msk [vmem:[#allocation2 + $0x338] sm:$0xff] %vm81_vm1, %v11133_v10  ;;  %v12247_v15 = vpop.xlane.xlu1 %2153  ;;  %v2082_v44 = vpop.f32.mrf.mxu0 }
 0x2e6   :  { %186 = vst.msk [vmem:[#allocation2 + $0x340] sm:$0xff] %vm81_vm1, %v11133_v10  ;;  %v1478_v0 = vpop.f32.mrf.mxu3 }
 0x2e7   :  { %1291 = vmax.xlane.f32.xlu2 %v1245_v25  ;;  %187 = vst.msk [vmem:[#allocation2 + $0x348] sm:$0xff] %vm81_vm1, %v11133_v10  ;;  %v10697_v25 = vld [vmem:[#allocation3 + $0x180] sm:$0xff]  ;;  %v2364_v63 = vpop.f32.mrf.mxu1  ;;  %v1479_v19 = vadd.f32 %v1478_v0, %v11835_v57  ;;  %v1360_v57 = vmax.f32 %v1328_v54, %v12251_v55 }
 0x2e8   :  { %188 = vst.msk [vmem:[#allocation2 + $0x350] sm:$0xff] %vm81_vm1, %v11133_v10  ;;  %3806 = vmatmul.bf16.vlgmr.msra.gmra.mxu0 %v10697_v25  ;;  %4088 = vmatmul.bf16.vlgmr.msra.gmra.mxu1 %v10697_v25  ;;  %v1331_v55 = vld [vmem:[#allocation2 + $0x20] sm:$0xff] }
 0x2e9   :  { %189 = vst.msk [vmem:[#allocation2 + $0x358] sm:$0xff] %vm81_vm1, %v11133_v10  ;;  %v2156_v4 = vpop.xlane.xlu0 %2155  ;;  %v1198_v47 = vpop.f32.mrf.mxu2  ;;  %v1531_v37 = vmax.f32 %v1479_v19, 0.0  ;;  %v2219_v19 = vld [vmem:[#allocation2 + $0x128] sm:$0xff] }
 0x2ea   :  { %190 = vst.msk [vmem:[#allocation2 + $0x360] sm:$0xff] %vm81_vm1, %v11133_v10 }
 0x2eb   :  { %1295 = vmax.xlane.f32.xlu1 %v1247_v29  ;;  %191 = vst.msk [vmem:[#allocation2 + $0x368] sm:$0xff] %vm81_vm1, %v11133_v10  ;;  %v12276_v62 = vpop.xlane.xlu2 %2437  ;;  %v2217_v29 = vld [vmem:[#allocation2 + $0x118] sm:$0xff] }
 0x2ec   :  { %192 = vst.msk [vmem:[#allocation2 + $0x370] sm:$0xff] %vm81_vm1, %v11133_v10 }
 0x2ed   :  { %2177 = vmax.xlane.f32.xlu0 %v2131_v5  ;;  %193 = vst.msk [vmem:[#allocation2 + $0x378] sm:$0xff] %vm81_vm1, %v11133_v10  ;;  %v1530_v5 = vmax.f32 %v1476_v50, 0.0 }
 0x2ee   :  { %194 = vst.msk [vmem:[#allocation2 + $0x380] sm:$0xff] %vm81_vm1, %v11133_v10  ;;  %v1480_v49 = vpop.f32.mrf.mxu3 }
 0x2ef   :  { %1573 = vmax.xlane.f32.xlu2 %v1527_v26  ;;  %195 = vst.msk [vmem:[#allocation2 + $0x388] sm:$0xff] %vm81_vm1, %v11133_v10  ;;  %v2083_v26 = vadd.f32 %v2082_v44, %v11935_v20  ;;  %v2366_v17 = vpop.f32.mrf.mxu1  ;;  %v1199_v44 = vadd.f32 %v1198_v47, %v11805_v13 }
 0x2f0   :  { %196 = vst.msk [vmem:[#allocation2 + $0x390] sm:$0xff] %vm81_vm1, %v11133_v10 }
 0x2f1   :  { %197 = vst.msk [vmem:[#allocation2 + $0x398] sm:$0xff] %vm81_vm1, %v11133_v10  ;;  %v2135_v24 = vmax.f32 %v2083_v26, 0.0  ;;  %v12318_v26 = vpop.f32.mrf.mxu2 }
 0x2f2   :  { %198 = vst.msk [vmem:[#allocation2 + $0x3a0] sm:$0xff] %vm81_vm1, %v11133_v10 }
 0x2f3   :  { %1579 = vmax.xlane.f32.xlu1 %v1530_v5  ;;  %199 = vst.msk [vmem:[#allocation2 + $0x3a8] sm:$0xff] %vm81_vm1, %v11133_v10  ;;  %v12314_v5 = vpop.xlane.xlu0 %1553 }
 0x2f4   :  { %200 = vst.msk [vmem:[#allocation2 + $0x3b0] sm:$0xff] %vm81_vm1, %v11133_v10 }
 0x2f5   :  { %2459 = vmax.xlane.f32.xlu0 %v2413_v2  ;;  %v12271_v2 = vpop.xlane.xlu1 %1549  ;;  %201 = vst.msk [vmem:[#allocation2 + $0x3b8] sm:$0xff] %vm81_vm1, %v11133_v10 }
 0x2f6   :  { %202 = vst.msk [vmem:[#allocation2 + $0x3c0] sm:$0xff] %vm81_vm1, %v11133_v10 }
 0x2f7   :  { %2179 = vmax.xlane.f32.xlu2 %v2132_v33  ;;  %v2084_v33 = vpop.f32.mrf.mxu0  ;;  %203 = vst.msk [vmem:[#allocation2 + $0x3c8] sm:$0xff] %vm81_vm1, %v11133_v10  ;;  %v2369_v54 = vpop.f32.mrf.mxu1 }
 0x2f8   :  { %204 = vst.msk [vmem:[#allocation2 + $0x3d0] sm:$0xff] %vm81_vm1, %v11133_v10  ;;  %3811 = vmatmul.bf16.gmra.mxu0 %v10698_v18  ;;  %4093 = vmatmul.bf16.gmra.mxu1 %v10698_v18  ;;  %v2085_v25 = vadd.f32 %v2084_v33, %v12150_v61 }
 0x2f9   :  { %205 = vst.msk [vmem:[#allocation2 + $0x3d8] sm:$0xff] %vm81_vm1, %v11133_v10 }
 0x2fa   :  { %206 = vst.msk [vmem:[#allocation2 + $0x3e0] sm:$0xff] %vm81_vm1, %v11133_v10 }
 0x2fb   :  { %2185 = vmax.xlane.f32.xlu1 %v2135_v24  ;;  %207 = vst.msk [vmem:[#allocation2 + $0x3e8] sm:$0xff] %vm81_vm1, %v11133_v10  ;;  %v2442_v18 = vpop.xlane.xlu0 %2441 }
 0x2fc   :  { %208 = vst.msk [vmem:[#allocation2 + $0x3f0] sm:$0xff] %vm81_vm1, %v11133_v10 }
 0x2fd   :  { %1293 = vmax.xlane.f32.xlu0 %v1246_v11  ;;  %v2416_v11 = vmax.f32 %v2362_v41, 0.0  ;;  %v12298_v14 = vpop.xlane.xlu1 %2439  ;;  %209 = vst.msk [vmem:[#allocation2 + $0x3f8] sm:$0xff] %vm81_vm1, %v11133_v10 }
 0x2fe   :  { %1392 = vst.msk [vmem:[#allocation2] sm:$0xff] %vm1391_vm2, %v1359_v43 }
 0x2ff   :  { %2461 = vmax.xlane.f32.xlu2 %v2414_v22  ;;  %v2215_v22 = vld [vmem:[#allocation2 + $0x108] sm:$0xff]  ;;  %v12305_v16 = vpop.f32.mrf.mxu0  ;;  %1393 = vst.msk [vmem:[#allocation2 + $0x8] sm:$0xff] %vm1391_vm2, %v1360_v57  ;;  %v10684_v57 = vld [vmem:[#allocation3 + $0x118] sm:$0xff] }
 0x300   :  { %v2247_v34 = vmax.f32 %v2215_v22, %v12227_v60  ;;  %v10683_v60 = vld [vmem:[#allocation3 + $0x110] sm:$0xff]  ;;  %1394 = vst.msk [vmem:[#allocation2 + $0x10] sm:$0xff] %vm1391_vm2, %v1361_v9  ;;  %v1250_v22 = vmax.f32 %v1199_v44, 0.0 }
 0x301   :  { %2931 = vmatmul.bf16.gmra.mxu2 %v10683_v60  ;;  %3213 = vmatmul.bf16.gmra.mxu3 %v10683_v60 }
 0x302   :  { %2279 = vst.msk [vmem:[#allocation2 + $0x108] sm:$0xff] %vm1391_vm2, %v2247_v34 }
 0x303   :  { %v2162_v44 = vpop.xlane.xlu0 %2161 }
 0x305   :  { %2181 = vmax.xlane.f32.xlu0 %v2133_v30  ;;  %v2365_v30 = vadd.f32 %v2364_v63, %v11935_v20  ;;  %v1270_v20 = vpop.xlane.xlu2 %1269  ;;  %v1481_v63 = vadd.f32 %v1480_v49, %v11805_v13  ;;  %v1272_v0 = vpop.xlane.xlu1 %1271  ;;  %v1609_v46 = vld [vmem:[#allocation2] sm:$0xff] }
 0x306   :  { %v1363_v41 = vmax.f32 %v1331_v55, %v1272_v0  ;;  %v1641_v59 = vmax.f32 %v1609_v46, %v12203_v12 }
 0x307   :  { %1577 = vmax.xlane.f32.xlu2 %v1529_v45  ;;  %v2248_v45 = vmax.f32 %v2216_v3, %v12247_v15  ;;  %v2417_v50 = vmax.f32 %v2365_v30, 0.0  ;;  %v2249_v15 = vmax.f32 %v2217_v29, %v2156_v4  ;;  %v2089_v40 = vpop.f32.mrf.mxu0  ;;  %v1610_v3 = vld [vmem:[#allocation2 + $0x8] sm:$0xff]  ;;  %v1532_v43 = vmax.f32 %v1481_v63, 0.0  ;;  %v1611_v34 = vld [vmem:[#allocation2 + $0x10] sm:$0xff]  ;;  %v1203_v29 = vpop.f32.mrf.mxu2 }
 0x308   :  { %1396 = vst.msk [vmem:[#allocation2 + $0x20] sm:$0xff] %vm1391_vm2, %v1363_v41  ;;  %v1642_v12 = vmax.f32 %v1610_v3, %v12217_v36  ;;  %v1204_v55 = vadd.f32 %v1203_v29, %v11853_v28 }
 0x309   :  { %2280 = vst.msk [vmem:[#allocation2 + $0x110] sm:$0xff] %vm1391_vm2, %v2248_v45  ;;  %2467 = vmax.xlane.f32.xlu1 %v2417_v50  ;;  %v2496_v33 = vld [vmem:[#allocation2 + $0x108] sm:$0xff]  ;;  %v10699_v45 = vld [vmem:[#allocation3 + $0x190] sm:$0xff] }
 0x30a   :  { %2281 = vst.msk [vmem:[#allocation2 + $0x118] sm:$0xff] %vm1391_vm2, %v2249_v15  ;;  %v2528_v24 = vmax.f32 %v2496_v33, %v12222_v7  ;;  %v1643_v7 = vmax.f32 %v1611_v34, %v12271_v2  ;;  %v2088_v2 = vadd.f32 %v12305_v16, %v11921_v56  ;;  %3816 = vmatmul.bf16.gmra.mxu0 %v10699_v45  ;;  %v2220_v15 = vld [vmem:[#allocation2 + $0x130] sm:$0xff]  ;;  %v10700_v34 = vld [vmem:[#allocation3 + $0x198] sm:$0xff] }
 0x30b   :  { %1674 = vst.msk [vmem:[#allocation2] sm:$0xff] %vm1673_vm3, %v1641_v59  ;;  %4098 = vmatmul.bf16.gmra.mxu1 %v10699_v45  ;;  %v2252_v0 = vmax.f32 %v2220_v15, %v2162_v44 }
 0x30c   :  { %2560 = vst.msk [vmem:[#allocation2 + $0x108] sm:$0xff] %vm1673_vm3, %v2528_v24  ;;  %v2137_v16 = vmax.f32 %v2088_v2, 0.0 }
 0x30d   :  { %2463 = vmax.xlane.f32.xlu0 %v2415_v23  ;;  %v1330_v23 = vld [vmem:[#allocation2 + $0x18] sm:$0xff]  ;;  %v1552_v52 = vpop.xlane.xlu2 %1551  ;;  %1675 = vst.msk [vmem:[#allocation2 + $0x8] sm:$0xff] %vm1673_vm3, %v1642_v12  ;;  %v2160_v60 = vpop.xlane.xlu1 %2159 }
 0x30e   :  { %v1362_v10 = vmax.f32 %v1330_v23, %v1270_v20  ;;  %1676 = vst.msk [vmem:[#allocation2 + $0x10] sm:$0xff] %vm1673_vm3, %v1643_v7  ;;  %v1276_v12 = vpop.xlane.xlu0 %1275 }
 0x30f   :  { %2183 = vmax.xlane.f32.xlu2 %v2134_v53  ;;  %v1483_v53 = vpop.f32.mrf.mxu3  ;;  %v1613_v20 = vld [vmem:[#allocation2 + $0x20] sm:$0xff]  ;;  %v12338_v23 = vpop.f32.mrf.mxu0  ;;  %2284 = vst.msk [vmem:[#allocation2 + $0x130] sm:$0xff] %vm1391_vm2, %v2252_v0 }
 0x310   :  { %1395 = vst.msk [vmem:[#allocation2 + $0x18] sm:$0xff] %vm1391_vm2, %v1362_v10  ;;  %v1484_v49 = vadd.f32 %v1483_v53, %v11875_v1  ;;  %v2090_v10 = vadd.f32 %v2089_v40, %v11931_v6  ;;  %v1332_v53 = vld [vmem:[#allocation2 + $0x28] sm:$0xff]  ;;  %v12347_v63 = vpop.f32.mrf.mxu2  ;;  %v1252_v40 = vmax.f32 %v1204_v55, 0.0  ;;  %v2093_v2 = vadd.f32 %v12338_v23, %v11933_v42  ;;  %v2222_v23 = vld [vmem:[#allocation2 + $0x140] sm:$0xff] }
 0x311   :  { %1301 = vmax.xlane.f32.xlu1 %v1250_v22  ;;  %v2498_v30 = vld [vmem:[#allocation2 + $0x118] sm:$0xff]  ;;  %2936 = vmatmul.bf16.gmra.mxu2 %v10684_v57 }
 0x312   :  { %v2530_v27 = vmax.f32 %v2498_v30, %v12276_v62  ;;  %v1533_v50 = vmax.f32 %v1484_v49, 0.0  ;;  %3218 = vmatmul.bf16.gmra.mxu3 %v10684_v57  ;;  %v2138_v24 = vmax.f32 %v2090_v10, 0.0  ;;  %v1207_v10 = vadd.f32 %v12347_v63, %v11831_v51 }
 0x314   :  { %2562 = vst.msk [vmem:[#allocation2 + $0x118] sm:$0xff] %vm1673_vm3, %v2530_v27 }
 0x315   :  { %1299 = vmax.xlane.f32.xlu0 %v1249_v35  ;;  %v2497_v35 = vld [vmem:[#allocation2 + $0x110] sm:$0xff]  ;;  %v2158_v62 = vpop.xlane.xlu2 %2157  ;;  %v1556_v46 = vpop.xlane.xlu1 %1555 }
 0x316   :  { %v2529_v13 = vmax.f32 %v2497_v35, %v12242_v39  ;;  %v2367_v39 = vadd.f32 %v2366_v17, %v12150_v61  ;;  %v2251_v61 = vmax.f32 %v2219_v19, %v2160_v60  ;;  %v2250_v9 = vmax.f32 %v2218_v38, %v2158_v62  ;;  %v2501_v49 = vld [vmem:[#allocation2 + $0x130] sm:$0xff]  ;;  %v1560_v60 = vpop.xlane.xlu0 %1559 }
 0x317   :  { %2465 = vmax.xlane.f32.xlu2 %v2416_v11  ;;  %v2136_v11 = vmax.f32 %v2085_v25, 0.0  ;;  %v1612_v4 = vld [vmem:[#allocation2 + $0x18] sm:$0xff]  ;;  %v1485_v36 = vpop.f32.mrf.mxu3  ;;  %v12350_v59 = vpop.f32.mrf.mxu0 }
 0x318   :  { %2561 = vst.msk [vmem:[#allocation2 + $0x110] sm:$0xff] %vm1673_vm3, %v2529_v13  ;;  %v1644_v47 = vmax.f32 %v1612_v4, %v1552_v52  ;;  %v2418_v17 = vmax.f32 %v2367_v39, 0.0  ;;  %v12362_v7 = vpop.f32.mrf.mxu2  ;;  %v10685_v39 = vld [vmem:[#allocation3 + $0x120] sm:$0xff]  ;;  %v2095_v0 = vadd.f32 %v12350_v59, %v11915_v31 }
 0x319   :  { %2283 = vst.msk [vmem:[#allocation2 + $0x128] sm:$0xff] %vm1391_vm2, %v2251_v61  ;;  %1585 = vmax.xlane.f32.xlu1 %v1533_v50 }
 0x31a   :  { %1677 = vst.msk [vmem:[#allocation2 + $0x18] sm:$0xff] %vm1673_vm3, %v1644_v47  ;;  %3821 = vmatmul.bf16.gmra.mxu0 %v10700_v34 }
 0x31b   :  { %2282 = vst.msk [vmem:[#allocation2 + $0x120] sm:$0xff] %vm1391_vm2, %v2250_v9  ;;  %4103 = vmatmul.bf16.gmra.mxu1 %v10700_v34  ;;  %v1209_v34 = vadd.f32 %v12362_v7, %v11881_v21 }
 0x31d   :  { %1581 = vmax.xlane.f32.xlu0 %v1531_v37  ;;  %v1645_v37 = vmax.f32 %v1613_v20, %v12314_v5  ;;  %v2370_v5 = vadd.f32 %v2369_v54, %v11921_v56  ;;  %v1274_v41 = vpop.xlane.xlu2 %1273  ;;  %v1333_v56 = vld [vmem:[#allocation2 + $0x30] sm:$0xff]  ;;  %v12364_v19 = vpop.xlane.xlu1 %2445 }
 0x31e   :  { %v1364_v33 = vmax.f32 %v1332_v53, %v1274_v41  ;;  %v1365_v30 = vmax.f32 %v1333_v56, %v1276_v12  ;;  %v2448_v44 = vpop.xlane.xlu0 %2447  ;;  %v2221_v53 = vld [vmem:[#allocation2 + $0x138] sm:$0xff]  ;;  %v1335_v12 = vld [vmem:[#allocation2 + $0x40] sm:$0xff] }
 0x31f   :  { %1297 = vmax.xlane.f32.xlu2 %v1248_v58  ;;  %1678 = vst.msk [vmem:[#allocation2 + $0x20] sm:$0xff] %vm1673_vm3, %v1645_v37  ;;  %v2371_v58 = vpop.f32.mrf.mxu1  ;;  %v1488_v25 = vpop.f32.mrf.mxu3  ;;  %v2419_v22 = vmax.f32 %v2370_v5, 0.0  ;;  %v2139_v37 = vmax.f32 %v2093_v2, 0.0  ;;  %v10701_v5 = vld [vmem:[#allocation3 + $0x1a0] sm:$0xff] }
 0x320   :  { %v2500_v52 = vld [vmem:[#allocation2 + $0x128] sm:$0xff]  ;;  %1397 = vst.msk [vmem:[#allocation2 + $0x28] sm:$0xff] %vm1391_vm2, %v1364_v33  ;;  %v2372_v3 = vadd.f32 %v2371_v58, %v11931_v6  ;;  %v1489_v57 = vadd.f32 %v1488_v25, %v11831_v51  ;;  %v1211_v61 = vpop.f32.mrf.mxu2 }
 0x321   :  { %v2532_v35 = vmax.f32 %v2500_v52, %v2442_v18  ;;  %2191 = vmax.xlane.f32.xlu1 %v2138_v24  ;;  %1398 = vst.msk [vmem:[#allocation2 + $0x30] sm:$0xff] %vm1391_vm2, %v1365_v30  ;;  %2941 = vmatmul.bf16.gmra.mxu2 %v10685_v39  ;;  %v10686_v52 = vld [vmem:[#allocation3 + $0x128] sm:$0xff]  ;;  %v1212_v56 = vadd.f32 %v1211_v61, %v11867_v8 }
 0x322   :  { %3223 = vmatmul.bf16.gmra.mxu3 %v10685_v39  ;;  %v1535_v15 = vmax.f32 %v1489_v57, 0.0 }
 0x323   :  { %2564 = vst.msk [vmem:[#allocation2 + $0x128] sm:$0xff] %vm1673_vm3, %v2532_v35 }
 0x325   :  { %2187 = vmax.xlane.f32.xlu0 %v2136_v11  ;;  %v2499_v11 = vld [vmem:[#allocation2 + $0x120] sm:$0xff]  ;;  %v2444_v27 = vpop.xlane.xlu2 %2443  ;;  %v1278_v62 = vpop.xlane.xlu1 %1277 }
 0x326   :  { %v2531_v13 = vmax.f32 %v2499_v11, %v12298_v14  ;;  %v1202_v14 = vadd.f32 %v12318_v26, %v11875_v1  ;;  %v2533_v6 = vmax.f32 %v2501_v49, %v2444_v27  ;;  %v12367_v1 = vpop.f32.mrf.mxu0  ;;  %v1334_v26 = vld [vmem:[#allocation2 + $0x38] sm:$0xff]  ;;  %v1253_v11 = vmax.f32 %v1207_v10, 0.0 }
 0x327   :  { %1583 = vmax.xlane.f32.xlu2 %v1532_v43  ;;  %v1486_v43 = vadd.f32 %v1485_v36, %v11853_v28  ;;  %v12358_v54 = vpop.f32.mrf.mxu3  ;;  %v2374_v4 = vpop.f32.mrf.mxu1  ;;  %v2420_v28 = vmax.f32 %v2372_v3, 0.0  ;;  %v1614_v18 = vld [vmem:[#allocation2 + $0x28] sm:$0xff]  ;;  %v1366_v20 = vmax.f32 %v1334_v26, %v1278_v62  ;;  %v2098_v7 = vadd.f32 %v12367_v1, %v11913_v48 }
 0x328   :  { %2563 = vst.msk [vmem:[#allocation2 + $0x120] sm:$0xff] %vm1673_vm3, %v2531_v13  ;;  %v1251_v38 = vmax.f32 %v1202_v14, 0.0  ;;  %v1646_v45 = vmax.f32 %v1614_v18, %v1556_v46  ;;  %v2375_v47 = vadd.f32 %v2374_v4, %v11933_v42  ;;  %v12388_v46 = vpop.f32.mrf.mxu2  ;;  %v1491_v13 = vadd.f32 %v12358_v54, %v11881_v21  ;;  %v1336_v21 = vld [vmem:[#allocation2 + $0x48] sm:$0xff] }
 0x329   :  { %v1534_v36 = vmax.f32 %v1486_v43, 0.0  ;;  %2565 = vst.msk [vmem:[#allocation2 + $0x130] sm:$0xff] %vm1673_vm3, %v2533_v6  ;;  %2473 = vmax.xlane.f32.xlu1 %v2420_v28  ;;  %v2168_v43 = vpop.xlane.xlu0 %2167  ;;  %v1255_v28 = vmax.f32 %v1212_v56, 0.0  ;;  %v2225_v56 = vld [vmem:[#allocation2 + $0x158] sm:$0xff] }
 0x32a   :  { %1679 = vst.msk [vmem:[#allocation2 + $0x28] sm:$0xff] %vm1673_vm3, %v1646_v45  ;;  %3826 = vmatmul.bf16.gmra.mxu0 %v10701_v5  ;;  %v1536_v6 = vmax.f32 %v1491_v13, 0.0 }
 0x32b   :  { %1399 = vst.msk [vmem:[#allocation2 + $0x38] sm:$0xff] %vm1391_vm2, %v1366_v20  ;;  %4108 = vmatmul.bf16.gmra.mxu1 %v10701_v5  ;;  %v10687_v20 = vld [vmem:[#allocation3 + $0x130] sm:$0xff] }
 0x32d   :  { %2469 = vmax.xlane.f32.xlu0 %v2418_v17  ;;  %v1558_v9 = vpop.xlane.xlu2 %1557  ;;  %v1615_v17 = vld [vmem:[#allocation2 + $0x30] sm:$0xff]  ;;  %v2166_v41 = vpop.xlane.xlu1 %2165 }
 0x32e   :  { %v1647_v50 = vmax.f32 %v1615_v17, %v1558_v9  ;;  %v12379_v42 = vpop.f32.mrf.mxu0  ;;  %v2254_v33 = vmax.f32 %v2222_v23, %v2166_v41  ;;  %v1337_v23 = vld [vmem:[#allocation2 + $0x50] sm:$0xff] }
 0x32f   :  { %2189 = vmax.xlane.f32.xlu2 %v2137_v16  ;;  %v12374_v29 = vpop.f32.mrf.mxu3  ;;  %v2421_v16 = vmax.f32 %v2375_v47, 0.0  ;;  %v2376_v58 = vpop.f32.mrf.mxu1  ;;  %v2100_v10 = vadd.f32 %v12379_v42, %v11929_v32 }
 0x330   :  { %1680 = vst.msk [vmem:[#allocation2 + $0x30] sm:$0xff] %vm1673_vm3, %v1647_v50  ;;  %v2377_v55 = vadd.f32 %v2376_v58, %v11915_v31  ;;  %v2223_v31 = vld [vmem:[#allocation2 + $0x148] sm:$0xff]  ;;  %v12400_v14 = vpop.f32.mrf.mxu2  ;;  %v1494_v26 = vadd.f32 %v12374_v29, %v11867_v8  ;;  %v2224_v58 = vld [vmem:[#allocation2 + $0x150] sm:$0xff] }
 0x331   :  { %2475 = vmax.xlane.f32.xlu1 %v2421_v16  ;;  %2286 = vst.msk [vmem:[#allocation2 + $0x140] sm:$0xff] %vm1391_vm2, %v2254_v33  ;;  %2946 = vmatmul.bf16.gmra.mxu2 %v10686_v52  ;;  %v2255_v30 = vmax.f32 %v2223_v31, %v2168_v43  ;;  %v1282_v47 = vpop.xlane.xlu0 %1281  ;;  %v17070_v31 = vld [vmem:[#allocation18_spill] sm:$0xff]  ;;  %v10703_v43 = vld [vmem:[#allocation3 + $0x1b0] sm:$0xff] }
 0x332   :  { %v2422_v51 = vmax.f32 %v2377_v55, 0.0  ;;  %3228 = vmatmul.bf16.gmra.mxu3 %v10686_v52  ;;  %v1368_v61 = vmax.f32 %v1336_v21, %v1282_v47  ;;  %v1537_v8 = vmax.f32 %v1494_v26, 0.0  ;;  %v2226_v21 = vld [vmem:[#allocation2 + $0x160] sm:$0xff]  ;;  %v17072_v47 = vld [vmem:[#allocation12_spill] sm:$0xff] }
 0x333   :  { %2287 = vst.msk [vmem:[#allocation2 + $0x148] sm:$0xff] %vm1391_vm2, %v2255_v30 }
 0x334   :  { %1401 = vst.msk [vmem:[#allocation2 + $0x48] sm:$0xff] %vm1391_vm2, %v1368_v61 }
 0x335   :  { %1305 = vmax.xlane.f32.xlu0 %v1252_v40  ;;  %v2164_v24 = vpop.xlane.xlu2 %2163  ;;  %v1616_v40 = vld [vmem:[#allocation2 + $0x38] sm:$0xff]  ;;  %v1562_v39 = vpop.xlane.xlu1 %1561 }
 0x336   :  { %v2253_v35 = vmax.f32 %v2221_v53, %v2164_v24  ;;  %v1648_v63 = vmax.f32 %v1616_v40, %v1560_v60  ;;  %v12402_v27 = vpop.f32.mrf.mxu0  ;;  %v17069_v53 = vld [vmem:[#allocation9_spill] sm:$0xff] }
 0x337   :  { %2471 = vmax.xlane.f32.xlu2 %v2419_v22  ;;  %v12384_v25 = vpop.f32.mrf.mxu3  ;;  %v2140_v22 = vmax.f32 %v2095_v0, 0.0  ;;  %v2379_v59 = vpop.f32.mrf.mxu1 }
 0x338   :  { %2285 = vst.msk [vmem:[#allocation2 + $0x138] sm:$0xff] %vm1391_vm2, %v2253_v35  ;;  %v2503_v4 = vld [vmem:[#allocation2 + $0x140] sm:$0xff]  ;;  %v2380_v60 = vadd.f32 %v2379_v59, %v11913_v48  ;;  %v12416_v57 = vpop.f32.mrf.mxu2  ;;  %v1496_v5 = vadd.f32 %v12384_v25, %v17069_v53 }
 0x339   :  { %1681 = vst.msk [vmem:[#allocation2 + $0x38] sm:$0xff] %vm1673_vm3, %v1648_v63  ;;  %1307 = vmax.xlane.f32.xlu1 %v1253_v11 }
 0x33a   :  { %v2504_v17 = vld [vmem:[#allocation2 + $0x148] sm:$0xff]  ;;  %v2423_v48 = vmax.f32 %v2380_v60, 0.0 }
 0x33b   :  { %v1618_v35 = vld [vmem:[#allocation2 + $0x48] sm:$0xff] }
 0x33d   :  { %1587 = vmax.xlane.f32.xlu0 %v1534_v36  ;;  %v1280_v49 = vpop.xlane.xlu2 %1279  ;;  %v2535_v36 = vmax.f32 %v2503_v4, %v2448_v44  ;;  %v12418_v62 = vpop.xlane.xlu1 %2451 }
 0x33e   :  { %v1367_v54 = vmax.f32 %v1335_v12, %v1280_v49  ;;  %v12421_v29 = vpop.f32.mrf.mxu0  ;;  %v2170_v44 = vpop.xlane.xlu0 %2169  ;;  %v2103_v12 = vadd.f32 %v12402_v27, %v17070_v31 }
 0x33f   :  { %1303 = vmax.xlane.f32.xlu2 %v1251_v38  ;;  %v12396_v3 = vpop.f32.mrf.mxu3  ;;  %v2502_v18 = vld [vmem:[#allocation2 + $0x138] sm:$0xff]  ;;  %v1254_v38 = vmax.f32 %v1209_v34, 0.0  ;;  %2567 = vst.msk [vmem:[#allocation2 + $0x140] sm:$0xff] %vm1673_vm3, %v2535_v36  ;;  %v2381_v50 = vpop.f32.mrf.mxu1  ;;  %v2256_v41 = vmax.f32 %v2224_v58, %v2170_v44 }
 0x340   :  { %v2534_v45 = vmax.f32 %v2502_v18, %v12364_v19  ;;  %1400 = vst.msk [vmem:[#allocation2 + $0x40] sm:$0xff] %vm1391_vm2, %v1367_v54  ;;  %v10702_v19 = vld [vmem:[#allocation3 + $0x1a8] sm:$0xff]  ;;  %v2382_v55 = vadd.f32 %v2381_v50, %v11929_v32  ;;  %v12430_v0 = vpop.f32.mrf.mxu2  ;;  %v1538_v32 = vmax.f32 %v1496_v5, 0.0  ;;  %v17073_v58 = vld [vmem:[#allocation20_spill] sm:$0xff] }
 0x341   :  { %1591 = vmax.xlane.f32.xlu1 %v1536_v6  ;;  %3831 = vmatmul.bf16.gmra.mxu0 %v10702_v19  ;;  %2288 = vst.msk [vmem:[#allocation2 + $0x150] sm:$0xff] %vm1391_vm2, %v2256_v41  ;;  %v10704_v44 = vld [vmem:[#allocation3 + $0x1b8] sm:$0xff] }
 0x342   :  { %2566 = vst.msk [vmem:[#allocation2 + $0x138] sm:$0xff] %vm1673_vm3, %v2534_v45  ;;  %4113 = vmatmul.bf16.gmra.mxu1 %v10702_v19  ;;  %2951 = vmatmul.bf16.gmra.mxu2 %v10687_v20  ;;  %v2424_v42 = vmax.f32 %v2382_v55, 0.0  ;;  %v2143_v45 = vmax.f32 %v2103_v12, 0.0  ;;  %v1219_v19 = vadd.f32 %v12416_v57, %v17072_v47 }
 0x343   :  { %3233 = vmatmul.bf16.gmra.mxu3 %v10687_v20 }
 0x345   :  { %2193 = vmax.xlane.f32.xlu0 %v2139_v37  ;;  %v2450_v9 = vpop.xlane.xlu2 %2449  ;;  %v2141_v37 = vmax.f32 %v2098_v7, 0.0  ;;  %v1284_v52 = vpop.xlane.xlu1 %1283  ;;  %v17071_v7 = vld [vmem:[#allocation15_spill] sm:$0xff] }
 0x346   :  { %v2536_v1 = vmax.f32 %v2504_v17, %v2450_v9  ;;  %v1369_v24 = vmax.f32 %v1337_v23, %v1284_v52  ;;  %v12437_v25 = vpop.f32.mrf.mxu0  ;;  %v1566_v13 = vpop.xlane.xlu0 %1565  ;;  %v1499_v26 = vadd.f32 %v12396_v3, %v17071_v7  ;;  %v1217_v20 = vadd.f32 %v12400_v14, %v17071_v7  ;;  %v17077_v7 = vld [vmem:[#allocation16_spill] sm:$0xff] }
 0x347   :  { %1589 = vmax.xlane.f32.xlu2 %v1535_v15  ;;  %v12413_v2 = vpop.f32.mrf.mxu3  ;;  %v1617_v16 = vld [vmem:[#allocation2 + $0x40] sm:$0xff]  ;;  %v2384_v63 = vpop.f32.mrf.mxu1  ;;  %v2105_v23 = vadd.f32 %v12421_v29, %v17073_v58 }
 0x348   :  { %v1649_v15 = vmax.f32 %v1617_v16, %v1562_v39  ;;  %2568 = vst.msk [vmem:[#allocation2 + $0x148] sm:$0xff] %vm1673_vm3, %v2536_v1  ;;  %v2385_v59 = vadd.f32 %v2384_v63, %v17070_v31  ;;  %v12444_v34 = vpop.f32.mrf.mxu2  ;;  %v10688_v39 = vld [vmem:[#allocation3 + $0x138] sm:$0xff]  ;;  %v2505_v49 = vld [vmem:[#allocation2 + $0x150] sm:$0xff]  ;;  %v1258_v16 = vmax.f32 %v1219_v19, 0.0  ;;  %v1257_v3 = vmax.f32 %v1217_v20, 0.0  ;;  %v1340_v31 = vld [vmem:[#allocation2 + $0x68] sm:$0xff] }
 0x349   :  { %2197 = vmax.xlane.f32.xlu1 %v2141_v37  ;;  %1402 = vst.msk [vmem:[#allocation2 + $0x50] sm:$0xff] %vm1391_vm2, %v1369_v24  ;;  %v2537_v54 = vmax.f32 %v2505_v49, %v12418_v62  ;;  %v1338_v62 = vld [vmem:[#allocation2 + $0x58] sm:$0xff]  ;;  %v10689_v24 = vld [vmem:[#allocation3 + $0x140] sm:$0xff]  ;;  %v1341_v19 = vld [vmem:[#allocation2 + $0x70] sm:$0xff] }
 0x34a   :  { %1682 = vst.msk [vmem:[#allocation2 + $0x40] sm:$0xff] %vm1673_vm3, %v1649_v15  ;;  %v2425_v36 = vmax.f32 %v2385_v59, 0.0  ;;  %v1339_v15 = vld [vmem:[#allocation2 + $0x60] sm:$0xff] }
 0x34b   :  { %2569 = vst.msk [vmem:[#allocation2 + $0x150] sm:$0xff] %vm1673_vm3, %v2537_v54  ;;  %v17074_v59 = vld [vmem:[#allocation21_spill] sm:$0xff] }
 0x34d   :  { %2477 = vmax.xlane.f32.xlu0 %v2422_v51  ;;  %v1564_v40 = vpop.xlane.xlu2 %1563  ;;  %v2142_v51 = vmax.f32 %v2100_v10, 0.0  ;;  %v12446_v30 = vpop.xlane.xlu1 %1567  ;;  %v1501_v10 = vadd.f32 %v12413_v2, %v17072_v47  ;;  %v2144_v2 = vmax.f32 %v2105_v23, 0.0  ;;  %v1343_v23 = vld [vmem:[#allocation2 + $0x80] sm:$0xff] }
 0x34e   :  { %v1650_v11 = vmax.f32 %v1618_v35, %v1564_v40  ;;  %v12458_v60 = vpop.f32.mrf.mxu0  ;;  %v2454_v61 = vpop.xlane.xlu0 %2453 }
 0x34f   :  { %2195 = vmax.xlane.f32.xlu2 %v2140_v22  ;;  %v12432_v33 = vpop.f32.mrf.mxu3  ;;  %v1214_v22 = vadd.f32 %v12388_v46, %v17069_v53  ;;  %v2386_v27 = vpop.f32.mrf.mxu1 }
 0x350   :  { %1683 = vst.msk [vmem:[#allocation2 + $0x48] sm:$0xff] %vm1673_vm3, %v1650_v11  ;;  %v1619_v6 = vld [vmem:[#allocation2 + $0x50] sm:$0xff]  ;;  %v12462_v9 = vpop.f32.mrf.mxu2  ;;  %v2387_v53 = vadd.f32 %v2386_v27, %v17073_v58 }
 0x351   :  { %2481 = vmax.xlane.f32.xlu1 %v2424_v42  ;;  %v1256_v46 = vmax.f32 %v1214_v22, 0.0  ;;  %3836 = vmatmul.bf16.gmra.mxu0 %v10703_v43  ;;  %v2228_v58 = vld [vmem:[#allocation2 + $0x170] sm:$0xff] }
 0x352   :  { %4118 = vmatmul.bf16.gmra.mxu1 %v10703_v43  ;;  %2956 = vmatmul.bf16.gmra.mxu2 %v10688_v39  ;;  %v2426_v63 = vmax.f32 %v2387_v53, 0.0 }
 0x353   :  { %3238 = vmatmul.bf16.gmra.mxu3 %v10688_v39  ;;  %v17075_v39 = vld [vmem:[#allocation10_spill] sm:$0xff] }
 0x355   :  { %1311 = vmax.xlane.f32.xlu0 %v1255_v28  ;;  %v2172_v4 = vpop.xlane.xlu2 %2171  ;;  %v2174_v17 = vpop.xlane.xlu1 %2173 }
 0x356   :  { %v2257_v28 = vmax.f32 %v2225_v56, %v2172_v4  ;;  %v2258_v50 = vmax.f32 %v2226_v21, %v2174_v17  ;;  %v1288_v55 = vpop.xlane.xlu0 %1287  ;;  %v12478_v40 = vpop.f32.mrf.mxu0  ;;  %v2227_v21 = vld [vmem:[#allocation2 + $0x168] sm:$0xff] }
 0x357   :  { %1309 = vmax.xlane.f32.xlu2 %v1254_v38  ;;  %v12449_v18 = vpop.f32.mrf.mxu3  ;;  %v1651_v38 = vmax.f32 %v1619_v6, %v1566_v13  ;;  %v1371_v41 = vmax.f32 %v1339_v15, %v1288_v55  ;;  %v2389_v11 = vpop.f32.mrf.mxu1  ;;  %v2108_v13 = vadd.f32 %v12437_v25, %v17074_v59 }
 0x358   :  { %2289 = vst.msk [vmem:[#allocation2 + $0x158] sm:$0xff] %vm1391_vm2, %v2257_v28  ;;  %v12474_v5 = vpop.f32.mrf.mxu2  ;;  %v2390_v56 = vadd.f32 %v2389_v11, %v17074_v59 }
 0x359   :  { %1684 = vst.msk [vmem:[#allocation2 + $0x50] sm:$0xff] %vm1673_vm3, %v1651_v38  ;;  %1313 = vmax.xlane.f32.xlu1 %v1256_v46 }
 0x35a   :  { %2290 = vst.msk [vmem:[#allocation2 + $0x160] sm:$0xff] %vm1391_vm2, %v2258_v50  ;;  %v2427_v38 = vmax.f32 %v2390_v56, 0.0  ;;  %v2229_v56 = vld [vmem:[#allocation2 + $0x178] sm:$0xff] }
 0x35b   :  { %1404 = vst.msk [vmem:[#allocation2 + $0x60] sm:$0xff] %vm1391_vm2, %v1371_v41 }
 0x35d   :  { %1593 = vmax.xlane.f32.xlu0 %v1537_v8  ;;  %v1286_v1 = vpop.xlane.xlu2 %1285  ;;  %v1539_v8 = vmax.f32 %v1499_v26, 0.0  ;;  %v12476_v52 = vpop.xlane.xlu1 %2457 }
 0x35e   :  { %v1370_v37 = vmax.f32 %v1338_v62, %v1286_v1  ;;  %v1570_v12 = vpop.xlane.xlu0 %1569  ;;  %v2110_v62 = vadd.f32 %v12458_v60, %v17077_v7  ;;  %v10690_v1 = vld [vmem:[#allocation3 + $0x148] sm:$0xff] }
 0x35f   :  { %2479 = vmax.xlane.f32.xlu2 %v2423_v48  ;;  %v12466_v57 = vpop.f32.mrf.mxu3  ;;  %v2506_v48 = vld [vmem:[#allocation2 + $0x158] sm:$0xff]  ;;  %v2391_v27 = vpop.f32.mrf.mxu1 }
 0x360   :  { %1403 = vst.msk [vmem:[#allocation2 + $0x58] sm:$0xff] %vm1391_vm2, %v1370_v37  ;;  %v2538_v14 = vmax.f32 %v2506_v48, %v2454_v61  ;;  %v12491_v49 = vpop.f32.mrf.mxu2  ;;  %v2392_v26 = vadd.f32 %v2391_v27, %v17077_v7  ;;  %v10705_v61 = vld [vmem:[#allocation3 + $0x1c0] sm:$0xff]  ;;  %v2146_v60 = vmax.f32 %v2110_v62, 0.0  ;;  %v17089_v7 = vld [vmem:[#allocation19_spill] sm:$0xff] }
 0x361   :  { %1597 = vmax.xlane.f32.xlu1 %v1539_v8  ;;  %v2507_v29 = vld [vmem:[#allocation2 + $0x160] sm:$0xff]  ;;  %3841 = vmatmul.bf16.gmra.mxu0 %v10704_v44  ;;  %17076 = vst [vmem:[#allocation9_spill] sm:$0xff] %v12491_v49 }
 0x362   :  { %2570 = vst.msk [vmem:[#allocation2 + $0x158] sm:$0xff] %vm1673_vm3, %v2538_v14  ;;  %4123 = vmatmul.bf16.gmra.mxu1 %v10704_v44  ;;  %2961 = vmatmul.bf16.gmra.mxu2 %v10689_v24  ;;  %v1621_v54 = vld [vmem:[#allocation2 + $0x60] sm:$0xff]  ;;  %v2428_v48 = vmax.f32 %v2392_v26, 0.0  ;;  %v17082_v44 = vld [vmem:[#allocation14_spill] sm:$0xff] }
 0x363   :  { %3243 = vmatmul.bf16.gmra.mxu3 %v10689_v24  ;;  %v1653_v46 = vmax.f32 %v1621_v54, %v1570_v12  ;;  %v1227_v53 = vadd.f32 %v12462_v9, %v17082_v44  ;;  %v10706_v12 = vld [vmem:[#allocation3 + $0x1c8] sm:$0xff] }
 0x365   :  { %2199 = vmax.xlane.f32.xlu0 %v2142_v51  ;;  %v2456_v35 = vpop.xlane.xlu2 %2455  ;;  %v1540_v51 = vmax.f32 %v1501_v10, 0.0  ;;  %v1290_v4 = vpop.xlane.xlu1 %1289  ;;  %1686 = vst.msk [vmem:[#allocation2 + $0x60] sm:$0xff] %vm1673_vm3, %v1653_v46  ;;  %v17081_v10 = vld [vmem:[#allocation17_spill] sm:$0xff] }
 0x366   :  { %v1372_v6 = vmax.f32 %v1340_v31, %v1290_v4  ;;  %v2176_v47 = vpop.xlane.xlu0 %2175  ;;  %v1506_v55 = vadd.f32 %v12449_v18, %v17081_v10  ;;  %v1224_v24 = vadd.f32 %v12444_v34, %v17081_v10  ;;  %v1261_v18 = vmax.f32 %v1227_v53, 0.0  ;;  %v10707_v10 = vld [vmem:[#allocation3 + $0x1d0] sm:$0xff] }
 0x367   :  { %1595 = vmax.xlane.f32.xlu2 %v1538_v32  ;;  %v1620_v42 = vld [vmem:[#allocation2 + $0x58] sm:$0xff]  ;;  %v2539_v32 = vmax.f32 %v2507_v29, %v2456_v35  ;;  %v12487_v43 = vpop.f32.mrf.mxu3  ;;  %v2259_v17 = vmax.f32 %v2227_v21, %v2176_v47 }
 0x368   :  { %v1652_v22 = vmax.f32 %v1620_v42, %v12446_v30  ;;  %v1504_v30 = vadd.f32 %v12432_v33, %v17075_v39  ;;  %1405 = vst.msk [vmem:[#allocation2 + $0x68] sm:$0xff] %vm1391_vm2, %v1372_v6  ;;  %v1222_v33 = vadd.f32 %v12430_v0, %v17075_v39  ;;  %v12502_v20 = vpop.f32.mrf.mxu2  ;;  %v17086_v39 = vld [vmem:[#allocation13_spill] sm:$0xff]  ;;  %v10691_v6 = vld [vmem:[#allocation3 + $0x150] sm:$0xff] }
 0x369   :  { %2571 = vst.msk [vmem:[#allocation2 + $0x160] sm:$0xff] %vm1673_vm3, %v2539_v32  ;;  %2203 = vmax.xlane.f32.xlu1 %v2144_v2 }
 0x36a   :  { %1685 = vst.msk [vmem:[#allocation2 + $0x58] sm:$0xff] %vm1673_vm3, %v1652_v22  ;;  %v1541_v25 = vmax.f32 %v1504_v30, 0.0  ;;  %v1260_v22 = vmax.f32 %v1224_v24, 0.0  ;;  %v2113_v30 = vadd.f32 %v12478_v40, %v17086_v39  ;;  %v1342_v40 = vld [vmem:[#allocation2 + $0x78] sm:$0xff] }
 0x36b   :  { %17078 = vst [vmem:[#allocation18_spill] sm:$0xff] %v12502_v20 }
 0x36c   :  { %2291 = vst.msk [vmem:[#allocation2 + $0x168] sm:$0xff] %vm1391_vm2, %v2259_v17 }
 0x36d   :  { %2483 = vmax.xlane.f32.xlu0 %v2425_v36  ;;  %v1572_v28 = vpop.xlane.xlu2 %1571  ;;  %v2145_v36 = vmax.f32 %v2108_v13, 0.0  ;;  %v12504_v50 = vpop.xlane.xlu1 %1575 }
 0x36e   :  { %v2178_v41 = vpop.xlane.xlu0 %2177 }
 0x36f   :  { %2201 = vmax.xlane.f32.xlu2 %v2143_v45  ;;  %v12493_v45 = vpop.f32.mrf.mxu0  ;;  %v12506_v8 = vpop.f32.mrf.mxu3  ;;  %v2260_v11 = vmax.f32 %v2228_v58, %v2178_v41  ;;  %v10692_v41 = vld [vmem:[#allocation3 + $0x158] sm:$0xff] }
 0x370   :  { %17079 = vst [vmem:[#allocation15_spill] sm:$0xff] %v12506_v8  ;;  %v12519_v35 = vpop.f32.mrf.mxu2  ;;  %v2115_v26 = vadd.f32 %v12493_v45, %v17089_v7 }
 0x371   :  { %2487 = vmax.xlane.f32.xlu1 %v2427_v38  ;;  %3846 = vmatmul.bf16.gmra.mxu0 %v10705_v61  ;;  %17083 = vst [vmem:[#allocation20_spill] sm:$0xff] %v12519_v35 }
 0x372   :  { %4128 = vmatmul.bf16.gmra.mxu1 %v10705_v61  ;;  %2966 = vmatmul.bf16.gmra.mxu2 %v10690_v1  ;;  %2292 = vst.msk [vmem:[#allocation2 + $0x170] sm:$0xff] %vm1391_vm2, %v2260_v11 }
 0x373   :  { %3248 = vmatmul.bf16.gmra.mxu3 %v10690_v1  ;;  %v2508_v2 = vld [vmem:[#allocation2 + $0x168] sm:$0xff] }
 0x374   :  { %v2540_v32 = vmax.f32 %v2508_v2, %v12476_v52  ;;  %v1509_v52 = vadd.f32 %v12466_v57, %v17082_v44  ;;  %v2147_v57 = vmax.f32 %v2113_v30, 0.0 }
 0x375   :  { %1317 = vmax.xlane.f32.xlu0 %v1258_v16  ;;  %v1292_v37 = vpop.xlane.xlu2 %1291  ;;  %v1622_v16 = vld [vmem:[#allocation2 + $0x68] sm:$0xff]  ;;  %v1296_v29 = vpop.xlane.xlu1 %1295 }
 0x376   :  { %v1373_v0 = vmax.f32 %v1341_v19, %v1292_v37  ;;  %v1654_v15 = vmax.f32 %v1622_v16, %v1572_v28  ;;  %2572 = vst.msk [vmem:[#allocation2 + $0x168] sm:$0xff] %vm1673_vm3, %v2540_v32  ;;  %v2460_v13 = vpop.xlane.xlu0 %2459  ;;  %v1543_v27 = vmax.f32 %v1509_v52, 0.0  ;;  %v17094_v52 = vld [vmem:[#allocation11_spill] sm:$0xff] }
 0x377   :  { %1315 = vmax.xlane.f32.xlu2 %v1257_v3  ;;  %v1259_v3 = vmax.f32 %v1222_v33, 0.0  ;;  %v12509_v14 = vpop.f32.mrf.mxu0  ;;  %v12524_v31 = vpop.f32.mrf.mxu3  ;;  %v2232_v33 = vld [vmem:[#allocation2 + $0x190] sm:$0xff] }
 0x378   :  { %17080 = vst [vmem:[#allocation12_spill] sm:$0xff] %v12509_v14  ;;  %v12534_v4 = vpop.f32.mrf.mxu2 }
 0x379   :  { %1406 = vst.msk [vmem:[#allocation2 + $0x70] sm:$0xff] %vm1391_vm2, %v1373_v0  ;;  %1319 = vmax.xlane.f32.xlu1 %v1259_v3  ;;  %v2509_v28 = vld [vmem:[#allocation2 + $0x170] sm:$0xff]  ;;  %v2148_v0 = vmax.f32 %v2115_v26, 0.0 }
 0x37a   :  { %1687 = vst.msk [vmem:[#allocation2 + $0x68] sm:$0xff] %vm1673_vm3, %v1654_v15  ;;  %v2541_v38 = vmax.f32 %v2509_v28, %v2460_v13  ;;  %v1229_v13 = vadd.f32 %v12474_v5, %v17094_v52 }
 0x37b   :  { %17084 = vst [vmem:[#allocation21_spill] sm:$0xff] %v12524_v31  ;;  %v1355_v31 = vld [vmem:[#allocation2 + $0xe0] sm:$0xff] }
 0x37c   :  { %17087 = vst [vmem:[#allocation16_spill] sm:$0xff] %v12534_v4 }
 0x37d   :  { %1599 = vmax.xlane.f32.xlu0 %v1540_v51  ;;  %v1375_v51 = vmax.f32 %v1343_v23, %v1296_v29  ;;  %v1574_v42 = vpop.xlane.xlu2 %1573  ;;  %v12536_v54 = vpop.xlane.xlu1 %1579  ;;  %2573 = vst.msk [vmem:[#allocation2 + $0x170] sm:$0xff] %vm1673_vm3, %v2541_v38  ;;  %v4409_v28 = vld [vmem:[#allocation2 + $0x168] sm:$0xff] }
 0x37e   :  { %v1294_v47 = vpop.xlane.xlu0 %1293 }
 0x37f   :  { %2485 = vmax.xlane.f32.xlu2 %v2426_v63  ;;  %v1542_v63 = vmax.f32 %v1506_v55, 0.0  ;;  %1408 = vst.msk [vmem:[#allocation2 + $0x80] sm:$0xff] %vm1391_vm2, %v1375_v51  ;;  %v12527_v59 = vpop.f32.mrf.mxu0  ;;  %v12540_v21 = vpop.f32.mrf.mxu3  ;;  %v1374_v17 = vmax.f32 %v1342_v40, %v1294_v47  ;;  %v4408_v40 = vld [vmem:[#allocation2 + $0x160] sm:$0xff] }
 0x380   :  { %v1623_v9 = vld [vmem:[#allocation2 + $0x70] sm:$0xff]  ;;  %17085 = vst [vmem:[#allocation10_spill] sm:$0xff] %v12527_v59  ;;  %v4514_v5 = vpack.c.bf16 %v4409_v28, %v4408_v40  ;;  %v4400_v40 = vld [vmem:[#allocation2 + $0x120] sm:$0xff] }
 0x381   :  { %v1655_v34 = vmax.f32 %v1623_v9, %v1574_v42  ;;  %1603 = vmax.xlane.f32.xlu1 %v1542_v63  ;;  %3851 = vmatmul.bf16.gmra.mxu0 %v10706_v12  ;;  %17088 = vst [vmem:[#allocation17_spill] sm:$0xff] %v12540_v21 }
 0x382   :  { %4133 = vmatmul.bf16.gmra.mxu1 %v10706_v12  ;;  %2971 = vmatmul.bf16.gmra.mxu2 %v10691_v6  ;;  %1407 = vst.msk [vmem:[#allocation2 + $0x78] sm:$0xff] %vm1391_vm2, %v1374_v17 }
 0x383   :  { %1688 = vst.msk [vmem:[#allocation2 + $0x70] sm:$0xff] %vm1673_vm3, %v1655_v34  ;;  %3253 = vmatmul.bf16.gmra.mxu3 %v10691_v6 }
 0x384   :  { %v12547_v62 = vpop.f32.mrf.mxu2  ;;  %v4410_v34 = vld [vmem:[#allocation2 + $0x170] sm:$0xff] }
 0x385   :  { %2205 = vmax.xlane.f32.xlu0 %v2145_v36  ;;  %v2180_v46 = vpop.xlane.xlu2 %2179  ;;  %v2394_v36 = vpop.f32.mrf.mxu1 }
 0x386   :  { %v2395_v61 = vadd.f32 %v2394_v36, %v17086_v39  ;;  %v2186_v1 = vpop.xlane.xlu1 %2185  ;;  %v2182_v23 = vpop.xlane.xlu0 %2181  ;;  %v1625_v29 = vld [vmem:[#allocation2 + $0x80] sm:$0xff]  ;;  %v2231_v39 = vld [vmem:[#allocation2 + $0x188] sm:$0xff] }
 0x387   :  { %1601 = vmax.xlane.f32.xlu2 %v1541_v25  ;;  %v2261_v25 = vmax.f32 %v2229_v56, %v2180_v46  ;;  %v12544_v19 = vpop.f32.mrf.mxu0  ;;  %v2264_v37 = vmax.f32 %v2232_v33, %v2186_v1  ;;  %v12557_v51 = vpop.f32.mrf.mxu3  ;;  %v1262_v33 = vmax.f32 %v1229_v13, 0.0  ;;  %v4407_v1 = vld [vmem:[#allocation2 + $0x158] sm:$0xff]  ;;  %v4373_v13 = vld [vmem:[#allocation2 + $0x48] sm:$0xff] }
 0x388   :  { %17090 = vst [vmem:[#allocation14_spill] sm:$0xff] %v12544_v19  ;;  %v2429_v3 = vmax.f32 %v2395_v61, 0.0 }
 0x389   :  { %2293 = vst.msk [vmem:[#allocation2 + $0x178] sm:$0xff] %vm1391_vm2, %v2261_v25  ;;  %1605 = vmax.xlane.f32.xlu1 %v1543_v27  ;;  %v1624_v24 = vld [vmem:[#allocation2 + $0x78] sm:$0xff] }
 0x38a   :  { %2296 = vst.msk [vmem:[#allocation2 + $0x190] sm:$0xff] %vm1391_vm2, %v2264_v37  ;;  %v1656_v42 = vmax.f32 %v1624_v24, %v12504_v50  ;;  %v1345_v37 = vld [vmem:[#allocation2 + $0x90] sm:$0xff]  ;;  %v4375_v24 = vld [vmem:[#allocation2 + $0x58] sm:$0xff] }
 0x38b   :  { %17093 = vst [vmem:[#allocation22_spill] sm:$0xff] %v12557_v51 }
 0x38c   :  { %v12553_v55 = vpop.f32.mrf.mxu2  ;;  %1689 = vst.msk [vmem:[#allocation2 + $0x78] sm:$0xff] %vm1673_vm3, %v1656_v42  ;;  %v4374_v42 = vld [vmem:[#allocation2 + $0x50] sm:$0xff] }
 0x38d   :  { %2489 = vmax.xlane.f32.xlu0 %v2428_v48  ;;  %v2462_v16 = vpop.xlane.xlu2 %2461  ;;  %v2396_v48 = vpop.f32.mrf.mxu1  ;;  %17091 = vst [vmem:[#allocation13_spill] sm:$0xff] %v12553_v55 }
 0x38e   :  { %v2397_v58 = vadd.f32 %v2396_v48, %v17089_v7  ;;  %v2468_v53 = vpop.xlane.xlu1 %2467  ;;  %v2464_v56 = vpop.xlane.xlu0 %2463  ;;  %v4378_v7 = vld [vmem:[#allocation2 + $0x70] sm:$0xff] }
 0x38f   :  { %2207 = vmax.xlane.f32.xlu2 %v2146_v60  ;;  %v2230_v60 = vld [vmem:[#allocation2 + $0x180] sm:$0xff]  ;;  %v12555_v2 = vpop.f32.mrf.mxu0  ;;  %v12573_v61 = vpop.f32.mrf.mxu3 }
 0x390   :  { %v2510_v15 = vld [vmem:[#allocation2 + $0x178] sm:$0xff]  ;;  %v2262_v44 = vmax.f32 %v2230_v60, %v2182_v23  ;;  %17092 = vst [vmem:[#allocation19_spill] sm:$0xff] %v12555_v2  ;;  %v10725_v2 = vld [vmem:[%s17018_s7 + $0x5c] sm:$0xf0] }
 0x391   :  { %v2542_v45 = vmax.f32 %v2510_v15, %v2462_v16  ;;  %2211 = vmax.xlane.f32.xlu1 %v2148_v0  ;;  %v2513_v32 = vld [vmem:[#allocation2 + $0x190] sm:$0xff]  ;;  %3856 = vmatmul.bf16.gmra.mxu0 %v10707_v10  ;;  %17097 = vst [vmem:[#allocation24_spill] sm:$0xff] %v12573_v61  ;;  %v4377_v16 = vld [vmem:[#allocation2 + $0x68] sm:$0xff]  ;;  %v4376_v15 = vld [vmem:[#allocation2 + $0x60] sm:$0xff] }
 0x392   :  { %2294 = vst.msk [vmem:[#allocation2 + $0x180] sm:$0xff] %vm1391_vm2, %v2262_v44  ;;  %v2545_v9 = vmax.f32 %v2513_v32, %v2468_v53  ;;  %4138 = vmatmul.bf16.gmra.mxu1 %v10707_v10  ;;  %2976 = vmatmul.bf16.gmra.mxu2 %v10692_v41  ;;  %v4406_v0 = vld [vmem:[#allocation2 + $0x150] sm:$0xff]  ;;  %v4498_v10 = vpack.c.bf16 %v4377_v16, %v4376_v15  ;;  %v10693_v44 = vld [vmem:[#allocation3 + $0x160] sm:$0xff]  ;;  %v4405_v53 = vld [vmem:[#allocation2 + $0x148] sm:$0xff] }
 0x393   :  { %2574 = vst.msk [vmem:[#allocation2 + $0x178] sm:$0xff] %vm1673_vm3, %v2542_v45  ;;  %3258 = vmatmul.bf16.gmra.mxu3 %v10692_v41  ;;  %v4379_v26 = vld [vmem:[#allocation2 + $0x78] sm:$0xff]  ;;  %v4513_v48 = vpack.c.bf16 %v4407_v1, %v4406_v0  ;;  %v9170_v32 = vld [vmem:[%s17017_s6 + $0x208] sm:$0xff]  ;;  %v4370_v0 = vld [vmem:[#allocation2 + $0x30] sm:$0xff] }
 0x394   :  { %2577 = vst.msk [vmem:[#allocation2 + $0x190] sm:$0xff] %vm1673_vm3, %v2545_v9  ;;  %v12566_v30 = vpop.f32.mrf.mxu2  ;;  %v4499_v17 = vpack.c.bf16 %v4379_v26, %v4378_v7  ;;  %v10708_v45 = vld [vmem:[#allocation3 + $0x1d8] sm:$0xff]  ;;  %v4497_v9 = vpack.c.bf16 %v4375_v24, %v4374_v42  ;;  %v4368_v24 = vld [vmem:[#allocation2 + $0x20] sm:$0xff] }
 0x395   :  { %1323 = vmax.xlane.f32.xlu0 %v1261_v18  ;;  %v1578_v11 = vpop.xlane.xlu2 %1577  ;;  %v2430_v18 = vmax.f32 %v2397_v58, 0.0  ;;  %v12568_v25 = vpop.f32.mrf.mxu1  ;;  %v4371_v26 = vld [vmem:[#allocation2 + $0x38] sm:$0xff] }
 0x396   :  { %v1657_v63 = vmax.f32 %v1625_v29, %v1578_v11  ;;  %v1302_v6 = vpop.xlane.xlu1 %1301  ;;  %17095 = vst [vmem:[#allocation11_spill] sm:$0xff] %v12568_v25  ;;  %6476 = vmatpush.bf16.msrb.mxu2 %v4499_v17  ;;  %v4404_v11 = vld [vmem:[#allocation2 + $0x140] sm:$0xff]  ;;  %v2233_v15 = vld [vmem:[#allocation2 + $0x198] sm:$0xff] }
 0x397   :  { %1321 = vmax.xlane.f32.xlu2 %v1260_v22  ;;  %v1346_v22 = vld [vmem:[#allocation2 + $0x98] sm:$0xff]  ;;  %v12571_v47 = vpop.f32.mrf.mxu0  ;;  %v4512_v29 = vpack.c.bf16 %v4405_v53, %v4404_v11  ;;  %v10709_v11 = vld [vmem:[#allocation3 + $0x1e0] sm:$0xff] }
 0x398   :  { %1690 = vst.msk [vmem:[#allocation2 + $0x80] sm:$0xff] %vm1673_vm3, %v1657_v63  ;;  %v1378_v36 = vmax.f32 %v1346_v22, %v1302_v6  ;;  %v4403_v22 = vld [vmem:[#allocation2 + $0x138] sm:$0xff] }
 0x399   :  { %2493 = vmax.xlane.f32.xlu1 %v2430_v18  ;;  %v2511_v46 = vld [vmem:[#allocation2 + $0x180] sm:$0xff]  ;;  %17096 = vst [vmem:[#allocation23_spill] sm:$0xff] %v12571_v47  ;;  %v9176_v25 = vld [vmem:[%s17017_s6 + $0x238] sm:$0xff] }
 0x39a   :  { %v4411_v50 = vld [vmem:[#allocation2 + $0x178] sm:$0xff]  ;;  %v2543_v27 = vmax.f32 %v2511_v46, %v2464_v56  ;;  %1411 = vst.msk [vmem:[#allocation2 + $0x98] sm:$0xff] %vm1391_vm2, %v1378_v36  ;;  %6477 = vmatpush.bf16.msrb.mxu2 %v4498_v10  ;;  %v12589_v56 = vpop.f32.mrf.mxu3  ;;  %v1344_v46 = vld [vmem:[#allocation2 + $0x88] sm:$0xff]  ;;  %v4372_v36 = vld [vmem:[#allocation2 + $0x40] sm:$0xff] }
 0x39b   :  { %v4515_v12 = vpack.c.bf16 %v4411_v50, %v4410_v34  ;;  %17101 = vst [vmem:[#allocation28_spill] sm:$0xff] %v12589_v56  ;;  %v4398_v10 = vld [vmem:[#allocation2 + $0x110] sm:$0xff] }
 0x39c   :  { %2575 = vst.msk [vmem:[#allocation2 + $0x180] sm:$0xff] %vm1673_vm3, %v2543_v27  ;;  %v12577_v60 = vpop.f32.mrf.mxu2 }
 0x39d   :  { %6814 = vmatpush.bf16.msrb.mxu0 %v4515_v12  ;;  %v2184_v38 = vpop.xlane.xlu2 %2183  ;;  %17098 = vst [vmem:[#allocation25_spill] sm:$0xff] %v12577_v60  ;;  %v12585_v63 = vpop.f32.mrf.mxu1  ;;  %v2235_v12 = vld [vmem:[#allocation2 + $0x1a8] sm:$0xff] }
 0x39e   :  { %v12579_v23 = vpop.xlane.xlu1 %1585  ;;  %17099 = vst [vmem:[#allocation26_spill] sm:$0xff] %v12585_v63  ;;  %6478 = vmatpush.bf16.msrb.mxu2 %v4497_v9  ;;  %v10694_v9 = vld [vmem:[#allocation3 + $0x168] sm:$0xff] }
 0x39f   :  { %2209 = vmax.xlane.f32.xlu2 %v2147_v57  ;;  %v2263_v57 = vmax.f32 %v2231_v39, %v2184_v38  ;;  %v12587_v50 = vpop.f32.mrf.mxu0  ;;  %v4402_v39 = vld [vmem:[#allocation2 + $0x130] sm:$0xff] }
 0x3a0   :  { %17100 = vst [vmem:[#allocation27_spill] sm:$0xff] %v12587_v50  ;;  %v4511_v28 = vpack.c.bf16 %v4403_v22, %v4402_v39  ;;  %v4397_v22 = vld [vmem:[#allocation2 + $0x108] sm:$0xff]  ;;  %v4367_v39 = vld [vmem:[#allocation2 + $0x18] sm:$0xff] }
 0x3a1   :  { %2295 = vst.msk [vmem:[#allocation2 + $0x188] sm:$0xff] %vm1391_vm2, %v2263_v57  ;;  %6815 = vmatpush.bf16.msrb.mxu0 %v4514_v5  ;;  %1325 = vmax.xlane.f32.xlu1 %v1262_v33  ;;  %v4496_v57 = vpack.c.bf16 %v4373_v13, %v4372_v36 }
 0x3a2   :  { %3861 = vmatmul.bf16.gmra.mxu0 %v10708_v45  ;;  %4143 = vmatmul.bf16.gmra.mxu1 %v10708_v45  ;;  %v4369_v45 = vld [vmem:[#allocation2 + $0x28] sm:$0xff] }
 0x3a3   :  { %2981 = vmatmul.bf16.gmra.mxu2 %v10693_v44  ;;  %3263 = vmatmul.bf16.gmra.mxu3 %v10693_v44 }
 0x3a4   :  { %v12592_v38 = vpop.f32.mrf.mxu2  ;;  %6479 = vmatpush.bf16.msrb.mxu2 %v4496_v57  ;;  %v4366_v57 = vld [vmem:[#allocation2 + $0x10] sm:$0xff] }
 0x3a5   :  { %6816 = vmatpush.bf16.msrb.mxu0 %v4513_v48  ;;  %v2466_v41 = vpop.xlane.xlu2 %2465  ;;  %v4399_v48 = vld [vmem:[#allocation2 + $0x118] sm:$0xff] }
 0x3a6   :  { %v2192_v27 = vpop.xlane.xlu1 %2191 }
 0x3a7   :  { %2491 = vmax.xlane.f32.xlu2 %v2429_v3  ;;  %v1300_v3 = vpop.xlane.xlu0 %1299  ;;  %v2267_v5 = vmax.f32 %v2235_v12, %v2192_v27  ;;  %v12599_v44 = vpop.f32.mrf.mxu0  ;;  %v1628_v12 = vld [vmem:[#allocation2 + $0x98] sm:$0xff] }
 0x3a8   :  { %v1377_v58 = vmax.f32 %v1345_v37, %v1300_v3  ;;  %v2512_v18 = vld [vmem:[#allocation2 + $0x188] sm:$0xff]  ;;  %v4495_v3 = vpack.c.bf16 %v4371_v26, %v4370_v0  ;;  %17103 = vst [vmem:[#allocation30_spill] sm:$0xff] %v12599_v44 }
 0x3a9   :  { %v2544_v34 = vmax.f32 %v2512_v18, %v2466_v41  ;;  %6817 = vmatpush.bf16.msrb.mxu0 %v4512_v29  ;;  %2664 = vperm.xlu0 %11066, %v9170_v32   ;;  %v4401_v37 = vld [vmem:[#allocation2 + $0x128] sm:$0xff]  ;;  %2299 = vst.msk [vmem:[#allocation2 + $0x1a8] sm:$0xff] %vm1391_vm2, %v2267_v5  ;;  %v4509_v41 = vpack.c.bf16 %v4399_v48, %v4398_v10  ;;  %v12601_v29 = vpop.f32.mrf.mxu3 }
 0x3aa   :  { %1410 = vst.msk [vmem:[#allocation2 + $0x90] sm:$0xff] %vm1391_vm2, %v1377_v58  ;;  %v4510_v16 = vpack.c.bf16 %v4401_v37, %v4400_v40  ;;  %v12597_v58 = vpop.f32.mrf.mxu1  ;;  %6480 = vmatpush.bf16.msrb.mxu2 %v4495_v3  ;;  %v4494_v18 = vpack.c.bf16 %v4369_v45, %v4368_v24  ;;  %v9169_v37 = vld [vmem:[%s17017_s6 + $0x200] sm:$0xff]  ;;  %v1348_v24 = vld [vmem:[#allocation2 + $0xa8] sm:$0xff] }
 0x3ab   :  { %2576 = vst.msk [vmem:[#allocation2 + $0x188] sm:$0xff] %vm1673_vm3, %v2544_v34 }
 0x3ac   :  { %17102 = vst [vmem:[#allocation29_spill] sm:$0xff] %v12597_v58  ;;  %v12603_v34 = vpop.f32.mrf.mxu2 }
 0x3ad   :  { %6818 = vmatpush.bf16.msrb.mxu0 %v4511_v28  ;;  %v1298_v7 = vpop.xlane.xlu2 %1297  ;;  %17104 = vst [vmem:[#allocation31_spill] sm:$0xff] %v12601_v29  ;;  %v10765_v29 = vld [vmem:[%s17018_s7 + $0x19c] sm:$0xf0] }
 0x3ae   :  { %v1376_v1 = vmax.f32 %v1344_v46, %v1298_v7  ;;  %v2474_v32 = vpop.xlane.xlu1 %2473  ;;  %6481 = vmatpush.bf16.msrb.mxu2 %v4494_v18  ;;  %v4396_v46 = vld [vmem:[#allocation2 + $0x100] sm:$0xff]  ;;  %v4365_v7 = vld [vmem:[#allocation2 + $0x8] sm:$0xff] }
 0x3af   :  { %v1582_v6 = vpop.xlane.xlu0 %1581  ;;  %v4508_v27 = vpack.c.bf16 %v4397_v22, %v4396_v46 }
 0x3b0   :  { %1409 = vst.msk [vmem:[#allocation2 + $0x88] sm:$0xff] %vm1391_vm2, %v1376_v1  ;;  %v4364_v1 = vld [vmem:[#allocation2] sm:$0xff] }
 0x3b1   :  { %v1627_v33 = vld [vmem:[#allocation2 + $0x90] sm:$0xff]  ;;  %6819 = vmatpush.bf16.msrb.mxu0 %v4510_v16  ;;  %v4492_v3 = vpack.c.bf16 %v4365_v7, %v4364_v1  ;;  %v12619_v45 = vpop.f32.mrf.mxu3  ;;  %v1511_v1 = vadd.f32 %v12487_v43, %v17094_v52  ;;  %v9182_v43 = vld [vmem:[%s17017_s6 + $0x268] sm:$0xff]  ;;  %v9200_v52 = vld [vmem:[%s17017_s6 + $0x2f8] sm:$0xff] }
 0x3b2   :  { %v1659_v17 = vmax.f32 %v1627_v33, %v1582_v6  ;;  %v2516_v6 = vld [vmem:[#allocation2 + $0x1a8] sm:$0xff]  ;;  %3866 = vmatmul.bf16.gmra.mxu0 %v10709_v11  ;;  %4148 = vmatmul.bf16.gmra.mxu1 %v10709_v11  ;;  %v4493_v33 = vpack.c.bf16 %v4367_v39, %v4366_v57  ;;  %v12613_v16 = vpop.f32.mrf.mxu1  ;;  %17107 = vst [vmem:[#allocation34_spill] sm:$0xff] %v12619_v45  ;;  %v9173_v11 = vld [vmem:[%s17017_s6 + $0x220] sm:$0xff]  ;;  %v9199_v7 = vld [vmem:[%s17017_s6 + $0x2f0] sm:$0xff] }
 0x3b3   :  { %v2548_v36 = vmax.f32 %v2516_v6, %v2474_v32  ;;  %2986 = vmatmul.bf16.gmra.mxu2 %v10694_v9  ;;  %3268 = vmatmul.bf16.gmra.mxu3 %v10694_v9  ;;  %17105 = vst [vmem:[#allocation32_spill] sm:$0xff] %v12613_v16  ;;  %v1349_v32 = vld [vmem:[#allocation2 + $0xb0] sm:$0xff]  ;;  %v10710_v9 = vld [vmem:[#allocation3 + $0x1e8] sm:$0xff] }
 0x3b4   :  { %1692 = vst.msk [vmem:[#allocation2 + $0x90] sm:$0xff] %vm1673_vm3, %v1659_v17  ;;  %6482 = vmatpush.bf16.msrb.mxu2 %v4493_v33  ;;  %v2234_v17 = vld [vmem:[#allocation2 + $0x1a0] sm:$0xff] }
 0x3b5   :  { %6820 = vmatpush.bf16.msrb.mxu0 %v4509_v41  ;;  %v1584_v13 = vpop.xlane.xlu2 %1583  ;;  %2580 = vst.msk [vmem:[#allocation2 + $0x1a8] sm:$0xff] %vm1673_vm3, %v2548_v36  ;;  %v12621_v41 = vpop.f32.mrf.mxu2 }
 0x3b6   :  { %v1660_v28 = vmax.f32 %v1628_v12, %v1584_v13  ;;  %v12615_v0 = vpop.xlane.xlu1 %2475  ;;  %v10695_v12 = vld [vmem:[#allocation3 + $0x170] sm:$0xff] }
 0x3b7   :  { %v2188_v53 = vpop.xlane.xlu0 %2187  ;;  %v1626_v40 = vld [vmem:[#allocation2 + $0x88] sm:$0xff] }
 0x3b8   :  { %v2265_v42 = vmax.f32 %v2233_v15, %v2188_v53  ;;  %1693 = vst.msk [vmem:[#allocation2 + $0x98] sm:$0xff] %vm1673_vm3, %v1660_v28  ;;  %v1658_v5 = vmax.f32 %v1626_v40, %v12536_v54  ;;  %v12617_v54 = vpop.f32.mrf.mxu0  ;;  %6483 = vmatpush.bf16.msrb.mxu2 %v4492_v3 }
 0x3b9   :  { %6821 = vmatpush.bf16.msrb.mxu0 %v4508_v27  ;;  %17106 = vst [vmem:[#allocation33_spill] sm:$0xff] %v12617_v54  ;;  %v12637_v36 = vpop.f32.mrf.mxu3 }
 0x3ba   :  { %2297 = vst.msk [vmem:[#allocation2 + $0x198] sm:$0xff] %vm1391_vm2, %v2265_v42  ;;  %2659 = vperm.xlu1 %11071, %v9169_v37   ;;  %v9171_v42 = vld [vmem:[%s17017_s6 + $0x210] sm:$0xff]  ;;  %v12631_v28 = vpop.f32.mrf.mxu1 }
 0x3bb   :  { %1691 = vst.msk [vmem:[#allocation2 + $0x88] sm:$0xff] %vm1673_vm3, %v1658_v5  ;;  %v1347_v5 = vld [vmem:[#allocation2 + $0xa0] sm:$0xff] }
 0x3bc   :  { %17108 = vst [vmem:[#allocation35_spill] sm:$0xff] %v12631_v28  ;;  %v1354_v28 = vld [vmem:[#allocation2 + $0xd8] sm:$0xff] }
 0x3bd   :  { %v2190_v15 = vpop.xlane.xlu2 %2189  ;;  %17110 = vst [vmem:[#allocation37_spill] sm:$0xff] %v12637_v36  ;;  %v12639_v57 = vpop.f32.mrf.mxu2 }
 0x3be   :  { %v2266_v53 = vmax.f32 %v2234_v17, %v2190_v15  ;;  %v1308_v13 = vpop.xlane.xlu1 %1307 }
 0x3bf   :  { %v2470_v26 = vpop.xlane.xlu0 %2469  ;;  %2669 = vperm.xlu2 %11070, %v9171_v42   ;;  %v1381_v39 = vmax.f32 %v1349_v32, %v1308_v13  ;;  %v2238_v32 = vld [vmem:[#allocation2 + $0x1c0] sm:$0xff] }
 0x3c0   :  { %2298 = vst.msk [vmem:[#allocation2 + $0x1a0] sm:$0xff] %vm1391_vm2, %v2266_v53  ;;  %v12634_v46 = vpop.f32.mrf.mxu0  ;;  %v1544_v53 = vmax.f32 %v1511_v1, 0.0  ;;  %v9197_v1 = vld [vmem:[%s17017_s6 + $0x2e0] sm:$0xff] }
 0x3c1   :  { %v2514_v48 = vld [vmem:[#allocation2 + $0x198] sm:$0xff]  ;;  %17109 = vst [vmem:[#allocation36_spill] sm:$0xff] %v12634_v46  ;;  %v12658_v42 = vpop.f32.mrf.mxu3 }
 0x3c2   :  { %v2546_v10 = vmax.f32 %v2514_v48, %v2470_v26  ;;  %2679 = vperm.xlu1 %11071, %v9173_v11   ;;  %1414 = vst.msk [vmem:[#allocation2 + $0xb0] sm:$0xff] %vm1391_vm2, %v1381_v39  ;;  %3871 = vmatmul.bf16.gmra.mxu0 %v10710_v9  ;;  %v9183_v26 = vld [vmem:[%s17017_s6 + $0x270] sm:$0xff]  ;;  %v10696_v39 = vld [vmem:[#allocation3 + $0x178] sm:$0xff] }
 0x3c3   :  { %4153 = vmatmul.bf16.gmra.mxu1 %v10710_v9  ;;  %2991 = vmatmul.bf16.gmra.mxu2 %v10695_v12  ;;  %v2236_v11 = vld [vmem:[#allocation2 + $0x1b0] sm:$0xff]  ;;  %17113 = vst [vmem:[#allocation40_spill] sm:$0xff] %v12658_v42 }
 0x3c4   :  { %2578 = vst.msk [vmem:[#allocation2 + $0x198] sm:$0xff] %vm1673_vm3, %v2546_v10  ;;  %3273 = vmatmul.bf16.gmra.mxu3 %v10695_v12  ;;  %v12652_v10 = vpop.f32.mrf.mxu1 }
 0x3c5   :  { %v2472_v6 = vpop.xlane.xlu2 %2471  ;;  %17111 = vst [vmem:[#allocation38_spill] sm:$0xff] %v12652_v10 }
 0x3c6   :  { %v12648_v17 = vpop.xlane.xlu1 %1591 }
 0x3c7   :  { %v1306_v18 = vpop.xlane.xlu0 %1305  ;;  %v2515_v27 = vld [vmem:[#allocation2 + $0x1a0] sm:$0xff]  ;;  %2729 = vperm.xlu2 %11070, %v9183_v26   ;;  %v9179_v26 = vld [vmem:[%s17017_s6 + $0x250] sm:$0xff] }
 0x3c8   :  { %v1380_v22 = vmax.f32 %v1348_v24, %v1306_v18  ;;  %v2547_v40 = vmax.f32 %v2515_v27, %v2472_v6  ;;  %v12655_v24 = vpop.f32.mrf.mxu0  ;;  %v12666_v18 = vpop.f32.mrf.mxu2 }
 0x3c9   :  { %17112 = vst [vmem:[#allocation39_spill] sm:$0xff] %v12655_v24  ;;  %v4412_v24 = vld [vmem:[#allocation2 + $0x180] sm:$0xff] }
 0x3ca   :  { %1413 = vst.msk [vmem:[#allocation2 + $0xa8] sm:$0xff] %vm1391_vm2, %v1380_v22  ;;  %2809 = vperm.xlu1 %11071, %v9199_v7   ;;  %v10711_v22 = vld [vmem:[#allocation3 + $0x1f0] sm:$0xff] }
 0x3cb   :  { %2579 = vst.msk [vmem:[#allocation2 + $0x1a0] sm:$0xff] %vm1673_vm3, %v2547_v40  ;;  %v1631_v40 = vld [vmem:[#allocation2 + $0xb0] sm:$0xff] }
 0x3cd   :  { %v1304_v3 = vpop.xlane.xlu2 %1303 }
 0x3ce   :  { %v1379_v15 = vmax.f32 %v1347_v5, %v1304_v3  ;;  %v2198_v12 = vpop.xlane.xlu1 %2197 }
 0x3cf   :  { %v1588_v33 = vpop.xlane.xlu0 %1587  ;;  %2814 = vperm.xlu2 %11070, %v9200_v52   ;;  %v2270_v6 = vmax.f32 %v2238_v32, %v2198_v12  ;;  %v9180_v12 = vld [vmem:[%s17017_s6 + $0x258] sm:$0xff] }
 0x3d0   :  { %1412 = vst.msk [vmem:[#allocation2 + $0xa0] sm:$0xff] %vm1391_vm2, %v1379_v15  ;;  %v12681_v3 = vpop.f32.mrf.mxu0  ;;  %v2237_v15 = vld [vmem:[#allocation2 + $0x1b8] sm:$0xff] }
 0x3d1   :  { %v1630_v37 = vld [vmem:[#allocation2 + $0xa8] sm:$0xff]  ;;  %2302 = vst.msk [vmem:[#allocation2 + $0x1c0] sm:$0xff] %vm1391_vm2, %v2270_v6 }
 0x3d2   :  { %v1662_v48 = vmax.f32 %v1630_v37, %v1588_v33  ;;  %2724 = vperm.xlu1 %11071, %v9182_v43   ;;  %3876 = vmatmul.bf16.gmra.mxu0 %v10711_v22  ;;  %v12678_v37 = vpop.f32.mrf.mxu1  ;;  %17115 = vst [vmem:[#allocation42_spill] sm:$0xff] %v12681_v3  ;;  %v4416_v49 = vld [vmem:[#allocation2 + $0x1a0] sm:$0xff] }
 0x3d3   :  { %1607 = vmax.xlane.f32.xlu0 %v1544_v53  ;;  %4158 = vmatmul.bf16.gmra.mxu1 %v10711_v22  ;;  %17114 = vst [vmem:[#allocation41_spill] sm:$0xff] %v12678_v37  ;;  %v12683_v53 = vpop.f32.mrf.mxu3  ;;  %v1351_v22 = vld [vmem:[#allocation2 + $0xc0] sm:$0xff] }
 0x3d4   :  { %1695 = vst.msk [vmem:[#allocation2 + $0xa8] sm:$0xff] %vm1673_vm3, %v1662_v48  ;;  %2996 = vmatmul.bf16.gmra.mxu2 %v10696_v39  ;;  %3278 = vmatmul.bf16.gmra.mxu3 %v10696_v39  ;;  %v1352_v39 = vld [vmem:[#allocation2 + $0xc8] sm:$0xff] }
 0x3d5   :  { %v1590_v27 = vpop.xlane.xlu2 %1589 }
 0x3d6   :  { %v1663_v33 = vmax.f32 %v1631_v40, %v1590_v27  ;;  %v1350_v27 = vld [vmem:[#allocation2 + $0xb8] sm:$0xff] }
 0x3d7   :  { %v2194_v9 = vpop.xlane.xlu0 %2193  ;;  %v1629_v5 = vld [vmem:[#allocation2 + $0xa0] sm:$0xff]  ;;  %2799 = vperm.xlu2 %11070, %v9197_v1   ;;  %v10712_v40 = vld [vmem:[#allocation3 + $0x1f8] sm:$0xff] }
 0x3d8   :  { %v2268_v13 = vmax.f32 %v2236_v11, %v2194_v9  ;;  %1696 = vst.msk [vmem:[#allocation2 + $0xb0] sm:$0xff] %vm1673_vm3, %v1663_v33  ;;  %v1661_v7 = vmax.f32 %v1629_v5, %v12579_v23  ;;  %v12685_v11 = vpop.xlane.xlu1 %2481  ;;  %v12687_v23 = vpop.f32.mrf.mxu2 }
 0x3d9   :  { %v12698_v5 = vpop.f32.mrf.mxu0 }
 0x3da   :  { %2300 = vst.msk [vmem:[#allocation2 + $0x1b0] sm:$0xff] %vm1391_vm2, %v2268_v13  ;;  %2709 = vperm.xlu1 %11071, %v9179_v26   ;;  %v9196_v13 = vld [vmem:[%s17017_s6 + $0x2d8] sm:$0xff] }
 0x3db   :  { %1694 = vst.msk [vmem:[#allocation2 + $0xa0] sm:$0xff] %vm1673_vm3, %v1661_v7  ;;  %v12700_v1 = vpop.f32.mrf.mxu3 }
 0x3dd   :  { %v2196_v43 = vpop.xlane.xlu2 %2195 }
 0x3de   :  { %v2269_v9 = vmax.f32 %v2237_v15, %v2196_v43 }
 0x3df   :  { %v2478_v48 = vpop.xlane.xlu0 %2477  ;;  %2714 = vperm.xlu2 %11070, %v9180_v12   ;;  %v9172_v12 = vld [vmem:[%s17017_s6 + $0x218] sm:$0xff] }
 0x3e0   :  { %2301 = vst.msk [vmem:[#allocation2 + $0x1b8] sm:$0xff] %vm1391_vm2, %v2269_v9  ;;  %v12705_v43 = vpop.f32.mrf.mxu2 }
 0x3e1   :  { %v2517_v32 = vld [vmem:[#allocation2 + $0x1b0] sm:$0xff] }
 0x3e2   :  { %v2549_v52 = vmax.f32 %v2517_v32, %v12615_v0  ;;  %v1314_v0 = vpop.xlane.xlu1 %1313  ;;  %2794 = vperm.xlu1 %11071, %v9196_v13   ;;  %v12703_v32 = vpop.f32.mrf.mxu1  ;;  %3881 = vmatmul.bf16.gmra.mxu0 %v10712_v40  ;;  %v9177_v13 = vld [vmem:[%s17017_s6 + $0x240] sm:$0xff] }
 0x3e3   :  { %v1384_v7 = vmax.f32 %v1352_v39, %v1314_v0  ;;  %17116 = vst [vmem:[#allocation43_spill] sm:$0xff] %v12703_v32  ;;  %4163 = vmatmul.bf16.gmra.mxu1 %v10712_v40  ;;  %v9279_v39 = vld [vmem:[%s17017_s6 + $0x370] sm:$0xff]  ;;  %v2519_v40 = vld [vmem:[#allocation2 + $0x1c0] sm:$0xff] }
 0x3e4   :  { %2581 = vst.msk [vmem:[#allocation2 + $0x1b0] sm:$0xff] %vm1673_vm3, %v2549_v52 }
 0x3e5   :  { %v1310_v26 = vpop.xlane.xlu2 %1309  ;;  %1417 = vst.msk [vmem:[#allocation2 + $0xc8] sm:$0xff] %vm1391_vm2, %v1384_v7  ;;  %v12721_v7 = vpop.f32.mrf.mxu0 }
 0x3e6   :  { %v1382_v15 = vmax.f32 %v1350_v27, %v1310_v26  ;;  %17117 = vst [vmem:[#allocation44_spill] sm:$0xff] %v12721_v7 }
 0x3e7   :  { %v1312_v6 = vpop.xlane.xlu0 %1311  ;;  %v2518_v52 = vld [vmem:[#allocation2 + $0x1b8] sm:$0xff]  ;;  %2674 = vperm.xlu0 %11066, %v9172_v12   ;;  %3614 = vperm.xlu2 %11070, %v9279_v39  }
 0x3e8   :  { %v1383_v33 = vmax.f32 %v1351_v22, %v1312_v6  ;;  %1415 = vst.msk [vmem:[#allocation2 + $0xb8] sm:$0xff] %vm1391_vm2, %v1382_v15  ;;  %v2550_v9 = vmax.f32 %v2518_v52, %v2478_v48  ;;  %v12723_v15 = vpop.f32.mrf.mxu3  ;;  %v2241_v12 = vld [vmem:[#allocation2 + $0x1d8] sm:$0xff] }
 0x3e9   :  { %v9184_v39 = vld [vmem:[%s17017_s6 + $0x278] sm:$0xff] }
 0x3ea   :  { %1416 = vst.msk [vmem:[#allocation2 + $0xc0] sm:$0xff] %vm1391_vm2, %v1383_v33  ;;  %v12719_v6 = vpop.xlane.xlu1 %1597  ;;  %2699 = vperm.xlu1 %11071, %v9177_v13   ;;  %v2239_v13 = vld [vmem:[#allocation2 + $0x1c8] sm:$0xff] }
 0x3eb   :  { %2582 = vst.msk [vmem:[#allocation2 + $0x1b8] sm:$0xff] %vm1673_vm3, %v2550_v9  ;;  %v12727_v9 = vpop.f32.mrf.mxu2 }
 0x3ed   :  { %v2480_v27 = vpop.xlane.xlu2 %2479  ;;  %v12743_v63 = vpop.f32.mrf.mxu0 }
 0x3ee   :  { %v2551_v0 = vmax.f32 %v2519_v40, %v2480_v27 }
 0x3ef   :  { %v1594_v22 = vpop.xlane.xlu0 %1593  ;;  %v1632_v26 = vld [vmem:[#allocation2 + $0xb8] sm:$0xff]  ;;  %2734 = vperm.xlu0 %11066, %v9184_v39   ;;  %v9193_v39 = vld [vmem:[%s17017_s6 + $0x2c0] sm:$0xff] }
 0x3f0   :  { %v1664_v52 = vmax.f32 %v1632_v26, %v12648_v17  ;;  %2583 = vst.msk [vmem:[#allocation2 + $0x1c0] sm:$0xff] %vm1673_vm3, %v2551_v0  ;;  %v9178_v17 = vld [vmem:[%s17017_s6 + $0x248] sm:$0xff] }
 0x3f1   :  { %v1633_v48 = vld [vmem:[#allocation2 + $0xc0] sm:$0xff]  ;;  %v1634_v26 = vld [vmem:[#allocation2 + $0xc8] sm:$0xff]  ;;  %2704 = vperm.xlu2 %11070, %v9178_v17  }
 0x3f2   :  { %v1665_v33 = vmax.f32 %v1633_v48, %v1594_v22  ;;  %1697 = vst.msk [vmem:[#allocation2 + $0xb8] sm:$0xff] %vm1673_vm3, %v1664_v52  ;;  %v9296_v22 = vld [vmem:[%s17017_s6 + $0x3f8] sm:$0xff]  ;;  %v2204_v40 = vpop.xlane.xlu1 %2203 }
 0x3f3   :  { %3699 = vperm.xlu1 %11071, %v9296_v22   ;;  %v12751_v22 = vpop.f32.mrf.mxu3  ;;  %v12756_v17 = vpop.f32.mrf.mxu2 }
 0x3f4   :  { %1698 = vst.msk [vmem:[#allocation2 + $0xc0] sm:$0xff] %vm1673_vm3, %v1665_v33  ;;  %v2273_v33 = vmax.f32 %v2241_v12, %v2204_v40  ;;  %v9181_v12 = vld [vmem:[%s17017_s6 + $0x260] sm:$0xff] }
 0x3f5   :  { %v1596_v0 = vpop.xlane.xlu2 %1595  ;;  %17118 = vst [vmem:[#allocation45_spill] sm:$0xff] %v12756_v17 }
 0x3f6   :  { %v1666_v52 = vmax.f32 %v1634_v26, %v1596_v0  ;;  %2305 = vst.msk [vmem:[#allocation2 + $0x1d8] sm:$0xff] %vm1391_vm2, %v2273_v33 }
 0x3f7   :  { %v2200_v48 = vpop.xlane.xlu0 %2199  ;;  %2719 = vperm.xlu0 %11066, %v9181_v12   ;;  %v12769_v12 = vpop.f32.mrf.mxu1 }
 0x3f8   :  { %v2271_v27 = vmax.f32 %v2239_v13, %v2200_v48  ;;  %1699 = vst.msk [vmem:[#allocation2 + $0xc8] sm:$0xff] %vm1673_vm3, %v1666_v52  ;;  %v9277_v13 = vld [vmem:[%s17017_s6 + $0x360] sm:$0xff] }
 0x3f9   :  { %2779 = vperm.xlu2 %11070, %v9193_v39   ;;  %17119 = vst [vmem:[#allocation46_spill] sm:$0xff] %v12769_v12  ;;  %v12774_v39 = vpop.f32.mrf.mxu0 }
 0x3fa   :  { %2303 = vst.msk [vmem:[#allocation2 + $0x1c8] sm:$0xff] %vm1391_vm2, %v2271_v27  ;;  %v2240_v27 = vld [vmem:[#allocation2 + $0x1d0] sm:$0xff]  ;;  %v12758_v40 = vpop.xlane.xlu1 %2487 }
 0x3fb   :  { %3604 = vperm.xlu1 %11071, %v9277_v13   ;;  %v9198_v13 = vld [vmem:[%s17017_s6 + $0x2e8] sm:$0xff]  ;;  %v12778_v16 = vpop.f32.mrf.mxu2 }
 0x3fc   :  { %17120 = vst [vmem:[#allocation47_spill] sm:$0xff] %v12778_v16 }
 0x3fd   :  { %v2202_v0 = vpop.xlane.xlu2 %2201 }
 0x3fe   :  { %v2272_v52 = vmax.f32 %v2240_v27, %v2202_v0  ;;  %v12776_v0 = vpop.f32.mrf.mxu3 }
 0x3ff   :  { %v2484_v48 = vpop.xlane.xlu0 %2483  ;;  %2804 = vperm.xlu0 %11066, %v9198_v13  }
 0x400   :  { %2304 = vst.msk [vmem:[#allocation2 + $0x1d0] sm:$0xff] %vm1391_vm2, %v2272_v52 }
 0x401   :  { %v2520_v33 = vld [vmem:[#allocation2 + $0x1c8] sm:$0xff] }
 0x402   :  { %v2552_v26 = vmax.f32 %v2520_v33, %v12685_v11  ;;  %v9278_v11 = vld [vmem:[%s17017_s6 + $0x368] sm:$0xff]  ;;  %v1353_v33 = vld [vmem:[#allocation2 + $0xd0] sm:$0xff]  ;;  %v1320_v52 = vpop.xlane.xlu1 %1319 }
 0x403   :  { %2694 = vperm.xlu1 %11071, %v9176_v25   ;;  %v1387_v37 = vmax.f32 %v1355_v31, %v1320_v52  ;;  %3609 = vperm.xlu2 %11070, %v9278_v11   ;;  %v9191_v25 = vld [vmem:[%s17017_s6 + $0x2b0] sm:$0xff] }
 0x404   :  { %2584 = vst.msk [vmem:[#allocation2 + $0x1c8] sm:$0xff] %vm1673_vm3, %v2552_v26  ;;  %v9195_v31 = vld [vmem:[%s17017_s6 + $0x2d0] sm:$0xff] }
 0x405   :  { %v1316_v58 = vpop.xlane.xlu2 %1315  ;;  %1420 = vst.msk [vmem:[#allocation2 + $0xe0] sm:$0xff] %vm1391_vm2, %v1387_v37  ;;  %v12793_v37 = vpop.f32.mrf.mxu1 }
 0x406   :  { %v1385_v10 = vmax.f32 %v1353_v33, %v1316_v58  ;;  %v9293_v58 = vld [vmem:[%s17017_s6 + $0x3e0] sm:$0xff]  ;;  %17121 = vst [vmem:[#allocation48_spill] sm:$0xff] %v12793_v37  ;;  %v12799_v11 = vpop.f32.mrf.mxu3 }
 0x407   :  { %v1318_v27 = vpop.xlane.xlu0 %1317  ;;  %v2521_v51 = vld [vmem:[#allocation2 + $0x1d0] sm:$0xff]  ;;  %2789 = vperm.xlu0 %11066, %v9195_v31   ;;  %v9276_v31 = vld [vmem:[%s17017_s6 + $0x358] sm:$0xff] }
 0x408   :  { %v1386_v26 = vmax.f32 %v1354_v28, %v1318_v27  ;;  %1418 = vst.msk [vmem:[#allocation2 + $0xd0] sm:$0xff] %vm1391_vm2, %v1385_v10  ;;  %v2553_v59 = vmax.f32 %v2521_v51, %v2484_v48  ;;  %v2522_v48 = vld [vmem:[#allocation2 + $0x1d8] sm:$0xff] }
 0x40a   :  { %1419 = vst.msk [vmem:[#allocation2 + $0xd8] sm:$0xff] %vm1391_vm2, %v1386_v26  ;;  %v12795_v13 = vpop.xlane.xlu1 %1603  ;;  %v12801_v26 = vpop.f32.mrf.mxu2 }
 0x40b   :  { %2585 = vst.msk [vmem:[#allocation2 + $0x1d0] sm:$0xff] %vm1673_vm3, %v2553_v59  ;;  %2769 = vperm.xlu1 %11071, %v9191_v25   ;;  %v12797_v59 = vpop.f32.mrf.mxu0  ;;  %3684 = vperm.xlu2 %11070, %v9293_v58   ;;  %v2242_v25 = vld [vmem:[#allocation2 + $0x1e0] sm:$0xff]  ;;  %v9192_v58 = vld [vmem:[%s17017_s6 + $0x2b8] sm:$0xff] }
 0x40c   :  { %17122 = vst [vmem:[#allocation49_spill] sm:$0xff] %v12801_v26 }
 0x40d   :  { %v2486_v10 = vpop.xlane.xlu2 %2485  ;;  %v12824_v14 = vpop.f32.mrf.mxu1 }
 0x40e   :  { %v2554_v33 = vmax.f32 %v2522_v48, %v2486_v10  ;;  %17123 = vst [vmem:[#allocation50_spill] sm:$0xff] %v12824_v14  ;;  %v12829_v56 = vpop.f32.mrf.mxu3 }
 0x40f   :  { %v1600_v28 = vpop.xlane.xlu0 %1599  ;;  %v1635_v52 = vld [vmem:[#allocation2 + $0xd0] sm:$0xff]  ;;  %17125 = vst [vmem:[#allocation52_spill] sm:$0xff] %v12829_v56  ;;  %v9395_v56 = vld [vmem:[%s17018_s7 + $0x40] sm:$0xf] }
 0x410   :  { %v1667_v12 = vmax.f32 %v1635_v52, %v12719_v6  ;;  %2586 = vst.msk [vmem:[#allocation2 + $0x1d8] sm:$0xff] %vm1673_vm3, %v2554_v33  ;;  %v1637_v52 = vld [vmem:[#allocation2 + $0xe0] sm:$0xff] }
 0x411   :  { %v1636_v51 = vld [vmem:[#allocation2 + $0xd8] sm:$0xff] }
 0x412   :  { %v1668_v27 = vmax.f32 %v1636_v51, %v1600_v28  ;;  %1700 = vst.msk [vmem:[#allocation2 + $0xd0] sm:$0xff] %vm1673_vm3, %v1667_v12  ;;  %v9280_v28 = vld [vmem:[%s17017_s6 + $0x378] sm:$0xff]  ;;  %v9363_v51 = vld [vmem:[%s17018_s7] sm:$0xf]  ;;  %v12822_v48 = vpop.xlane.xlu1 %1605 }
 0x413   :  { %v10717_v12 = vld [vmem:[%s17018_s7 + $0x1c] sm:$0xf0]  ;;  %3599 = vperm.xlu1 %11071, %v9276_v31   ;;  %3619 = vperm.xlu0 %11066, %v9280_v28   ;;  %v12827_v32 = vpop.f32.mrf.mxu0  ;;  %v9292_v31 = vld [vmem:[%s17017_s6 + $0x3d8] sm:$0xff]  ;;  %v9295_v28 = vld [vmem:[%s17017_s6 + $0x3f0] sm:$0xff] }
 0x414   :  { %1701 = vst.msk [vmem:[#allocation2 + $0xd8] sm:$0xff] %vm1673_vm3, %v1668_v27  ;;  %v9364_v27 = vor.u32 %v10717_v12, %v9363_v51  ;;  %2774 = vperm.xlu2 %11070, %v9192_v58   ;;  %v2245_v58 = vld [vmem:[#allocation2 + $0x1f8] sm:$0xff]  ;;  %v2243_v12 = vld [vmem:[#allocation2 + $0x1e8] sm:$0xff] }
 0x415   :  { %v1602_v33 = vpop.xlane.xlu2 %1601  ;;  %17124 = vst [vmem:[#allocation51_spill] sm:$0xff] %v12827_v32  ;;  %v12851_v17 = vpop.f32.mrf.mxu1 }
 0x416   :  { %v1669_v8 = vmax.f32 %v1637_v52, %v1602_v33  ;;  %6484 = vmatmul.bf16.vlgmr.msrb.gmra.mxu2 %v9364_v27  ;;  %17127 = vst [vmem:[#allocation54_spill] sm:$0xff] %v12851_v17 }
 0x417   :  { %v2206_v6 = vpop.xlane.xlu0 %2205  ;;  %v4423_v20 = vld [vmem:[#allocation2 + $0x1d8] sm:$0xff] }
 0x418   :  { %v2274_v10 = vmax.f32 %v2242_v25, %v2206_v6  ;;  %1702 = vst.msk [vmem:[#allocation2 + $0xe0] sm:$0xff] %vm1673_vm3, %v1669_v8  ;;  %v12832_v25 = vpop.f32.mrf.mxu2  ;;  %v9174_v6 = vld [vmem:[%s17017_s6 + $0x228] sm:$0xff] }
 0x419   :  { %17126 = vst [vmem:[#allocation53_spill] sm:$0xff] %v12832_v25 }
 0x41a   :  { %2306 = vst.msk [vmem:[#allocation2 + $0x1e0] sm:$0xff] %vm1391_vm2, %v2274_v10  ;;  %v2212_v10 = vpop.xlane.xlu1 %2211 }
 0x41b   :  { %3679 = vperm.xlu1 %11071, %v9292_v31   ;;  %3694 = vperm.xlu0 %11066, %v9295_v28   ;;  %v2277_v27 = vmax.f32 %v2245_v58, %v2212_v10  ;;  %v12854_v31 = vpop.f32.mrf.mxu0  ;;  %v9273_v28 = vld [vmem:[%s17017_s6 + $0x340] sm:$0xff]  ;;  %v9194_v58 = vld [vmem:[%s17017_s6 + $0x2c8] sm:$0xff]  ;;  %v9396_v10 = vor.u32 %v10725_v2, %v9395_v56 }
 0x41c   :  { %2684 = vperm.xlu2 %11070, %v9174_v6   ;;  %17128 = vst [vmem:[#allocation55_spill] sm:$0xff] %v12854_v31  ;;  %v12863_v6 = vpop.f32.mrf.mxu3  ;;  %v9290_v56 = vld [vmem:[%s17017_s6 + $0x3c8] sm:$0xff] }
 0x41d   :  { %v2208_v33 = vpop.xlane.xlu2 %2207  ;;  %2309 = vst.msk [vmem:[#allocation2 + $0x1f8] sm:$0xff] %vm1391_vm2, %v2277_v27 }
 0x41e   :  { %v2275_v32 = vmax.f32 %v2243_v12, %v2208_v33  ;;  %17129 = vst [vmem:[#allocation56_spill] sm:$0xff] %v12863_v6  ;;  %v9189_v12 = vld [vmem:[%s17017_s6 + $0x2a0] sm:$0xff] }
 0x41f   :  { %v2490_v51 = vpop.xlane.xlu0 %2489 }
 0x420   :  { %2307 = vst.msk [vmem:[#allocation2 + $0x1e8] sm:$0xff] %vm1391_vm2, %v2275_v32  ;;  %v1356_v32 = vld [vmem:[#allocation2 + $0xe8] sm:$0xff] }
 0x421   :  { %v2523_v8 = vld [vmem:[#allocation2 + $0x1e0] sm:$0xff] }
 0x422   :  { %v2555_v52 = vmax.f32 %v2523_v8, %v12758_v40  ;;  %v1357_v40 = vld [vmem:[#allocation2 + $0xf0] sm:$0xff]  ;;  %v12868_v8 = vpop.f32.mrf.mxu2 }
 0x423   :  { %17130 = vst [vmem:[#allocation57_spill] sm:$0xff] %v12868_v8  ;;  %3584 = vperm.xlu1 %11071, %v9273_v28   ;;  %2784 = vperm.xlu0 %11066, %v9194_v58   ;;  %v12879_v28 = vpop.f32.mrf.mxu1  ;;  %v1358_v58 = vld [vmem:[#allocation2 + $0xf8] sm:$0xff] }
 0x424   :  { %2587 = vst.msk [vmem:[#allocation2 + $0x1e0] sm:$0xff] %vm1673_vm3, %v2555_v52  ;;  %v2494_v52 = vpop.xlane.xlu1 %2493  ;;  %2759 = vperm.xlu2 %11070, %v9189_v12   ;;  %v2526_v19 = vld [vmem:[#allocation2 + $0x1f8] sm:$0xff] }
 0x425   :  { %v1322_v31 = vpop.xlane.xlu2 %1321  ;;  %v2558_v6 = vmax.f32 %v2526_v19, %v2494_v52  ;;  %17131 = vst [vmem:[#allocation58_spill] sm:$0xff] %v12879_v28  ;;  %v9274_v19 = vld [vmem:[%s17017_s6 + $0x348] sm:$0xff] }
 0x426   :  { %v1388_v21 = vmax.f32 %v1356_v32, %v1322_v31  ;;  %6489 = vmatmul.bf16.gmra.mxu2 %v9396_v10  ;;  %v12884_v31 = vpop.f32.mrf.mxu0 }
 0x427   :  { %v1324_v27 = vpop.xlane.xlu0 %1323  ;;  %v2524_v37 = vld [vmem:[#allocation2 + $0x1e8] sm:$0xff]  ;;  %2590 = vst.msk [vmem:[#allocation2 + $0x1f8] sm:$0xff] %vm1673_vm3, %v2558_v6 }
 0x428   :  { %v1389_v33 = vmax.f32 %v1357_v40, %v1324_v27  ;;  %1421 = vst.msk [vmem:[#allocation2 + $0xe8] sm:$0xff] %vm1391_vm2, %v1388_v21  ;;  %v2556_v2 = vmax.f32 %v2524_v37, %v2490_v51  ;;  %v9175_v40 = vld [vmem:[%s17017_s6 + $0x230] sm:$0xff]  ;;  %v12887_v37 = vpop.f32.mrf.mxu3 }
 0x429   :  { %17132 = vst [vmem:[#allocation59_spill] sm:$0xff] %v12884_v31  ;;  %v2244_v21 = vld [vmem:[#allocation2 + $0x1f0] sm:$0xff] }
 0x42a   :  { %1422 = vst.msk [vmem:[#allocation2 + $0xf0] sm:$0xff] %vm1391_vm2, %v1389_v33  ;;  %v12889_v6 = vpop.f32.mrf.mxu2 }
 0x42b   :  { %2588 = vst.msk [vmem:[#allocation2 + $0x1e8] sm:$0xff] %vm1673_vm3, %v2556_v2  ;;  %3669 = vperm.xlu1 %11071, %v9290_v56   ;;  %2689 = vperm.xlu0 %11066, %v9175_v40   ;;  %v9427_v2 = vld [vmem:[%s17018_s7 + $0x80] sm:$0xf] }
 0x42c   :  { %17133 = vst [vmem:[#allocation60_spill] sm:$0xff] %v12887_v37  ;;  %v1326_v51 = vpop.xlane.xlu1 %1325  ;;  %3589 = vperm.xlu2 %11070, %v9274_v19   ;;  %v10733_v56 = vld [vmem:[%s17018_s7 + $0x9c] sm:$0xf0]  ;;  %v9187_v19 = vld [vmem:[%s17017_s6 + $0x290] sm:$0xff] }
 0x42d   :  { %17134 = vst [vmem:[#allocation61_spill] sm:$0xff] %v12889_v6  ;;  %v1390_v10 = vmax.f32 %v1358_v58, %v1326_v51  ;;  %v2210_v27 = vpop.xlane.xlu2 %2209  ;;  %v9294_v58 = vld [vmem:[%s17017_s6 + $0x3e8] sm:$0xff]  ;;  %v12912_v51 = vpop.f32.mrf.mxu1  ;;  %v9185_v37 = vld [vmem:[%s17017_s6 + $0x280] sm:$0xff] }
 0x42e   :  { %v2276_v33 = vmax.f32 %v2244_v21, %v2210_v27  ;;  %v9428_v21 = vor.u32 %v10733_v56, %v9427_v2  ;;  %17135 = vst [vmem:[#allocation62_spill] sm:$0xff] %v12912_v51  ;;  %v9288_v2 = vld [vmem:[%s17017_s6 + $0x3b8] sm:$0xff]  ;;  %v9275_v56 = vld [vmem:[%s17017_s6 + $0x350] sm:$0xff]  ;;  %v4424_v61 = vld [vmem:[#allocation2 + $0x1e0] sm:$0xff] }
 0x42f   :  { %v1638_v52 = vld [vmem:[#allocation2 + $0xe8] sm:$0xff]  ;;  %1423 = vst.msk [vmem:[#allocation2 + $0xf8] sm:$0xff] %vm1391_vm2, %v1390_v10  ;;  %v4427_v31 = vld [vmem:[#allocation2 + $0x1f8] sm:$0xff] }
 0x430   :  { %v1670_v40 = vmax.f32 %v1638_v52, %v12795_v13  ;;  %2308 = vst.msk [vmem:[#allocation2 + $0x1f0] sm:$0xff] %vm1391_vm2, %v2276_v33  ;;  %v12918_v27 = vpop.f32.mrf.mxu3  ;;  %v9373_v51 = vld [vmem:[%s17018_s7 + $0x28] sm:$0xf0] }
 0x431   :  { %v1639_v12 = vld [vmem:[#allocation2 + $0xf0] sm:$0xff]  ;;  %17138 = vst [vmem:[#allocation65_spill] sm:$0xff] %v12918_v27 }
 0x432   :  { %v1671_v32 = vmax.f32 %v1639_v12, %v12822_v48  ;;  %v9271_v48 = vld [vmem:[%s17017_s6 + $0x330] sm:$0xff]  ;;  %1703 = vst.msk [vmem:[#allocation2 + $0xe8] sm:$0xff] %vm1673_vm3, %v1670_v40  ;;  %v12916_v12 = vpop.f32.mrf.mxu0  ;;  %v9272_v40 = vld [vmem:[%s17017_s6 + $0x338] sm:$0xff]  ;;  %v4425_v44 = vld [vmem:[#allocation2 + $0x1e8] sm:$0xff] }
 0x433   :  { %3574 = vperm.xlu1 %11071, %v9271_v48   ;;  %3689 = vperm.xlu0 %11066, %v9294_v58   ;;  %17137 = vst [vmem:[#allocation64_spill] sm:$0xff] %v12916_v12  ;;  %v4522_v17 = vpack.c.bf16 %v4425_v44, %v4424_v61  ;;  %v4422_v61 = vld [vmem:[#allocation2 + $0x1d0] sm:$0xff]  ;;  %v9270_v44 = vld [vmem:[%s17017_s6 + $0x328] sm:$0xff] }
 0x434   :  { %1704 = vst.msk [vmem:[#allocation2 + $0xf0] sm:$0xff] %vm1673_vm3, %v1671_v32  ;;  %v12914_v13 = vpop.permute.xlu1 %2659  ;;  %2749 = vperm.xlu2 %11070, %v9187_v19   ;;  %v12920_v32 = vpop.f32.mrf.mxu2 }
 0x435   :  { %17136 = vst [vmem:[#allocation63_spill] sm:$0xff] %v12914_v13  ;;  %v2492_v10 = vpop.xlane.xlu2 %2491  ;;  %v12936_v19 = vpop.f32.mrf.mxu1 }
 0x436   :  { %6494 = vmatmul.bf16.gmra.mxu2 %v9428_v21  ;;  %17140 = vst [vmem:[#allocation67_spill] sm:$0xff] %v12936_v19  ;;  %v12938_v21 = vpop.permute.xlu0 %2664  ;;  %v1640_v16 = vld [vmem:[#allocation2 + $0xf8] sm:$0xff] }
 0x437   :  { %v2525_v33 = vld [vmem:[#allocation2 + $0x1f0] sm:$0xff]  ;;  %17141 = vst [vmem:[#allocation68_spill] sm:$0xff] %v12938_v21 }
 0x438   :  { %v2557_v52 = vmax.f32 %v2525_v33, %v2492_v10  ;;  %v9459_v33 = vld [vmem:[%s17018_s7 + $0xc0] sm:$0xf]  ;;  %v12948_v27 = vpop.f32.mrf.mxu3 }
 0x439   :  { %17143 = vst [vmem:[#allocation70_spill] sm:$0xff] %v12948_v27  ;;  %v4393_v21 = vld [vmem:[#allocation2 + $0xe8] sm:$0xff] }
 0x43a   :  { %2589 = vst.msk [vmem:[#allocation2 + $0x1f0] sm:$0xff] %vm1673_vm3, %v2557_v52  ;;  %v12940_v10 = vpop.f32.mrf.mxu0  ;;  %v10741_v52 = vld [vmem:[%s17018_s7 + $0xdc] sm:$0xf0] }
 0x43b   :  { %3659 = vperm.xlu1 %11071, %v9288_v2   ;;  %3594 = vperm.xlu0 %11066, %v9275_v56   ;;  %17142 = vst [vmem:[#allocation69_spill] sm:$0xff] %v12940_v10  ;;  %v9269_v56 = vld [vmem:[%s17017_s6 + $0x320] sm:$0xff]  ;;  %v9460_v10 = vor.u32 %v10741_v52, %v9459_v33 }
 0x43c   :  { %v12932_v48 = vpop.permute.xlu1 %2679  ;;  %3579 = vperm.xlu2 %11070, %v9272_v40   ;;  %v12950_v2 = vpop.f32.mrf.mxu2  ;;  %v9291_v40 = vld [vmem:[%s17017_s6 + $0x3d0] sm:$0xff] }
 0x43d   :  { %v12934_v58 = vpop.permute.xlu2 %2669  ;;  %17144 = vst [vmem:[#allocation71_spill] sm:$0xff] %v12950_v2  ;;  %v12965_v14 = vpop.f32.mrf.mxu1 }
 0x43e   :  { %17139 = vst [vmem:[#allocation66_spill] sm:$0xff] %v12934_v58 }
 0x43f   :  { %17145 = vst [vmem:[#allocation72_spill] sm:$0xff] %v12965_v14  ;;  %v10714_v14 = vld [vmem:[%s17018_s7 + $0xc] sm:$0xf] }
 0x440   :  { %v9376_v55 = vor.u32 %v10714_v14, %v9373_v51  ;;  %v9268_v51 = vld [vmem:[%s17017_s6 + $0x318] sm:$0xff] }
 0x441   :  { %v4426_v12 = vld [vmem:[#allocation2 + $0x1f0] sm:$0xff] }
 0x442   :  { %v4523_v50 = vpack.c.bf16 %v4427_v31, %v4426_v12  ;;  %v12967_v33 = vpop.f32.mrf.mxu0  ;;  %v9190_v31 = vld [vmem:[%s17017_s6 + $0x2a8] sm:$0xff] }
 0x443   :  { %3564 = vperm.xlu1 %11071, %v9269_v56   ;;  %3674 = vperm.xlu0 %11066, %v9291_v40   ;;  %17146 = vst [vmem:[#allocation73_spill] sm:$0xff] %v12967_v33  ;;  %v9491_v56 = vld [vmem:[%s17018_s7 + $0x100] sm:$0xf] }
 0x444   :  { %v12961_v27 = vpop.permute.xlu1 %2809  ;;  %6983 = vmatpush.bf16.msrb.mxu1 %v4523_v50  ;;  %2739 = vperm.xlu2 %11070, %v9185_v37   ;;  %v9286_v50 = vld [vmem:[%s17017_s6 + $0x3a8] sm:$0xff]  ;;  %v12976_v37 = vpop.f32.mrf.mxu3  ;;  %v10749_v40 = vld [vmem:[%s17018_s7 + $0x11c] sm:$0xf0] }
 0x445   :  { %v12963_v47 = vpop.permute.xlu2 %2729  ;;  %17147 = vst [vmem:[#allocation74_spill] sm:$0xff] %v12976_v37  ;;  %v9492_v33 = vor.u32 %v10749_v40, %v9491_v56  ;;  %v4417_v40 = vld [vmem:[#allocation2 + $0x1a8] sm:$0xff] }
 0x446   :  { %6499 = vmatmul.bf16.gmra.mxu2 %v9460_v10  ;;  %v1608_v25 = vpop.xlane.xlu0 %1607  ;;  %v4420_v10 = vld [vmem:[#allocation2 + $0x1c0] sm:$0xff] }
 0x447   :  { %v1672_v28 = vmax.f32 %v1640_v16, %v1608_v25  ;;  %v12981_v16 = vpop.f32.mrf.mxu2  ;;  %v4421_v25 = vld [vmem:[#allocation2 + $0x1c8] sm:$0xff] }
 0x448   :  { %6984 = vmatpush.bf16.msrb.mxu1 %v4522_v17  ;;  %v4521_v17 = vpack.c.bf16 %v4423_v20, %v4422_v61  ;;  %v4520_v52 = vpack.c.bf16 %v4421_v25, %v4420_v10  ;;  %v4419_v20 = vld [vmem:[#allocation2 + $0x1b8] sm:$0xff]  ;;  %v4394_v61 = vld [vmem:[#allocation2 + $0xf0] sm:$0xff] }
 0x449   :  { %1705 = vst.msk [vmem:[#allocation2 + $0xf8] sm:$0xff] %vm1673_vm3, %v1672_v28  ;;  %v4418_v25 = vld [vmem:[#allocation2 + $0x1b0] sm:$0xff] }
 0x44a   :  { %v9267_v10 = vld [vmem:[%s17017_s6 + $0x310] sm:$0xff]  ;;  %v13004_v35 = vpop.f32.mrf.mxu0 }
 0x44b   :  { %3649 = vperm.xlu1 %11071, %v9286_v50   ;;  %2764 = vperm.xlu0 %11066, %v9190_v31   ;;  %v9283_v50 = vld [vmem:[%s17017_s6 + $0x390] sm:$0xff]  ;;  %v9289_v31 = vld [vmem:[%s17017_s6 + $0x3c0] sm:$0xff]  ;;  %17149 = vst [vmem:[#allocation76_spill] sm:$0xff] %v13004_v35 }
 0x44c   :  { %v12983_v28 = vpop.permute.xlu1 %2724  ;;  %6985 = vmatpush.bf16.msrb.mxu1 %v4521_v17  ;;  %3569 = vperm.xlu2 %11070, %v9270_v44   ;;  %v12999_v17 = vpop.f32.mrf.mxu1  ;;  %v4390_v35 = vld [vmem:[#allocation2 + $0xd0] sm:$0xff] }
 0x44d   :  { %v12985_v12 = vpop.permute.xlu2 %2814  ;;  %17148 = vst [vmem:[#allocation75_spill] sm:$0xff] %v12999_v17  ;;  %v13006_v58 = vpop.f32.mrf.mxu3 }
 0x44e   :  { %17150 = vst [vmem:[#allocation77_spill] sm:$0xff] %v13006_v58  ;;  %v4414_v58 = vld [vmem:[#allocation2 + $0x190] sm:$0xff] }
 0x450   :  { %v4395_v37 = vld [vmem:[#allocation2 + $0xf8] sm:$0xff]  ;;  %6986 = vmatpush.bf16.msrb.mxu1 %v4520_v52  ;;  %v4519_v52 = vpack.c.bf16 %v4419_v20, %v4418_v25  ;;  %v4518_v20 = vpack.c.bf16 %v4417_v40, %v4416_v49  ;;  %v4388_v40 = vld [vmem:[#allocation2 + $0xc0] sm:$0xff] }
 0x451   :  { %v4507_v44 = vpack.c.bf16 %v4395_v37, %v4394_v61  ;;  %v4392_v37 = vld [vmem:[#allocation2 + $0xe0] sm:$0xff]  ;;  %v13010_v61 = vpop.f32.mrf.mxu2  ;;  %v4391_v25 = vld [vmem:[#allocation2 + $0xd8] sm:$0xff] }
 0x452   :  { %v4506_v56 = vpack.c.bf16 %v4393_v21, %v4392_v37  ;;  %v9284_v21 = vld [vmem:[%s17017_s6 + $0x398] sm:$0xff]  ;;  %v4413_v37 = vld [vmem:[#allocation2 + $0x188] sm:$0xff] }
 0x453   :  { %6645 = vmatpush.bf16.msrb.mxu3 %v4507_v44  ;;  %3634 = vperm.xlu1 %11071, %v9283_v50   ;;  %v4415_v44 = vld [vmem:[#allocation2 + $0x198] sm:$0xff]  ;;  %v9266_v50 = vld [vmem:[%s17017_s6 + $0x308] sm:$0xff] }
 0x454   :  { %v13008_v13 = vpop.permute.xlu1 %2709  ;;  %3664 = vperm.xlu0 %11066, %v9289_v31   ;;  %6987 = vmatpush.bf16.msrb.mxu1 %v4519_v52  ;;  %v9188_v31 = vld [vmem:[%s17017_s6 + $0x298] sm:$0xff]  ;;  %v4505_v52 = vpack.c.bf16 %v4391_v25, %v4390_v35  ;;  %v4517_v49 = vpack.c.bf16 %v4415_v44, %v4414_v58 }
 0x455   :  { %v13012_v17 = vpop.permute.xlu2 %2799  ;;  %3554 = vperm.xlu2 %11070, %v9267_v10   ;;  %v13023_v10 = vpop.f32.mrf.mxu1  ;;  %v4387_v58 = vld [vmem:[#allocation2 + $0xb8] sm:$0xff] }
 0x456   :  { %6504 = vmatmul.bf16.gmra.mxu2 %v9492_v33  ;;  %v4389_v33 = vld [vmem:[#allocation2 + $0xc8] sm:$0xff]  ;;  %17151 = vst [vmem:[#allocation78_spill] sm:$0xff] %v13023_v10  ;;  %v13033_v44 = vpop.f32.mrf.mxu3  ;;  %v4516_v10 = vpack.c.bf16 %v4413_v37, %v4412_v24  ;;  %v9281_v24 = vld [vmem:[%s17017_s6 + $0x380] sm:$0xff] }
 0x457   :  { %6646 = vmatpush.bf16.msrb.mxu3 %v4506_v56  ;;  %v4504_v25 = vpack.c.bf16 %v4389_v33, %v4388_v40  ;;  %17154 = vst [vmem:[#allocation81_spill] sm:$0xff] %v13033_v44  ;;  %v9287_v33 = vld [vmem:[%s17017_s6 + $0x3b0] sm:$0xff]  ;;  %v4384_v40 = vld [vmem:[#allocation2 + $0xa0] sm:$0xff] }
 0x458   :  { %6988 = vmatpush.bf16.msrb.mxu1 %v4518_v20  ;;  %v13027_v20 = vpop.f32.mrf.mxu0 }
 0x459   :  { %17152 = vst [vmem:[#allocation79_spill] sm:$0xff] %v13027_v20  ;;  %v13031_v54 = vpop.permute.xlu0 %2674 }
 0x45a   :  { %17153 = vst [vmem:[#allocation80_spill] sm:$0xff] %v13031_v54 }
 0x45b   :  { %6647 = vmatpush.bf16.msrb.mxu3 %v4505_v52  ;;  %3549 = vperm.xlu1 %11071, %v9266_v50   ;;  %v13035_v52 = vpop.f32.mrf.mxu2  ;;  %v9523_v50 = vld [vmem:[%s17018_s7 + $0x140] sm:$0xf] }
 0x45c   :  { %v13025_v56 = vpop.permute.xlu1 %2794  ;;  %2754 = vperm.xlu0 %11066, %v9188_v31   ;;  %6989 = vmatpush.bf16.msrb.mxu1 %v4517_v49  ;;  %v10757_v31 = vld [vmem:[%s17018_s7 + $0x15c] sm:$0xf0] }
 0x45d   :  { %v13029_v35 = vpop.permute.xlu2 %2714  ;;  %3639 = vperm.xlu2 %11070, %v9284_v21   ;;  %v4386_v21 = vld [vmem:[#allocation2 + $0xb0] sm:$0xff]  ;;  %v9524_v37 = vor.u32 %v10757_v31, %v9523_v50  ;;  %v13053_v45 = vpop.f32.mrf.mxu1 }
 0x45e   :  { %v4503_v49 = vpack.c.bf16 %v4387_v58, %v4386_v21  ;;  %17156 = vst [vmem:[#allocation83_spill] sm:$0xff] %v13053_v45  ;;  %v4383_v58 = vld [vmem:[#allocation2 + $0x98] sm:$0xff]  ;;  %v4382_v50 = vld [vmem:[#allocation2 + $0x90] sm:$0xff]  ;;  %v13059_v31 = vpop.f32.mrf.mxu3 }
 0x45f   :  { %6648 = vmatpush.bf16.msrb.mxu3 %v4504_v25  ;;  %v4385_v25 = vld [vmem:[#allocation2 + $0xa8] sm:$0xff]  ;;  %17158 = vst [vmem:[#allocation85_spill] sm:$0xff] %v13059_v31 }
 0x460   :  { %6990 = vmatpush.bf16.msrb.mxu1 %v4516_v10  ;;  %v4502_v10 = vpack.c.bf16 %v4385_v25, %v4384_v40  ;;  %v13057_v21 = vpop.f32.mrf.mxu0  ;;  %v4381_v40 = vld [vmem:[#allocation2 + $0x88] sm:$0xff] }
 0x461   :  { %v13055_v36 = vpop.permute.xlu0 %2734  ;;  %17157 = vst [vmem:[#allocation84_spill] sm:$0xff] %v13057_v21 }
 0x463   :  { %6649 = vmatpush.bf16.msrb.mxu3 %v4503_v49  ;;  %v9186_v49 = vld [vmem:[%s17017_s6 + $0x288] sm:$0xff]  ;;  %6991 = vmatmul.bf16.vlgmr.msrb.gmra.mxu1 %v9376_v55 }
 0x464   :  { %3654 = vperm.xlu0 %11066, %v9287_v33   ;;  %v13051_v44 = vpop.permute.xlu1 %2699  ;;  %v13061_v33 = vpop.f32.mrf.mxu2 }
 0x465   :  { %v13049_v20 = vpop.permute.xlu2 %3614  ;;  %17155 = vst [vmem:[#allocation82_spill] sm:$0xff] %v13051_v44  ;;  %3624 = vperm.xlu2 %11070, %v9281_v24   ;;  %v4501_v24 = vpack.c.bf16 %v4383_v58, %v4382_v50  ;;  %v10713_v58 = vld [vmem:[%s17018_s7 + $0x4] sm:$0xf]  ;;  %v13096_v21 = vpop.f32.mrf.mxu1 }
 0x466   :  { %6509 = vmatmul.bf16.gmra.mxu2 %v9524_v37  ;;  %v4380_v37 = vld [vmem:[#allocation2 + $0x80] sm:$0xff]  ;;  %17160 = vst [vmem:[#allocation87_spill] sm:$0xff] %v13096_v21 }
 0x467   :  { %6650 = vmatpush.bf16.msrb.mxu3 %v4502_v10  ;;  %v4500_v45 = vpack.c.bf16 %v4381_v40, %v4380_v37  ;;  %v9555_v10 = vld [vmem:[%s17018_s7 + $0x180] sm:$0xf]  ;;  %v9365_v50 = vld [vmem:[%s17018_s7 + $0x20] sm:$0xf0]  ;;  %v10718_v37 = vld [vmem:[%s17018_s7 + $0x24] sm:$0xf0] }
 0x468   :  { %v9368_v40 = vor.u32 %v10713_v58, %v9365_v50  ;;  %v13098_v4 = vpop.f32.mrf.mxu0  ;;  %v9556_v58 = vor.u32 %v10765_v29, %v9555_v10  ;;  %v13103_v50 = vpop.f32.mrf.mxu3 }
 0x469   :  { %v13074_v26 = vpop.permute.xlu0 %2719  ;;  %17161 = vst [vmem:[#allocation88_spill] sm:$0xff] %v13098_v4  ;;  %v9405_v4 = vld [vmem:[%s17018_s7 + $0x68] sm:$0xf0] }
 0x46a   :  { %17162 = vst [vmem:[#allocation89_spill] sm:$0xff] %v13103_v50  ;;  %v10722_v50 = vld [vmem:[%s17018_s7 + $0x4c] sm:$0xf] }
 0x46b   :  { %6651 = vmatpush.bf16.msrb.mxu3 %v4501_v24  ;;  %v9408_v6 = vor.u32 %v10722_v50, %v9405_v4 }
 0x46c   :  { %2744 = vperm.xlu0 %11066, %v9186_v49   ;;  %v9371_v49 = vld [vmem:[%s17018_s7 + $0x8] sm:$0xf]  ;;  %v13085_v24 = vpop.permute.xlu1 %3699  ;;  %v13105_v54 = vpop.f32.mrf.mxu2 }
 0x46d   :  { %v13066_v25 = vpop.permute.xlu2 %2704  ;;  %17159 = vst [vmem:[#allocation86_spill] sm:$0xff] %v13085_v24  ;;  %v9372_v31 = vor.u32 %v10718_v37, %v9371_v49  ;;  %v13116_v29 = vpop.f32.mrf.mxu1  ;;  %v10773_v37 = vld [vmem:[%s17018_s7 + $0x1dc] sm:$0xf0] }
 0x46e   :  { %17164 = vst [vmem:[#allocation91_spill] sm:$0xff] %v13116_v29  ;;  %v10726_v29 = vld [vmem:[%s17018_s7 + $0x64] sm:$0xf0] }
 0x46f   :  { %6652 = vmatpush.bf16.msrb.mxu3 %v4500_v45  ;;  %v9285_v45 = vld [vmem:[%s17017_s6 + $0x3a0] sm:$0xff]  ;;  %6822 = vmatmul.bf16.vlgmr.msrb.gmra.mxu0 %v9372_v31 }
 0x470   :  { %v13118_v31 = vpop.f32.mrf.mxu0  ;;  %v13120_v10 = vpop.f32.mrf.mxu3 }
 0x471   :  { %v13109_v49 = vpop.permute.xlu0 %2804  ;;  %17165 = vst [vmem:[#allocation92_spill] sm:$0xff] %v13118_v31  ;;  %v2958_v31 = vadd.f32 %v12705_v43, %v12963_v47 }
 0x472   :  { %6653 = vmatmul.bf16.vlgmr.msrb.gmra.mxu3 %v9368_v40  ;;  %v9587_v40 = vld [vmem:[%s17018_s7 + $0x1c0] sm:$0xf] }
 0x473   :  { %v9588_v42 = vor.u32 %v10773_v37, %v9587_v40  ;;  %6996 = vmatmul.bf16.gmra.mxu1 %v9408_v6  ;;  %v3016_v43 = vmax.f32 %v2958_v31, 0.0  ;;  %v9282_v6 = vld [vmem:[%s17017_s6 + $0x388] sm:$0xff] }
 0x474   :  { %3644 = vperm.xlu0 %11066, %v9285_v45   ;;  %v13111_v14 = vpop.permute.xlu1 %3604  ;;  %v13122_v55 = vpop.f32.mrf.mxu2  ;;  %v10721_v45 = vld [vmem:[%s17018_s7 + $0x44] sm:$0xf] }
 0x475   :  { %v13107_v3 = vpop.permute.xlu2 %2779  ;;  %17163 = vst [vmem:[#allocation90_spill] sm:$0xff] %v13111_v14  ;;  %v13159_v19 = vpop.f32.mrf.mxu1 }
 0x476   :  { %6514 = vmatmul.bf16.gmra.mxu2 %v9556_v58  ;;  %v9397_v58 = vld [vmem:[%s17018_s7 + $0x60] sm:$0xf0]  ;;  %17167 = vst [vmem:[#allocation94_spill] sm:$0xff] %v13159_v19  ;;  %v2953_v19 = vadd.f32 %v12666_v18, %v13074_v26 }
 0x477   :  { %v9400_v21 = vor.u32 %v10721_v45, %v9397_v58  ;;  %v9265_v45 = vld [vmem:[%s17017_s6 + $0x300] sm:$0xff] }
 0x478   :  { %v13161_v60 = vpop.f32.mrf.mxu0  ;;  %v13163_v4 = vpop.f32.mrf.mxu3  ;;  %v3014_v18 = vmax.f32 %v2953_v19, 0.0 }
 0x479   :  { %v13155_v58 = vpop.permute.xlu0 %2789  ;;  %17168 = vst [vmem:[#allocation95_spill] sm:$0xff] %v13161_v60 }
 0x47a   :  { %17169 = vst [vmem:[#allocation96_spill] sm:$0xff] %v13163_v4 }
 0x47c   :  { %3559 = vperm.xlu0 %11066, %v9268_v51   ;;  %v9403_v51 = vld [vmem:[%s17018_s7 + $0x48] sm:$0xf]  ;;  %v13157_v8 = vpop.permute.xlu1 %2694  ;;  %v13165_v50 = vpop.f32.mrf.mxu2 }
 0x47d   :  { %v13150_v46 = vpop.permute.xlu2 %3609  ;;  %v9404_v2 = vor.u32 %v10726_v29, %v9403_v51  ;;  %17166 = vst [vmem:[#allocation93_spill] sm:$0xff] %v13157_v8  ;;  %v2950_v29 = vadd.f32 %v12639_v57, %v13029_v35  ;;  %v13180_v51 = vpop.f32.mrf.mxu1  ;;  %v10729_v57 = vld [vmem:[%s17018_s7 + $0x84] sm:$0xf] }
 0x47e   :  { %17172 = vst [vmem:[#allocation99_spill] sm:$0xff] %v13180_v51 }
 0x47f   :  { %6827 = vmatmul.bf16.gmra.mxu0 %v9404_v2  ;;  %v2960_v2 = vadd.f32 %v12727_v9, %v13055_v36  ;;  %v3013_v40 = vmax.f32 %v2950_v29, 0.0  ;;  %v9429_v9 = vld [vmem:[%s17018_s7 + $0xa0] sm:$0xf0] }
 0x480   :  { %v9432_v29 = vor.u32 %v10729_v57, %v9429_v9  ;;  %v9619_v57 = vld [vmem:[%s17018_s7 + $0x200] sm:$0xf] }
 0x481   :  { %v10781_v9 = vld [vmem:[%s17018_s7 + $0x21c] sm:$0xf0] }
 0x482   :  { %6658 = vmatmul.bf16.gmra.mxu3 %v9400_v21 }
 0x484   :  { %3544 = vperm.xlu0 %11066, %v9265_v45   ;;  %v13178_v37 = vpop.permute.xlu1 %2769  ;;  %v9435_v45 = vld [vmem:[%s17018_s7 + $0x88] sm:$0xf]  ;;  %v13214_v8 = vpop.f32.mrf.mxu2 }
 0x485   :  { %3062 = vmax.xlane.f32.xlu1 %v3016_v43  ;;  %v13174_v21 = vpop.permute.xlu2 %3684  ;;  %v13176_v31 = vpop.permute.xlu0 %3619 }
 0x486   :  { %6519 = vmatmul.bf16.gmra.mxu2 %v9588_v42  ;;  %17170 = vst [vmem:[#allocation97_spill] sm:$0xff] %v13174_v21  ;;  %v3017_v42 = vmax.f32 %v2960_v2, 0.0  ;;  %v13191_v43 = vpop.f32.mrf.mxu0  ;;  %v10734_v2 = vld [vmem:[%s17018_s7 + $0xa4] sm:$0xf0]  ;;  %v13212_v21 = vpop.f32.mrf.mxu3 }
 0x487   :  { %17171 = vst [vmem:[#allocation98_spill] sm:$0xff] %v13176_v31  ;;  %v9436_v51 = vor.u32 %v10734_v2, %v9435_v45  ;;  %v13222_v45 = vpop.f32.mrf.mxu1  ;;  %v2988_v2 = vadd.f32 %v13035_v52, %v13155_v58  ;;  %v9467_v52 = vld [vmem:[%s17018_s7 + $0xc8] sm:$0xf] }
 0x488   :  { %17173 = vst [vmem:[#allocation100_spill] sm:$0xff] %v13191_v43 }
 0x489   :  { %17175 = vst [vmem:[#allocation102_spill] sm:$0xff] %v13222_v45 }
 0x48c   :  { %3629 = vperm.xlu0 %11066, %v9282_v6   ;;  %v10730_v6 = vld [vmem:[%s17018_s7 + $0x8c] sm:$0xf]  ;;  %v13220_v7 = vpop.permute.xlu1 %3599 }
 0x48d   :  { %3056 = vmax.xlane.f32.xlu1 %v3013_v40  ;;  %v3240_v40 = vadd.f32 %v12776_v0, %v12963_v47  ;;  %v9620_v47 = vor.u32 %v10781_v9, %v9619_v57  ;;  %v13216_v0 = vpop.permute.xlu2 %2774  ;;  %v13218_v4 = vpop.permute.xlu0 %3694  ;;  %v10742_v9 = vld [vmem:[%s17018_s7 + $0xe4] sm:$0xf0] }
 0x48e   :  { %3064 = vmax.xlane.f32.xlu2 %v3017_v42  ;;  %v9437_v42 = vld [vmem:[%s17018_s7 + $0xa8] sm:$0xf0]  ;;  %17174 = vst [vmem:[#allocation101_spill] sm:$0xff] %v13216_v0  ;;  %v13232_v19 = vpop.f32.mrf.mxu3 }
 0x48f   :  { %v9440_v43 = vor.u32 %v10730_v6, %v9437_v42  ;;  %6832 = vmatmul.bf16.gmra.mxu0 %v9436_v51  ;;  %v3298_v60 = vmax.f32 %v3240_v40, 0.0  ;;  %v3845_v51 = vadd.f32 %v12797_v59, %v13176_v31  ;;  %v3028_v6 = vmax.f32 %v2988_v2, 0.0  ;;  %v10737_v40 = vld [vmem:[%s17018_s7 + $0xc4] sm:$0xf] }
 0x490   :  { %v9461_v59 = vld [vmem:[%s17018_s7 + $0xe0] sm:$0xf0]  ;;  %v2993_v2 = vadd.f32 %v13105_v54, %v13012_v17  ;;  %v13270_v54 = vpop.f32.mrf.mxu1 }
 0x491   :  { %7001 = vmatmul.bf16.gmra.mxu1 %v9440_v43  ;;  %v13228_v43 = vpop.f32.mrf.mxu0  ;;  %v3902_v42 = vmax.f32 %v3845_v51, 0.0  ;;  %v9464_v57 = vor.u32 %v10737_v40, %v9461_v59  ;;  %v3242_v51 = vadd.f32 %v12799_v11, %v13055_v36  ;;  %v10789_v40 = vld [vmem:[%s17018_s7 + $0x25c] sm:$0xf0]  ;;  %v9468_v59 = vor.u32 %v10742_v9, %v9467_v52  ;;  %17179 = vst [vmem:[#allocation106_spill] sm:$0xff] %v13270_v54 }
 0x492   :  { %6663 = vmatmul.bf16.gmra.mxu3 %v9432_v29  ;;  %v3030_v0 = vmax.f32 %v2993_v2, 0.0  ;;  %v2943_v9 = vadd.f32 %v12592_v38, %v13051_v44  ;;  %v9493_v38 = vld [vmem:[%s17018_s7 + $0x120] sm:$0xf0] }
 0x494   :  { %v13266_v45 = vpop.permute.xlu1 %3679 }
 0x495   :  { %3344 = vmax.xlane.f32.xlu1 %v3298_v60  ;;  %v13234_v60 = vpop.permute.xlu2 %2684 }
 0x496   :  { %3058 = vmax.xlane.f32.xlu2 %v3014_v18  ;;  %6524 = vmatmul.bf16.gmra.mxu2 %v9620_v47  ;;  %17177 = vst [vmem:[#allocation104_spill] sm:$0xff] %v13234_v60  ;;  %v10738_v47 = vld [vmem:[%s17018_s7 + $0xcc] sm:$0xf]  ;;  %v3299_v60 = vmax.f32 %v3242_v51, 0.0  ;;  %v3279_v14 = vpop.f32.mrf.mxu3  ;;  %v3010_v51 = vmax.f32 %v2943_v9, 0.0 }
 0x497   :  { %v9469_v18 = vld [vmem:[%s17018_s7 + $0xe8] sm:$0xf0]  ;;  %v3280_v52 = vadd.f32 %v3279_v14, %v12961_v27  ;;  %v10745_v14 = vld [vmem:[%s17018_s7 + $0x104] sm:$0xf] }
 0x499   :  { %v13230_v29 = vpop.f32.mrf.mxu2  ;;  %v13272_v36 = vpop.f32.mrf.mxu0  ;;  %v3314_v2 = vmax.f32 %v3280_v52, 0.0  ;;  %v9501_v52 = vld [vmem:[%s17018_s7 + $0x128] sm:$0xf0] }
 0x49a   :  { %17176 = vst [vmem:[#allocation103_spill] sm:$0xff] %v13230_v29  ;;  %v9472_v29 = vor.u32 %v10738_v47, %v9469_v18 }
 0x49d   :  { %3949 = vmax.xlane.f32.xlu1 %v3902_v42  ;;  %v9651_v42 = vld [vmem:[%s17018_s7 + $0x240] sm:$0xf]  ;;  %v13277_v47 = vpop.permute.xlu2 %2759 }
 0x49e   :  { %3086 = vmax.xlane.f32.xlu2 %v3028_v6  ;;  %v13258_v6 = vpop.permute.xlu0 %2784  ;;  %v9652_v11 = vor.u32 %v10789_v40, %v9651_v42  ;;  %17180 = vst [vmem:[#allocation107_spill] sm:$0xff] %v13277_v47  ;;  %v9496_v42 = vor.u32 %v10745_v14, %v9493_v38  ;;  %v10750_v40 = vld [vmem:[%s17018_s7 + $0x124] sm:$0xf0]  ;;  %v10797_v14 = vld [vmem:[%s17018_s7 + $0x29c] sm:$0xf0] }
 0x49f   :  { %6837 = vmatmul.bf16.gmra.mxu0 %v9468_v59  ;;  %v13283_v59 = vpop.permute.xlu1 %3584 }
 0x4a0   :  { %17182 = vst [vmem:[#allocation109_spill] sm:$0xff] %v13283_v59 }
 0x4a1   :  { %v13268_v31 = vpop.f32.mrf.mxu2  ;;  %7006 = vmatmul.bf16.gmra.mxu1 %v9472_v29  ;;  %v13285_v29 = vpop.f32.mrf.mxu1 }
 0x4a2   :  { %17178 = vst [vmem:[#allocation105_spill] sm:$0xff] %v13268_v31  ;;  %6668 = vmatmul.bf16.gmra.mxu3 %v9464_v57 }
 0x4a3   :  { %17183 = vst [vmem:[#allocation110_spill] sm:$0xff] %v13285_v29 }
 0x4a5   :  { %3090 = vmax.xlane.f32.xlu1 %v3030_v0  ;;  %v9499_v0 = vld [vmem:[%s17018_s7 + $0x108] sm:$0xf]  ;;  %v13318_v29 = vpop.permute.xlu2 %3589 }
 0x4a6   :  { %3346 = vmax.xlane.f32.xlu2 %v3299_v60  ;;  %6529 = vmatmul.bf16.gmra.mxu2 %v9652_v11  ;;  %v13281_v57 = vpop.permute.xlu0 %2689  ;;  %v3884_v60 = vpop.f32.mrf.mxu0  ;;  %v10746_v11 = vld [vmem:[%s17018_s7 + $0x10c] sm:$0xf]  ;;  %v9500_v38 = vor.u32 %v10750_v40, %v9499_v0 }
 0x4a7   :  { %v3885_v9 = vadd.f32 %v3884_v60, %v13085_v24  ;;  %v9504_v31 = vor.u32 %v10746_v11, %v9501_v52  ;;  %v13322_v59 = vpop.permute.xlu1 %3669 }
 0x4a9   :  { %v13279_v18 = vpop.f32.mrf.mxu2  ;;  %v3918_v24 = vmax.f32 %v3885_v9, 0.0  ;;  %v13324_v0 = vpop.f32.mrf.mxu1 }
 0x4aa   :  { %17181 = vst [vmem:[#allocation108_spill] sm:$0xff] %v13279_v18  ;;  %v2955_v18 = vadd.f32 %v12687_v23, %v12983_v28  ;;  %v3000_v23 = vadd.f32 %v13214_v8, %v12985_v12  ;;  %v3281_v9 = vpop.f32.mrf.mxu3  ;;  %v10753_v8 = vld [vmem:[%s17018_s7 + $0x144] sm:$0xf] }
 0x4ac   :  { %v3015_v47 = vmax.f32 %v2955_v18, 0.0  ;;  %v3033_v11 = vmax.f32 %v3000_v23, 0.0  ;;  %v3282_v23 = vadd.f32 %v3281_v9, %v12985_v12 }
 0x4ad   :  { %3376 = vmax.xlane.f32.xlu1 %v3314_v2  ;;  %v2995_v2 = vadd.f32 %v13122_v55, %v13109_v49  ;;  %v13334_v52 = vpop.permute.xlu2 %2749 }
 0x4ae   :  { %3050 = vmax.xlane.f32.xlu2 %v3010_v51  ;;  %v9683_v51 = vld [vmem:[%s17018_s7 + $0x280] sm:$0xf]  ;;  %v13320_v60 = vpop.permute.xlu0 %3689 }
 0x4af   :  { %6842 = vmatmul.bf16.gmra.mxu0 %v9500_v38  ;;  %v9684_v55 = vor.u32 %v10797_v14, %v9683_v51  ;;  %v3031_v44 = vmax.f32 %v2995_v2, 0.0  ;;  %v10758_v51 = vld [vmem:[%s17018_s7 + $0x164] sm:$0xf0]  ;;  %v10754_v14 = vld [vmem:[%s17018_s7 + $0x14c] sm:$0xf] }
 0x4b0   :  { %v9533_v38 = vld [vmem:[%s17018_s7 + $0x168] sm:$0xf0] }
 0x4b1   :  { %v13316_v54 = vpop.f32.mrf.mxu2  ;;  %7011 = vmatmul.bf16.gmra.mxu1 %v9504_v31  ;;  %v2948_v31 = vadd.f32 %v12621_v41, %v13008_v13  ;;  %v9525_v41 = vld [vmem:[%s17018_s7 + $0x160] sm:$0xf0] }
 0x4b2   :  { %17184 = vst [vmem:[#allocation111_spill] sm:$0xff] %v13316_v54  ;;  %6673 = vmatmul.bf16.gmra.mxu3 %v9496_v42  ;;  %v2983_v42 = vadd.f32 %v12981_v16, %v13107_v3  ;;  %v9531_v16 = vld [vmem:[%s17018_s7 + $0x148] sm:$0xf]  ;;  %v9528_v2 = vor.u32 %v10753_v8, %v9525_v41  ;;  %v3843_v8 = vadd.f32 %v12774_v39, %v13049_v20 }
 0x4b3   :  { %v3840_v39 = vadd.f32 %v12743_v63, %v13150_v46  ;;  %v9563_v63 = vld [vmem:[%s17018_s7 + $0x188] sm:$0xf] }
 0x4b4   :  { %v3026_v18 = vmax.f32 %v2983_v42, 0.0  ;;  %v3235_v42 = vadd.f32 %v12723_v15, %v13074_v26  ;;  %v3315_v15 = vmax.f32 %v3282_v23, 0.0  ;;  %v3901_v9 = vmax.f32 %v3843_v8, 0.0 }
 0x4b5   :  { %3981 = vmax.xlane.f32.xlu1 %v3918_v24 }
 0x4b6   :  { %3092 = vmax.xlane.f32.xlu2 %v3031_v44  ;;  %6534 = vmatmul.bf16.gmra.mxu2 %v9684_v55  ;;  %v3012_v44 = vmax.f32 %v2948_v31, 0.0  ;;  %v13336_v24 = vpop.permute.xlu0 %3594  ;;  %v13358_v55 = vpop.f32.mrf.mxu1  ;;  %v9715_v31 = vld [vmem:[%s17018_s7 + $0x2c0] sm:$0xf]  ;;  %v3296_v26 = vmax.f32 %v3235_v42, 0.0  ;;  %v10761_v42 = vld [vmem:[%s17018_s7 + $0x184] sm:$0xf] }
 0x4b7   :  { %3060 = vmax.xlane.f32.xlu0 %v3015_v47  ;;  %v13347_v47 = vpop.permute.xlu1 %3574 }
 0x4b9   :  { %v13332_v40 = vpop.f32.mrf.mxu2 }
 0x4ba   :  { %17185 = vst [vmem:[#allocation112_spill] sm:$0xff] %v13332_v40  ;;  %v13373_v40 = vpop.permute.xlu2 %3579 }
 0x4bd   :  { %3096 = vmax.xlane.f32.xlu1 %v3033_v11  ;;  %v10805_v11 = vld [vmem:[%s17018_s7 + $0x2dc] sm:$0xf0] }
 0x4be   :  { %3082 = vmax.xlane.f32.xlu2 %v3026_v18  ;;  %v9532_v18 = vor.u32 %v10758_v51, %v9531_v16  ;;  %v9716_v12 = vor.u32 %v10805_v11, %v9715_v31  ;;  %v3237_v16 = vadd.f32 %v12751_v22, %v12983_v28  ;;  %v13379_v51 = vpop.permute.xlu0 %3674  ;;  %v13387_v23 = vpop.f32.mrf.mxu1  ;;  %v9557_v22 = vld [vmem:[%s17018_s7 + $0x1a0] sm:$0xf0]  ;;  %v3900_v31 = vmax.f32 %v3840_v39, 0.0  ;;  %v10762_v11 = vld [vmem:[%s17018_s7 + $0x18c] sm:$0xf] }
 0x4bf   :  { %3054 = vmax.xlane.f32.xlu0 %v3012_v44  ;;  %v9536_v44 = vor.u32 %v10754_v14, %v9533_v38  ;;  %v13383_v14 = vpop.permute.xlu1 %3659  ;;  %v9560_v8 = vor.u32 %v10761_v42, %v9557_v22  ;;  %v9747_v39 = vld [vmem:[%s17018_s7 + $0x300] sm:$0xf]  ;;  %v2990_v42 = vadd.f32 %v13061_v33, %v13025_v56  ;;  %v3277_v33 = vadd.f32 %v13232_v19, %v13109_v49  ;;  %v9595_v49 = vld [vmem:[%s17018_s7 + $0x1c8] sm:$0xf] }
 0x4c0   :  { %6847 = vmatmul.bf16.gmra.mxu0 %v9532_v18  ;;  %v3297_v28 = vmax.f32 %v3237_v16, 0.0  ;;  %v9565_v18 = vld [vmem:[%s17018_s7 + $0x1a8] sm:$0xf0] }
 0x4c1   :  { %v13371_v41 = vpop.f32.mrf.mxu2  ;;  %7016 = vmatmul.bf16.gmra.mxu1 %v9536_v44 }
 0x4c2   :  { %17186 = vst [vmem:[#allocation113_spill] sm:$0xff] %v13371_v41  ;;  %6678 = vmatmul.bf16.gmra.mxu3 %v9528_v2  ;;  %v2945_v2 = vadd.f32 %v12603_v34, %v13066_v25  ;;  %v10766_v34 = vld [vmem:[%s17018_s7 + $0x1a4] sm:$0xf0]  ;;  %v13411_v16 = vpop.permute.xlu2 %2739 }
 0x4c4   :  { %v3011_v44 = vmax.f32 %v2945_v2, 0.0  ;;  %v10813_v2 = vld [vmem:[%s17018_s7 + $0x31c] sm:$0xf0] }
 0x4c5   :  { %3340 = vmax.xlane.f32.xlu1 %v3296_v26  ;;  %v3275_v26 = vadd.f32 %v13212_v21, %v13012_v17  ;;  %v9748_v17 = vor.u32 %v10813_v2, %v9747_v39 }
 0x4c6   :  { %3378 = vmax.xlane.f32.xlu2 %v3315_v15  ;;  %6539 = vmatmul.bf16.gmra.mxu2 %v9716_v12  ;;  %v9564_v12 = vor.u32 %v10766_v34, %v9563_v63  ;;  %v9568_v15 = vor.u32 %v10762_v11, %v9565_v18  ;;  %v13423_v63 = vpop.permute.xlu0 %2764  ;;  %v13427_v21 = vpop.f32.mrf.mxu1  ;;  %v3880_v11 = vadd.f32 %v13228_v43, %v13320_v60  ;;  %v3313_v43 = vmax.f32 %v3277_v33, 0.0 }
 0x4c7   :  { %3947 = vmax.xlane.f32.xlu0 %v3901_v9  ;;  %v2938_v9 = vadd.f32 %v12566_v30, %v13281_v57  ;;  %v13425_v30 = vpop.permute.xlu1 %3564  ;;  %v2998_v18 = vadd.f32 %v13165_v50, %v12961_v27  ;;  %v10774_v27 = vld [vmem:[%s17018_s7 + $0x1e4] sm:$0xf0]  ;;  %v2978_v33 = vadd.f32 %v12920_v32, %v13178_v37 }
 0x4c8   :  { %v3916_v19 = vmax.f32 %v3880_v11, 0.0  ;;  %v9779_v11 = vld [vmem:[%s17018_s7 + $0x340] sm:$0xf] }
 0x4c9   :  { %v13385_v38 = vpop.f32.mrf.mxu2  ;;  %v3008_v34 = vmax.f32 %v2938_v9, 0.0  ;;  %v9597_v9 = vld [vmem:[%s17018_s7 + $0x1e8] sm:$0xf0]  ;;  %v3032_v39 = vmax.f32 %v2998_v18, 0.0  ;;  %v10821_v18 = vld [vmem:[%s17018_s7 + $0x35c] sm:$0xf0] }
 0x4ca   :  { %17187 = vst [vmem:[#allocation114_spill] sm:$0xff] %v13385_v38  ;;  %v3024_v32 = vmax.f32 %v2978_v33, 0.0  ;;  %v9629_v33 = vld [vmem:[%s17018_s7 + $0x228] sm:$0xf0] }
 0x4cd   :  { %3945 = vmax.xlane.f32.xlu1 %v3900_v31  ;;  %v3029_v31 = vmax.f32 %v2990_v42, 0.0 }
 0x4ce   :  { %3342 = vmax.xlane.f32.xlu2 %v3297_v28  ;;  %v3312_v28 = vmax.f32 %v3275_v26, 0.0  ;;  %v13451_v50 = vpop.permute.xlu0 %3664  ;;  %v10770_v26 = vld [vmem:[%s17018_s7 + $0x1cc] sm:$0xf]  ;;  %v13461_v42 = vpop.f32.mrf.mxu1 }
 0x4cf   :  { %3052 = vmax.xlane.f32.xlu0 %v3011_v44  ;;  %17190 = vst [vmem:[#allocation117_spill] sm:$0xff] %v13451_v50  ;;  %v13459_v2 = vpop.permute.xlu1 %3649 }
 0x4d0   :  { %6852 = vmatmul.bf16.gmra.mxu0 %v9564_v12  ;;  %v10769_v12 = vld [vmem:[%s17018_s7 + $0x1c4] sm:$0xf] }
 0x4d1   :  { %v13421_v22 = vpop.f32.mrf.mxu2  ;;  %7021 = vmatmul.bf16.gmra.mxu1 %v9568_v15  ;;  %v9589_v15 = vld [vmem:[%s17018_s7 + $0x1e0] sm:$0xf0] }
 0x4d2   :  { %17188 = vst [vmem:[#allocation115_spill] sm:$0xff] %v13421_v22  ;;  %6683 = vmatmul.bf16.gmra.mxu3 %v9560_v8  ;;  %v13437_v8 = vpop.permute.xlu2 %3569 }
 0x4d5   :  { %3372 = vmax.xlane.f32.xlu1 %v3312_v28  ;;  %v9600_v28 = vor.u32 %v10770_v26, %v9597_v9  ;;  %v3835_v9 = vadd.f32 %v12698_v5, %v13220_v7  ;;  %v10782_v5 = vld [vmem:[%s17018_s7 + $0x224] sm:$0xf0] }
 0x4d6   :  { %3046 = vmax.xlane.f32.xlu2 %v3008_v34  ;;  %6544 = vmatmul.bf16.gmra.mxu2 %v9748_v17  ;;  %v9592_v17 = vor.u32 %v10769_v12, %v9589_v15  ;;  %v9596_v34 = vor.u32 %v10774_v27, %v9595_v49  ;;  %v3883_v12 = vadd.f32 %v13272_v36, %v13218_v4  ;;  %v13485_v26 = vpop.f32.mrf.mxu1 }
 0x4d7   :  { %3088 = vmax.xlane.f32.xlu0 %v3029_v31  ;;  %v3230_v31 = vadd.f32 %v12683_v53, %v13008_v13  ;;  %v9780_v49 = vor.u32 %v10821_v18, %v9779_v11  ;;  %v3232_v36 = vadd.f32 %v12700_v1, %v13029_v35  ;;  %v9627_v1 = vld [vmem:[%s17018_s7 + $0x208] sm:$0xf] }
 0x4d8   :  { %v3917_v27 = vmax.f32 %v3883_v12, 0.0 }
 0x4d9   :  { %v13435_v44 = vpop.f32.mrf.mxu2  ;;  %v3294_v13 = vmax.f32 %v3230_v31, 0.0  ;;  %v3295_v35 = vmax.f32 %v3232_v36, 0.0  ;;  %v10778_v31 = vld [vmem:[%s17018_s7 + $0x20c] sm:$0xf]  ;;  %v3270_v36 = vadd.f32 %v13120_v10, %v13155_v58 }
 0x4da   :  { %17189 = vst [vmem:[#allocation116_spill] sm:$0xff] %v13435_v44  ;;  %v13477_v53 = vpop.permute.xlu2 %3554  ;;  %v17210_v44 = vld [vmem:[#allocation67_spill] sm:$0xff] }
 0x4db   :  { %v4125_v54 = vadd.f32 %v17210_v44, %v13049_v20 }
 0x4dd   :  { %3977 = vmax.xlane.f32.xlu1 %v3916_v19  ;;  %v13481_v19 = vpop.permute.xlu1 %3634 }
 0x4de   :  { %3374 = vmax.xlane.f32.xlu2 %v3313_v43  ;;  %v13479_v43 = vpop.permute.xlu0 %2754 }
 0x4df   :  { %3094 = vmax.xlane.f32.xlu0 %v3032_v39  ;;  %v2985_v39 = vadd.f32 %v13010_v61, %v13258_v6  ;;  %v3898_v61 = vmax.f32 %v3835_v9, 0.0 }
 0x4e0   :  { %6857 = vmatmul.bf16.gmra.mxu0 %v9596_v34  ;;  %v10777_v34 = vld [vmem:[%s17018_s7 + $0x204] sm:$0xf] }
 0x4e1   :  { %v13475_v15 = vpop.f32.mrf.mxu2  ;;  %7026 = vmatmul.bf16.gmra.mxu1 %v9600_v28  ;;  %v9621_v28 = vld [vmem:[%s17018_s7 + $0x220] sm:$0xf0]  ;;  %v3027_v11 = vmax.f32 %v2985_v39, 0.0  ;;  %v9811_v39 = vld [vmem:[%s17018_s7 + $0x380] sm:$0xf] }
 0x4e2   :  { %17191 = vst [vmem:[#allocation118_spill] sm:$0xff] %v13475_v15  ;;  %6688 = vmatmul.bf16.gmra.mxu3 %v9592_v17  ;;  %v13511_v18 = vpop.permute.xlu2 %3639  ;;  %v9624_v12 = vor.u32 %v10777_v34, %v9621_v28  ;;  %v10829_v34 = vld [vmem:[%s17018_s7 + $0x39c] sm:$0xf0]  ;;  %v13527_v28 = vpop.f32.mrf.mxu1  ;;  %v17200_v15 = vld [vmem:[#allocation96_spill] sm:$0xff] }
 0x4e3   :  { %17194 = vst [vmem:[#allocation121_spill] sm:$0xff] %v13527_v28  ;;  %v9812_v10 = vor.u32 %v10829_v34, %v9811_v39  ;;  %v17211_v28 = vld [vmem:[#allocation107_spill] sm:$0xff] }
 0x4e5   :  { %3336 = vmax.xlane.f32.xlu1 %v3294_v13 }
 0x4e6   :  { %3078 = vmax.xlane.f32.xlu2 %v3024_v32  ;;  %6549 = vmatmul.bf16.gmra.mxu2 %v9780_v49  ;;  %v9628_v49 = vor.u32 %v10782_v5, %v9627_v1  ;;  %v9632_v32 = vor.u32 %v10778_v31, %v9629_v33  ;;  %v13519_v9 = vpop.permute.xlu0 %3654  ;;  %v17195_v1 = vld [vmem:[#allocation90_spill] sm:$0xff]  ;;  %v17196_v5 = vld [vmem:[#allocation44_spill] sm:$0xff]  ;;  %v3310_v31 = vmax.f32 %v3270_v36, 0.0  ;;  %v17206_v36 = vld [vmem:[#allocation25_spill] sm:$0xff] }
 0x4e7   :  { %3979 = vmax.xlane.f32.xlu0 %v3917_v27  ;;  %v2933_v27 = vadd.f32 %v12547_v62, %v12932_v48 }
 0x4e9   :  { %v13491_v17 = vpop.f32.mrf.mxu2  ;;  %v3006_v58 = vmax.f32 %v2933_v27, 0.0  ;;  %v17205_v27 = vld [vmem:[#allocation93_spill] sm:$0xff] }
 0x4ea   :  { %17192 = vst [vmem:[#allocation119_spill] sm:$0xff] %v13491_v17  ;;  %v3272_v17 = vadd.f32 %v17200_v15, %v13025_v56  ;;  %v13543_v39 = vpop.permute.xlu2 %3624  ;;  %v2940_v34 = vadd.f32 %v17206_v36, %v17205_v27  ;;  %v9661_v36 = vld [vmem:[%s17018_s7 + $0x268] sm:$0xf0] }
 0x4ec   :  { %v13513_v13 = vpop.f32.mrf.mxu0 }
 0x4ed   :  { %3941 = vmax.xlane.f32.xlu1 %v3898_v61  ;;  %17193 = vst [vmem:[#allocation120_spill] sm:$0xff] %v13513_v13  ;;  %v13531_v61 = vpop.permute.xlu1 %3549  ;;  %v17212_v13 = vld [vmem:[#allocation57_spill] sm:$0xff] }
 0x4ee   :  { %3338 = vmax.xlane.f32.xlu2 %v3295_v35  ;;  %v3838_v35 = vadd.f32 %v17196_v5, %v17195_v1  ;;  %17197 = vst [vmem:[#allocation90_spill] sm:$0xff] %v13531_v61  ;;  %v3113_v5 = vld [vmem:[#allocation2 + $0x270] sm:$0xff]  ;;  %v13551_v56 = vpop.permute.xlu0 %2744  ;;  %v17234_v61 = vld [vmem:[#allocation16_spill] sm:$0xff] }
 0x4ef   :  { %3084 = vmax.xlane.f32.xlu0 %v3027_v11 }
 0x4f0   :  { %6862 = vmatmul.bf16.gmra.mxu0 %v9628_v49  ;;  %v3899_v33 = vmax.f32 %v3838_v35, 0.0 }
 0x4f1   :  { %v13533_v62 = vpop.f32.mrf.mxu2  ;;  %7031 = vmatmul.bf16.gmra.mxu1 %v9632_v32  ;;  %v13545_v32 = vpop.f32.mrf.mxu1 }
 0x4f2   :  { %17198 = vst [vmem:[#allocation44_spill] sm:$0xff] %v13533_v62  ;;  %6693 = vmatmul.bf16.gmra.mxu3 %v9624_v12  ;;  %v17202_v12 = vld [vmem:[#allocation95_spill] sm:$0xff] }
 0x4f3   :  { %v3875_v49 = vadd.f32 %v17202_v12, %v13266_v45  ;;  %17203 = vst [vmem:[#allocation95_spill] sm:$0xff] %v13543_v39  ;;  %v10790_v12 = vld [vmem:[%s17018_s7 + $0x264] sm:$0xf0]  ;;  %v17227_v39 = vld [vmem:[#allocation109_spill] sm:$0xff] }
 0x4f4   :  { %v13539_v22 = vpop.f32.mrf.mxu0  ;;  %17204 = vst [vmem:[#allocation123_spill] sm:$0xff] %v13545_v32  ;;  %v3114_v32 = vld [vmem:[#allocation2 + $0x278] sm:$0xff] }
 0x4f5   :  { %v13535_v11 = vpop.f32.mrf.mxu3  ;;  %3368 = vmax.xlane.f32.xlu1 %v3310_v31  ;;  %17201 = vst [vmem:[#allocation96_spill] sm:$0xff] %v13539_v22  ;;  %v9653_v31 = vld [vmem:[%s17018_s7 + $0x260] sm:$0xf0]  ;;  %v3110_v22 = vld [vmem:[#allocation2 + $0x258] sm:$0xff] }
 0x4f6   :  { %17199 = vst [vmem:[#allocation122_spill] sm:$0xff] %v13535_v11  ;;  %3042 = vmax.xlane.f32.xlu2 %v3006_v58  ;;  %6554 = vmatmul.bf16.gmra.mxu2 %v9812_v10  ;;  %v3311_v10 = vmax.f32 %v3272_v17, 0.0  ;;  %v10785_v58 = vld [vmem:[%s17018_s7 + $0x244] sm:$0xf]  ;;  %v10786_v17 = vld [vmem:[%s17018_s7 + $0x24c] sm:$0xf]  ;;  %v2973_v11 = vadd.f32 %v17212_v13, %v17211_v28 }
 0x4f7   :  { %3943 = vmax.xlane.f32.xlu0 %v3899_v33  ;;  %v9659_v33 = vld [vmem:[%s17018_s7 + $0x248] sm:$0xf]  ;;  %v9656_v38 = vor.u32 %v10785_v58, %v9653_v31  ;;  %v17214_v31 = vld [vmem:[#allocation97_spill] sm:$0xff] }
 0x4f8   :  { %v3063_v35 = vpop.xlane.xlu1 %3062  ;;  %v9660_v41 = vor.u32 %v10790_v12, %v9659_v33  ;;  %v17215_v33 = vld [vmem:[#allocation100_spill] sm:$0xff] }
 0x4f9   :  { %v13549_v62 = vpop.f32.mrf.mxu2  ;;  %v3145_v15 = vmax.f32 %v3113_v5, %v3063_v35  ;;  %v3914_v5 = vmax.f32 %v3875_v49, 0.0  ;;  %v3009_v35 = vmax.f32 %v2940_v34, 0.0  ;;  %v9664_v49 = vor.u32 %v10786_v17, %v9661_v36  ;;  %v9843_v34 = vld [vmem:[%s17018_s7 + $0x3c0] sm:$0xf]  ;;  %v13586_v58 = vpop.f32.mrf.mxu1 }
 0x4fa   :  { %17207 = vst [vmem:[#allocation93_spill] sm:$0xff] %v13549_v62  ;;  %v3878_v12 = vadd.f32 %v17215_v33, %v17214_v31 }
 0x4fb   :  { %3177 = vst.msk [vmem:[#allocation2 + $0x270] sm:$0xff] %vm1391_vm2, %v3145_v15 }
 0x4fc   :  { %v13574_v15 = vpop.f32.mrf.mxu0  ;;  %17213 = vst [vmem:[#allocation67_spill] sm:$0xff] %v13586_v58  ;;  %v3915_v58 = vmax.f32 %v3878_v12, 0.0 }
 0x4fd   :  { %v13572_v62 = vpop.f32.mrf.mxu3  ;;  %3973 = vmax.xlane.f32.xlu1 %v3914_v5  ;;  %17209 = vst [vmem:[#allocation124_spill] sm:$0xff] %v13574_v15  ;;  %v3022_v15 = vmax.f32 %v2973_v11, 0.0  ;;  %v17222_v11 = vld [vmem:[#allocation101_spill] sm:$0xff] }
 0x4fe   :  { %17208 = vst [vmem:[#allocation25_spill] sm:$0xff] %v13572_v62  ;;  %3370 = vmax.xlane.f32.xlu2 %v3311_v10  ;;  %v10837_v10 = vld [vmem:[%s17018_s7 + $0x3dc] sm:$0xf0]  ;;  %v4183_v62 = vmax.f32 %v4125_v54, 0.0 }
 0x4ff   :  { %3048 = vmax.xlane.f32.xlu0 %v3009_v35  ;;  %v9844_v13 = vor.u32 %v10837_v10, %v9843_v34  ;;  %v13592_v35 = vpop.permute.xlu0 %3644  ;;  %v17223_v10 = vld [vmem:[#allocation71_spill] sm:$0xff] }
 0x500   :  { %v3057_v17 = vpop.xlane.xlu1 %3056  ;;  %6867 = vmatmul.bf16.gmra.mxu0 %v9660_v41  ;;  %v3111_v41 = vld [vmem:[#allocation2 + $0x260] sm:$0xff]  ;;  %v2980_v12 = vadd.f32 %v17223_v10, %v17222_v11  ;;  %v9693_v10 = vld [vmem:[%s17018_s7 + $0x2a8] sm:$0xf0] }
 0x501   :  { %v3065_v5 = vpop.xlane.xlu2 %3064  ;;  %v3142_v20 = vmax.f32 %v3110_v22, %v3057_v17  ;;  %v13590_v44 = vpop.f32.mrf.mxu2  ;;  %7036 = vmatmul.bf16.gmra.mxu1 %v9664_v49  ;;  %v17220_v49 = vld [vmem:[#allocation61_spill] sm:$0xff] }
 0x502   :  { %v3146_v36 = vmax.f32 %v3114_v32, %v3065_v5  ;;  %17216 = vst [vmem:[#allocation107_spill] sm:$0xff] %v13590_v44  ;;  %6698 = vmatmul.bf16.gmra.mxu3 %v9656_v38  ;;  %v17218_v32 = vld [vmem:[#allocation40_spill] sm:$0xff]  ;;  %v2975_v34 = vadd.f32 %v17220_v49, %v13423_v63  ;;  %v13604_v54 = vpop.f32.mrf.mxu1 }
 0x503   :  { %3174 = vst.msk [vmem:[#allocation2 + $0x258] sm:$0xff] %vm1391_vm2, %v3142_v20  ;;  %v3227_v22 = vadd.f32 %v17218_v32, %v13066_v25  ;;  %v9691_v32 = vld [vmem:[%s17018_s7 + $0x288] sm:$0xf]  ;;  %v3999_v44 = vld [vmem:[#allocation2 + $0x378] sm:$0xff] }
 0x504   :  { %3178 = vst.msk [vmem:[#allocation2 + $0x278] sm:$0xff] %vm1391_vm2, %v3146_v36  ;;  %v13600_v38 = vpop.f32.mrf.mxu0  ;;  %v3394_v36 = vld [vmem:[#allocation2 + $0x270] sm:$0xff]  ;;  %v3023_v49 = vmax.f32 %v2975_v34, 0.0 }
 0x505   :  { %v13596_v33 = vpop.f32.mrf.mxu3  ;;  %3074 = vmax.xlane.f32.xlu1 %v3022_v15  ;;  %17219 = vst [vmem:[#allocation97_spill] sm:$0xff] %v13600_v38  ;;  %v3293_v15 = vmax.f32 %v3227_v22, 0.0  ;;  %v10794_v22 = vld [vmem:[%s17018_s7 + $0x28c] sm:$0xf]  ;;  %v3125_v34 = vld [vmem:[#allocation2 + $0x2d0] sm:$0xff] }
 0x506   :  { %17217 = vst [vmem:[#allocation57_spill] sm:$0xff] %v13596_v33  ;;  %4229 = vmax.xlane.f32.xlu2 %v4183_v62  ;;  %6559 = vmatmul.bf16.gmra.mxu2 %v9844_v13  ;;  %v9685_v13 = vld [vmem:[%s17018_s7 + $0x2a0] sm:$0xf0]  ;;  %v9696_v38 = vor.u32 %v10794_v22, %v9693_v10  ;;  %v4165_v33 = vadd.f32 %v13461_v42, %v13218_v4 }
 0x507   :  { %3975 = vmax.xlane.f32.xlu0 %v3915_v58  ;;  %17221 = vst [vmem:[#allocation100_spill] sm:$0xff] %v13604_v54  ;;  %v10793_v58 = vld [vmem:[%s17018_s7 + $0x284] sm:$0xf] }
 0x508   :  { %v3345_v17 = vpop.xlane.xlu1 %3344 }
 0x509   :  { %v3059_v5 = vpop.xlane.xlu2 %3058  ;;  %v3426_v25 = vmax.f32 %v3394_v36, %v3345_v17  ;;  %v13608_v62 = vpop.f32.mrf.mxu2 }
 0x50a   :  { %v3143_v20 = vmax.f32 %v3111_v41, %v3059_v5  ;;  %17224 = vst [vmem:[#allocation40_spill] sm:$0xff] %v13608_v62  ;;  %v10798_v41 = vld [vmem:[%s17018_s7 + $0x2a4] sm:$0xf0]  ;;  %v3025_v5 = vmax.f32 %v2980_v12, 0.0  ;;  %v13632_v36 = vpop.permute.xlu0 %3559  ;;  %v9688_v62 = vor.u32 %v10793_v58, %v9685_v13 }
 0x50b   :  { %3458 = vst.msk [vmem:[#allocation2 + $0x270] sm:$0xff] %vm1673_vm3, %v3426_v25  ;;  %v17228_v25 = vld [vmem:[#allocation36_spill] sm:$0xff]  ;;  %v17230_v13 = vld [vmem:[#allocation42_spill] sm:$0xff] }
 0x50c   :  { %3175 = vst.msk [vmem:[#allocation2 + $0x260] sm:$0xff] %vm1391_vm2, %v3143_v20  ;;  %v9692_v20 = vor.u32 %v10798_v41, %v9691_v32  ;;  %v13634_v54 = vpop.f32.mrf.mxu0  ;;  %v3828_v12 = vadd.f32 %v17228_v25, %v17227_v39  ;;  %v3833_v32 = vadd.f32 %v17230_v13, %v13336_v24  ;;  %v17233_v13 = vld [vmem:[#allocation80_spill] sm:$0xff] }
 0x50d   :  { %v13630_v17 = vpop.f32.mrf.mxu3  ;;  %3334 = vmax.xlane.f32.xlu1 %v3293_v15  ;;  %17226 = vst [vmem:[#allocation101_spill] sm:$0xff] %v13634_v54  ;;  %v10845_v15 = vld [vmem:[%s17018_s7 + $0x41c] sm:$0xf0]  ;;  %v2930_v39 = vadd.f32 %v17234_v61, %v17233_v13 }
 0x50e   :  { %17225 = vst [vmem:[#allocation61_spill] sm:$0xff] %v13630_v17  ;;  %3076 = vmax.xlane.f32.xlu2 %v3023_v49  ;;  %v9875_v17 = vld [vmem:[%s17018_s7 + $0x400] sm:$0xf]  ;;  %v13646_v58 = vpop.f32.mrf.mxu1  ;;  %v3895_v25 = vmax.f32 %v3828_v12, 0.0 }
 0x50f   :  { %3080 = vmax.xlane.f32.xlu0 %v3025_v5  ;;  %17229 = vst [vmem:[#allocation71_spill] sm:$0xff] %v13646_v58  ;;  %v9876_v10 = vor.u32 %v10845_v15, %v9875_v17  ;;  %v4199_v5 = vmax.f32 %v4165_v33, 0.0  ;;  %v3897_v58 = vmax.f32 %v3833_v32, 0.0  ;;  %v17239_v12 = vld [vmem:[#allocation13_spill] sm:$0xff] }
 0x510   :  { %v3950_v49 = vpop.xlane.xlu1 %3949  ;;  %6872 = vmatmul.bf16.gmra.mxu0 %v9692_v20 }
 0x511   :  { %v3087_v41 = vpop.xlane.xlu2 %3086  ;;  %v4031_v4 = vmax.f32 %v3999_v44, %v3950_v49  ;;  %v13650_v42 = vpop.f32.mrf.mxu2  ;;  %7041 = vmatmul.bf16.gmra.mxu1 %v9696_v38  ;;  %v3127_v44 = vld [vmem:[#allocation2 + $0x2e0] sm:$0xff]  ;;  %v17236_v38 = vld [vmem:[#allocation86_spill] sm:$0xff] }
 0x512   :  { %v3157_v22 = vmax.f32 %v3125_v34, %v3087_v41  ;;  %17231 = vst [vmem:[#allocation36_spill] sm:$0xff] %v13650_v42  ;;  %6703 = vmatmul.bf16.gmra.mxu3 %v9688_v62  ;;  %v4167_v17 = vadd.f32 %v13485_v26, %v17236_v38  ;;  %v13662_v33 = vpop.permute.xlu0 %3544  ;;  %v17238_v34 = vld [vmem:[#allocation104_spill] sm:$0xff]  ;;  %v9717_v26 = vld [vmem:[%s17018_s7 + $0x2e0] sm:$0xf0]  ;;  %v9725_v38 = vld [vmem:[%s17018_s7 + $0x2e8] sm:$0xf0] }
 0x513   :  { %4063 = vst.msk [vmem:[#allocation2 + $0x378] sm:$0xff] %vm1391_vm2, %v4031_v4  ;;  %v2935_v15 = vadd.f32 %v17239_v12, %v17238_v34  ;;  %v3395_v41 = vld [vmem:[#allocation2 + $0x278] sm:$0xff]  ;;  %v17243_v42 = vld [vmem:[#allocation85_spill] sm:$0xff] }
 0x514   :  { %3189 = vst.msk [vmem:[#allocation2 + $0x2d0] sm:$0xff] %vm1391_vm2, %v3157_v22  ;;  %v13658_v62 = vpop.f32.mrf.mxu0 }
 0x515   :  { %v13654_v54 = vpop.f32.mrf.mxu3  ;;  %4261 = vmax.xlane.f32.xlu1 %v4199_v5  ;;  %17235 = vst [vmem:[#allocation80_spill] sm:$0xff] %v13658_v62  ;;  %v9723_v5 = vld [vmem:[%s17018_s7 + $0x2c8] sm:$0xf]  ;;  %v3007_v12 = vmax.f32 %v2935_v15, 0.0  ;;  %v17244_v62 = vld [vmem:[#allocation84_spill] sm:$0xff] }
 0x516   :  { %17232 = vst [vmem:[#allocation42_spill] sm:$0xff] %v13654_v54  ;;  %3935 = vmax.xlane.f32.xlu2 %v3895_v25  ;;  %6564 = vmatmul.bf16.gmra.mxu2 %v9876_v10  ;;  %v13664_v20 = vpop.f32.mrf.mxu1  ;;  %v10801_v10 = vld [vmem:[%s17018_s7 + $0x2c4] sm:$0xf]  ;;  %v10806_v25 = vld [vmem:[%s17018_s7 + $0x2e4] sm:$0xf0]  ;;  %v3868_v54 = vadd.f32 %v17244_v62, %v13451_v50 }
 0x517   :  { %3939 = vmax.xlane.f32.xlu0 %v3897_v58  ;;  %17237 = vst [vmem:[#allocation16_spill] sm:$0xff] %v13664_v20  ;;  %v3005_v58 = vmax.f32 %v2930_v39, 0.0  ;;  %v10802_v39 = vld [vmem:[%s17018_s7 + $0x2cc] sm:$0xf]  ;;  %v3265_v20 = vadd.f32 %v17243_v42, %v13107_v3  ;;  %v9907_v15 = vld [vmem:[%s17018_s7 + $0x440] sm:$0xf] }
 0x518   :  { %v3091_v61 = vpop.xlane.xlu1 %3090  ;;  %v17250_v50 = vld [vmem:[#allocation62_spill] sm:$0xff] }
 0x519   :  { %v3347_v32 = vpop.xlane.xlu2 %3346  ;;  %v3159_v22 = vmax.f32 %v3127_v44, %v3091_v61  ;;  %v13668_v4 = vpop.f32.mrf.mxu2  ;;  %v4200_v44 = vmax.f32 %v4167_v17, 0.0  ;;  %v9724_v61 = vor.u32 %v10806_v25, %v9723_v5 }
 0x51a   :  { %v3427_v49 = vmax.f32 %v3395_v41, %v3347_v32  ;;  %17240 = vst [vmem:[#allocation86_spill] sm:$0xff] %v13668_v4  ;;  %v9720_v41 = vor.u32 %v10801_v10, %v9717_v26  ;;  %v9728_v4 = vor.u32 %v10802_v39, %v9725_v38  ;;  %v17246_v10 = vld [vmem:[#allocation92_spill] sm:$0xff]  ;;  %v13710_v3 = vpop.permute.xlu0 %3629  ;;  %v4442_v39 = vld [vmem:[#allocation2 + $0x270] sm:$0xff] }
 0x51b   :  { %3191 = vst.msk [vmem:[#allocation2 + $0x2e0] sm:$0xff] %vm1391_vm2, %v3159_v22  ;;  %v10853_v22 = vld [vmem:[%s17018_s7 + $0x45c] sm:$0xf0]  ;;  %v3873_v26 = vadd.f32 %v17246_v10, %v13379_v51 }
 0x51c   :  { %3459 = vst.msk [vmem:[#allocation2 + $0x278] sm:$0xff] %vm1673_vm3, %v3427_v49  ;;  %v3107_v49 = vld [vmem:[#allocation2 + $0x240] sm:$0xff]  ;;  %v13692_v17 = vpop.f32.mrf.mxu0 }
 0x51d   :  { %v13690_v32 = vpop.f32.mrf.mxu3  ;;  %3040 = vmax.xlane.f32.xlu1 %v3005_v58  ;;  %17242 = vst [vmem:[#allocation13_spill] sm:$0xff] %v13692_v17  ;;  %v3913_v10 = vmax.f32 %v3873_v26, 0.0  ;;  %v17255_v26 = vld [vmem:[#allocation72_spill] sm:$0xff] }
 0x51e   :  { %17241 = vst [vmem:[#allocation104_spill] sm:$0xff] %v13690_v32  ;;  %4263 = vmax.xlane.f32.xlu2 %v4200_v44  ;;  %v13704_v58 = vpop.f32.mrf.mxu1  ;;  %v9908_v44 = vor.u32 %v10853_v22, %v9907_v15  ;;  %v17254_v22 = vld [vmem:[#allocation98_spill] sm:$0xff] }
 0x51f   :  { %3044 = vmax.xlane.f32.xlu0 %v3007_v12  ;;  %17245 = vst [vmem:[#allocation85_spill] sm:$0xff] %v13704_v58  ;;  %v3911_v12 = vmax.f32 %v3868_v54, 0.0  ;;  %v3308_v58 = vmax.f32 %v3265_v20, 0.0  ;;  %v3112_v54 = vld [vmem:[#allocation2 + $0x268] sm:$0xff] }
 0x520   :  { %v13708_v25 = vpop.xlane.xlu1 %3376  ;;  %17247 = vst [vmem:[#allocation84_spill] sm:$0xff] %v13710_v3  ;;  %6877 = vmatmul.bf16.gmra.mxu0 %v9724_v61  ;;  %v4122_v3 = vadd.f32 %v17250_v50, %v13150_v46  ;;  %v4015_v61 = vld [vmem:[#allocation2 + $0x3f8] sm:$0xff] }
 0x521   :  { %v3051_v5 = vpop.xlane.xlu2 %3050  ;;  %v13712_v62 = vpop.f32.mrf.mxu2  ;;  %7046 = vmatmul.bf16.gmra.mxu1 %v9728_v4  ;;  %v17252_v4 = vld [vmem:[#allocation88_spill] sm:$0xff] }
 0x522   :  { %v3139_v42 = vmax.f32 %v3107_v49, %v3051_v5  ;;  %17248 = vst [vmem:[#allocation92_spill] sm:$0xff] %v13712_v62  ;;  %6708 = vmatmul.bf16.gmra.mxu3 %v9720_v41  ;;  %v3128_v41 = vld [vmem:[#allocation2 + $0x2e8] sm:$0xff]  ;;  %v3870_v15 = vadd.f32 %v17252_v4, %v13322_v59  ;;  %v4127_v5 = vadd.f32 %v17255_v26, %v17254_v22  ;;  %v17259_v62 = vld [vmem:[#allocation49_spill] sm:$0xff] }
 0x523   :  { %v4443_v38 = vld [vmem:[#allocation2 + $0x278] sm:$0xff]  ;;  %v9755_v4 = vld [vmem:[%s17018_s7 + $0x308] sm:$0xf] }
 0x524   :  { %3171 = vst.msk [vmem:[#allocation2 + $0x240] sm:$0xff] %vm1391_vm2, %v3139_v42  ;;  %v4531_v17 = vpack.c.bf16 %v4443_v38, %v4442_v39  ;;  %v13719_v49 = vpop.f32.mrf.mxu0  ;;  %v4182_v38 = vmax.f32 %v4122_v3, 0.0  ;;  %v3912_v3 = vmax.f32 %v3870_v15, 0.0  ;;  %v4184_v22 = vmax.f32 %v4127_v5, 0.0  ;;  %v3123_v15 = vld [vmem:[#allocation2 + $0x2c0] sm:$0xff] }
 0x525   :  { %v13715_v32 = vpop.f32.mrf.mxu3  ;;  %3967 = vmax.xlane.f32.xlu1 %v3911_v12  ;;  %17251 = vst [vmem:[#allocation62_spill] sm:$0xff] %v13719_v49  ;;  %v10809_v12 = vld [vmem:[%s17018_s7 + $0x304] sm:$0xf]  ;;  %v3109_v49 = vld [vmem:[#allocation2 + $0x250] sm:$0xff] }
 0x526   :  { %17249 = vst [vmem:[#allocation125_spill] sm:$0xff] %v13715_v32  ;;  %3364 = vmax.xlane.f32.xlu2 %v3308_v58  ;;  %6569 = vmatmul.bf16.gmra.mxu2 %v9908_v44  ;;  %v13723_v20 = vpop.f32.mrf.mxu1 }
 0x527   :  { %3971 = vmax.xlane.f32.xlu0 %v3913_v10  ;;  %7152 = vmatpush.bf16.msra.mxu2 %v4531_v17  ;;  %17253 = vst [vmem:[#allocation88_spill] sm:$0xff] %v13723_v20  ;;  %v9749_v17 = vld [vmem:[%s17018_s7 + $0x320] sm:$0xf0]  ;;  %v2968_v20 = vadd.f32 %v17259_v62, %v13334_v52 }
 0x528   :  { %v3982_v46 = vpop.xlane.xlu1 %3981 }
 0x529   :  { %v3093_v42 = vpop.xlane.xlu2 %3092  ;;  %v4047_v58 = vmax.f32 %v4015_v61, %v3982_v46  ;;  %v13727_v44 = vpop.f32.mrf.mxu2  ;;  %v10810_v61 = vld [vmem:[%s17018_s7 + $0x30c] sm:$0xf] }
 0x52a   :  { %v3160_v50 = vmax.f32 %v3128_v41, %v3093_v42  ;;  %17256 = vst [vmem:[#allocation98_spill] sm:$0xff] %v13727_v44  ;;  %v3061_v39 = vpop.xlane.xlu0 %3060  ;;  %v10814_v41 = vld [vmem:[%s17018_s7 + $0x324] sm:$0xf0]  ;;  %v9752_v42 = vor.u32 %v10809_v12, %v9749_v17  ;;  %v10861_v12 = vld [vmem:[%s17018_s7 + $0x49c] sm:$0xf0] }
 0x52b   :  { %v3144_v10 = vmax.f32 %v3112_v54, %v3061_v39  ;;  %v9757_v54 = vld [vmem:[%s17018_s7 + $0x328] sm:$0xf0]  ;;  %4079 = vst.msk [vmem:[#allocation2 + $0x3f8] sm:$0xff] %vm1391_vm2, %v4047_v58  ;;  %v9756_v46 = vor.u32 %v10814_v41, %v9755_v4  ;;  %v17260_v58 = vld [vmem:[#allocation31_spill] sm:$0xff]  ;;  %v17263_v4 = vld [vmem:[#allocation37_spill] sm:$0xff] }
 0x52c   :  { %3192 = vst.msk [vmem:[#allocation2 + $0x2e8] sm:$0xff] %vm1391_vm2, %v3160_v50  ;;  %v3130_v50 = vld [vmem:[#allocation2 + $0x2f8] sm:$0xff]  ;;  %v13752_v39 = vpop.f32.mrf.mxu0  ;;  %v9760_v44 = vor.u32 %v10810_v61, %v9757_v54  ;;  %v3220_v5 = vadd.f32 %v17260_v58, %v13281_v57  ;;  %v17262_v17 = vld [vmem:[#allocation82_spill] sm:$0xff] }
 0x52d   :  { %v13749_v26 = vpop.f32.mrf.mxu3  ;;  %3176 = vst.msk [vmem:[#allocation2 + $0x268] sm:$0xff] %vm1391_vm2, %v3144_v10  ;;  %4227 = vmax.xlane.f32.xlu1 %v4182_v38  ;;  %v9939_v38 = vld [vmem:[%s17018_s7 + $0x480] sm:$0xf]  ;;  %v3225_v41 = vadd.f32 %v17263_v4, %v17262_v17 }
 0x52e   :  { %17257 = vst [vmem:[#allocation72_spill] sm:$0xff] %v13749_v26  ;;  %3969 = vmax.xlane.f32.xlu2 %v3912_v3  ;;  %v13764_v10 = vpop.f32.mrf.mxu1  ;;  %v9940_v26 = vor.u32 %v10861_v12, %v9939_v38  ;;  %v3290_v32 = vmax.f32 %v3220_v5, 0.0  ;;  %v17266_v4 = vld [vmem:[#allocation33_spill] sm:$0xff] }
 0x52f   :  { %4231 = vmax.xlane.f32.xlu0 %v4184_v22  ;;  %17258 = vst [vmem:[#allocation126_spill] sm:$0xff] %v13752_v39  ;;  %v3020_v39 = vmax.f32 %v2968_v20, 0.0  ;;  %v3998_v20 = vld [vmem:[#allocation2 + $0x370] sm:$0xff] }
 0x530   :  { %17261 = vst [vmem:[#allocation49_spill] sm:$0xff] %v13764_v10  ;;  %v3097_v61 = vpop.xlane.xlu1 %3096  ;;  %6882 = vmatmul.bf16.gmra.mxu0 %v9756_v46  ;;  %v3292_v10 = vmax.f32 %v3225_v41, 0.0 }
 0x531   :  { %v3083_v3 = vpop.xlane.xlu2 %3082  ;;  %v3162_v54 = vmax.f32 %v3130_v50, %v3097_v61  ;;  %v13768_v22 = vpop.f32.mrf.mxu2  ;;  %7051 = vmatmul.bf16.gmra.mxu1 %v9760_v44 }
 0x532   :  { %v3155_v62 = vmax.f32 %v3123_v15, %v3083_v3  ;;  %17264 = vst [vmem:[#allocation31_spill] sm:$0xff] %v13768_v22  ;;  %v3055_v57 = vpop.xlane.xlu0 %3054  ;;  %6713 = vmatmul.bf16.gmra.mxu3 %v9752_v42  ;;  %v17265_v15 = vld [vmem:[#allocation34_spill] sm:$0xff]  ;;  %v3825_v3 = vadd.f32 %v17266_v4, %v13373_v40  ;;  %v17269_v42 = vld [vmem:[#allocation39_spill] sm:$0xff] }
 0x533   :  { %v3141_v58 = vmax.f32 %v3109_v49, %v3055_v57  ;;  %3194 = vst.msk [vmem:[#allocation2 + $0x2f8] sm:$0xff] %vm1391_vm2, %v3162_v54  ;;  %v3222_v50 = vadd.f32 %v17265_v15, %v17205_v27  ;;  %v3830_v46 = vadd.f32 %v17269_v42, %v13318_v29  ;;  %v3392_v27 = vld [vmem:[#allocation2 + $0x260] sm:$0xff]  ;;  %v9787_v54 = vld [vmem:[%s17018_s7 + $0x348] sm:$0xf]  ;;  %v10818_v15 = vld [vmem:[%s17018_s7 + $0x34c] sm:$0xf] }
 0x534   :  { %3187 = vst.msk [vmem:[#allocation2 + $0x2c0] sm:$0xff] %vm1391_vm2, %v3155_v62  ;;  %v13779_v49 = vpop.f32.mrf.mxu0  ;;  %v3894_v62 = vmax.f32 %v3825_v3, 0.0  ;;  %v10822_v57 = vld [vmem:[%s17018_s7 + $0x364] sm:$0xf0] }
 0x535   :  { %v13772_v17 = vpop.f32.mrf.mxu3  ;;  %3173 = vst.msk [vmem:[#allocation2 + $0x250] sm:$0xff] %vm1391_vm2, %v3141_v58  ;;  %3328 = vmax.xlane.f32.xlu1 %v3290_v32  ;;  %v3291_v32 = vmax.f32 %v3222_v50, 0.0  ;;  %v9789_v50 = vld [vmem:[%s17018_s7 + $0x368] sm:$0xf0]  ;;  %v3896_v3 = vmax.f32 %v3830_v46, 0.0 }
 0x536   :  { %3070 = vmax.xlane.f32.xlu2 %v3020_v39  ;;  %6574 = vmatmul.bf16.gmra.mxu2 %v9940_v26  ;;  %17267 = vst [vmem:[#allocation82_spill] sm:$0xff] %v13779_v49  ;;  %v13781_v44 = vpop.f32.mrf.mxu1  ;;  %v10817_v26 = vld [vmem:[%s17018_s7 + $0x344] sm:$0xf]  ;;  %v3108_v46 = vld [vmem:[#allocation2 + $0x248] sm:$0xff] }
 0x537   :  { %3332 = vmax.xlane.f32.xlu0 %v3292_v10  ;;  %17268 = vst [vmem:[#allocation37_spill] sm:$0xff] %v13781_v44  ;;  %v9781_v10 = vld [vmem:[%s17018_s7 + $0x360] sm:$0xf0]  ;;  %v17272_v44 = vld [vmem:[#allocation63_spill] sm:$0xff] }
 0x538   :  { %v3341_v38 = vpop.xlane.xlu1 %3340  ;;  %v9784_v42 = vor.u32 %v10817_v26, %v9781_v10  ;;  %v17273_v49 = vld [vmem:[#allocation9_spill] sm:$0xff]  ;;  %v17276_v10 = vld [vmem:[#allocation20_spill] sm:$0xff] }
 0x539   :  { %v3379_v5 = vpop.xlane.xlu2 %3378  ;;  %v3424_v12 = vmax.f32 %v3392_v27, %v3341_v38  ;;  %v13785_v41 = vpop.f32.mrf.mxu2  ;;  %v9788_v38 = vor.u32 %v10822_v57, %v9787_v54  ;;  %v3997_v27 = vld [vmem:[#allocation2 + $0x368] sm:$0xff] }
 0x53a   :  { %17270 = vst [vmem:[#allocation34_spill] sm:$0xff] %v13785_v41  ;;  %v3948_v61 = vpop.xlane.xlu0 %3947  ;;  %v3411_v58 = vld [vmem:[#allocation2 + $0x2f8] sm:$0xff]  ;;  %v2923_v41 = vadd.f32 %v17273_v49, %v17272_v44 }
 0x53b   :  { %v4030_v39 = vmax.f32 %v3998_v20, %v3948_v61  ;;  %3456 = vst.msk [vmem:[#allocation2 + $0x260] sm:$0xff] %vm1673_vm3, %v3424_v12  ;;  %v3443_v4 = vmax.f32 %v3411_v58, %v3379_v5  ;;  %v9792_v61 = vor.u32 %v10818_v15, %v9789_v50  ;;  %v4160_v5 = vadd.f32 %v13387_v23, %v17214_v31  ;;  %v3393_v58 = vld [vmem:[#allocation2 + $0x268] sm:$0xff] }
 0x53d   :  { %4062 = vst.msk [vmem:[#allocation2 + $0x370] sm:$0xff] %vm1391_vm2, %v4030_v39  ;;  %v13807_v20 = vpop.f32.mrf.mxu3  ;;  %3933 = vmax.xlane.f32.xlu1 %v3894_v62  ;;  %v13810_v12 = vpop.f32.mrf.mxu0  ;;  %v9971_v62 = vld [vmem:[%s17018_s7 + $0x4c0] sm:$0xf]  ;;  %v17275_v39 = vld [vmem:[#allocation66_spill] sm:$0xff]  ;;  %v4197_v22 = vmax.f32 %v4160_v5, 0.0 }
 0x53e   :  { %17271 = vst [vmem:[#allocation33_spill] sm:$0xff] %v13807_v20  ;;  %3330 = vmax.xlane.f32.xlu2 %v3291_v32  ;;  %v10869_v32 = vld [vmem:[%s17018_s7 + $0x4dc] sm:$0xf0]  ;;  %v13822_v26 = vpop.f32.mrf.mxu1  ;;  %v2928_v54 = vadd.f32 %v17276_v10, %v17275_v39  ;;  %v3002_v20 = vmax.f32 %v2923_v41, 0.0 }
 0x53f   :  { %3475 = vst.msk [vmem:[#allocation2 + $0x2f8] sm:$0xff] %vm1673_vm3, %v3443_v4  ;;  %3937 = vmax.xlane.f32.xlu0 %v3896_v3  ;;  %v9972_v3 = vor.u32 %v10869_v32, %v9971_v62  ;;  %v17280_v41 = vld [vmem:[#allocation81_spill] sm:$0xff] }
 0x540   :  { %17274 = vst [vmem:[#allocation39_spill] sm:$0xff] %v13822_v26  ;;  %v3946_v49 = vpop.xlane.xlu1 %3945  ;;  %6887 = vmatmul.bf16.gmra.mxu0 %v9788_v38  ;;  %v3004_v10 = vmax.f32 %v2928_v54, 0.0  ;;  %v3105_v38 = vld [vmem:[#allocation2 + $0x230] sm:$0xff]  ;;  %v3262_v5 = vadd.f32 %v17280_v41, %v17222_v11  ;;  %v17282_v32 = vld [vmem:[#allocation89_spill] sm:$0xff]  ;;  %v10830_v41 = vld [vmem:[%s17018_s7 + $0x3a4] sm:$0xf0] }
 0x541   :  { %v3343_v57 = vpop.xlane.xlu2 %3342  ;;  %v4029_v50 = vmax.f32 %v3997_v27, %v3946_v49  ;;  %v13826_v23 = vpop.f32.mrf.mxu2  ;;  %7056 = vmatmul.bf16.gmra.mxu1 %v9792_v61  ;;  %v17278_v27 = vld [vmem:[#allocation68_spill] sm:$0xff]  ;;  %v3267_v54 = vadd.f32 %v17282_v32, %v13258_v6  ;;  %v9813_v11 = vld [vmem:[%s17018_s7 + $0x3a0] sm:$0xf0]  ;;  %v9819_v6 = vld [vmem:[%s17018_s7 + $0x388] sm:$0xf] }
 0x542   :  { %v3425_v15 = vmax.f32 %v3393_v58, %v3343_v57  ;;  %17277 = vst [vmem:[#allocation63_spill] sm:$0xff] %v13826_v23  ;;  %v3053_v31 = vpop.xlane.xlu0 %3052  ;;  %6718 = vmatmul.bf16.gmra.mxu3 %v9784_v42  ;;  %v17279_v57 = vld [vmem:[#allocation18_spill] sm:$0xff]  ;;  %v3307_v32 = vmax.f32 %v3262_v5, 0.0  ;;  %v9820_v5 = vor.u32 %v10830_v41, %v9819_v6 }
 0x543   :  { %v3140_v4 = vmax.f32 %v3108_v46, %v3053_v31  ;;  %4061 = vst.msk [vmem:[#allocation2 + $0x368] sm:$0xff] %vm1391_vm2, %v4029_v50  ;;  %v2925_v42 = vadd.f32 %v17279_v57, %v17278_v27  ;;  %v3126_v46 = vld [vmem:[#allocation2 + $0x2d8] sm:$0xff]  ;;  %v4440_v57 = vld [vmem:[#allocation2 + $0x260] sm:$0xff]  ;;  %v17288_v6 = vld [vmem:[#allocation58_spill] sm:$0xff] }
 0x544   :  { %3457 = vst.msk [vmem:[#allocation2 + $0x268] sm:$0xff] %vm1673_vm3, %v3425_v15 }
 0x545   :  { %v13830_v26 = vpop.f32.mrf.mxu3  ;;  %3172 = vst.msk [vmem:[#allocation2 + $0x248] sm:$0xff] %vm1391_vm2, %v3140_v4  ;;  %3034 = vmax.xlane.f32.xlu1 %v3002_v20  ;;  %v13835_v61 = vpop.f32.mrf.mxu0  ;;  %v10825_v4 = vld [vmem:[%s17018_s7 + $0x384] sm:$0xf] }
 0x546   :  { %4257 = vmax.xlane.f32.xlu2 %v4197_v22  ;;  %6579 = vmatmul.bf16.gmra.mxu2 %v9972_v3  ;;  %v13839_v62 = vpop.f32.mrf.mxu1  ;;  %v3408_v22 = vld [vmem:[#allocation2 + $0x2e0] sm:$0xff] }
 0x547   :  { %3038 = vmax.xlane.f32.xlu0 %v3004_v10  ;;  %17281 = vst [vmem:[#allocation9_spill] sm:$0xff] %v13839_v62  ;;  %v3003_v10 = vmax.f32 %v2925_v42, 0.0  ;;  %v3309_v42 = vmax.f32 %v3267_v54, 0.0  ;;  %v3129_v62 = vld [vmem:[#allocation2 + $0x2f0] sm:$0xff] }
 0x548   :  { %v3373_v20 = vpop.xlane.xlu1 %3372 }
 0x549   :  { %v3047_v58 = vpop.xlane.xlu2 %3046  ;;  %v3440_v15 = vmax.f32 %v3408_v22, %v3373_v20  ;;  %v13843_v50 = vpop.f32.mrf.mxu2  ;;  %v10826_v20 = vld [vmem:[%s17018_s7 + $0x38c] sm:$0xf] }
 0x54a   :  { %v3137_v49 = vmax.f32 %v3105_v38, %v3047_v58  ;;  %17283 = vst [vmem:[#allocation66_spill] sm:$0xff] %v13843_v50  ;;  %v3089_v31 = vpop.xlane.xlu0 %3088  ;;  %v9821_v22 = vld [vmem:[%s17018_s7 + $0x3a8] sm:$0xf0] }
 0x54b   :  { %v3158_v3 = vmax.f32 %v3126_v46, %v3089_v31  ;;  %v4441_v38 = vld [vmem:[#allocation2 + $0x268] sm:$0xff]  ;;  %3472 = vst.msk [vmem:[#allocation2 + $0x2e0] sm:$0xff] %vm1673_vm3, %v3440_v15  ;;  %v17286_v15 = vld [vmem:[#allocation76_spill] sm:$0xff] }
 0x54c   :  { %3169 = vst.msk [vmem:[#allocation2 + $0x230] sm:$0xff] %vm1391_vm2, %v3137_v49  ;;  %v4530_v58 = vpack.c.bf16 %v4441_v38, %v4440_v57  ;;  %v9816_v49 = vor.u32 %v10825_v4, %v9813_v11  ;;  %v4013_v31 = vld [vmem:[#allocation2 + $0x3e8] sm:$0xff]  ;;  %v9824_v38 = vor.u32 %v10826_v20, %v9821_v22  ;;  %v3863_v54 = vadd.f32 %v17286_v15, %v13519_v9  ;;  %v10877_v4 = vld [vmem:[%s17018_s7 + $0x51c] sm:$0xf0] }
 0x54d   :  { %v13865_v46 = vpop.f32.mrf.mxu3  ;;  %3190 = vst.msk [vmem:[#allocation2 + $0x2d8] sm:$0xff] %vm1391_vm2, %v3158_v3  ;;  %3362 = vmax.xlane.f32.xlu1 %v3307_v32  ;;  %v13868_v57 = vpop.f32.mrf.mxu0  ;;  %v17285_v50 = vld [vmem:[#allocation50_spill] sm:$0xff]  ;;  %v10003_v3 = vld [vmem:[%s17018_s7 + $0x500] sm:$0xf] }
 0x54e   :  { %3036 = vmax.xlane.f32.xlu2 %v3003_v10  ;;  %7153 = vmatpush.bf16.msra.mxu2 %v4530_v58  ;;  %17284 = vst [vmem:[#allocation20_spill] sm:$0xff] %v13868_v57  ;;  %v4115_v23 = vadd.f32 %v17285_v50, %v13336_v24  ;;  %v13880_v11 = vpop.f32.mrf.mxu1  ;;  %v4120_v10 = vadd.f32 %v17288_v6, %v17195_v1  ;;  %v3409_v32 = vld [vmem:[#allocation2 + $0x2e8] sm:$0xff] }
 0x54f   :  { %3366 = vmax.xlane.f32.xlu0 %v3309_v42  ;;  %17287 = vst [vmem:[#allocation68_spill] sm:$0xff] %v13880_v11  ;;  %v10004_v15 = vor.u32 %v10877_v4, %v10003_v3  ;;  %v3909_v11 = vmax.f32 %v3863_v54, 0.0  ;;  %v17293_v3 = vld [vmem:[#allocation53_spill] sm:$0xff] }
 0x550   :  { %v3978_v24 = vpop.xlane.xlu1 %3977  ;;  %6892 = vmatmul.bf16.gmra.mxu0 %v9820_v5  ;;  %v4179_v57 = vmax.f32 %v4115_v23, 0.0  ;;  %v4181_v1 = vmax.f32 %v4120_v10, 0.0  ;;  %v17291_v23 = vld [vmem:[#allocation47_spill] sm:$0xff]  ;;  %v2970_v4 = vadd.f32 %v17293_v3, %v13479_v43 }
 0x551   :  { %v3375_v41 = vpop.xlane.xlu2 %3374  ;;  %v4045_v58 = vmax.f32 %v4013_v31, %v3978_v24  ;;  %v13884_v20 = vpop.f32.mrf.mxu2  ;;  %7061 = vmatmul.bf16.gmra.mxu1 %v9824_v38  ;;  %v2965_v5 = vadd.f32 %v17291_v23, %v13551_v56  ;;  %v4014_v38 = vld [vmem:[#allocation2 + $0x3f0] sm:$0xff]  ;;  %v9853_v23 = vld [vmem:[%s17018_s7 + $0x3e8] sm:$0xf0] }
 0x552   :  { %v3441_v50 = vmax.f32 %v3409_v32, %v3375_v41  ;;  %17289 = vst [vmem:[#allocation18_spill] sm:$0xff] %v13884_v20  ;;  %v3095_v22 = vpop.xlane.xlu0 %3094  ;;  %6723 = vmatmul.bf16.gmra.mxu3 %v9816_v49  ;;  %v17290_v41 = vld [vmem:[#allocation54_spill] sm:$0xff]  ;;  %v3390_v32 = vld [vmem:[#allocation2 + $0x250] sm:$0xff]  ;;  %v3021_v3 = vmax.f32 %v2970_v4, 0.0  ;;  %v17296_v20 = vld [vmem:[#allocation24_spill] sm:$0xff] }
 0x553   :  { %v3161_v42 = vmax.f32 %v3129_v62, %v3095_v22  ;;  %4077 = vst.msk [vmem:[#allocation2 + $0x3e8] sm:$0xff] %vm1391_vm2, %v4045_v58  ;;  %v4117_v31 = vadd.f32 %v17290_v41, %v13220_v7  ;;  %v3121_v62 = vld [vmem:[#allocation2 + $0x2b0] sm:$0xff]  ;;  %v10833_v22 = vld [vmem:[%s17018_s7 + $0x3c4] sm:$0xf]  ;;  %v10838_v41 = vld [vmem:[%s17018_s7 + $0x3e4] sm:$0xf0] }
 0x554   :  { %3473 = vst.msk [vmem:[#allocation2 + $0x2e8] sm:$0xff] %vm1673_vm3, %v3441_v50  ;;  %v17297_v4 = vld [vmem:[#allocation23_spill] sm:$0xff] }
 0x555   :  { %v13888_v6 = vpop.f32.mrf.mxu3  ;;  %3193 = vst.msk [vmem:[#allocation2 + $0x2f0] sm:$0xff] %vm1391_vm2, %v3161_v42  ;;  %4221 = vmax.xlane.f32.xlu1 %v4179_v57  ;;  %v13893_v49 = vpop.f32.mrf.mxu0  ;;  %v4180_v58 = vmax.f32 %v4117_v31, 0.0  ;;  %v3019_v31 = vmax.f32 %v2965_v5, 0.0 }
 0x556   :  { %3963 = vmax.xlane.f32.xlu2 %v3909_v11  ;;  %6584 = vmatmul.bf16.gmra.mxu2 %v10004_v15  ;;  %v13897_v54 = vpop.f32.mrf.mxu1  ;;  %v9845_v15 = vld [vmem:[%s17018_s7 + $0x3e0] sm:$0xf0] }
 0x557   :  { %4225 = vmax.xlane.f32.xlu0 %v4181_v1  ;;  %17292 = vst [vmem:[#allocation81_spill] sm:$0xff] %v13897_v54  ;;  %v9851_v1 = vld [vmem:[%s17018_s7 + $0x3c8] sm:$0xf]  ;;  %v9848_v5 = vor.u32 %v10833_v22, %v9845_v15  ;;  %v3215_v54 = vadd.f32 %v17296_v20, %v12932_v48  ;;  %v10885_v22 = vld [vmem:[%s17018_s7 + $0x55c] sm:$0xf0]  ;;  %v3391_v20 = vld [vmem:[#allocation2 + $0x258] sm:$0xff] }
 0x558   :  { %v3337_v7 = vpop.xlane.xlu1 %3336  ;;  %v17299_v15 = vld [vmem:[#allocation30_spill] sm:$0xff] }
 0x559   :  { %v3079_v10 = vpop.xlane.xlu2 %3078  ;;  %v3422_v57 = vmax.f32 %v3390_v32, %v3337_v7  ;;  %v13901_v11 = vpop.f32.mrf.mxu2  ;;  %v9852_v32 = vor.u32 %v10838_v41, %v9851_v1  ;;  %v3823_v1 = vadd.f32 %v17299_v15, %v13347_v47 }
 0x55a   :  { %v3153_v24 = vmax.f32 %v3121_v62, %v3079_v10  ;;  %17294 = vst [vmem:[#allocation89_spill] sm:$0xff] %v13901_v11  ;;  %v3980_v50 = vpop.xlane.xlu0 %3979  ;;  %v10834_v62 = vld [vmem:[%s17018_s7 + $0x3cc] sm:$0xf] }
 0x55b   :  { %v4046_v42 = vmax.f32 %v4014_v38, %v3980_v50  ;;  %3454 = vst.msk [vmem:[#allocation2 + $0x250] sm:$0xff] %vm1673_vm3, %v3422_v57  ;;  %v9856_v11 = vor.u32 %v10834_v62, %v9853_v23  ;;  %v3818_v57 = vadd.f32 %v17297_v4, %v13425_v30  ;;  %v3288_v4 = vmax.f32 %v3215_v54, 0.0 }
 0x55c   :  { %3185 = vst.msk [vmem:[#allocation2 + $0x2b0] sm:$0xff] %vm1391_vm2, %v3153_v24  ;;  %v3410_v38 = vld [vmem:[#allocation2 + $0x2f0] sm:$0xff]  ;;  %v3995_v24 = vld [vmem:[#allocation2 + $0x358] sm:$0xff]  ;;  %v3893_v15 = vmax.f32 %v3823_v1, 0.0  ;;  %v4157_v1 = vadd.f32 %v13358_v55, %v13266_v45  ;;  %v9877_v45 = vld [vmem:[%s17018_s7 + $0x420] sm:$0xf0] }
 0x55d   :  { %v13923_v10 = vpop.f32.mrf.mxu3  ;;  %v3442_v7 = vmax.f32 %v3410_v38, %v13708_v25  ;;  %4078 = vst.msk [vmem:[#allocation2 + $0x3f0] sm:$0xff] %vm1391_vm2, %v4046_v42  ;;  %3068 = vmax.xlane.f32.xlu1 %v3019_v31  ;;  %v13927_v50 = vpop.f32.mrf.mxu0  ;;  %v3124_v25 = vld [vmem:[#allocation2 + $0x2c8] sm:$0xff] }
 0x55e   :  { %4223 = vmax.xlane.f32.xlu2 %v4180_v58  ;;  %17295 = vst [vmem:[#allocation50_spill] sm:$0xff] %v13927_v50  ;;  %v10035_v58 = vld [vmem:[%s17018_s7 + $0x540] sm:$0xf]  ;;  %v13940_v42 = vpop.f32.mrf.mxu1  ;;  %v9883_v55 = vld [vmem:[%s17018_s7 + $0x408] sm:$0xf] }
 0x55f   :  { %3072 = vmax.xlane.f32.xlu0 %v3021_v3  ;;  %3474 = vst.msk [vmem:[#allocation2 + $0x2f0] sm:$0xff] %vm1673_vm3, %v3442_v7  ;;  %v10036_v7 = vor.u32 %v10885_v22, %v10035_v58  ;;  %v3996_v58 = vld [vmem:[#allocation2 + $0x360] sm:$0xff] }
 0x560   :  { %17298 = vst [vmem:[#allocation76_spill] sm:$0xff] %v13940_v42  ;;  %v3942_v41 = vpop.xlane.xlu1 %3941  ;;  %6897 = vmatmul.bf16.gmra.mxu0 %v9852_v32  ;;  %v3891_v42 = vmax.f32 %v3818_v57, 0.0 }
 0x561   :  { %v3339_v48 = vpop.xlane.xlu2 %3338  ;;  %v4027_v62 = vmax.f32 %v3995_v24, %v3942_v41  ;;  %v13944_v23 = vpop.f32.mrf.mxu2  ;;  %7066 = vmatmul.bf16.gmra.mxu1 %v9856_v11  ;;  %v4459_v24 = vld [vmem:[#allocation2 + $0x2f8] sm:$0xff]  ;;  %v17303_v11 = vld [vmem:[#allocation27_spill] sm:$0xff]  ;;  %v4456_v41 = vld [vmem:[#allocation2 + $0x2e0] sm:$0xff] }
 0x562   :  { %v3423_v31 = vmax.f32 %v3391_v20, %v3339_v48  ;;  %17300 = vst [vmem:[#allocation58_spill] sm:$0xff] %v13944_v23  ;;  %v3085_v38 = vpop.xlane.xlu0 %3084  ;;  %6728 = vmatmul.bf16.gmra.mxu3 %v9848_v5  ;;  %v3103_v5 = vld [vmem:[#allocation2 + $0x220] sm:$0xff]  ;;  %v3820_v54 = vadd.f32 %v17303_v11, %v13437_v8 }
 0x563   :  { %v3156_v3 = vmax.f32 %v3124_v25, %v3085_v38  ;;  %4059 = vst.msk [vmem:[#allocation2 + $0x358] sm:$0xff] %vm1391_vm2, %v4027_v62  ;;  %v4162_v62 = vadd.f32 %v13427_v21, %v13320_v60  ;;  %v4438_v60 = vld [vmem:[#allocation2 + $0x250] sm:$0xff] }
 0x564   :  { %3455 = vst.msk [vmem:[#allocation2 + $0x258] sm:$0xff] %vm1673_vm3, %v3423_v31  ;;  %v4457_v31 = vld [vmem:[#allocation2 + $0x2e8] sm:$0xff]  ;;  %v3892_v11 = vmax.f32 %v3820_v54, 0.0 }
 0x565   :  { %v13948_v50 = vpop.f32.mrf.mxu3  ;;  %3188 = vst.msk [vmem:[#allocation2 + $0x2c8] sm:$0xff] %vm1391_vm2, %v3156_v3  ;;  %3927 = vmax.xlane.f32.xlu1 %v3891_v42  ;;  %v13951_v25 = vpop.f32.mrf.mxu0  ;;  %v3406_v42 = vld [vmem:[#allocation2 + $0x2d0] sm:$0xff] }
 0x566   :  { %17301 = vst [vmem:[#allocation54_spill] sm:$0xff] %v13948_v50  ;;  %3324 = vmax.xlane.f32.xlu2 %v3288_v4  ;;  %6589 = vmatmul.bf16.gmra.mxu2 %v10036_v7  ;;  %v4458_v32 = vld [vmem:[#allocation2 + $0x2f0] sm:$0xff]  ;;  %v13955_v22 = vpop.f32.mrf.mxu1 }
 0x567   :  { %3931 = vmax.xlane.f32.xlu0 %v3893_v15  ;;  %17302 = vst [vmem:[#allocation47_spill] sm:$0xff] %v13951_v25  ;;  %v4539_v57 = vpack.c.bf16 %v4459_v24, %v4458_v32  ;;  %v10841_v15 = vld [vmem:[%s17018_s7 + $0x404] sm:$0xf]  ;;  %v4538_v24 = vpack.c.bf16 %v4457_v31, %v4456_v41  ;;  %v4198_v41 = vmax.f32 %v4162_v62, 0.0  ;;  %v10893_v62 = vld [vmem:[%s17018_s7 + $0x59c] sm:$0xf0] }
 0x568   :  { %17304 = vst [vmem:[#allocation53_spill] sm:$0xff] %v13955_v22  ;;  %v3369_v20 = vpop.xlane.xlu1 %3368  ;;  %v9880_v54 = vor.u32 %v10841_v15, %v9877_v45  ;;  %v17310_v45 = vld [vmem:[#allocation69_spill] sm:$0xff] }
 0x569   :  { %v3043_v48 = vpop.xlane.xlu2 %3042  ;;  %v3438_v3 = vmax.f32 %v3406_v42, %v3369_v20  ;;  %v13961_v7 = vpop.f32.mrf.mxu2  ;;  %7321 = vmatpush.bf16.msra.mxu3 %v4539_v57  ;;  %v9885_v20 = vld [vmem:[%s17018_s7 + $0x428] sm:$0xf0] }
 0x56a   :  { %v3135_v38 = vmax.f32 %v3103_v5, %v3043_v48  ;;  %17305 = vst [vmem:[#allocation24_spill] sm:$0xff] %v13961_v7  ;;  %v3944_v4 = vpop.xlane.xlu0 %3943  ;;  %v10846_v5 = vld [vmem:[%s17018_s7 + $0x424] sm:$0xf0]  ;;  %v10842_v48 = vld [vmem:[%s17018_s7 + $0x40c] sm:$0xf] }
 0x56b   :  { %v4028_v32 = vmax.f32 %v3996_v58, %v3944_v4  ;;  %v4439_v21 = vld [vmem:[#allocation2 + $0x258] sm:$0xff]  ;;  %3470 = vst.msk [vmem:[#allocation2 + $0x2d0] sm:$0xff] %vm1673_vm3, %v3438_v3  ;;  %v4196_v58 = vmax.f32 %v4157_v1, 0.0  ;;  %v9884_v31 = vor.u32 %v10846_v5, %v9883_v55  ;;  %v10067_v3 = vld [vmem:[%s17018_s7 + $0x580] sm:$0xf]  ;;  %v3858_v55 = vadd.f32 %v17310_v45, %v13592_v35 }
 0x56c   :  { %3167 = vst.msk [vmem:[#allocation2 + $0x220] sm:$0xff] %vm1391_vm2, %v3135_v38  ;;  %v4529_v57 = vpack.c.bf16 %v4439_v21, %v4438_v60  ;;  %v4011_v38 = vld [vmem:[#allocation2 + $0x3d8] sm:$0xff]  ;;  %v9888_v60 = vor.u32 %v10842_v48, %v9885_v20  ;;  %v17308_v21 = vld [vmem:[#allocation70_spill] sm:$0xff] }
 0x56d   :  { %v13983_v42 = vpop.f32.mrf.mxu3  ;;  %4060 = vst.msk [vmem:[#allocation2 + $0x360] sm:$0xff] %vm1391_vm2, %v4028_v32  ;;  %7322 = vmatpush.bf16.msra.mxu3 %v4538_v24  ;;  %4255 = vmax.xlane.f32.xlu1 %v4196_v58  ;;  %v13986_v4 = vpop.f32.mrf.mxu0  ;;  %v3255_v7 = vadd.f32 %v17308_v21, %v17211_v28  ;;  %v3106_v1 = vld [vmem:[#allocation2 + $0x238] sm:$0xff]  ;;  %v17311_v28 = vld [vmem:[#allocation77_spill] sm:$0xff]  ;;  %v10068_v21 = vor.u32 %v10893_v62, %v10067_v3  ;;  %v3907_v45 = vmax.f32 %v3858_v55, 0.0 }
 0x56e   :  { %17306 = vst [vmem:[#allocation23_spill] sm:$0xff] %v13983_v42  ;;  %3929 = vmax.xlane.f32.xlu2 %v3892_v11  ;;  %7154 = vmatpush.bf16.msra.mxu2 %v4529_v57  ;;  %v13996_v15 = vpop.f32.mrf.mxu1  ;;  %v3407_v5 = vld [vmem:[#allocation2 + $0x2d8] sm:$0xff]  ;;  %v3260_v11 = vadd.f32 %v17311_v28, %v13178_v37 }
 0x56f   :  { %17307 = vst [vmem:[#allocation30_spill] sm:$0xff] %v13986_v4  ;;  %4259 = vmax.xlane.f32.xlu0 %v4198_v41  ;;  %v3304_v23 = vmax.f32 %v3255_v7, 0.0  ;;  %v17317_v3 = vld [vmem:[#allocation48_spill] sm:$0xff] }
 0x570   :  { %17309 = vst [vmem:[#allocation27_spill] sm:$0xff] %v13996_v15  ;;  %v3974_v24 = vpop.xlane.xlu1 %3973  ;;  %6902 = vmatmul.bf16.gmra.mxu0 %v9884_v31  ;;  %v3306_v37 = vmax.f32 %v3260_v11, 0.0  ;;  %v17315_v31 = vld [vmem:[#allocation73_spill] sm:$0xff]  ;;  %v4112_v62 = vadd.f32 %v17317_v3, %v13318_v29  ;;  %v9915_v29 = vld [vmem:[%s17018_s7 + $0x448] sm:$0xf] }
 0x571   :  { %v3371_v32 = vpop.xlane.xlu2 %3370  ;;  %v4043_v48 = vmax.f32 %v4011_v38, %v3974_v24  ;;  %v14002_v20 = vpop.f32.mrf.mxu2  ;;  %7071 = vmatmul.bf16.gmra.mxu1 %v9888_v60  ;;  %v3119_v38 = vld [vmem:[#allocation2 + $0x2a0] sm:$0xff]  ;;  %v3860_v60 = vadd.f32 %v17315_v31, %v13459_v2 }
 0x572   :  { %v3439_v57 = vmax.f32 %v3407_v5, %v3371_v32  ;;  %17312 = vst [vmem:[#allocation70_spill] sm:$0xff] %v14002_v20  ;;  %v3049_v58 = vpop.xlane.xlu0 %3048  ;;  %6733 = vmatmul.bf16.gmra.mxu3 %v9880_v54  ;;  %v4279_v32 = vld [vmem:[#allocation2 + $0x370] sm:$0xff] }
 0x573   :  { %v3138_v41 = vmax.f32 %v3106_v1, %v3049_v58  ;;  %4075 = vst.msk [vmem:[#allocation2 + $0x3d8] sm:$0xff] %vm1391_vm2, %v4043_v48  ;;  %v4012_v1 = vld [vmem:[#allocation2 + $0x3e0] sm:$0xff]  ;;  %v3908_v31 = vmax.f32 %v3860_v60, 0.0 }
 0x574   :  { %3471 = vst.msk [vmem:[#allocation2 + $0x2d8] sm:$0xff] %vm1673_vm3, %v3439_v57  ;;  %v10849_v58 = vld [vmem:[%s17018_s7 + $0x444] sm:$0xf] }
 0x575   :  { %v14006_v22 = vpop.f32.mrf.mxu3  ;;  %3170 = vst.msk [vmem:[#allocation2 + $0x238] sm:$0xff] %vm1391_vm2, %v3138_v41  ;;  %3959 = vmax.xlane.f32.xlu1 %v3907_v45  ;;  %v14009_v54 = vpop.f32.mrf.mxu0  ;;  %v9909_v41 = vld [vmem:[%s17018_s7 + $0x460] sm:$0xf0]  ;;  %v4454_v45 = vld [vmem:[#allocation2 + $0x2d0] sm:$0xff] }
 0x576   :  { %17313 = vst [vmem:[#allocation69_spill] sm:$0xff] %v14006_v22  ;;  %3356 = vmax.xlane.f32.xlu2 %v3304_v23  ;;  %6594 = vmatmul.bf16.gmra.mxu2 %v10068_v21  ;;  %v14013_v7 = vpop.f32.mrf.mxu1  ;;  %v17318_v23 = vld [vmem:[#allocation79_spill] sm:$0xff]  ;;  %v9912_v60 = vor.u32 %v10849_v58, %v9909_v41  ;;  %v17324_v41 = vld [vmem:[#allocation14_spill] sm:$0xff] }
 0x577   :  { %17314 = vst [vmem:[#allocation77_spill] sm:$0xff] %v14009_v54  ;;  %3360 = vmax.xlane.f32.xlu0 %v3306_v37  ;;  %v3865_v24 = vadd.f32 %v17318_v23, %v13383_v14 }
 0x578   :  { %17316 = vst [vmem:[#allocation73_spill] sm:$0xff] %v14013_v7  ;;  %v3075_v5 = vpop.xlane.xlu1 %3074 }
 0x579   :  { %v4230_v55 = vpop.xlane.xlu2 %4229  ;;  %v3151_v11 = vmax.f32 %v3119_v38, %v3075_v5  ;;  %v14019_v57 = vpop.f32.mrf.mxu2  ;;  %v10854_v38 = vld [vmem:[%s17018_s7 + $0x464] sm:$0xf0]  ;;  %v3910_v23 = vmax.f32 %v3865_v24, 0.0  ;;  %v10901_v24 = vld [vmem:[%s17018_s7 + $0x5dc] sm:$0xf0] }
 0x57a   :  { %v4311_v28 = vmax.f32 %v4279_v32, %v4230_v55  ;;  %17319 = vst [vmem:[#allocation48_spill] sm:$0xff] %v14019_v57  ;;  %v3976_v48 = vpop.xlane.xlu0 %3975  ;;  %v10850_v55 = vld [vmem:[%s17018_s7 + $0x44c] sm:$0xf]  ;;  %v17322_v57 = vld [vmem:[#allocation17_spill] sm:$0xff] }
 0x57b   :  { %v4044_v21 = vmax.f32 %v4012_v1, %v3976_v48  ;;  %v4455_v37 = vld [vmem:[#allocation2 + $0x2d8] sm:$0xff]  ;;  %v9917_v32 = vld [vmem:[%s17018_s7 + $0x468] sm:$0xf0]  ;;  %3183 = vst.msk [vmem:[#allocation2 + $0x2a0] sm:$0xff] %vm1391_vm2, %v3151_v11  ;;  %v4178_v1 = vmax.f32 %v4112_v62, 0.0  ;;  %v3210_v20 = vadd.f32 %v17322_v57, %v17275_v39  ;;  %v17325_v39 = vld [vmem:[#allocation45_spill] sm:$0xff] }
 0x57c   :  { %4343 = vst.msk [vmem:[#allocation2 + $0x370] sm:$0xff] %vm1673_vm3, %v4311_v28  ;;  %v4537_v3 = vpack.c.bf16 %v4455_v37, %v4454_v45  ;;  %v9916_v28 = vor.u32 %v10854_v38, %v9915_v29  ;;  %v3120_v48 = vld [vmem:[#allocation2 + $0x2a8] sm:$0xff]  ;;  %v9920_v37 = vor.u32 %v10850_v55, %v9917_v32  ;;  %v3122_v11 = vld [vmem:[#allocation2 + $0x2b8] sm:$0xff]  ;;  %v10099_v62 = vld [vmem:[%s17018_s7 + $0x5c0] sm:$0xf]  ;;  %v3813_v29 = vadd.f32 %v17324_v41, %v13477_v53 }
 0x57d   :  { %v14041_v5 = vpop.f32.mrf.mxu3  ;;  %4076 = vst.msk [vmem:[#allocation2 + $0x3e0] sm:$0xff] %vm1391_vm2, %v4044_v21  ;;  %4219 = vmax.xlane.f32.xlu1 %v4178_v1  ;;  %v14044_v45 = vpop.f32.mrf.mxu0  ;;  %v2963_v57 = vadd.f32 %v17325_v39, %v13411_v16 }
 0x57e   :  { %17320 = vst [vmem:[#allocation79_spill] sm:$0xff] %v14041_v5  ;;  %3961 = vmax.xlane.f32.xlu2 %v3908_v31  ;;  %7323 = vmatpush.bf16.msra.mxu3 %v4537_v3  ;;  %v14054_v58 = vpop.f32.mrf.mxu1  ;;  %v3389_v31 = vld [vmem:[#allocation2 + $0x248] sm:$0xff]  ;;  %v3889_v41 = vmax.f32 %v3813_v29, 0.0 }
 0x57f   :  { %17321 = vst [vmem:[#allocation127_spill] sm:$0xff] %v14044_v45  ;;  %3965 = vmax.xlane.f32.xlu0 %v3910_v23  ;;  %v10100_v45 = vor.u32 %v10901_v24, %v10099_v62  ;;  %v17331_v62 = vld [vmem:[#allocation110_spill] sm:$0xff] }
 0x580   :  { %17323 = vst [vmem:[#allocation17_spill] sm:$0xff] %v14054_v58  ;;  %v3335_v38 = vpop.xlane.xlu1 %3334  ;;  %6907 = vmatmul.bf16.gmra.mxu0 %v9916_v28  ;;  %v3286_v58 = vmax.f32 %v3210_v20, 0.0  ;;  %v17329_v28 = vld [vmem:[#allocation19_spill] sm:$0xff]  ;;  %v4152_v24 = vadd.f32 %v17331_v62, %v13322_v59  ;;  %v9941_v59 = vld [vmem:[%s17018_s7 + $0x4a0] sm:$0xf0] }
 0x581   :  { %v3077_v21 = vpop.xlane.xlu2 %3076  ;;  %v3421_v55 = vmax.f32 %v3389_v31, %v3335_v38  ;;  %v14060_v32 = vpop.f32.mrf.mxu2  ;;  %7076 = vmatmul.bf16.gmra.mxu1 %v9920_v37  ;;  %v3815_v37 = vadd.f32 %v17329_v28, %v13632_v36  ;;  %v4295_v31 = vld [vmem:[#allocation2 + $0x3f0] sm:$0xff]  ;;  %v9949_v28 = vld [vmem:[%s17018_s7 + $0x4a8] sm:$0xf0] }
 0x582   :  { %v3152_v3 = vmax.f32 %v3120_v48, %v3077_v21  ;;  %17326 = vst [vmem:[#allocation14_spill] sm:$0xff] %v14060_v32  ;;  %v3081_v1 = vpop.xlane.xlu0 %3080  ;;  %6738 = vmatmul.bf16.gmra.mxu3 %v9912_v60  ;;  %v3018_v48 = vmax.f32 %v2963_v57, 0.0  ;;  %v3992_v21 = vld [vmem:[#allocation2 + $0x340] sm:$0xff]  ;;  %v3104_v32 = vld [vmem:[#allocation2 + $0x228] sm:$0xff] }
 0x583   :  { %v3154_v23 = vmax.f32 %v3122_v11, %v3081_v1  ;;  %3453 = vst.msk [vmem:[#allocation2 + $0x248] sm:$0xff] %vm1673_vm3, %v3421_v55  ;;  %v3994_v11 = vld [vmem:[#allocation2 + $0x350] sm:$0xff]  ;;  %v10857_v1 = vld [vmem:[%s17018_s7 + $0x484] sm:$0xf] }
 0x584   :  { %3184 = vst.msk [vmem:[#allocation2 + $0x2a8] sm:$0xff] %vm1391_vm2, %v3152_v3 }
 0x585   :  { %v14064_v7 = vpop.f32.mrf.mxu3  ;;  %3186 = vst.msk [vmem:[#allocation2 + $0x2b8] sm:$0xff] %vm1391_vm2, %v3154_v23  ;;  %3923 = vmax.xlane.f32.xlu1 %v3889_v41  ;;  %v14067_v60 = vpop.f32.mrf.mxu0  ;;  %v9947_v41 = vld [vmem:[%s17018_s7 + $0x488] sm:$0xf] }
 0x586   :  { %17327 = vst [vmem:[#allocation45_spill] sm:$0xff] %v14064_v7  ;;  %3320 = vmax.xlane.f32.xlu2 %v3286_v58  ;;  %6599 = vmatmul.bf16.gmra.mxu2 %v10100_v45  ;;  %v14071_v20 = vpop.f32.mrf.mxu1  ;;  %v17332_v58 = vld [vmem:[#allocation28_spill] sm:$0xff] }
 0x587   :  { %17328 = vst [vmem:[#allocation128_spill] sm:$0xff] %v14067_v60  ;;  %3066 = vmax.xlane.f32.xlu0 %v3018_v48  ;;  %v3217_v39 = vadd.f32 %v17332_v58, %v17238_v34  ;;  %v10862_v34 = vld [vmem:[%s17018_s7 + $0x4a4] sm:$0xf0]  ;;  %v3890_v48 = vmax.f32 %v3815_v37, 0.0  ;;  %v3102_v37 = vld [vmem:[#allocation2 + $0x218] sm:$0xff] }
 0x588   :  { %17330 = vst [vmem:[#allocation19_spill] sm:$0xff] %v14071_v20  ;;  %v4262_v38 = vpop.xlane.xlu1 %4261 }
 0x589   :  { %v3936_v29 = vpop.xlane.xlu2 %3935  ;;  %v4327_v57 = vmax.f32 %v4295_v31, %v4262_v38  ;;  %v14077_v3 = vpop.f32.mrf.mxu2  ;;  %v9944_v38 = vor.u32 %v10857_v1, %v9941_v59  ;;  %v9948_v31 = vor.u32 %v10862_v34, %v9947_v41  ;;  %v17338_v1 = vld [vmem:[#allocation59_spill] sm:$0xff]  ;;  %v4296_v41 = vld [vmem:[#allocation2 + $0x3f8] sm:$0xff] }
 0x58a   :  { %v4024_v45 = vmax.f32 %v3992_v21, %v3936_v29  ;;  %17333 = vst [vmem:[#allocation110_spill] sm:$0xff] %v14077_v3  ;;  %v3940_v55 = vpop.xlane.xlu0 %3939  ;;  %v10858_v21 = vld [vmem:[%s17018_s7 + $0x48c] sm:$0xf]  ;;  %v3289_v29 = vmax.f32 %v3217_v39, 0.0  ;;  %v10909_v39 = vld [vmem:[%s17018_s7 + $0x61c] sm:$0xf0] }
 0x58b   :  { %v4026_v23 = vmax.f32 %v3994_v11, %v3940_v55  ;;  %4359 = vst.msk [vmem:[#allocation2 + $0x3f0] sm:$0xff] %vm1673_vm3, %v4327_v57  ;;  %v4194_v11 = vmax.f32 %v4152_v24, 0.0  ;;  %v17336_v55 = vld [vmem:[#allocation60_spill] sm:$0xff]  ;;  %v10131_v24 = vld [vmem:[%s17018_s7 + $0x600] sm:$0xf] }
 0x58c   :  { %4056 = vst.msk [vmem:[#allocation2 + $0x340] sm:$0xff] %vm1391_vm2, %v4024_v45  ;;  %v9952_v45 = vor.u32 %v10858_v21, %v9949_v28  ;;  %v3250_v3 = vadd.f32 %v17336_v55, %v13334_v52  ;;  %v4155_v52 = vadd.f32 %v13324_v0, %v13379_v51  ;;  %v10132_v55 = vor.u32 %v10909_v39, %v10131_v24  ;;  %v4008_v51 = vld [vmem:[#allocation2 + $0x3c0] sm:$0xff] }
 0x58d   :  { %v14099_v62 = vpop.f32.mrf.mxu3  ;;  %4058 = vst.msk [vmem:[#allocation2 + $0x350] sm:$0xff] %vm1391_vm2, %v4026_v23  ;;  %4251 = vmax.xlane.f32.xlu1 %v4194_v11  ;;  %v14102_v58 = vpop.f32.mrf.mxu0  ;;  %v3853_v23 = vadd.f32 %v17338_v1, %v13481_v19 }
 0x58e   :  { %17334 = vst [vmem:[#allocation28_spill] sm:$0xff] %v14099_v62  ;;  %3925 = vmax.xlane.f32.xlu2 %v3890_v48  ;;  %v14112_v57 = vpop.f32.mrf.mxu1  ;;  %v3302_v7 = vmax.f32 %v3250_v3, 0.0  ;;  %v4195_v0 = vmax.f32 %v4155_v52, 0.0  ;;  %v7996_v62 = vld [vmem:[%s17021_s10 + $0x40] sm:$0xff] }
 0x58f   :  { %17335 = vst [vmem:[#allocation129_spill] sm:$0xff] %v14102_v58  ;;  %3326 = vmax.xlane.f32.xlu0 %v3289_v29  ;;  %v3905_v1 = vmax.f32 %v3853_v23, 0.0  ;;  %v3404_v23 = vld [vmem:[#allocation2 + $0x2c0] sm:$0xff]  ;;  %v8002_v58 = vld [vmem:[%s17021_s10 + $0x70] sm:$0xff] }
 0x590   :  { %17337 = vst [vmem:[#allocation60_spill] sm:$0xff] %v14112_v57  ;;  %v3041_v34 = vpop.xlane.xlu1 %3040  ;;  %6912 = vmatmul.bf16.gmra.mxu0 %v9948_v31 }
 0x591   :  { %v4264_v59 = vpop.xlane.xlu2 %4263  ;;  %v3134_v21 = vmax.f32 %v3102_v37, %v3041_v34  ;;  %v14118_v28 = vpop.f32.mrf.mxu2  ;;  %7081 = vmatmul.bf16.gmra.mxu1 %v9952_v45  ;;  %v4010_v37 = vld [vmem:[#allocation2 + $0x3d0] sm:$0xff] }
 0x592   :  { %v4328_v48 = vmax.f32 %v4296_v41, %v4264_v59  ;;  %17339 = vst [vmem:[#allocation59_spill] sm:$0xff] %v14118_v28  ;;  %v3045_v11 = vpop.xlane.xlu0 %3044  ;;  %6743 = vmatmul.bf16.gmra.mxu3 %v9944_v38  ;;  %v17344_v45 = vld [vmem:[#allocation43_spill] sm:$0xff] }
 0x593   :  { %v3136_v29 = vmax.f32 %v3104_v32, %v3045_v11  ;;  %3166 = vst.msk [vmem:[#allocation2 + $0x218] sm:$0xff] %vm1391_vm2, %v3134_v21  ;;  %v17342_v32 = vld [vmem:[#allocation64_spill] sm:$0xff]  ;;  %v4107_v24 = vadd.f32 %v17344_v45, %v13373_v40  ;;  %v10865_v11 = vld [vmem:[%s17018_s7 + $0x4c4] sm:$0xf]  ;;  %v9979_v40 = vld [vmem:[%s17018_s7 + $0x4c8] sm:$0xf] }
 0x594   :  { %4360 = vst.msk [vmem:[#allocation2 + $0x3f8] sm:$0xff] %vm1673_vm3, %v4328_v48  ;;  %v3855_v31 = vadd.f32 %v17342_v32, %v13511_v18  ;;  %v10866_v45 = vld [vmem:[%s17018_s7 + $0x4cc] sm:$0xf] }
 0x595   :  { %v14122_v54 = vpop.f32.mrf.mxu3  ;;  %3168 = vst.msk [vmem:[#allocation2 + $0x228] sm:$0xff] %vm1391_vm2, %v3136_v29  ;;  %3955 = vmax.xlane.f32.xlu1 %v3905_v1  ;;  %v14125_v38 = vpop.f32.mrf.mxu0  ;;  %v9973_v29 = vld [vmem:[%s17018_s7 + $0x4e0] sm:$0xf0]  ;;  %v4490_v1 = vld [vmem:[#allocation2 + $0x3f0] sm:$0xff] }
 0x596   :  { %17340 = vst [vmem:[#allocation130_spill] sm:$0xff] %v14122_v54  ;;  %3352 = vmax.xlane.f32.xlu2 %v3302_v7  ;;  %6604 = vmatmul.bf16.gmra.mxu2 %v10132_v55  ;;  %v14129_v3 = vpop.f32.mrf.mxu1  ;;  %v17345_v7 = vld [vmem:[#allocation74_spill] sm:$0xff] }
 0x597   :  { %17341 = vst [vmem:[#allocation131_spill] sm:$0xff] %v14125_v38  ;;  %4253 = vmax.xlane.f32.xlu0 %v4195_v0  ;;  %v3257_v41 = vadd.f32 %v17345_v7, %v13423_v63  ;;  %v10870_v0 = vld [vmem:[%s17018_s7 + $0x4e4] sm:$0xf0] }
 0x598   :  { %17343 = vst [vmem:[#allocation64_spill] sm:$0xff] %v14129_v3  ;;  %v3968_v59 = vpop.xlane.xlu1 %3967  ;;  %v9980_v7 = vor.u32 %v10870_v0, %v9979_v40  ;;  %v4278_v0 = vld [vmem:[#allocation2 + $0x368] sm:$0xff] }
 0x599   :  { %v3365_v39 = vpop.xlane.xlu2 %3364  ;;  %v4040_v52 = vmax.f32 %v4008_v51, %v3968_v59  ;;  %v14135_v48 = vpop.f32.mrf.mxu2  ;;  %v3906_v51 = vmax.f32 %v3855_v31, 0.0  ;;  %v3305_v59 = vmax.f32 %v3257_v41, 0.0  ;;  %v9976_v31 = vor.u32 %v10865_v11, %v9973_v29  ;;  %v17351_v11 = vld [vmem:[#allocation12_spill] sm:$0xff] }
 0x59a   :  { %v3436_v34 = vmax.f32 %v3404_v23, %v3365_v39  ;;  %17346 = vst [vmem:[#allocation43_spill] sm:$0xff] %v14135_v48  ;;  %v3972_v21 = vpop.xlane.xlu0 %3971  ;;  %v9981_v39 = vld [vmem:[%s17018_s7 + $0x4e8] sm:$0xf0]  ;;  %v3808_v29 = vadd.f32 %v17351_v11, %v13662_v33 }
 0x59b   :  { %v4042_v55 = vmax.f32 %v4010_v37, %v3972_v21  ;;  %v4491_v63 = vld [vmem:[#allocation2 + $0x3f8] sm:$0xff]  ;;  %4072 = vst.msk [vmem:[#allocation2 + $0x3c0] sm:$0xff] %vm1391_vm2, %v4040_v52  ;;  %v4176_v37 = vmax.f32 %v4107_v24, 0.0  ;;  %v10163_v24 = vld [vmem:[%s17018_s7 + $0x640] sm:$0xf] }
 0x59c   :  { %3468 = vst.msk [vmem:[#allocation2 + $0x2c0] sm:$0xff] %vm1673_vm3, %v3436_v34  ;;  %v4555_v32 = vpack.c.bf16 %v4491_v63, %v4490_v1  ;;  %v4009_v34 = vld [vmem:[#allocation2 + $0x3c8] sm:$0xff]  ;;  %v9984_v1 = vor.u32 %v10866_v45, %v9981_v39  ;;  %v17349_v63 = vld [vmem:[#allocation15_spill] sm:$0xff]  ;;  %v10917_v52 = vld [vmem:[%s17018_s7 + $0x65c] sm:$0xf0] }
 0x59d   :  { %v14157_v23 = vpop.f32.mrf.mxu3  ;;  %4074 = vst.msk [vmem:[#allocation2 + $0x3d0] sm:$0xff] %vm1391_vm2, %v4042_v55  ;;  %4215 = vmax.xlane.f32.xlu1 %v4176_v37  ;;  %v14160_v21 = vpop.f32.mrf.mxu0  ;;  %v3205_v28 = vadd.f32 %v17349_v63, %v17272_v44  ;;  %v4280_v63 = vld [vmem:[#allocation2 + $0x378] sm:$0xff] }
 0x59e   :  { %17347 = vst [vmem:[#allocation74_spill] sm:$0xff] %v14157_v23  ;;  %3957 = vmax.xlane.f32.xlu2 %v3906_v51  ;;  %7659 = vmatpush.bf16.msra.mxu1 %v4555_v32  ;;  %v14170_v41 = vpop.f32.mrf.mxu1  ;;  %v17352_v51 = vld [vmem:[#allocation109_spill] sm:$0xff]  ;;  %v17353_v32 = vld [vmem:[#allocation46_spill] sm:$0xff] }
 0x59f   :  { %17348 = vst [vmem:[#allocation132_spill] sm:$0xff] %v14160_v21  ;;  %3358 = vmax.xlane.f32.xlu0 %v3305_v59  ;;  %v4110_v44 = vadd.f32 %v17353_v32, %v17352_v51  ;;  %v10164_v21 = vor.u32 %v10917_v52, %v10163_v24  ;;  %v3284_v11 = vmax.f32 %v3205_v28, 0.0  ;;  %v17358_v24 = vld [vmem:[#allocation10_spill] sm:$0xff]  ;;  %v3386_v51 = vld [vmem:[#allocation2 + $0x230] sm:$0xff] }
 0x5a0   :  { %17350 = vst [vmem:[#allocation15_spill] sm:$0xff] %v14170_v41  ;;  %v4228_v55 = vpop.xlane.xlu1 %4227  ;;  %6917 = vmatmul.bf16.gmra.mxu0 %v9980_v7  ;;  %v3887_v41 = vmax.f32 %v3808_v29, 0.0  ;;  %v17357_v7 = vld [vmem:[#allocation90_spill] sm:$0xff] }
 0x5a1   :  { %v3970_v40 = vpop.xlane.xlu2 %3969  ;;  %v4310_v39 = vmax.f32 %v4278_v0, %v4228_v55  ;;  %v14176_v37 = vpop.f32.mrf.mxu2  ;;  %7086 = vmatmul.bf16.gmra.mxu1 %v9984_v1  ;;  %v3810_v1 = vadd.f32 %v17358_v24, %v17357_v7  ;;  %v17360_v28 = vld [vmem:[#allocation102_spill] sm:$0xff] }
 0x5a2   :  { %v4041_v45 = vmax.f32 %v4009_v34, %v3970_v40  ;;  %17354 = vst [vmem:[#allocation12_spill] sm:$0xff] %v14176_v37  ;;  %v4232_v59 = vpop.xlane.xlu0 %4231  ;;  %6748 = vmatmul.bf16.gmra.mxu3 %v9976_v31  ;;  %v4177_v34 = vmax.f32 %v4110_v44, 0.0  ;;  %v3117_v40 = vld [vmem:[#allocation2 + $0x290] sm:$0xff]  ;;  %v4147_v29 = vadd.f32 %v17360_v28, %v13383_v14  ;;  %v10005_v14 = vld [vmem:[%s17018_s7 + $0x520] sm:$0xf0] }
 0x5a3   :  { %v4312_v48 = vmax.f32 %v4280_v63, %v4232_v59  ;;  %4342 = vst.msk [vmem:[#allocation2 + $0x368] sm:$0xff] %vm1673_vm3, %v4310_v39  ;;  %v3388_v39 = vld [vmem:[#allocation2 + $0x240] sm:$0xff]  ;;  %v10013_v24 = vld [vmem:[%s17018_s7 + $0x528] sm:$0xf0] }
 0x5a4   :  { %4073 = vst.msk [vmem:[#allocation2 + $0x3c8] sm:$0xff] %vm1391_vm2, %v4041_v45  ;;  %v10873_v59 = vld [vmem:[%s17018_s7 + $0x504] sm:$0xf]  ;;  %v4192_v28 = vmax.f32 %v4147_v29, 0.0  ;;  %v3993_v29 = vld [vmem:[#allocation2 + $0x348] sm:$0xff] }
 0x5a5   :  { %v14180_v3 = vpop.f32.mrf.mxu3  ;;  %4344 = vst.msk [vmem:[#allocation2 + $0x378] sm:$0xff] %vm1673_vm3, %v4312_v48  ;;  %3919 = vmax.xlane.f32.xlu1 %v3887_v41  ;;  %v14183_v31 = vpop.f32.mrf.mxu0  ;;  %v17361_v48 = vld [vmem:[#allocation22_spill] sm:$0xff] }
 0x5a6   :  { %17355 = vst [vmem:[#allocation109_spill] sm:$0xff] %v14180_v3  ;;  %3316 = vmax.xlane.f32.xlu2 %v3284_v11  ;;  %6609 = vmatmul.bf16.gmra.mxu2 %v10164_v21  ;;  %v14187_v52 = vpop.f32.mrf.mxu1  ;;  %v3212_v32 = vadd.f32 %v17361_v48, %v17233_v13  ;;  %v10011_v11 = vld [vmem:[%s17018_s7 + $0x508] sm:$0xf] }
 0x5a7   :  { %17356 = vst [vmem:[#allocation46_spill] sm:$0xff] %v14183_v31  ;;  %4217 = vmax.xlane.f32.xlu0 %v4177_v34  ;;  %v10878_v13 = vld [vmem:[%s17018_s7 + $0x524] sm:$0xf0]  ;;  %v3888_v34 = vmax.f32 %v3810_v1, 0.0 }
 0x5a8   :  { %17359 = vst [vmem:[#allocation90_spill] sm:$0xff] %v14187_v52  ;;  %v3329_v0 = vpop.xlane.xlu1 %3328  ;;  %v3287_v48 = vmax.f32 %v3212_v32, 0.0  ;;  %v17365_v52 = vld [vmem:[#allocation52_spill] sm:$0xff]  ;;  %v10925_v32 = vld [vmem:[%s17018_s7 + $0x69c] sm:$0xf0]  ;;  %v4437_v3 = vld [vmem:[#allocation2 + $0x248] sm:$0xff] }
 0x5a9   :  { %v3071_v55 = vpop.xlane.xlu2 %3070  ;;  %v3418_v21 = vmax.f32 %v3386_v51, %v3329_v0  ;;  %v14193_v44 = vpop.f32.mrf.mxu2 }
 0x5aa   :  { %v3149_v41 = vmax.f32 %v3117_v40, %v3071_v55  ;;  %17362 = vst [vmem:[#allocation10_spill] sm:$0xff] %v14193_v44  ;;  %v3333_v45 = vpop.xlane.xlu0 %3332  ;;  %v10874_v40 = vld [vmem:[%s17018_s7 + $0x50c] sm:$0xf]  ;;  %v4474_v55 = vld [vmem:[#allocation2 + $0x370] sm:$0xff] }
 0x5ab   :  { %v3420_v63 = vmax.f32 %v3388_v39, %v3333_v45  ;;  %3450 = vst.msk [vmem:[#allocation2 + $0x230] sm:$0xff] %vm1673_vm3, %v3418_v21  ;;  %v10012_v45 = vor.u32 %v10878_v13, %v10011_v11  ;;  %v3991_v39 = vld [vmem:[#allocation2 + $0x338] sm:$0xff]  ;;  %v10016_v37 = vor.u32 %v10874_v40, %v10013_v24  ;;  %v3245_v21 = vadd.f32 %v17365_v52, %v13411_v16  ;;  %v17368_v11 = vld [vmem:[#allocation51_spill] sm:$0xff]  ;;  %v17369_v16 = vld [vmem:[#allocation117_spill] sm:$0xff] }
 0x5ac   :  { %3181 = vst.msk [vmem:[#allocation2 + $0x290] sm:$0xff] %vm1391_vm2, %v3149_v41  ;;  %v4475_v0 = vld [vmem:[#allocation2 + $0x378] sm:$0xff]  ;;  %v10008_v41 = vor.u32 %v10873_v59, %v10005_v14  ;;  %v17367_v14 = vld [vmem:[#allocation95_spill] sm:$0xff]  ;;  %v17370_v52 = vld [vmem:[#allocation106_spill] sm:$0xff] }
 0x5ad   :  { %v14215_v51 = vpop.f32.mrf.mxu3  ;;  %3452 = vst.msk [vmem:[#allocation2 + $0x240] sm:$0xff] %vm1673_vm3, %v3420_v63  ;;  %v4547_v1 = vpack.c.bf16 %v4475_v0, %v4474_v55  ;;  %4247 = vmax.xlane.f32.xlu1 %v4192_v28  ;;  %v14218_v44 = vpop.f32.mrf.mxu0  ;;  %v10195_v63 = vld [vmem:[%s17018_s7 + $0x680] sm:$0xf]  ;;  %v3848_v13 = vadd.f32 %v17368_v11, %v17367_v14  ;;  %v3387_v40 = vld [vmem:[#allocation2 + $0x238] sm:$0xff]  ;;  %v4150_v28 = vadd.f32 %v17370_v52, %v17369_v16 }
 0x5ae   :  { %17363 = vst [vmem:[#allocation102_spill] sm:$0xff] %v14215_v51  ;;  %3921 = vmax.xlane.f32.xlu2 %v3888_v34  ;;  %v14228_v59 = vpop.f32.mrf.mxu1  ;;  %v10196_v31 = vor.u32 %v10925_v32, %v10195_v63  ;;  %v3101_v63 = vld [vmem:[#allocation2 + $0x210] sm:$0xff] }
 0x5af   :  { %17364 = vst [vmem:[#allocation22_spill] sm:$0xff] %v14218_v44  ;;  %3322 = vmax.xlane.f32.xlu0 %v3287_v48  ;;  %7490 = vmatpush.bf16.msra.mxu0 %v4547_v1  ;;  %v3903_v11 = vmax.f32 %v3848_v13, 0.0  ;;  %v17377_v13 = vld [vmem:[#allocation38_spill] sm:$0xff] }
 0x5b0   :  { %17366 = vst [vmem:[#allocation52_spill] sm:$0xff] %v14228_v59  ;;  %v3934_v24 = vpop.xlane.xlu1 %3933  ;;  %6922 = vmatmul.bf16.gmra.mxu0 %v10012_v45  ;;  %v3300_v59 = vmax.f32 %v3245_v21, 0.0 }
 0x5b1   :  { %v3331_v34 = vpop.xlane.xlu2 %3330  ;;  %v4023_v0 = vmax.f32 %v3991_v39, %v3934_v24  ;;  %v14234_v48 = vpop.f32.mrf.mxu2  ;;  %7091 = vmatmul.bf16.gmra.mxu1 %v10016_v37  ;;  %v4193_v39 = vmax.f32 %v4150_v28, 0.0  ;;  %v17374_v37 = vld [vmem:[#allocation84_spill] sm:$0xff] }
 0x5b2   :  { %v3419_v55 = vmax.f32 %v3387_v40, %v3331_v34  ;;  %17371 = vst [vmem:[#allocation95_spill] sm:$0xff] %v14234_v48  ;;  %v3938_v1 = vpop.xlane.xlu0 %3937  ;;  %6753 = vmatmul.bf16.gmra.mxu3 %v10008_v41  ;;  %v3099_v41 = vld [vmem:[#allocation2 + $0x200] sm:$0xff]  ;;  %v4102_v40 = vadd.f32 %v17377_v13, %v13437_v8  ;;  %v10043_v8 = vld [vmem:[%s17018_s7 + $0x548] sm:$0xf]  ;;  %v10045_v13 = vld [vmem:[%s17018_s7 + $0x568] sm:$0xf0] }
 0x5b3   :  { %v4025_v44 = vmax.f32 %v3993_v29, %v3938_v1  ;;  %4055 = vst.msk [vmem:[#allocation2 + $0x338] sm:$0xff] %vm1391_vm2, %v4023_v0  ;;  %v17375_v29 = vld [vmem:[#allocation55_spill] sm:$0xff]  ;;  %v10037_v0 = vld [vmem:[%s17018_s7 + $0x560] sm:$0xf0] }
 0x5b4   :  { %3451 = vst.msk [vmem:[#allocation2 + $0x238] sm:$0xff] %vm1673_vm3, %v3419_v55  ;;  %v4436_v51 = vld [vmem:[#allocation2 + $0x240] sm:$0xff]  ;;  %v3850_v21 = vadd.f32 %v17375_v29, %v17374_v37  ;;  %v10882_v29 = vld [vmem:[%s17018_s7 + $0x54c] sm:$0xf] }
 0x5b5   :  { %v14238_v38 = vpop.f32.mrf.mxu3  ;;  %4057 = vst.msk [vmem:[#allocation2 + $0x348] sm:$0xff] %vm1391_vm2, %v4025_v44  ;;  %v4528_v34 = vpack.c.bf16 %v4437_v3, %v4436_v51  ;;  %3951 = vmax.xlane.f32.xlu1 %v3903_v11  ;;  %v14241_v45 = vpop.f32.mrf.mxu0  ;;  %v17378_v3 = vld [vmem:[#allocation65_spill] sm:$0xff]  ;;  %v4434_v11 = vld [vmem:[#allocation2 + $0x230] sm:$0xff] }
 0x5b6   :  { %17372 = vst [vmem:[#allocation51_spill] sm:$0xff] %v14238_v38  ;;  %3348 = vmax.xlane.f32.xlu2 %v3300_v59  ;;  %6614 = vmatmul.bf16.gmra.mxu2 %v10196_v31  ;;  %v14245_v32 = vpop.f32.mrf.mxu1  ;;  %v4293_v59 = vld [vmem:[#allocation2 + $0x3e0] sm:$0xff]  ;;  %v3252_v31 = vadd.f32 %v17378_v3, %v13479_v43  ;;  %v3100_v3 = vld [vmem:[#allocation2 + $0x208] sm:$0xff] }
 0x5b7   :  { %17373 = vst [vmem:[#allocation117_spill] sm:$0xff] %v14241_v45  ;;  %4249 = vmax.xlane.f32.xlu0 %v4193_v39  ;;  %7155 = vmatpush.bf16.msra.mxu2 %v4528_v34  ;;  %v10881_v55 = vld [vmem:[%s17018_s7 + $0x544] sm:$0xf]  ;;  %v10886_v39 = vld [vmem:[%s17018_s7 + $0x564] sm:$0xf0]  ;;  %v3904_v34 = vmax.f32 %v3850_v21, 0.0 }
 0x5b8   :  { %17376 = vst [vmem:[#allocation106_spill] sm:$0xff] %v14245_v32  ;;  %v3035_v24 = vpop.xlane.xlu1 %3034  ;;  %v10040_v21 = vor.u32 %v10881_v55, %v10037_v0  ;;  %v17384_v55 = vld [vmem:[#allocation29_spill] sm:$0xff]  ;;  %v4869_v45 = vld [vmem:[%s17019_s8 + $0x1c8] sm:$0xff] }
 0x5b9   :  { %v4258_v44 = vpop.xlane.xlu2 %4257  ;;  %v3131_v16 = vmax.f32 %v3099_v41, %v3035_v24  ;;  %v14251_v52 = vpop.f32.mrf.mxu2  ;;  %v10044_v24 = vor.u32 %v10886_v39, %v10043_v8  ;;  %v4095_v0 = vadd.f32 %v17384_v55, %v13477_v53  ;;  %v3403_v39 = vld [vmem:[#allocation2 + $0x2b8] sm:$0xff] }
 0x5ba   :  { %v4325_v51 = vmax.f32 %v4293_v59, %v4258_v44  ;;  %17379 = vst [vmem:[#allocation84_spill] sm:$0xff] %v14251_v52  ;;  %v3039_v28 = vpop.xlane.xlu0 %3038  ;;  %v3303_v59 = vmax.f32 %v3252_v31, 0.0 }
 0x5bb   :  { %v3133_v1 = vmax.f32 %v3101_v63, %v3039_v28  ;;  %v4435_v43 = vld [vmem:[#allocation2 + $0x238] sm:$0xff]  ;;  %3163 = vst.msk [vmem:[#allocation2 + $0x200] sm:$0xff] %vm1391_vm2, %v3131_v16  ;;  %v4174_v63 = vmax.f32 %v4102_v40, 0.0  ;;  %v10048_v28 = vor.u32 %v10882_v29, %v10045_v13  ;;  %v10227_v40 = vld [vmem:[%s17018_s7 + $0x6c0] sm:$0xf]  ;;  %v4171_v55 = vmax.f32 %v4095_v0, 0.0 }
 0x5bc   :  { %4357 = vst.msk [vmem:[#allocation2 + $0x3e0] sm:$0xff] %vm1673_vm3, %v4325_v51  ;;  %v4527_v41 = vpack.c.bf16 %v4435_v43, %v4434_v11  ;;  %v17382_v11 = vld [vmem:[#allocation91_spill] sm:$0xff]  ;;  %v10933_v16 = vld [vmem:[%s17018_s7 + $0x6dc] sm:$0xf0] }
 0x5bd   :  { %v14273_v44 = vpop.f32.mrf.mxu3  ;;  %3165 = vst.msk [vmem:[#allocation2 + $0x210] sm:$0xff] %vm1391_vm2, %v3133_v1  ;;  %4211 = vmax.xlane.f32.xlu1 %v4174_v63  ;;  %v14276_v51 = vpop.f32.mrf.mxu0  ;;  %v4140_v43 = vadd.f32 %v17382_v11, %v13592_v35  ;;  %v10228_v52 = vor.u32 %v10933_v16, %v10227_v40 }
 0x5be   :  { %17380 = vst [vmem:[#allocation55_spill] sm:$0xff] %v14273_v44  ;;  %3953 = vmax.xlane.f32.xlu2 %v3904_v34  ;;  %7156 = vmatpush.bf16.msra.mxu2 %v4527_v41  ;;  %v14286_v31 = vpop.f32.mrf.mxu1  ;;  %v17385_v34 = vld [vmem:[#allocation41_spill] sm:$0xff] }
 0x5bf   :  { %17381 = vst [vmem:[#allocation38_spill] sm:$0xff] %v14276_v51  ;;  %3354 = vmax.xlane.f32.xlu0 %v3303_v59  ;;  %v4105_v35 = vadd.f32 %v17385_v34, %v13347_v47  ;;  %v3405_v59 = vld [vmem:[#allocation2 + $0x2c8] sm:$0xff]  ;;  %v4189_v53 = vmax.f32 %v4140_v43, 0.0  ;;  %v17391_v43 = vld [vmem:[#allocation87_spill] sm:$0xff] }
 0x5c0   :  { %17383 = vst [vmem:[#allocation65_spill] sm:$0xff] %v14286_v31  ;;  %v3363_v1 = vpop.xlane.xlu1 %3362  ;;  %6927 = vmatmul.bf16.gmra.mxu0 %v10044_v24  ;;  %v17389_v24 = vld [vmem:[#allocation32_spill] sm:$0xff]  ;;  %v4137_v16 = vadd.f32 %v17391_v43, %v13511_v18  ;;  %v10069_v18 = vld [vmem:[%s17018_s7 + $0x5a0] sm:$0xf0] }
 0x5c1   :  { %v3037_v8 = vpop.xlane.xlu2 %3036  ;;  %v3435_v29 = vmax.f32 %v3403_v39, %v3363_v1  ;;  %v14292_v13 = vpop.f32.mrf.mxu2  ;;  %7096 = vmatmul.bf16.gmra.mxu1 %v10048_v28  ;;  %v4175_v47 = vmax.f32 %v4105_v35, 0.0  ;;  %v4097_v28 = vadd.f32 %v17389_v24, %v13632_v36  ;;  %v4275_v1 = vld [vmem:[#allocation2 + $0x350] sm:$0xff]  ;;  %v17392_v39 = vld [vmem:[#allocation21_spill] sm:$0xff] }
 0x5c2   :  { %v3132_v41 = vmax.f32 %v3100_v3, %v3037_v8  ;;  %17386 = vst [vmem:[#allocation91_spill] sm:$0xff] %v14292_v13  ;;  %v3367_v63 = vpop.xlane.xlu0 %3366  ;;  %6758 = vmatmul.bf16.gmra.mxu3 %v10040_v21  ;;  %v4006_v3 = vld [vmem:[#allocation2 + $0x3b0] sm:$0xff]  ;;  %v3207_v34 = vadd.f32 %v17392_v39, %v17278_v27  ;;  %v10889_v36 = vld [vmem:[%s17018_s7 + $0x584] sm:$0xf]  ;;  %v10894_v27 = vld [vmem:[%s17018_s7 + $0x5a4] sm:$0xf0] }
 0x5c3   :  { %v3437_v11 = vmax.f32 %v3405_v59, %v3367_v63  ;;  %3467 = vst.msk [vmem:[#allocation2 + $0x2b8] sm:$0xff] %vm1673_vm3, %v3435_v29  ;;  %v4277_v63 = vld [vmem:[#allocation2 + $0x360] sm:$0xff]  ;;  %v17396_v13 = vld [vmem:[#allocation11_spill] sm:$0xff] }
 0x5c4   :  { %3164 = vst.msk [vmem:[#allocation2 + $0x208] sm:$0xff] %vm1391_vm2, %v3132_v41  ;;  %v4452_v24 = vld [vmem:[#allocation2 + $0x2c0] sm:$0xff] }
 0x5c5   :  { %v14296_v48 = vpop.f32.mrf.mxu3  ;;  %3469 = vst.msk [vmem:[#allocation2 + $0x2c8] sm:$0xff] %vm1673_vm3, %v3437_v11  ;;  %4205 = vmax.xlane.f32.xlu1 %v4171_v55  ;;  %v14299_v21 = vpop.f32.mrf.mxu0  ;;  %v10075_v11 = vld [vmem:[%s17018_s7 + $0x588] sm:$0xf]  ;;  %v10890_v55 = vld [vmem:[%s17018_s7 + $0x58c] sm:$0xf] }
 0x5c6   :  { %17387 = vst [vmem:[#allocation29_spill] sm:$0xff] %v14296_v48  ;;  %4241 = vmax.xlane.f32.xlu2 %v4189_v53  ;;  %6619 = vmatmul.bf16.gmra.mxu2 %v10228_v52  ;;  %v14303_v40 = vpop.f32.mrf.mxu1  ;;  %v4172_v53 = vmax.f32 %v4097_v28, 0.0  ;;  %v10076_v39 = vor.u32 %v10894_v27, %v10075_v11 }
 0x5c7   :  { %17388 = vst [vmem:[#allocation41_spill] sm:$0xff] %v14299_v21  ;;  %4213 = vmax.xlane.f32.xlu0 %v4175_v47  ;;  %v10077_v47 = vld [vmem:[%s17018_s7 + $0x5a8] sm:$0xf0] }
 0x5c8   :  { %17390 = vst [vmem:[#allocation32_spill] sm:$0xff] %v14303_v40  ;;  %v4222_v8 = vpop.xlane.xlu1 %4221  ;;  %v4833_v21 = vld [vmem:[%s17019_s8 + $0xa8] sm:$0xff] }
 0x5c9   :  { %v3964_v0 = vpop.xlane.xlu2 %3963  ;;  %v4307_v52 = vmax.f32 %v4275_v1, %v4222_v8  ;;  %v14309_v41 = vpop.f32.mrf.mxu2  ;;  %v3285_v8 = vmax.f32 %v3207_v34, 0.0  ;;  %v10072_v1 = vor.u32 %v10889_v36, %v10069_v18  ;;  %v10941_v34 = vld [vmem:[%s17018_s7 + $0x71c] sm:$0xf0]  ;;  %v17398_v18 = vld [vmem:[#allocation75_spill] sm:$0xff] }
 0x5ca   :  { %v4038_v35 = vmax.f32 %v4006_v3, %v3964_v0  ;;  %17393 = vst [vmem:[#allocation87_spill] sm:$0xff] %v14309_v41  ;;  %v4226_v29 = vpop.xlane.xlu0 %4225  ;;  %v4188_v3 = vmax.f32 %v4137_v16, 0.0  ;;  %v3118_v16 = vld [vmem:[#allocation2 + $0x298] sm:$0xff]  ;;  %v4130_v11 = vadd.f32 %v17398_v18, %v17367_v14 }
 0x5cb   :  { %v4309_v59 = vmax.f32 %v4277_v63, %v4226_v29  ;;  %4339 = vst.msk [vmem:[#allocation2 + $0x350] sm:$0xff] %vm1673_vm3, %v4307_v52  ;;  %v10080_v63 = vor.u32 %v10890_v55, %v10077_v47  ;;  %v4090_v52 = vadd.f32 %v17396_v13, %v13662_v33  ;;  %v17399_v33 = vld [vmem:[#allocation99_spill] sm:$0xff] }
 0x5cc   :  { %4070 = vst.msk [vmem:[#allocation2 + $0x3b0] sm:$0xff] %vm1391_vm2, %v4038_v35  ;;  %v4453_v43 = vld [vmem:[#allocation2 + $0x2c8] sm:$0xff]  ;;  %v4145_v13 = vadd.f32 %v17399_v33, %v13519_v9  ;;  %v4185_v14 = vmax.f32 %v4130_v11, 0.0  ;;  %v3384_v11 = vld [vmem:[#allocation2 + $0x220] sm:$0xff] }
 0x5cd   :  { %v14331_v0 = vpop.f32.mrf.mxu3  ;;  %4341 = vst.msk [vmem:[#allocation2 + $0x360] sm:$0xff] %vm1673_vm3, %v4309_v59  ;;  %v4536_v28 = vpack.c.bf16 %v4453_v43, %v4452_v24  ;;  %4239 = vmax.xlane.f32.xlu1 %v4188_v3  ;;  %v3116_v35 = vld [vmem:[#allocation2 + $0x288] sm:$0xff]  ;;  %v14334_v29 = vpop.f32.mrf.mxu0  ;;  %v10259_v59 = vld [vmem:[%s17018_s7 + $0x700] sm:$0xf]  ;;  %v4169_v41 = vmax.f32 %v4090_v52, 0.0 }
 0x5ce   :  { %17394 = vst [vmem:[#allocation21_spill] sm:$0xff] %v14331_v0  ;;  %4207 = vmax.xlane.f32.xlu2 %v4172_v53  ;;  %v14344_v36 = vpop.f32.mrf.mxu1  ;;  %v4276_v53 = vld [vmem:[#allocation2 + $0x358] sm:$0xff]  ;;  %v4191_v9 = vmax.f32 %v4145_v13, 0.0 }
 0x5cf   :  { %17395 = vst [vmem:[#allocation133_spill] sm:$0xff] %v14334_v29  ;;  %3318 = vmax.xlane.f32.xlu0 %v3285_v8  ;;  %7324 = vmatpush.bf16.msra.mxu3 %v4536_v28  ;;  %v10260_v28 = vor.u32 %v10941_v34, %v10259_v59 }
 0x5d0   :  { %17397 = vst [vmem:[#allocation11_spill] sm:$0xff] %v14344_v36  ;;  %v3069_v55 = vpop.xlane.xlu1 %3068  ;;  %6932 = vmatmul.bf16.gmra.mxu0 %v10076_v39  ;;  %v4473_v36 = vld [vmem:[#allocation2 + $0x368] sm:$0xff] }
 0x5d1   :  { %v4224_v27 = vpop.xlane.xlu2 %4223  ;;  %v3148_v3 = vmax.f32 %v3116_v35, %v3069_v55  ;;  %v14350_v24 = vpop.f32.mrf.mxu2  ;;  %7101 = vmatmul.bf16.gmra.mxu1 %v10080_v63  ;;  %v17403_v63 = vld [vmem:[#allocation78_spill] sm:$0xff] }
 0x5d2   :  { %v4308_v47 = vmax.f32 %v4276_v53, %v4224_v27  ;;  %17400 = vst [vmem:[#allocation75_spill] sm:$0xff] %v14350_v24  ;;  %v3073_v43 = vpop.xlane.xlu0 %3072  ;;  %6763 = vmatmul.bf16.gmra.mxu3 %v10072_v1  ;;  %v3988_v1 = vld [vmem:[#allocation2 + $0x320] sm:$0xff]  ;;  %v4132_v52 = vadd.f32 %v17403_v63, %v17374_v37 }
 0x5d3   :  { %v3150_v8 = vmax.f32 %v3118_v16, %v3073_v43  ;;  %3180 = vst.msk [vmem:[#allocation2 + $0x288] sm:$0xff] %vm1391_vm2, %v3148_v3  ;;  %v3990_v16 = vld [vmem:[#allocation2 + $0x330] sm:$0xff]  ;;  %v10897_v37 = vld [vmem:[%s17018_s7 + $0x5c4] sm:$0xf]  ;;  %v10107_v3 = vld [vmem:[%s17018_s7 + $0x5c8] sm:$0xf] }
 0x5d4   :  { %4340 = vst.msk [vmem:[#allocation2 + $0x358] sm:$0xff] %vm1673_vm3, %v4308_v47  ;;  %v4472_v18 = vld [vmem:[#allocation2 + $0x360] sm:$0xff] }
 0x5d5   :  { %v14354_v31 = vpop.f32.mrf.mxu3  ;;  %3182 = vst.msk [vmem:[#allocation2 + $0x298] sm:$0xff] %vm1391_vm2, %v3150_v8  ;;  %v4546_v35 = vpack.c.bf16 %v4473_v36, %v4472_v18  ;;  %4233 = vmax.xlane.f32.xlu1 %v4185_v14  ;;  %v14357_v39 = vpop.f32.mrf.mxu0  ;;  %v10101_v47 = vld [vmem:[%s17018_s7 + $0x5e0] sm:$0xf0]  ;;  %v4470_v8 = vld [vmem:[#allocation2 + $0x350] sm:$0xff]  ;;  %v4186_v14 = vmax.f32 %v4132_v52, 0.0 }
 0x5d6   :  { %17401 = vst [vmem:[#allocation99_spill] sm:$0xff] %v14354_v31  ;;  %4201 = vmax.xlane.f32.xlu2 %v4169_v41  ;;  %6624 = vmatmul.bf16.gmra.mxu2 %v10260_v28  ;;  %v14361_v59 = vpop.f32.mrf.mxu1  ;;  %v17405_v41 = vld [vmem:[#allocation56_spill] sm:$0xff]  ;;  %v10902_v28 = vld [vmem:[%s17018_s7 + $0x5e4] sm:$0xf0]  ;;  %v10957_v24 = vld [vmem:[%s17018_s7 + $0x79c] sm:$0xf0] }
 0x5d7   :  { %17402 = vst [vmem:[#allocation134_spill] sm:$0xff] %v14357_v39  ;;  %4245 = vmax.xlane.f32.xlu0 %v4191_v9  ;;  %7491 = vmatpush.bf16.msra.mxu0 %v4546_v35  ;;  %v3247_v53 = vadd.f32 %v17405_v41, %v13551_v56  ;;  %v10898_v9 = vld [vmem:[%s17018_s7 + $0x5cc] sm:$0xf]  ;;  %v10108_v52 = vor.u32 %v10902_v28, %v10107_v3  ;;  %v10291_v41 = vld [vmem:[%s17018_s7 + $0x740] sm:$0xf] }
 0x5d8   :  { %17404 = vst [vmem:[#allocation78_spill] sm:$0xff] %v14361_v59  ;;  %v3928_v27 = vpop.xlane.xlu1 %3927  ;;  %v10109_v35 = vld [vmem:[%s17018_s7 + $0x5e8] sm:$0xf0] }
 0x5d9   :  { %v3325_v34 = vpop.xlane.xlu2 %3324  ;;  %v4020_v55 = vmax.f32 %v3988_v1, %v3928_v27  ;;  %v14365_v33 = vpop.f32.mrf.mxu2  ;;  %v3301_v63 = vmax.f32 %v3247_v53, 0.0  ;;  %v10112_v27 = vor.u32 %v10898_v9, %v10109_v35  ;;  %v17410_v53 = vld [vmem:[#allocation35_spill] sm:$0xff] }
 0x5da   :  { %v3416_v36 = vmax.f32 %v3384_v11, %v3325_v34  ;;  %17406 = vst [vmem:[#allocation56_spill] sm:$0xff] %v14365_v33  ;;  %v3932_v13 = vpop.xlane.xlu0 %3931  ;;  %v3989_v34 = vld [vmem:[#allocation2 + $0x328] sm:$0xff] }
 0x5db   :  { %v4022_v43 = vmax.f32 %v3990_v16, %v3932_v13  ;;  %v4471_v56 = vld [vmem:[#allocation2 + $0x358] sm:$0xff]  ;;  %4052 = vst.msk [vmem:[#allocation2 + $0x320] sm:$0xff] %vm1391_vm2, %v4020_v55  ;;  %v10104_v16 = vor.u32 %v10897_v37, %v10101_v47  ;;  %v4100_v37 = vadd.f32 %v17410_v53, %v13425_v30 }
 0x5dc   :  { %3448 = vst.msk [vmem:[#allocation2 + $0x220] sm:$0xff] %vm1673_vm3, %v3416_v36  ;;  %v4545_v18 = vpack.c.bf16 %v4471_v56, %v4470_v8  ;;  %v10949_v36 = vld [vmem:[%s17018_s7 + $0x75c] sm:$0xf0] }
 0x5dd   :  { %v14387_v1 = vpop.f32.mrf.mxu3  ;;  %4054 = vst.msk [vmem:[#allocation2 + $0x330] sm:$0xff] %vm1391_vm2, %v4022_v43  ;;  %v14390_v11 = vpop.f32.mrf.mxu0  ;;  %v4292_v43 = vld [vmem:[#allocation2 + $0x3d8] sm:$0xff]  ;;  %v4173_v30 = vmax.f32 %v4100_v37, 0.0  ;;  %v10905_v37 = vld [vmem:[%s17018_s7 + $0x604] sm:$0xf] }
 0x5de   :  { %17407 = vst [vmem:[#allocation135_spill] sm:$0xff] %v14387_v1  ;;  %4235 = vmax.xlane.f32.xlu2 %v4186_v14  ;;  %7492 = vmatpush.bf16.msra.mxu0 %v4545_v18  ;;  %v14398_v55 = vpop.f32.mrf.mxu1  ;;  %v4294_v14 = vld [vmem:[#allocation2 + $0x3e8] sm:$0xff]  ;;  %v10292_v18 = vor.u32 %v10949_v36, %v10291_v41  ;;  %v3400_v41 = vld [vmem:[#allocation2 + $0x2a0] sm:$0xff] }
 0x5df   :  { %17408 = vst [vmem:[#allocation136_spill] sm:$0xff] %v14390_v11  ;;  %3350 = vmax.xlane.f32.xlu0 %v3301_v63 }
 0x5e0   :  { %17409 = vst [vmem:[#allocation137_spill] sm:$0xff] %v14398_v55  ;;  %v4256_v3 = vpop.xlane.xlu1 %4255  ;;  %6937 = vmatmul.bf16.gmra.mxu0 %v10108_v52 }
 0x5e1   :  { %v3930_v13 = vpop.xlane.xlu2 %3929  ;;  %v14402_v8 = vpop.f32.mrf.mxu2  ;;  %v4324_v56 = vmax.f32 %v4292_v43, %v4256_v3  ;;  %7106 = vmatmul.bf16.gmra.mxu1 %v10112_v27  ;;  %v17415_v27 = vld [vmem:[#allocation94_spill] sm:$0xff]  ;;  %v3402_v3 = vld [vmem:[#allocation2 + $0x2b0] sm:$0xff] }
 0x5e2   :  { %v4021_v47 = vmax.f32 %v3989_v34, %v3930_v13  ;;  %17411 = vst [vmem:[#allocation35_spill] sm:$0xff] %v14402_v8  ;;  %6768 = vmatmul.bf16.gmra.mxu3 %v10104_v16  ;;  %v4260_v28 = vpop.xlane.xlu0 %4259  ;;  %v4004_v16 = vld [vmem:[#allocation2 + $0x3a0] sm:$0xff]  ;;  %v4142_v36 = vadd.f32 %v17415_v27, %v13459_v2  ;;  %v10910_v2 = vld [vmem:[%s17018_s7 + $0x624] sm:$0xf0] }
 0x5e3   :  { %v4326_v9 = vmax.f32 %v4294_v14, %v4260_v28  ;;  %4356 = vst.msk [vmem:[#allocation2 + $0x3d8] sm:$0xff] %vm1673_vm3, %v4324_v56  ;;  %v10133_v28 = vld [vmem:[%s17018_s7 + $0x620] sm:$0xf0]  ;;  %v10139_v14 = vld [vmem:[%s17018_s7 + $0x608] sm:$0xf] }
 0x5e4   :  { %4053 = vst.msk [vmem:[#allocation2 + $0x328] sm:$0xff] %vm1391_vm2, %v4021_v47 }
 0x5e5   :  { %v14406_v35 = vpop.f32.mrf.mxu3  ;;  %4358 = vst.msk [vmem:[#allocation2 + $0x3e8] sm:$0xff] %vm1673_vm3, %v4326_v9  ;;  %v14409_v63 = vpop.f32.mrf.mxu0  ;;  %v10906_v9 = vld [vmem:[%s17018_s7 + $0x60c] sm:$0xf] }
 0x5e6   :  { %17412 = vst [vmem:[#allocation138_spill] sm:$0xff] %v14406_v35  ;;  %6629 = vmatmul.bf16.gmra.mxu2 %v10292_v18  ;;  %v14411_v52 = vpop.f32.mrf.mxu1 }
 0x5e7   :  { %17413 = vst [vmem:[#allocation139_spill] sm:$0xff] %v14409_v63  ;;  %4209 = vmax.xlane.f32.xlu0 %v4173_v30  ;;  %v10141_v30 = vld [vmem:[%s17018_s7 + $0x628] sm:$0xf0] }
 0x5e8   :  { %17414 = vst [vmem:[#allocation140_spill] sm:$0xff] %v14411_v52  ;;  %v3960_v53 = vpop.xlane.xlu1 %3959  ;;  %v10144_v33 = vor.u32 %v10906_v9, %v10141_v30  ;;  %v4274_v9 = vld [vmem:[#allocation2 + $0x348] sm:$0xff] }
 0x5e9   :  { %v3357_v34 = vpop.xlane.xlu2 %3356  ;;  %v14415_v47 = vpop.f32.mrf.mxu2  ;;  %v4036_v43 = vmax.f32 %v4004_v16, %v3960_v53  ;;  %v4827_v16 = vld [vmem:[%s17019_s8 + $0x78] sm:$0xff] }
 0x5ea   :  { %v3432_v13 = vmax.f32 %v3400_v41, %v3357_v34  ;;  %17416 = vst [vmem:[#allocation94_spill] sm:$0xff] %v14415_v47  ;;  %v3361_v56 = vpop.xlane.xlu0 %3360  ;;  %v4488_v34 = vld [vmem:[#allocation2 + $0x3e0] sm:$0xff]  ;;  %v4005_v47 = vld [vmem:[#allocation2 + $0x3a8] sm:$0xff] }
 0x5eb   :  { %v3434_v18 = vmax.f32 %v3402_v3, %v3361_v56  ;;  %4068 = vst.msk [vmem:[#allocation2 + $0x3a0] sm:$0xff] %vm1391_vm2, %v4036_v43  ;;  %v10136_v3 = vor.u32 %v10905_v37, %v10133_v28  ;;  %v10140_v56 = vor.u32 %v10910_v2, %v10139_v14  ;;  %v10323_v43 = vld [vmem:[%s17018_s7 + $0x780] sm:$0xf]  ;;  %v4007_v37 = vld [vmem:[#allocation2 + $0x3b8] sm:$0xff]  ;;  %v17420_v28 = vld [vmem:[#allocation83_spill] sm:$0xff] }
 0x5ec   :  { %3464 = vst.msk [vmem:[#allocation2 + $0x2a0] sm:$0xff] %vm1673_vm3, %v3432_v13  ;;  %v4489_v41 = vld [vmem:[#allocation2 + $0x3e8] sm:$0xff]  ;;  %v4190_v13 = vmax.f32 %v4142_v36, 0.0  ;;  %v4135_v14 = vadd.f32 %v17420_v28, %v13481_v19  ;;  %v4824_v19 = vld [vmem:[%s17019_s8 + $0x60] sm:$0xff] }
 0x5ed   :  { %v14440_v27 = vpop.f32.mrf.mxu3  ;;  %3466 = vst.msk [vmem:[#allocation2 + $0x2b0] sm:$0xff] %vm1673_vm3, %v3434_v18  ;;  %v4554_v53 = vpack.c.bf16 %v4489_v41, %v4488_v34  ;;  %v14443_v8 = vpop.f32.mrf.mxu0  ;;  %v4842_v41 = vld [vmem:[%s17019_s8 + $0xf0] sm:$0xff] }
 0x5ee   :  { %17417 = vst [vmem:[#allocation141_spill] sm:$0xff] %v14440_v27  ;;  %4953 = vperm.xlu1 %11071, %v4827_v16   ;;  %v14451_v52 = vpop.f32.mrf.mxu1 }
 0x5ef   :  { %17418 = vst [vmem:[#allocation142_spill] sm:$0xff] %v14443_v8  ;;  %4243 = vmax.xlane.f32.xlu0 %v4190_v13  ;;  %7660 = vmatpush.bf16.msra.mxu1 %v4554_v53  ;;  %v10324_v13 = vor.u32 %v10957_v24, %v10323_v43  ;;  %v4826_v8 = vld [vmem:[%s17019_s8 + $0x70] sm:$0xff] }
 0x5f0   :  { %17419 = vst [vmem:[#allocation143_spill] sm:$0xff] %v14451_v52  ;;  %v4220_v18 = vpop.xlane.xlu1 %4219  ;;  %6942 = vmatmul.bf16.gmra.mxu0 %v10140_v56 }
 0x5f1   :  { %v3962_v36 = vpop.xlane.xlu2 %3961  ;;  %v14455_v30 = vpop.f32.mrf.mxu2  ;;  %v4306_v16 = vmax.f32 %v4274_v9, %v4220_v18  ;;  %7111 = vmatmul.bf16.gmra.mxu1 %v10144_v33  ;;  %v3986_v33 = vld [vmem:[#allocation2 + $0x310] sm:$0xff]  ;;  %v3115_v18 = vld [vmem:[#allocation2 + $0x280] sm:$0xff]  ;;  %v17425_v9 = vld [vmem:[#allocation26_spill] sm:$0xff] }
 0x5f2   :  { %v4037_v2 = vmax.f32 %v4005_v47, %v3962_v36  ;;  %17421 = vst [vmem:[#allocation83_spill] sm:$0xff] %v14455_v30  ;;  %6773 = vmatmul.bf16.gmra.mxu3 %v10136_v3  ;;  %v3966_v34 = vpop.xlane.xlu0 %3965  ;;  %v4451_v3 = vld [vmem:[#allocation2 + $0x2b8] sm:$0xff]  ;;  %v4187_v36 = vmax.f32 %v4135_v14, 0.0  ;;  %v4840_v14 = vld [vmem:[%s17019_s8 + $0xe0] sm:$0xff] }
 0x5f3   :  { %v4039_v53 = vmax.f32 %v4007_v37, %v3966_v34  ;;  %4338 = vst.msk [vmem:[#allocation2 + $0x348] sm:$0xff] %vm1673_vm3, %v4306_v16  ;;  %v4092_v16 = vadd.f32 %v17425_v9, %v17357_v7  ;;  %v10171_v7 = vld [vmem:[%s17018_s7 + $0x648] sm:$0xf] }
 0x5f4   :  { %4069 = vst.msk [vmem:[#allocation2 + $0x3a8] sm:$0xff] %vm1391_vm2, %v4037_v2  ;;  %v4450_v47 = vld [vmem:[#allocation2 + $0x2b0] sm:$0xff] }
 0x5f5   :  { %v14465_v56 = vpop.f32.mrf.mxu3  ;;  %4071 = vst.msk [vmem:[#allocation2 + $0x3b8] sm:$0xff] %vm1391_vm2, %v4039_v53  ;;  %v4535_v28 = vpack.c.bf16 %v4451_v3, %v4450_v47  ;;  %v14468_v24 = vpop.f32.mrf.mxu0  ;;  %v3382_v2 = vld [vmem:[#allocation2 + $0x210] sm:$0xff]  ;;  %v10165_v3 = vld [vmem:[%s17018_s7 + $0x660] sm:$0xf0] }
 0x5f6   :  { %17422 = vst [vmem:[#allocation144_spill] sm:$0xff] %v14465_v56  ;;  %5028 = vperm.xlu2 %11070, %v4842_v41   ;;  %6634 = vmatmul.bf16.gmra.mxu2 %v10324_v13  ;;  %v14470_v43 = vpop.f32.mrf.mxu1  ;;  %v10913_v13 = vld [vmem:[%s17018_s7 + $0x644] sm:$0xf] }
 0x5f7   :  { %17423 = vst [vmem:[#allocation145_spill] sm:$0xff] %v14468_v24  ;;  %4237 = vmax.xlane.f32.xlu0 %v4187_v36  ;;  %4938 = vperm.xlu1 %11071, %v4824_v19   ;;  %v10918_v36 = vld [vmem:[%s17018_s7 + $0x664] sm:$0xf0] }
 0x5f8   :  { %17424 = vst [vmem:[#allocation146_spill] sm:$0xff] %v14470_v43  ;;  %7325 = vmatpush.bf16.msra.mxu3 %v4535_v28  ;;  %v3924_v53 = vpop.xlane.xlu1 %3923  ;;  %v10965_v43 = vld [vmem:[%s17018_s7 + $0x7dc] sm:$0xf0] }
 0x5f9   :  { %v3321_v37 = vpop.xlane.xlu2 %3320  ;;  %v14474_v41 = vpop.f32.mrf.mxu2  ;;  %v4018_v19 = vmax.f32 %v3986_v33, %v3924_v53  ;;  %v10914_v33 = vld [vmem:[%s17018_s7 + $0x64c] sm:$0xf]  ;;  %v10172_v53 = vor.u32 %v10918_v36, %v10171_v7 }
 0x5fa   :  { %v3414_v34 = vmax.f32 %v3382_v2, %v3321_v37  ;;  %17426 = vst [vmem:[#allocation26_spill] sm:$0xff] %v14474_v41  ;;  %v3067_v47 = vpop.xlane.xlu0 %3066  ;;  %v10173_v37 = vld [vmem:[%s17018_s7 + $0x668] sm:$0xf0] }
 0x5fb   :  { %v3147_v28 = vmax.f32 %v3115_v18, %v3067_v47  ;;  %4050 = vst.msk [vmem:[#allocation2 + $0x310] sm:$0xff] %vm1391_vm2, %v4018_v19  ;;  %v4841_v2 = vld [vmem:[%s17019_s8 + $0xe8] sm:$0xff]  ;;  %v4170_v18 = vmax.f32 %v4092_v16, 0.0  ;;  %v3987_v47 = vld [vmem:[#allocation2 + $0x318] sm:$0xff]  ;;  %v10176_v30 = vor.u32 %v10914_v33, %v10173_v37  ;;  %v10355_v19 = vld [vmem:[%s17018_s7 + $0x7c0] sm:$0xf] }
 0x5fc   :  { %3446 = vst.msk [vmem:[#allocation2 + $0x210] sm:$0xff] %vm1673_vm3, %v3414_v34  ;;  %v10168_v34 = vor.u32 %v10913_v13, %v10165_v3  ;;  %v4290_v3 = vld [vmem:[#allocation2 + $0x3c8] sm:$0xff]  ;;  %v4823_v37 = vld [vmem:[%s17019_s8 + $0x58] sm:$0xff] }
 0x5fd   :  { %v14502_v9 = vpop.f32.mrf.mxu3  ;;  %3179 = vst.msk [vmem:[#allocation2 + $0x280] sm:$0xff] %vm1391_vm2, %v3147_v28  ;;  %v14505_v41 = vpop.f32.mrf.mxu0  ;;  %v3385_v33 = vld [vmem:[#allocation2 + $0x228] sm:$0xff] }
 0x5fe   :  { %17427 = vst [vmem:[#allocation147_spill] sm:$0xff] %v14502_v9  ;;  %5018 = vperm.xlu2 %11070, %v4840_v14   ;;  %v14513_v24 = vpop.f32.mrf.mxu1 }
 0x5ff   :  { %17428 = vst [vmem:[#allocation148_spill] sm:$0xff] %v14505_v41  ;;  %5023 = vperm.xlu1 %11071, %v4841_v2   ;;  %4203 = vmax.xlane.f32.xlu0 %v4170_v18  ;;  %v10356_v2 = vor.u32 %v10965_v43, %v10355_v19  ;;  %v4002_v43 = vld [vmem:[#allocation2 + $0x390] sm:$0xff] }
 0x600   :  { %17429 = vst [vmem:[#allocation149_spill] sm:$0xff] %v14513_v24  ;;  %v4252_v13 = vpop.xlane.xlu1 %4251  ;;  %6947 = vmatmul.bf16.gmra.mxu0 %v10172_v53 }
 0x601   :  { %v3926_v14 = vpop.xlane.xlu2 %3925  ;;  %v14515_v7 = vpop.f32.mrf.mxu2  ;;  %v4322_v36 = vmax.f32 %v4290_v3, %v4252_v13  ;;  %7116 = vmatmul.bf16.gmra.mxu1 %v10176_v30 }
 0x602   :  { %v4019_v16 = vmax.f32 %v3987_v47, %v3926_v14  ;;  %6778 = vmatmul.bf16.gmra.mxu3 %v10168_v34  ;;  %v3327_v28 = vpop.xlane.xlu0 %3326  ;;  %v4838_v47 = vld [vmem:[%s17019_s8 + $0xd0] sm:$0xff] }
 0x603   :  { %v3417_v18 = vmax.f32 %v3385_v33, %v3327_v28  ;;  %4354 = vst.msk [vmem:[#allocation2 + $0x3c8] sm:$0xff] %vm1673_vm3, %v4322_v36  ;;  %v3398_v14 = vld [vmem:[#allocation2 + $0x290] sm:$0xff]  ;;  %v10921_v33 = vld [vmem:[%s17018_s7 + $0x684] sm:$0xf] }
 0x604   :  { %4051 = vst.msk [vmem:[#allocation2 + $0x318] sm:$0xff] %vm1391_vm2, %v4019_v16  ;;  %v4291_v36 = vld [vmem:[#allocation2 + $0x3d0] sm:$0xff] }
 0x605   :  { %v14525_v34 = vpop.f32.mrf.mxu3  ;;  %3449 = vst.msk [vmem:[#allocation2 + $0x228] sm:$0xff] %vm1673_vm3, %v3417_v18  ;;  %v14528_v53 = vpop.f32.mrf.mxu0  ;;  %v4858_v28 = vld [vmem:[%s17019_s8 + $0x170] sm:$0xff]  ;;  %v10197_v18 = vld [vmem:[%s17018_s7 + $0x6a0] sm:$0xf0] }
 0x606   :  { %17430 = vst [vmem:[#allocation150_spill] sm:$0xff] %v14525_v34  ;;  %4933 = vperm.xlu2 %11070, %v4823_v37   ;;  %6639 = vmatmul.bf16.gmra.mxu2 %v10356_v2  ;;  %v14530_v30 = vpop.f32.mrf.mxu1  ;;  %v4003_v34 = vld [vmem:[#allocation2 + $0x398] sm:$0xff] }
 0x607   :  { %17431 = vst [vmem:[#allocation151_spill] sm:$0xff] %v14528_v53  ;;  %5008 = vperm.xlu1 %11071, %v4838_v47   ;;  %v10203_v47 = vld [vmem:[%s17018_s7 + $0x688] sm:$0xf]  ;;  %v4432_v53 = vld [vmem:[#allocation2 + $0x220] sm:$0xff] }
 0x608   :  { %17432 = vst [vmem:[#allocation152_spill] sm:$0xff] %v14530_v30  ;;  %v3956_v13 = vpop.xlane.xlu1 %3955  ;;  %v4859_v30 = vld [vmem:[%s17019_s8 + $0x178] sm:$0xff] }
 0x609   :  { %v3353_v19 = vpop.xlane.xlu2 %3352  ;;  %v14532_v3 = vpop.f32.mrf.mxu2  ;;  %v4034_v37 = vmax.f32 %v4002_v43, %v3956_v13  ;;  %v10922_v43 = vld [vmem:[%s17018_s7 + $0x68c] sm:$0xf] }
 0x60a   :  { %v3430_v16 = vmax.f32 %v3398_v14, %v3353_v19  ;;  %v4254_v2 = vpop.xlane.xlu0 %4253  ;;  %v10926_v19 = vld [vmem:[%s17018_s7 + $0x6a4] sm:$0xf0]  ;;  %v10205_v13 = vld [vmem:[%s17018_s7 + $0x6a8] sm:$0xf0] }
 0x60b   :  { %v4323_v14 = vmax.f32 %v4291_v36, %v4254_v2  ;;  %4066 = vst.msk [vmem:[#allocation2 + $0x390] sm:$0xff] %vm1391_vm2, %v4034_v37  ;;  %v10200_v36 = vor.u32 %v10921_v33, %v10197_v18  ;;  %v10204_v2 = vor.u32 %v10926_v19, %v10203_v47  ;;  %v10208_v9 = vor.u32 %v10922_v43, %v10205_v13  ;;  %v3401_v33 = vld [vmem:[#allocation2 + $0x2a8] sm:$0xff]  ;;  %v4487_v47 = vld [vmem:[#allocation2 + $0x3d8] sm:$0xff]  ;;  %v3380_v13 = vld [vmem:[#allocation2 + $0x200] sm:$0xff] }
 0x60c   :  { %3462 = vst.msk [vmem:[#allocation2 + $0x290] sm:$0xff] %vm1673_vm3, %v3430_v16  ;;  %v4433_v24 = vld [vmem:[#allocation2 + $0x228] sm:$0xff] }
 0x60d   :  { %v14560_v41 = vpop.f32.mrf.mxu3  ;;  %4355 = vst.msk [vmem:[#allocation2 + $0x3d0] sm:$0xff] %vm1673_vm3, %v4323_v14  ;;  %v4526_v16 = vpack.c.bf16 %v4433_v24, %v4432_v53  ;;  %v14563_v52 = vpop.f32.mrf.mxu0  ;;  %v4272_v14 = vld [vmem:[#allocation2 + $0x338] sm:$0xff] }
 0x60e   :  { %17433 = vst [vmem:[#allocation153_spill] sm:$0xff] %v14560_v41  ;;  %5108 = vperm.xlu2 %11070, %v4858_v28   ;;  %v14565_v37 = vpop.f32.mrf.mxu1 }
 0x60f   :  { %17434 = vst [vmem:[#allocation154_spill] sm:$0xff] %v14563_v52  ;;  %5113 = vperm.xlu1 %11071, %v4859_v30   ;;  %7157 = vmatpush.bf16.msra.mxu2 %v4526_v16  ;;  %v4821_v30 = vld [vmem:[%s17019_s8 + $0x48] sm:$0xff]  ;;  %v4843_v16 = vld [vmem:[%s17019_s8 + $0xf8] sm:$0xff] }
 0x610   :  { %17435 = vst [vmem:[#allocation155_spill] sm:$0xff] %v14565_v37  ;;  %v4216_v55 = vpop.xlane.xlu1 %4215  ;;  %6952 = vmatmul.bf16.gmra.mxu0 %v10204_v2 }
 0x611   :  { %v3958_v63 = vpop.xlane.xlu2 %3957  ;;  %v14570_v28 = vpop.f32.mrf.mxu2  ;;  %v4304_v24 = vmax.f32 %v4272_v14, %v4216_v55  ;;  %7121 = vmatmul.bf16.gmra.mxu1 %v10208_v9 }
 0x612   :  { %v4035_v41 = vmax.f32 %v4003_v34, %v3958_v63  ;;  %6783 = vmatmul.bf16.gmra.mxu3 %v10200_v36  ;;  %v3359_v53 = vpop.xlane.xlu0 %3358  ;;  %v4874_v63 = vld [vmem:[%s17019_s8 + $0x1f0] sm:$0xff] }
 0x613   :  { %v3433_v18 = vmax.f32 %v3401_v33, %v3359_v53  ;;  %4948 = vperm.xlu0 %11066, %v4826_v8   ;;  %4336 = vst.msk [vmem:[#allocation2 + $0x338] sm:$0xff] %vm1673_vm3, %v4304_v24  ;;  %v4273_v24 = vld [vmem:[#allocation2 + $0x340] sm:$0xff] }
 0x614   :  { %4067 = vst.msk [vmem:[#allocation2 + $0x398] sm:$0xff] %vm1391_vm2, %v4035_v41  ;;  %v4486_v34 = vld [vmem:[#allocation2 + $0x3d0] sm:$0xff]  ;;  %v3984_v41 = vld [vmem:[#allocation2 + $0x300] sm:$0xff] }
 0x615   :  { %v14580_v55 = vpop.f32.mrf.mxu3  ;;  %3465 = vst.msk [vmem:[#allocation2 + $0x2a8] sm:$0xff] %vm1673_vm3, %v3433_v18  ;;  %v4553_v19 = vpack.c.bf16 %v4487_v47, %v4486_v34  ;;  %v14583_v43 = vpop.f32.mrf.mxu0  ;;  %v4836_v53 = vld [vmem:[%s17019_s8 + $0xc0] sm:$0xff]  ;;  %v10235_v34 = vld [vmem:[%s17018_s7 + $0x6c8] sm:$0xf] }
 0x616   :  { %17436 = vst [vmem:[#allocation156_spill] sm:$0xff] %v14580_v55  ;;  %4923 = vperm.xlu2 %11070, %v4821_v30   ;;  %v14585_v8 = vpop.f32.mrf.mxu1  ;;  %v10929_v33 = vld [vmem:[%s17018_s7 + $0x6c4] sm:$0xf]  ;;  %v10934_v47 = vld [vmem:[%s17018_s7 + $0x6e4] sm:$0xf0] }
 0x617   :  { %17437 = vst [vmem:[#allocation157_spill] sm:$0xff] %v14583_v43  ;;  %5188 = vperm.xlu1 %11071, %v4874_v63   ;;  %7661 = vmatpush.bf16.msra.mxu1 %v4553_v19  ;;  %v10229_v63 = vld [vmem:[%s17018_s7 + $0x6e0] sm:$0xf0]  ;;  %v4825_v55 = vld [vmem:[%s17019_s8 + $0x68] sm:$0xff] }
 0x618   :  { %17438 = vst [vmem:[#allocation158_spill] sm:$0xff] %v14585_v8  ;;  %v3920_v2 = vpop.xlane.xlu1 %3919 }
 0x619   :  { %v3317_v9 = vpop.xlane.xlu2 %3316  ;;  %v14590_v14 = vpop.f32.mrf.mxu2  ;;  %v4016_v30 = vmax.f32 %v3984_v41, %v3920_v2  ;;  %v10930_v41 = vld [vmem:[%s17018_s7 + $0x6cc] sm:$0xf]  ;;  %v4448_v2 = vld [vmem:[#allocation2 + $0x2a0] sm:$0xff] }
 0x61a   :  { %v3412_v36 = vmax.f32 %v3380_v13, %v3317_v9  ;;  %17439 = vst [vmem:[#allocation159_spill] sm:$0xff] %v14590_v14  ;;  %v4218_v18 = vpop.xlane.xlu0 %4217  ;;  %v10237_v9 = vld [vmem:[%s17018_s7 + $0x6e8] sm:$0xf0] }
 0x61b   :  { %v4305_v19 = vmax.f32 %v4273_v24, %v4218_v18  ;;  %5033 = vperm.xlu0 %11066, %v4843_v16   ;;  %4048 = vst.msk [vmem:[#allocation2 + $0x300] sm:$0xff] %vm1391_vm2, %v4016_v30  ;;  %v4837_v13 = vld [vmem:[%s17019_s8 + $0xc8] sm:$0xff]  ;;  %v10236_v24 = vor.u32 %v10934_v47, %v10235_v34  ;;  %v10240_v37 = vor.u32 %v10930_v41, %v10237_v9 }
 0x61c   :  { %3444 = vst.msk [vmem:[#allocation2 + $0x200] sm:$0xff] %vm1673_vm3, %v3412_v36  ;;  %v4449_v14 = vld [vmem:[#allocation2 + $0x2a8] sm:$0xff]  ;;  %v10232_v36 = vor.u32 %v10929_v33, %v10229_v63  ;;  %v3383_v63 = vld [vmem:[#allocation2 + $0x218] sm:$0xff] }
 0x61d   :  { %v14618_v8 = vpop.f32.mrf.mxu3  ;;  %4337 = vst.msk [vmem:[#allocation2 + $0x340] sm:$0xff] %vm1673_vm3, %v4305_v19  ;;  %v4534_v16 = vpack.c.bf16 %v4449_v14, %v4448_v2  ;;  %v3985_v18 = vld [vmem:[#allocation2 + $0x308] sm:$0xff]  ;;  %v14621_v43 = vpop.f32.mrf.mxu0  ;;  %v4288_v19 = vld [vmem:[#allocation2 + $0x3b8] sm:$0xff] }
 0x61e   :  { %17440 = vst [vmem:[#allocation160_spill] sm:$0xff] %v14618_v8  ;;  %4998 = vperm.xlu2 %11070, %v4836_v53   ;;  %v14623_v30 = vpop.f32.mrf.mxu1  ;;  %v4857_v34 = vld [vmem:[%s17019_s8 + $0x168] sm:$0xff] }
 0x61f   :  { %17441 = vst [vmem:[#allocation161_spill] sm:$0xff] %v14621_v43  ;;  %5003 = vperm.xlu1 %11071, %v4837_v13   ;;  %7326 = vmatpush.bf16.msra.mxu3 %v4534_v16  ;;  %v4469_v9 = vld [vmem:[#allocation2 + $0x348] sm:$0xff]  ;;  %v3396_v16 = vld [vmem:[#allocation2 + $0x280] sm:$0xff]  ;;  %v4839_v43 = vld [vmem:[%s17019_s8 + $0xd8] sm:$0xff] }
 0x620   :  { %17442 = vst [vmem:[#allocation162_spill] sm:$0xff] %v14623_v30  ;;  %v4248_v27 = vpop.xlane.xlu1 %4247  ;;  %6957 = vmatmul.bf16.gmra.mxu0 %v10236_v24 }
 0x621   :  { %v3922_v52 = vpop.xlane.xlu2 %3921  ;;  %v14628_v53 = vpop.f32.mrf.mxu2  ;;  %v4320_v14 = vmax.f32 %v4288_v19, %v4248_v27  ;;  %7126 = vmatmul.bf16.gmra.mxu1 %v10240_v37  ;;  %v4000_v37 = vld [vmem:[#allocation2 + $0x380] sm:$0xff] }
 0x622   :  { %v4017_v8 = vmax.f32 %v3985_v18, %v3922_v52  ;;  %17443 = vst [vmem:[#allocation163_spill] sm:$0xff] %v14628_v53  ;;  %6788 = vmatmul.bf16.gmra.mxu3 %v10232_v36  ;;  %v3323_v33 = vpop.xlane.xlu0 %3322  ;;  %v4818_v52 = vld [vmem:[%s17019_s8 + $0x30] sm:$0xff] }
 0x623   :  { %v3415_v47 = vmax.f32 %v3383_v63, %v3323_v33  ;;  %4943 = vperm.xlu0 %11066, %v4825_v55   ;;  %4352 = vst.msk [vmem:[#allocation2 + $0x3b8] sm:$0xff] %vm1673_vm3, %v4320_v14  ;;  %v4822_v36 = vld [vmem:[%s17019_s8 + $0x50] sm:$0xff]  ;;  %v4289_v14 = vld [vmem:[#allocation2 + $0x3c0] sm:$0xff] }
 0x624   :  { %4049 = vst.msk [vmem:[#allocation2 + $0x308] sm:$0xff] %vm1391_vm2, %v4017_v8  ;;  %v4468_v41 = vld [vmem:[#allocation2 + $0x340] sm:$0xff] }
 0x625   :  { %v14638_v27 = vpop.f32.mrf.mxu3  ;;  %3447 = vst.msk [vmem:[#allocation2 + $0x218] sm:$0xff] %vm1673_vm3, %v3415_v47  ;;  %v4544_v13 = vpack.c.bf16 %v4469_v9, %v4468_v41  ;;  %v14641_v2 = vpop.f32.mrf.mxu0  ;;  %v4872_v33 = vld [vmem:[%s17019_s8 + $0x1e0] sm:$0xff]  ;;  %v10267_v41 = vld [vmem:[%s17018_s7 + $0x708] sm:$0xf] }
 0x626   :  { %17444 = vst [vmem:[#allocation164_spill] sm:$0xff] %v14638_v27  ;;  %5103 = vperm.xlu2 %11070, %v4857_v34   ;;  %v14643_v55 = vpop.f32.mrf.mxu1  ;;  %v10937_v63 = vld [vmem:[%s17018_s7 + $0x704] sm:$0xf]  ;;  %v10942_v9 = vld [vmem:[%s17018_s7 + $0x724] sm:$0xf0] }
 0x627   :  { %17445 = vst [vmem:[#allocation165_spill] sm:$0xff] %v14641_v2  ;;  %4908 = vperm.xlu1 %11071, %v4818_v52   ;;  %7493 = vmatpush.bf16.msra.mxu0 %v4544_v13  ;;  %v10261_v52 = vld [vmem:[%s17018_s7 + $0x720] sm:$0xf0] }
 0x628   :  { %17446 = vst [vmem:[#allocation166_spill] sm:$0xff] %v14643_v55  ;;  %v3952_v18 = vpop.xlane.xlu1 %3951 }
 0x629   :  { %v3349_v8 = vpop.xlane.xlu2 %3348  ;;  %v14648_v19 = vpop.f32.mrf.mxu2  ;;  %v4032_v34 = vmax.f32 %v4000_v37, %v3952_v18  ;;  %v10938_v37 = vld [vmem:[%s17018_s7 + $0x70c] sm:$0xf]  ;;  %v4430_v18 = vld [vmem:[#allocation2 + $0x210] sm:$0xff] }
 0x62a   :  { %v3428_v24 = vmax.f32 %v3396_v16, %v3349_v8  ;;  %17447 = vst [vmem:[#allocation167_spill] sm:$0xff] %v14648_v19  ;;  %v4250_v47 = vpop.xlane.xlu0 %4249  ;;  %v10269_v8 = vld [vmem:[%s17018_s7 + $0x728] sm:$0xf0] }
 0x62b   :  { %v4321_v13 = vmax.f32 %v4289_v14, %v4250_v47  ;;  %4928 = vperm.xlu0 %11066, %v4822_v36   ;;  %4064 = vst.msk [vmem:[#allocation2 + $0x380] sm:$0xff] %vm1391_vm2, %v4032_v34  ;;  %v4873_v16 = vld [vmem:[%s17019_s8 + $0x1e8] sm:$0xff]  ;;  %v10268_v14 = vor.u32 %v10942_v9, %v10267_v41  ;;  %v10272_v2 = vor.u32 %v10938_v37, %v10269_v8  ;;  %v4835_v41 = vld [vmem:[%s17019_s8 + $0xb8] sm:$0xff] }
 0x62c   :  { %3460 = vst.msk [vmem:[#allocation2 + $0x280] sm:$0xff] %vm1673_vm3, %v3428_v24  ;;  %v4431_v53 = vld [vmem:[#allocation2 + $0x218] sm:$0xff]  ;;  %v10264_v24 = vor.u32 %v10937_v63, %v10261_v52  ;;  %v4001_v47 = vld [vmem:[#allocation2 + $0x388] sm:$0xff] }
 0x62d   :  { %v14676_v19 = vpop.f32.mrf.mxu3  ;;  %4353 = vst.msk [vmem:[#allocation2 + $0x3c0] sm:$0xff] %vm1673_vm3, %v4321_v13  ;;  %v4525_v36 = vpack.c.bf16 %v4431_v53, %v4430_v18  ;;  %v14679_v55 = vpop.f32.mrf.mxu0  ;;  %v4270_v13 = vld [vmem:[#allocation2 + $0x328] sm:$0xff]  ;;  %v3399_v52 = vld [vmem:[#allocation2 + $0x298] sm:$0xff] }
 0x62e   :  { %17448 = vst [vmem:[#allocation168_spill] sm:$0xff] %v14676_v19  ;;  %5178 = vperm.xlu2 %11070, %v4872_v33   ;;  %v14681_v34 = vpop.f32.mrf.mxu1  ;;  %v4485_v8 = vld [vmem:[#allocation2 + $0x3c8] sm:$0xff] }
 0x62f   :  { %17449 = vst [vmem:[#allocation169_spill] sm:$0xff] %v14679_v55  ;;  %5183 = vperm.xlu1 %11071, %v4873_v16   ;;  %7158 = vmatpush.bf16.msra.mxu2 %v4525_v36  ;;  %v4271_v36 = vld [vmem:[#allocation2 + $0x330] sm:$0xff]  ;;  %v4875_v55 = vld [vmem:[%s17019_s8 + $0x1f8] sm:$0xff] }
 0x630   :  { %17450 = vst [vmem:[#allocation170_spill] sm:$0xff] %v14681_v34  ;;  %v4212_v27 = vpop.xlane.xlu1 %4211  ;;  %6962 = vmatmul.bf16.gmra.mxu0 %v10268_v14  ;;  %v4268_v34 = vld [vmem:[#allocation2 + $0x318] sm:$0xff] }
 0x631   :  { %v3954_v30 = vpop.xlane.xlu2 %3953  ;;  %v14686_v33 = vpop.f32.mrf.mxu2  ;;  %v4302_v53 = vmax.f32 %v4270_v13, %v4212_v27  ;;  %7131 = vmatmul.bf16.gmra.mxu1 %v10272_v2  ;;  %v4267_v13 = vld [vmem:[#allocation2 + $0x310] sm:$0xff] }
 0x632   :  { %v4033_v19 = vmax.f32 %v4001_v47, %v3954_v30  ;;  %17451 = vst [vmem:[#allocation171_spill] sm:$0xff] %v14686_v33  ;;  %6793 = vmatmul.bf16.gmra.mxu3 %v10264_v24  ;;  %v3355_v63 = vpop.xlane.xlu0 %3354  ;;  %v4854_v30 = vld [vmem:[%s17019_s8 + $0x150] sm:$0xff]  ;;  %v4820_v24 = vld [vmem:[%s17019_s8 + $0x40] sm:$0xff] }
 0x633   :  { %v3431_v9 = vmax.f32 %v3399_v52, %v3355_v63  ;;  %5013 = vperm.xlu0 %11066, %v4839_v43   ;;  %4334 = vst.msk [vmem:[#allocation2 + $0x328] sm:$0xff] %vm1673_vm3, %v4302_v53  ;;  %v4816_v63 = vld [vmem:[%s17019_s8 + $0x20] sm:$0xff] }
 0x634   :  { %4065 = vst.msk [vmem:[#allocation2 + $0x388] sm:$0xff] %vm1391_vm2, %v4033_v19  ;;  %v4484_v37 = vld [vmem:[#allocation2 + $0x3c0] sm:$0xff] }
 0x635   :  { %v14696_v27 = vpop.f32.mrf.mxu3  ;;  %3463 = vst.msk [vmem:[#allocation2 + $0x298] sm:$0xff] %vm1673_vm3, %v3431_v9  ;;  %v4552_v16 = vpack.c.bf16 %v4485_v8, %v4484_v37  ;;  %v14699_v18 = vpop.f32.mrf.mxu0  ;;  %v4285_v19 = vld [vmem:[#allocation2 + $0x3a0] sm:$0xff]  ;;  %v10299_v37 = vld [vmem:[%s17018_s7 + $0x748] sm:$0xf] }
 0x636   :  { %17452 = vst [vmem:[#allocation172_spill] sm:$0xff] %v14696_v27  ;;  %4993 = vperm.xlu2 %11070, %v4835_v41   ;;  %v14701_v2 = vpop.f32.mrf.mxu1  ;;  %v10945_v52 = vld [vmem:[%s17018_s7 + $0x744] sm:$0xf]  ;;  %v10950_v8 = vld [vmem:[%s17018_s7 + $0x764] sm:$0xf0] }
 0x637   :  { %17453 = vst [vmem:[#allocation173_spill] sm:$0xff] %v14699_v18  ;;  %5088 = vperm.xlu1 %11071, %v4854_v30   ;;  %7662 = vmatpush.bf16.msra.mxu1 %v4552_v16  ;;  %v10293_v30 = vld [vmem:[%s17018_s7 + $0x760] sm:$0xf0] }
 0x638   :  { %17454 = vst [vmem:[#allocation174_spill] sm:$0xff] %v14701_v2  ;;  %v4206_v47 = vpop.xlane.xlu1 %4205 }
 0x639   :  { %v4242_v43 = vpop.xlane.xlu2 %4241  ;;  %v14706_v53 = vpop.f32.mrf.mxu2  ;;  %v4299_v41 = vmax.f32 %v4267_v13, %v4206_v47  ;;  %v4817_v47 = vld [vmem:[%s17019_s8 + $0x28] sm:$0xff]  ;;  %v4446_v13 = vld [vmem:[#allocation2 + $0x290] sm:$0xff] }
 0x63a   :  { %v4317_v14 = vmax.f32 %v4285_v19, %v4242_v43  ;;  %17455 = vst [vmem:[#allocation175_spill] sm:$0xff] %v14706_v53  ;;  %v4214_v9 = vpop.xlane.xlu0 %4213  ;;  %v10946_v43 = vld [vmem:[%s17018_s7 + $0x74c] sm:$0xf] }
 0x63b   :  { %v4303_v16 = vmax.f32 %v4271_v36, %v4214_v9  ;;  %4918 = vperm.xlu0 %11066, %v4820_v24   ;;  %v10301_v19 = vld [vmem:[%s17018_s7 + $0x768] sm:$0xf0]  ;;  %4331 = vst.msk [vmem:[#allocation2 + $0x310] sm:$0xff] %vm1673_vm3, %v4299_v41  ;;  %v10296_v24 = vor.u32 %v10945_v52, %v10293_v30 }
 0x63c   :  { %4349 = vst.msk [vmem:[#allocation2 + $0x3a0] sm:$0xff] %vm1673_vm3, %v4317_v14  ;;  %v4447_v33 = vld [vmem:[#allocation2 + $0x298] sm:$0xff]  ;;  %v10300_v14 = vor.u32 %v10950_v8, %v10299_v37  ;;  %v10304_v2 = vor.u32 %v10946_v43, %v10301_v19  ;;  %v3381_v30 = vld [vmem:[#allocation2 + $0x208] sm:$0xff] }
 0x63d   :  { %v14734_v53 = vpop.f32.mrf.mxu3  ;;  %4335 = vst.msk [vmem:[#allocation2 + $0x330] sm:$0xff] %vm1673_vm3, %v4303_v16  ;;  %v4533_v36 = vpack.c.bf16 %v4447_v33, %v4446_v13  ;;  %v14737_v9 = vpop.f32.mrf.mxu0  ;;  %v4284_v16 = vld [vmem:[#allocation2 + $0x398] sm:$0xff]  ;;  %v4281_v13 = vld [vmem:[#allocation2 + $0x380] sm:$0xff]  ;;  %v4282_v56 = vld [vmem:[#allocation2 + $0x388] sm:$0xff] }
 0x63e   :  { %17456 = vst [vmem:[#allocation176_spill] sm:$0xff] %v14734_v53  ;;  %4898 = vperm.xlu2 %11070, %v4816_v63   ;;  %v14739_v41 = vpop.f32.mrf.mxu1  ;;  %v4871_v37 = vld [vmem:[%s17019_s8 + $0x1d8] sm:$0xff] }
 0x63f   :  { %17457 = vst [vmem:[#allocation177_spill] sm:$0xff] %v14737_v9  ;;  %4903 = vperm.xlu1 %11071, %v4817_v47   ;;  %7327 = vmatpush.bf16.msra.mxu3 %v4533_v36  ;;  %v4467_v43 = vld [vmem:[#allocation2 + $0x338] sm:$0xff]  ;;  %v4287_v36 = vld [vmem:[#allocation2 + $0x3b0] sm:$0xff] }
 0x640   :  { %17458 = vst [vmem:[#allocation178_spill] sm:$0xff] %v14739_v41  ;;  %v4240_v27 = vpop.xlane.xlu1 %4239  ;;  %6967 = vmatmul.bf16.gmra.mxu0 %v10300_v14  ;;  %v4852_v14 = vld [vmem:[%s17019_s8 + $0x140] sm:$0xff] }
 0x641   :  { %v4208_v18 = vpop.xlane.xlu2 %4207  ;;  %v14744_v63 = vpop.f32.mrf.mxu2  ;;  %v4316_v33 = vmax.f32 %v4284_v16, %v4240_v27  ;;  %7136 = vmatmul.bf16.gmra.mxu1 %v10304_v2  ;;  %v4265_v2 = vld [vmem:[#allocation2 + $0x300] sm:$0xff] }
 0x642   :  { %v4300_v53 = vmax.f32 %v4268_v34, %v4208_v18  ;;  %17459 = vst [vmem:[#allocation179_spill] sm:$0xff] %v14744_v63  ;;  %6798 = vmatmul.bf16.gmra.mxu3 %v10296_v24  ;;  %v3319_v52 = vpop.xlane.xlu0 %3318  ;;  %v4832_v34 = vld [vmem:[%s17019_s8 + $0xa0] sm:$0xff]  ;;  %v4853_v63 = vld [vmem:[%s17019_s8 + $0x148] sm:$0xff] }
 0x643   :  { %v3413_v8 = vmax.f32 %v3381_v30, %v3319_v52  ;;  %5193 = vperm.xlu0 %11066, %v4875_v55   ;;  %4348 = vst.msk [vmem:[#allocation2 + $0x398] sm:$0xff] %vm1673_vm3, %v4316_v33  ;;  %v4856_v24 = vld [vmem:[%s17019_s8 + $0x160] sm:$0xff]  ;;  %v9379_v30 = vld [vmem:[%s17018_s7 + $0x10] sm:$0xf] }
 0x644   :  { %4332 = vst.msk [vmem:[#allocation2 + $0x318] sm:$0xff] %vm1673_vm3, %v4300_v53  ;;  %v4466_v18 = vld [vmem:[#allocation2 + $0x330] sm:$0xff]  ;;  %v4428_v41 = vld [vmem:[#allocation2 + $0x200] sm:$0xff] }
 0x645   :  { %v14754_v27 = vpop.f32.mrf.mxu3  ;;  %3445 = vst.msk [vmem:[#allocation2 + $0x208] sm:$0xff] %vm1673_vm3, %v3413_v8  ;;  %v4543_v19 = vpack.c.bf16 %v4467_v43, %v4466_v18  ;;  %v14757_v47 = vpop.f32.mrf.mxu0  ;;  %v10953_v8 = vld [vmem:[%s17018_s7 + $0x784] sm:$0xf] }
 0x646   :  { %17460 = vst [vmem:[#allocation180_spill] sm:$0xff] %v14754_v27  ;;  %5173 = vperm.xlu2 %11070, %v4871_v37   ;;  %v14759_v55 = vpop.f32.mrf.mxu1  ;;  %v10719_v37 = vld [vmem:[%s17018_s7 + $0x2c] sm:$0xf0]  ;;  %v10325_v43 = vld [vmem:[%s17018_s7 + $0x7a0] sm:$0xf0] }
 0x647   :  { %17461 = vst [vmem:[#allocation181_spill] sm:$0xff] %v14757_v47  ;;  %4978 = vperm.xlu1 %11071, %v4832_v34   ;;  %7494 = vmatpush.bf16.msra.mxu0 %v4543_v19  ;;  %v10331_v19 = vld [vmem:[%s17018_s7 + $0x788] sm:$0xf] }
 0x648   :  { %17462 = vst [vmem:[#allocation182_spill] sm:$0xff] %v14759_v55  ;;  %v4234_v33 = vpop.xlane.xlu1 %4233 }
 0x649   :  { %v4202_v53 = vpop.xlane.xlu2 %4201  ;;  %v14767_v52 = vpop.f32.mrf.mxu2  ;;  %v4313_v34 = vmax.f32 %v4281_v13, %v4234_v33  ;;  %v10954_v13 = vld [vmem:[%s17018_s7 + $0x78c] sm:$0xf] }
 0x64a   :  { %v4297_v16 = vmax.f32 %v4265_v2, %v4202_v53  ;;  %v4246_v18 = vpop.xlane.xlu0 %4245  ;;  %v10958_v2 = vld [vmem:[%s17018_s7 + $0x7a4] sm:$0xf0]  ;;  %v10333_v33 = vld [vmem:[%s17018_s7 + $0x7a8] sm:$0xf0] }
 0x64b   :  { %v4319_v53 = vmax.f32 %v4287_v36, %v4246_v18  ;;  %5098 = vperm.xlu0 %11066, %v4856_v24   ;;  %4345 = vst.msk [vmem:[#allocation2 + $0x380] sm:$0xff] %vm1673_vm3, %v4313_v34  ;;  %v10328_v24 = vor.u32 %v10953_v8, %v10325_v43  ;;  %v9380_v18 = vor.u32 %v10719_v37, %v9379_v30  ;;  %v4483_v30 = vld [vmem:[#allocation2 + $0x3b8] sm:$0xff] }
 0x64c   :  { %4329 = vst.msk [vmem:[#allocation2 + $0x300] sm:$0xff] %vm1673_vm3, %v4297_v16  ;;  %v4429_v55 = vld [vmem:[#allocation2 + $0x208] sm:$0xff]  ;;  %v10332_v16 = vor.u32 %v10958_v2, %v10331_v19  ;;  %v10336_v27 = vor.u32 %v10954_v13, %v10333_v33  ;;  %v4834_v19 = vld [vmem:[%s17019_s8 + $0xb0] sm:$0xff] }
 0x64d   :  { %v14798_v9 = vpop.f32.mrf.mxu3  ;;  %4351 = vst.msk [vmem:[#allocation2 + $0x3b0] sm:$0xff] %vm1673_vm3, %v4319_v53  ;;  %v4524_v36 = vpack.c.bf16 %v4429_v55, %v4428_v41  ;;  %v14801_v47 = vpop.f32.mrf.mxu0  ;;  %v3397_v55 = vld [vmem:[#allocation2 + $0x288] sm:$0xff]  ;;  %v4830_v13 = vld [vmem:[%s17019_s8 + $0x90] sm:$0xff] }
 0x64e   :  { %17463 = vst [vmem:[#allocation183_spill] sm:$0xff] %v14798_v9  ;;  %5078 = vperm.xlu2 %11070, %v4852_v14   ;;  %v14803_v34 = vpop.f32.mrf.mxu1  ;;  %v4819_v9 = vld [vmem:[%s17019_s8 + $0x38] sm:$0xff]  ;;  %v9411_v33 = vld [vmem:[%s17018_s7 + $0x50] sm:$0xf] }
 0x64f   :  { %17464 = vst [vmem:[#allocation184_spill] sm:$0xff] %v14801_v47  ;;  %5083 = vperm.xlu1 %11071, %v4853_v63   ;;  %7159 = vmatpush.bf16.msra.mxu2 %v4524_v36  ;;  %v4815_v63 = vld [vmem:[%s17019_s8 + $0x18] sm:$0xff]  ;;  %v10961_v36 = vld [vmem:[%s17018_s7 + $0x7c4] sm:$0xf] }
 0x650   :  { %17465 = vst [vmem:[#allocation185_spill] sm:$0xff] %v14803_v34  ;;  %6972 = vmatmul.bf16.gmra.mxu0 %v10332_v16  ;;  %v10357_v16 = vld [vmem:[%s17018_s7 + $0x7e0] sm:$0xf0] }
 0x651   :  { %v4236_v11 = vpop.xlane.xlu2 %4235  ;;  %v14808_v53 = vpop.f32.mrf.mxu2  ;;  %7141 = vmatmul.bf16.gmra.mxu1 %v10336_v27 }
 0x652   :  { %v4314_v35 = vmax.f32 %v4282_v56, %v4236_v11  ;;  %6803 = vmatmul.bf16.gmra.mxu3 %v10328_v24  ;;  %v3351_v41 = vpop.xlane.xlu0 %3350  ;;  %7160 = vmatmul.bf16.vlgmr.msra.gmra.mxu2 %v9380_v18  ;;  %v4868_v11 = vld [vmem:[%s17019_s8 + $0x1c0] sm:$0xff]  ;;  %v10363_v18 = vld [vmem:[%s17018_s7 + $0x7c8] sm:$0xf] }
 0x653   :  { %v3429_v14 = vmax.f32 %v3397_v55, %v3351_v41  ;;  %4913 = vperm.xlu0 %11066, %v4819_v9   ;;  %v4269_v9 = vld [vmem:[#allocation2 + $0x320] sm:$0xff]  ;;  %v10966_v41 = vld [vmem:[%s17018_s7 + $0x7e4] sm:$0xf0] }
 0x654   :  { %4346 = vst.msk [vmem:[#allocation2 + $0x388] sm:$0xff] %vm1673_vm3, %v4314_v35  ;;  %v4482_v56 = vld [vmem:[#allocation2 + $0x3b0] sm:$0xff] }
 0x655   :  { %v14817_v37 = vpop.f32.mrf.mxu3  ;;  %3461 = vst.msk [vmem:[#allocation2 + $0x288] sm:$0xff] %vm1673_vm3, %v3429_v14  ;;  %v4551_v8 = vpack.c.bf16 %v4483_v30, %v4482_v56  ;;  %v14820_v43 = vpop.f32.mrf.mxu0  ;;  %v10962_v14 = vld [vmem:[%s17018_s7 + $0x7cc] sm:$0xf]  ;;  %v4831_v56 = vld [vmem:[%s17019_s8 + $0x98] sm:$0xff]  ;;  %v4444_v30 = vld [vmem:[#allocation2 + $0x280] sm:$0xff] }
 0x656   :  { %17466 = vst [vmem:[#allocation186_spill] sm:$0xff] %v14817_v37  ;;  %4893 = vperm.xlu2 %11070, %v4815_v63   ;;  %v14822_v27 = vpop.f32.mrf.mxu1  ;;  %v10727_v63 = vld [vmem:[%s17018_s7 + $0x6c] sm:$0xf0] }
 0x657   :  { %17467 = vst [vmem:[#allocation187_spill] sm:$0xff] %v14820_v43  ;;  %5158 = vperm.xlu1 %11071, %v4868_v11   ;;  %7663 = vmatpush.bf16.msra.mxu1 %v4551_v8  ;;  %v10365_v11 = vld [vmem:[%s17018_s7 + $0x7e8] sm:$0xf0]  ;;  %v9412_v34 = vor.u32 %v10727_v63, %v9411_v33 }
 0x658   :  { %17468 = vst [vmem:[#allocation188_spill] sm:$0xff] %v14822_v27  ;;  %v10364_v27 = vor.u32 %v10966_v41, %v10363_v18  ;;  %v10368_v47 = vor.u32 %v10962_v14, %v10365_v11  ;;  %v4812_v41 = vld [vmem:[%s17019_s8] sm:$0xff]  ;;  %v4465_v63 = vld [vmem:[#allocation2 + $0x328] sm:$0xff]  ;;  %v4463_v11 = vld [vmem:[#allocation2 + $0x318] sm:$0xff] }
 0x659   :  { %v14824_v35 = vpop.permute.xlu2 %5028  ;;  %v14829_v2 = vpop.f32.mrf.mxu2 }
 0x65a   :  { %17469 = vst [vmem:[#allocation189_spill] sm:$0xff] %v14824_v35  ;;  %v4210_v24 = vpop.xlane.xlu0 %4209  ;;  %v4855_v35 = vld [vmem:[%s17019_s8 + $0x158] sm:$0xff] }
 0x65b   :  { %v4301_v55 = vmax.f32 %v4269_v9, %v4210_v24  ;;  %4988 = vperm.xlu0 %11066, %v4834_v19   ;;  %v10360_v24 = vor.u32 %v10961_v36, %v10357_v16  ;;  %v4286_v36 = vld [vmem:[#allocation2 + $0x3a8] sm:$0xff]  ;;  %v4851_v16 = vld [vmem:[%s17019_s8 + $0x138] sm:$0xff] }
 0x65c   :  { %v4445_v8 = vld [vmem:[#allocation2 + $0x288] sm:$0xff] }
 0x65d   :  { %v14861_v9 = vpop.f32.mrf.mxu3  ;;  %4333 = vst.msk [vmem:[#allocation2 + $0x320] sm:$0xff] %vm1673_vm3, %v4301_v55  ;;  %v4532_v19 = vpack.c.bf16 %v4445_v8, %v4444_v30  ;;  %v14864_v43 = vpop.f32.mrf.mxu0  ;;  %v4462_v30 = vld [vmem:[#allocation2 + $0x310] sm:$0xff] }
 0x65e   :  { %4968 = vperm.xlu2 %11070, %v4830_v13   ;;  %v14866_v37 = vpop.f32.mrf.mxu1 }
 0x65f   :  { %4973 = vperm.xlu1 %11071, %v4831_v56   ;;  %7328 = vmatpush.bf16.msra.mxu3 %v4532_v19 }
 0x660   :  { %v14873_v39 = vpop.permute.xlu1 %4953  ;;  %6977 = vmatmul.bf16.gmra.mxu0 %v10364_v27 }
 0x661   :  { %v14868_v59 = vpop.permute.xlu2 %5018  ;;  %17471 = vst [vmem:[#allocation191_spill] sm:$0xff] %v14873_v39  ;;  %v14875_v13 = vpop.f32.mrf.mxu2  ;;  %7146 = vmatmul.bf16.gmra.mxu1 %v10368_v47 }
 0x662   :  { %17470 = vst [vmem:[#allocation190_spill] sm:$0xff] %v14868_v59  ;;  %6808 = vmatmul.bf16.gmra.mxu3 %v10360_v24  ;;  %v4244_v33 = vpop.xlane.xlu0 %4243  ;;  %7165 = vmatmul.bf16.gmra.mxu2 %v9412_v34  ;;  %v4283_v24 = vld [vmem:[#allocation2 + $0x390] sm:$0xff] }
 0x663   :  { %v4318_v18 = vmax.f32 %v4286_v36, %v4244_v33  ;;  %5093 = vperm.xlu0 %11066, %v4855_v35   ;;  %v4870_v35 = vld [vmem:[%s17019_s8 + $0x1d0] sm:$0xff]  ;;  %v4541_v33 = vpack.c.bf16 %v4463_v11, %v4462_v30  ;;  %v4867_v11 = vld [vmem:[%s17019_s8 + $0x1b8] sm:$0xff]  ;;  %v4480_v30 = vld [vmem:[#allocation2 + $0x3a0] sm:$0xff] }
 0x664   :  { %v4464_v55 = vld [vmem:[#allocation2 + $0x320] sm:$0xff] }
 0x665   :  { %v6769_v14 = vpop.f32.mrf.mxu3  ;;  %4350 = vst.msk [vmem:[#allocation2 + $0x3a8] sm:$0xff] %vm1673_vm3, %v4318_v18  ;;  %v4542_v27 = vpack.c.bf16 %v4465_v63, %v4464_v55  ;;  %v14884_v34 = vpop.f32.mrf.mxu0  ;;  %v10715_v18 = vld [vmem:[%s17018_s7 + $0x14] sm:$0xf]  ;;  %v9443_v63 = vld [vmem:[%s17018_s7 + $0x90] sm:$0xf] }
 0x666   :  { %5073 = vperm.xlu2 %11070, %v4851_v16   ;;  %v14886_v56 = vpop.f32.mrf.mxu1  ;;  %v4866_v16 = vld [vmem:[%s17019_s8 + $0x1b0] sm:$0xff] }
 0x667   :  { %4878 = vperm.xlu1 %11071, %v4812_v41   ;;  %7495 = vmatpush.bf16.msra.mxu0 %v4542_v27  ;;  %v9381_v41 = vld [vmem:[%s17018_s7 + $0x30] sm:$0xf0]  ;;  %v10735_v27 = vld [vmem:[%s17018_s7 + $0xac] sm:$0xf0] }
 0x669   :  { %v14888_v47 = vpop.permute.xlu2 %4933  ;;  %v14893_v8 = vpop.permute.xlu1 %4938 }
 0x66a   :  { %v14895_v19 = vpop.f32.mrf.mxu2  ;;  %v4238_v36 = vpop.xlane.xlu0 %4237 }
 0x66b   :  { %v4315_v55 = vmax.f32 %v4283_v24, %v4238_v36  ;;  %5168 = vperm.xlu0 %11066, %v4870_v35   ;;  %7496 = vmatpush.bf16.msra.mxu0 %v4541_v33  ;;  %v9384_v24 = vor.u32 %v10715_v18, %v9381_v41  ;;  %v9444_v33 = vor.u32 %v10735_v27, %v9443_v63  ;;  %v4829_v18 = vld [vmem:[%s17019_s8 + $0x88] sm:$0xff]  ;;  %v4479_v27 = vld [vmem:[#allocation2 + $0x398] sm:$0xff] }
 0x66c   :  { %v4481_v40 = vld [vmem:[#allocation2 + $0x3a8] sm:$0xff] }
 0x66d   :  { %v14915_v29 = vpop.f32.mrf.mxu3  ;;  %4347 = vst.msk [vmem:[#allocation2 + $0x390] sm:$0xff] %vm1673_vm3, %v4315_v55  ;;  %v4550_v35 = vpack.c.bf16 %v4481_v40, %v4480_v30  ;;  %v14918_v36 = vpop.f32.mrf.mxu0 }
 0x66e   :  { %5148 = vperm.xlu2 %11070, %v4866_v16   ;;  %17472 = vst [vmem:[#allocation192_spill] sm:$0xff] %v14918_v36  ;;  %v14920_v1 = vpop.f32.mrf.mxu1  ;;  %v4266_v16 = vld [vmem:[#allocation2 + $0x308] sm:$0xff] }
 0x66f   :  { %5153 = vperm.xlu1 %11071, %v4867_v11   ;;  %7664 = vmatpush.bf16.msra.mxu1 %v4550_v35  ;;  %17473 = vst [vmem:[#allocation193_spill] sm:$0xff] %v14920_v1  ;;  %v4477_v35 = vld [vmem:[#allocation2 + $0x388] sm:$0xff]  ;;  %v4460_v1 = vld [vmem:[#allocation2 + $0x300] sm:$0xff] }
 0x671   :  { %v5109_v51 = vpop.permute.xlu2 %5108  ;;  %v14926_v48 = vpop.permute.xlu1 %5023 }
 0x672   :  { %v6601_v31 = vadd.f32 %v14532_v3, %v5109_v51  ;;  %17474 = vst [vmem:[#allocation194_spill] sm:$0xff] %v14926_v48  ;;  %v14928_v55 = vpop.f32.mrf.mxu2  ;;  %7329 = vmatmul.bf16.vlgmr.msra.gmra.mxu3 %v9384_v24  ;;  %v4204_v40 = vpop.xlane.xlu0 %4203  ;;  %7170 = vmatmul.bf16.gmra.mxu2 %v9444_v33  ;;  %v4848_v51 = vld [vmem:[%s17019_s8 + $0x120] sm:$0xff] }
 0x673   :  { %v4298_v63 = vmax.f32 %v4266_v16, %v4204_v40  ;;  %4983 = vperm.xlu0 %11066, %v4833_v21   ;;  %v9389_v21 = vld [vmem:[%s17018_s7 + $0x38] sm:$0xf0]  ;;  %v4814_v40 = vld [vmem:[%s17019_s8 + $0x10] sm:$0xff]  ;;  %v4476_v16 = vld [vmem:[#allocation2 + $0x380] sm:$0xff] }
 0x674   :  { %v14933_v41 = vadd.f32 %v6769_v14, %v6601_v31  ;;  %v4478_v3 = vld [vmem:[#allocation2 + $0x390] sm:$0xff]  ;;  %v10716_v31 = vld [vmem:[%s17018_s7 + $0x1c] sm:$0xf] }
 0x675   :  { %v14938_v11 = vpop.f32.mrf.mxu3  ;;  %4330 = vst.msk [vmem:[#allocation2 + $0x308] sm:$0xff] %vm1673_vm3, %v4298_v63  ;;  %v4549_v30 = vpack.c.bf16 %v4479_v27, %v4478_v3  ;;  %v14941_v24 = vpop.f32.mrf.mxu0  ;;  %v4864_v3 = vld [vmem:[%s17019_s8 + $0x1a0] sm:$0xff]  ;;  %v9392_v27 = vor.u32 %v10716_v31, %v9389_v21  ;;  %v9387_v31 = vld [vmem:[%s17018_s7 + $0x18] sm:$0xf] }
 0x676   :  { %17475 = vst [vmem:[#allocation195_spill] sm:$0xff] %v14938_v11  ;;  %4963 = vperm.xlu2 %11070, %v4829_v18   ;;  %v14949_v14 = vpop.f32.mrf.mxu1  ;;  %v10720_v21 = vld [vmem:[%s17018_s7 + $0x34] sm:$0xf0] }
 0x677   :  { %17476 = vst [vmem:[#allocation196_spill] sm:$0xff] %v14941_v24  ;;  %5058 = vperm.xlu1 %11071, %v4848_v51   ;;  %7665 = vmatpush.bf16.msra.mxu1 %v4549_v30  ;;  %v4548_v51 = vpack.c.bf16 %v4477_v35, %v4476_v16  ;;  %v9475_v30 = vld [vmem:[%s17018_s7 + $0xd0] sm:$0xf]  ;;  %v9413_v24 = vld [vmem:[%s17018_s7 + $0x70] sm:$0xf0]  ;;  %v4865_v16 = vld [vmem:[%s17019_s8 + $0x1a8] sm:$0xff]  ;;  %v9388_v0 = vor.u32 %v10720_v21, %v9387_v31 }
 0x678   :  { %17477 = vst [vmem:[#allocation197_spill] sm:$0xff] %v14949_v14  ;;  %v10723_v14 = vld [vmem:[%s17018_s7 + $0x54] sm:$0xf]  ;;  %v10743_v35 = vld [vmem:[%s17018_s7 + $0xec] sm:$0xf0]  ;;  %v4844_v31 = vld [vmem:[%s17019_s8 + $0x100] sm:$0xff] }
 0x679   :  { %v14951_v33 = vpop.permute.xlu2 %4923  ;;  %v14956_v18 = vpop.permute.xlu1 %5008  ;;  %v9416_v11 = vor.u32 %v10723_v14, %v9413_v24  ;;  %v9476_v48 = vor.u32 %v10743_v35, %v9475_v30  ;;  %v4862_v14 = vld [vmem:[%s17019_s8 + $0x190] sm:$0xff] }
 0x67a   :  { %17478 = vst [vmem:[#allocation198_spill] sm:$0xff] %v14951_v33  ;;  %v14958_v63 = vpop.f32.mrf.mxu2 }
 0x67b   :  { %17479 = vst [vmem:[#allocation199_spill] sm:$0xff] %v14956_v18  ;;  %4888 = vperm.xlu0 %11066, %v4814_v40   ;;  %7666 = vmatpush.bf16.msra.mxu1 %v4548_v51 }
 0x67c   :  { %v4461_v36 = vld [vmem:[#allocation2 + $0x308] sm:$0xff] }
 0x67d   :  { %v14984_v40 = vpop.f32.mrf.mxu3  ;;  %v4540_v51 = vpack.c.bf16 %v4461_v36, %v4460_v1  ;;  %v14986_v59 = vpop.f32.mrf.mxu0  ;;  %v4847_v36 = vld [vmem:[%s17019_s8 + $0x118] sm:$0xff] }
 0x67e   :  { %17480 = vst [vmem:[#allocation200_spill] sm:$0xff] %v14984_v40  ;;  %5138 = vperm.xlu2 %11070, %v4864_v3   ;;  %7667 = vmatmul.bf16.vlgmr.msra.gmra.mxu1 %v9392_v27  ;;  %v14988_v32 = vpop.f32.mrf.mxu1 }
 0x67f   :  { %17481 = vst [vmem:[#allocation201_spill] sm:$0xff] %v14986_v59  ;;  %5143 = vperm.xlu1 %11071, %v4865_v16   ;;  %7497 = vmatpush.bf16.msra.mxu0 %v4540_v51  ;;  %v9507_v51 = vld [vmem:[%s17018_s7 + $0x110] sm:$0xf] }
 0x680   :  { %17482 = vst [vmem:[#allocation202_spill] sm:$0xff] %v14988_v32 }
 0x681   :  { %v14990_v18 = vpop.permute.xlu2 %4998  ;;  %v5114_v44 = vpop.permute.xlu1 %5113 }
 0x682   :  { %17483 = vst [vmem:[#allocation203_spill] sm:$0xff] %v14990_v18  ;;  %v14995_v40 = vpop.f32.mrf.mxu2  ;;  %7334 = vmatmul.bf16.gmra.mxu3 %v9416_v11  ;;  %v6603_v1 = vadd.f32 %v14570_v28, %v5114_v44  ;;  %7175 = vmatmul.bf16.gmra.mxu2 %v9476_v48  ;;  %v10724_v48 = vld [vmem:[%s17018_s7 + $0x5c] sm:$0xf] }
 0x683   :  { %7498 = vmatmul.bf16.vlgmr.msra.gmra.mxu0 %v9388_v0  ;;  %5163 = vperm.xlu0 %11066, %v4869_v45   ;;  %v9421_v45 = vld [vmem:[%s17018_s7 + $0x78] sm:$0xf0] }
 0x684   :  { %v6772_v24 = vadd.f32 %v14915_v29, %v6603_v1  ;;  %v4850_v29 = vld [vmem:[%s17019_s8 + $0x130] sm:$0xff]  ;;  %v9424_v16 = vor.u32 %v10724_v48, %v9421_v45  ;;  %v9419_v45 = vld [vmem:[%s17018_s7 + $0x58] sm:$0xf] }
 0x685   :  { %v15005_v3 = vpop.f32.mrf.mxu3  ;;  %v15007_v27 = vpop.permute.xlu0 %4948  ;;  %v10731_v1 = vld [vmem:[%s17018_s7 + $0x94] sm:$0xf]  ;;  %v10751_v48 = vld [vmem:[%s17018_s7 + $0x12c] sm:$0xf0] }
 0x686   :  { %17484 = vst [vmem:[#allocation204_spill] sm:$0xff] %v15005_v3  ;;  %5053 = vperm.xlu2 %11070, %v4847_v36   ;;  %v15009_v11 = vpop.f32.mrf.mxu0  ;;  %v15017_v44 = vpop.f32.mrf.mxu1  ;;  %v6939_v36 = vadd.f32 %v14864_v43, %v14933_v41  ;;  %v4845_v43 = vld [vmem:[%s17019_s8 + $0x108] sm:$0xff] }
 0x687   :  { %17485 = vst [vmem:[#allocation205_spill] sm:$0xff] %v15009_v11  ;;  %5128 = vperm.xlu1 %11071, %v4862_v14  }
 0x688   :  { %17486 = vst [vmem:[#allocation206_spill] sm:$0xff] %v15017_v44 }
 0x689   :  { %v5104_v0 = vpop.permute.xlu2 %5103  ;;  %v5189_v30 = vpop.permute.xlu1 %5188 }
 0x68a   :  { %v6598_v28 = vadd.f32 %v14515_v7, %v5104_v0  ;;  %v6640_v35 = vpop.f32.mrf.mxu2  ;;  %v9445_v7 = vld [vmem:[%s17018_s7 + $0xb0] sm:$0xf0]  ;;  %v10728_v0 = vld [vmem:[%s17018_s7 + $0x74] sm:$0xf0] }
 0x68b   :  { %v15026_v21 = vadd.f32 %v6640_v35, %v5189_v30  ;;  %5068 = vperm.xlu0 %11066, %v4850_v29   ;;  %v9508_v30 = vor.u32 %v10751_v48, %v9507_v51  ;;  %v9420_v35 = vor.u32 %v10728_v0, %v9419_v45  ;;  %v6941_v45 = vadd.f32 %v14884_v34, %v6772_v24  ;;  %v10739_v34 = vld [vmem:[%s17018_s7 + $0xd4] sm:$0xf] }
 0x68c   :  { %v15040_v14 = vadd.f32 %v14861_v9, %v6598_v28  ;;  %v15057_v9 = vadd.f32 %v14866_v37, %v6939_v36  ;;  %v9448_v28 = vor.u32 %v10731_v1, %v9445_v7  ;;  %v9453_v7 = vld [vmem:[%s17018_s7 + $0xb8] sm:$0xf0]  ;;  %v9477_v24 = vld [vmem:[%s17018_s7 + $0xf0] sm:$0xf0] }
 0x68d   :  { %v15054_v41 = vpop.f32.mrf.mxu3  ;;  %v15059_v29 = vpop.permute.xlu0 %5033 }
 0x68e   :  { %17487 = vst [vmem:[#allocation207_spill] sm:$0xff] %v15040_v14  ;;  %5038 = vperm.xlu2 %11070, %v4844_v31   ;;  %7672 = vmatmul.bf16.gmra.mxu1 %v9424_v16  ;;  %v15061_v44 = vpop.f32.mrf.mxu0  ;;  %v15063_v11 = vpop.f32.mrf.mxu1  ;;  %v4861_v31 = vld [vmem:[%s17019_s8 + $0x188] sm:$0xff]  ;;  %v8003_v16 = vld [vmem:[%s17021_s10 + $0x78] sm:$0xff] }
 0x68f   :  { %17488 = vst [vmem:[#allocation208_spill] sm:$0xff] %v15054_v41  ;;  %5043 = vperm.xlu1 %11071, %v4845_v43   ;;  %v4813_v41 = vld [vmem:[%s17019_s8 + $0x8] sm:$0xff]  ;;  %v4828_v43 = vld [vmem:[%s17019_s8 + $0x80] sm:$0xff] }
 0x690   :  { %17489 = vst [vmem:[#allocation209_spill] sm:$0xff] %v15057_v9 }
 0x691   :  { %17490 = vst [vmem:[#allocation210_spill] sm:$0xff] %v15059_v29  ;;  %v5179_v32 = vpop.permute.xlu2 %5178  ;;  %v15071_v36 = vpop.permute.xlu1 %5003 }
 0x692   :  { %17491 = vst [vmem:[#allocation211_spill] sm:$0xff] %v15061_v44  ;;  %v15069_v37 = vadd.f32 %v14958_v63, %v5179_v32  ;;  %7339 = vmatmul.bf16.gmra.mxu3 %v9448_v28  ;;  %7180 = vmatmul.bf16.gmra.mxu2 %v9508_v30  ;;  %v10732_v63 = vld [vmem:[%s17018_s7 + $0x9c] sm:$0xf] }
 0x693   :  { %17492 = vst [vmem:[#allocation212_spill] sm:$0xff] %v15063_v11  ;;  %7503 = vmatmul.bf16.gmra.mxu0 %v9420_v35  ;;  %4883 = vperm.xlu0 %11066, %v4813_v41   ;;  %v8019_v28 = vld [vmem:[%s17021_s10 + $0xf8] sm:$0xff]  ;;  %v9456_v30 = vor.u32 %v10732_v63, %v9453_v7  ;;  %v9539_v35 = vld [vmem:[%s17018_s7 + $0x150] sm:$0xf]  ;;  %v8001_v7 = vld [vmem:[%s17021_s10 + $0x68] sm:$0xff]  ;;  %v9480_v11 = vor.u32 %v10739_v34, %v9477_v24 }
 0x694   :  { %17493 = vst [vmem:[#allocation213_spill] sm:$0xff] %v15071_v36  ;;  %v10736_v63 = vld [vmem:[%s17018_s7 + $0xb4] sm:$0xf0]  ;;  %v4846_v24 = vld [vmem:[%s17019_s8 + $0x110] sm:$0xff] }
 0x695   :  { %v15079_v51 = vpop.f32.mrf.mxu3  ;;  %v15081_v1 = vpop.permute.xlu0 %4943  ;;  %v4863_v36 = vld [vmem:[%s17019_s8 + $0x198] sm:$0xff] }
 0x696   :  { %17494 = vst [vmem:[#allocation214_spill] sm:$0xff] %v15079_v51  ;;  %5123 = vperm.xlu2 %11070, %v4861_v31   ;;  %v15083_v32 = vpop.f32.mrf.mxu0  ;;  %v15091_v48 = vpop.f32.mrf.mxu1  ;;  %v10759_v31 = vld [vmem:[%s17018_s7 + $0x16c] sm:$0xf0] }
 0x697   :  { %17495 = vst [vmem:[#allocation215_spill] sm:$0xff] %v15083_v32  ;;  %8097 = vperm.xlu1 %11071, %v8003_v16   ;;  %v9451_v16 = vld [vmem:[%s17018_s7 + $0x98] sm:$0xf]  ;;  %v9540_v44 = vor.u32 %v10759_v31, %v9539_v35 }
 0x698   :  { %17496 = vst [vmem:[#allocation216_spill] sm:$0xff] %v15091_v48  ;;  %v9452_v9 = vor.u32 %v10736_v63, %v9451_v16  ;;  %v8016_v16 = vld [vmem:[%s17021_s10 + $0xe0] sm:$0xff] }
 0x699   :  { %v15094_v0 = vpop.permute.xlu2 %4993  ;;  %v15099_v41 = vpop.permute.xlu1 %4908 }
 0x69a   :  { %17497 = vst [vmem:[#allocation217_spill] sm:$0xff] %v15094_v0 }
 0x69b   :  { %4958 = vperm.xlu0 %11066, %v4828_v43   ;;  %v15128_v43 = vadd.f32 %v14886_v56, %v6941_v45  ;;  %v8000_v45 = vld [vmem:[%s17021_s10 + $0x60] sm:$0xff] }
 0x69d   :  { %v15125_v48 = vpop.f32.mrf.mxu3  ;;  %17499 = vst [vmem:[#allocation219_spill] sm:$0xff] %v15128_v43  ;;  %v15130_v32 = vpop.permute.xlu0 %4928 }
 0x69e   :  { %17498 = vst [vmem:[#allocation218_spill] sm:$0xff] %v15125_v48  ;;  %8177 = vperm.xlu2 %11070, %v8019_v28   ;;  %7677 = vmatmul.bf16.gmra.mxu1 %v9456_v30  ;;  %v15132_v51 = vpop.f32.mrf.mxu0  ;;  %v15134_v59 = vpop.f32.mrf.mxu1  ;;  %v4849_v48 = vld [vmem:[%s17019_s8 + $0x128] sm:$0xff] }
 0x69f   :  { %17500 = vst [vmem:[#allocation220_spill] sm:$0xff] %v15132_v51  ;;  %8087 = vperm.xlu1 %11071, %v8001_v7   ;;  %v8017_v28 = vld [vmem:[%s17021_s10 + $0xe8] sm:$0xff]  ;;  %v9571_v7 = vld [vmem:[%s17018_s7 + $0x190] sm:$0xf] }
 0x6a0   :  { %17501 = vst [vmem:[#allocation221_spill] sm:$0xff] %v15134_v59 }
 0x6a1   :  { %v15136_v14 = vpop.permute.xlu2 %4898  ;;  %v15141_v56 = vpop.permute.xlu1 %5183 }
 0x6a2   :  { %7344 = vmatmul.bf16.gmra.mxu3 %v9480_v11  ;;  %7185 = vmatmul.bf16.gmra.mxu2 %v9540_v44  ;;  %v10740_v11 = vld [vmem:[%s17018_s7 + $0xdc] sm:$0xf] }
 0x6a3   :  { %7508 = vmatmul.bf16.gmra.mxu0 %v9452_v9  ;;  %5063 = vperm.xlu0 %11066, %v4849_v48   ;;  %v9485_v44 = vld [vmem:[%s17018_s7 + $0xf8] sm:$0xf0] }
 0x6a4   :  { %v9488_v63 = vor.u32 %v10740_v11, %v9485_v44  ;;  %v9483_v11 = vld [vmem:[%s17018_s7 + $0xd8] sm:$0xf] }
 0x6a5   :  { %v15149_v30 = vpop.f32.mrf.mxu3  ;;  %v15151_v35 = vpop.permute.xlu0 %5013  ;;  %v10744_v44 = vld [vmem:[%s17018_s7 + $0xf4] sm:$0xf0] }
 0x6a6   :  { %17502 = vst [vmem:[#allocation222_spill] sm:$0xff] %v15151_v35  ;;  %8082 = vperm.xlu2 %11070, %v8000_v45   ;;  %v15153_v34 = vpop.f32.mrf.mxu0  ;;  %v15161_v9 = vpop.f32.mrf.mxu1  ;;  %v10747_v45 = vld [vmem:[%s17018_s7 + $0x114] sm:$0xf]  ;;  %v9484_v3 = vor.u32 %v10744_v44, %v9483_v11  ;;  %v8013_v44 = vld [vmem:[%s17021_s10 + $0xc8] sm:$0xff] }
 0x6a7   :  { %17503 = vst [vmem:[#allocation223_spill] sm:$0xff] %v15153_v34  ;;  %8167 = vperm.xlu1 %11071, %v8017_v28   ;;  %v9509_v28 = vld [vmem:[%s17018_s7 + $0x130] sm:$0xf0] }
 0x6a8   :  { %17504 = vst [vmem:[#allocation224_spill] sm:$0xff] %v15161_v9  ;;  %v10767_v9 = vld [vmem:[%s17018_s7 + $0x1ac] sm:$0xf0] }
 0x6a9   :  { %v15163_v48 = vpop.permute.xlu2 %5173  ;;  %v15168_v31 = vpop.permute.xlu1 %5088  ;;  %v7998_v34 = vld [vmem:[%s17021_s10 + $0x50] sm:$0xff]  ;;  %v9572_v43 = vor.u32 %v10767_v9, %v9571_v7  ;;  %v7997_v9 = vld [vmem:[%s17021_s10 + $0x48] sm:$0xff] }
 0x6aa   :  { %17505 = vst [vmem:[#allocation225_spill] sm:$0xff] %v15168_v31 }
 0x6ab   :  { %5048 = vperm.xlu0 %11066, %v4846_v24   ;;  %v9512_v24 = vor.u32 %v10747_v45, %v9509_v28  ;;  %v4860_v28 = vld [vmem:[%s17019_s8 + $0x180] sm:$0xff] }
 0x6ad   :  { %v15194_v59 = vpop.f32.mrf.mxu3  ;;  %v15196_v51 = vpop.permute.xlu0 %4918 }
 0x6ae   :  { %8162 = vperm.xlu2 %11070, %v8016_v16   ;;  %7682 = vmatmul.bf16.gmra.mxu1 %v9488_v63  ;;  %v15198_v31 = vpop.f32.mrf.mxu0  ;;  %v15200_v29 = vpop.f32.mrf.mxu1 }
 0x6af   :  { %8072 = vperm.xlu1 %11071, %v7998_v34   ;;  %v8014_v34 = vld [vmem:[%s17021_s10 + $0xd0] sm:$0xff] }
 0x6b1   :  { %v15202_v35 = vpop.permute.xlu2 %5078  ;;  %v15207_v38 = vpop.permute.xlu1 %4903 }
 0x6b2   :  { %17506 = vst [vmem:[#allocation226_spill] sm:$0xff] %v15202_v35  ;;  %7349 = vmatmul.bf16.gmra.mxu3 %v9512_v24  ;;  %7190 = vmatmul.bf16.gmra.mxu2 %v9572_v43  ;;  %v9517_v43 = vld [vmem:[%s17018_s7 + $0x138] sm:$0xf0] }
 0x6b3   :  { %7513 = vmatmul.bf16.gmra.mxu0 %v9484_v3  ;;  %5133 = vperm.xlu0 %11066, %v4863_v36   ;;  %v10748_v3 = vld [vmem:[%s17018_s7 + $0x11c] sm:$0xf] }
 0x6b4   :  { %v9520_v24 = vor.u32 %v10748_v3, %v9517_v43  ;;  %v9515_v3 = vld [vmem:[%s17018_s7 + $0x118] sm:$0xf] }
 0x6b5   :  { %v6794_v16 = vpop.f32.mrf.mxu3  ;;  %v15215_v63 = vpop.permute.xlu0 %5193  ;;  %v10752_v43 = vld [vmem:[%s17018_s7 + $0x134] sm:$0xf0] }
 0x6b6   :  { %8067 = vperm.xlu2 %11070, %v7997_v9   ;;  %v15217_v7 = vpop.f32.mrf.mxu0  ;;  %v15225_v36 = vpop.f32.mrf.mxu1  ;;  %v9603_v9 = vld [vmem:[%s17018_s7 + $0x1d0] sm:$0xf]  ;;  %v7995_v35 = vld [vmem:[%s17021_s10 + $0x38] sm:$0xff]  ;;  %v9516_v23 = vor.u32 %v10752_v43, %v9515_v3 }
 0x6b7   :  { %17507 = vst [vmem:[#allocation227_spill] sm:$0xff] %v15217_v7  ;;  %8152 = vperm.xlu1 %11071, %v8014_v34   ;;  %v10755_v34 = vld [vmem:[%s17018_s7 + $0x154] sm:$0xf]  ;;  %v10775_v7 = vld [vmem:[%s17018_s7 + $0x1ec] sm:$0xf0] }
 0x6b8   :  { %17508 = vst [vmem:[#allocation228_spill] sm:$0xff] %v15225_v36  ;;  %v9541_v36 = vld [vmem:[%s17018_s7 + $0x170] sm:$0xf0]  ;;  %v9604_v57 = vor.u32 %v10775_v7, %v9603_v9 }
 0x6b9   :  { %v15227_v45 = vpop.permute.xlu2 %4893  ;;  %v15232_v11 = vpop.permute.xlu1 %4978  ;;  %v7994_v7 = vld [vmem:[%s17021_s10 + $0x30] sm:$0xff] }
 0x6ba   :  { %17509 = vst [vmem:[#allocation229_spill] sm:$0xff] %v15232_v11  ;;  %v8010_v3 = vld [vmem:[%s17021_s10 + $0xb0] sm:$0xff] }
 0x6bb   :  { %5118 = vperm.xlu0 %11066, %v4860_v28   ;;  %v9544_v28 = vor.u32 %v10755_v34, %v9541_v36 }
 0x6bd   :  { %v15258_v18 = vpop.f32.mrf.mxu3  ;;  %v15260_v0 = vpop.permute.xlu0 %5098 }
 0x6be   :  { %17510 = vst [vmem:[#allocation230_spill] sm:$0xff] %v15260_v0  ;;  %8147 = vperm.xlu2 %11070, %v8013_v44   ;;  %7687 = vmatmul.bf16.gmra.mxu1 %v9520_v24  ;;  %v15262_v15 = vpop.f32.mrf.mxu0  ;;  %v15269_v4 = vpop.f32.mrf.mxu1  ;;  %v10763_v0 = vld [vmem:[%s17018_s7 + $0x194] sm:$0xf] }
 0x6bf   :  { %8057 = vperm.xlu1 %11071, %v7995_v35   ;;  %v8011_v35 = vld [vmem:[%s17021_s10 + $0xb8] sm:$0xff] }
 0x6c1   :  { %v15264_v5 = vpop.permute.xlu2 %4968  ;;  %v15271_v20 = vpop.permute.xlu1 %5083 }
 0x6c2   :  { %17511 = vst [vmem:[#allocation231_spill] sm:$0xff] %v15264_v5  ;;  %7354 = vmatmul.bf16.gmra.mxu3 %v9544_v28  ;;  %7195 = vmatmul.bf16.gmra.mxu2 %v9604_v57  ;;  %v10756_v57 = vld [vmem:[%s17018_s7 + $0x15c] sm:$0xf]  ;;  %v7992_v5 = vld [vmem:[%s17021_s10 + $0x20] sm:$0xff] }
 0x6c3   :  { %17512 = vst [vmem:[#allocation232_spill] sm:$0xff] %v15271_v20  ;;  %7518 = vmatmul.bf16.gmra.mxu0 %v9516_v23  ;;  %8092 = vperm.xlu0 %11066, %v8002_v58   ;;  %v9549_v23 = vld [vmem:[%s17018_s7 + $0x178] sm:$0xf0]  ;;  %v8018_v58 = vld [vmem:[%s17021_s10 + $0xf0] sm:$0xff] }
 0x6c4   :  { %v9552_v28 = vor.u32 %v10756_v57, %v9549_v23  ;;  %v9573_v20 = vld [vmem:[%s17018_s7 + $0x1b0] sm:$0xf0]  ;;  %v9547_v57 = vld [vmem:[%s17018_s7 + $0x158] sm:$0xf] }
 0x6c5   :  { %v15279_v36 = vpop.f32.mrf.mxu3  ;;  %v15281_v44 = vpop.permute.xlu0 %4913  ;;  %v10760_v23 = vld [vmem:[%s17018_s7 + $0x174] sm:$0xf0]  ;;  %v9576_v33 = vor.u32 %v10763_v0, %v9573_v20 }
 0x6c6   :  { %8052 = vperm.xlu2 %11070, %v7994_v7   ;;  %v15294_v9 = vpop.f32.mrf.mxu0  ;;  %v15300_v7 = vpop.f32.mrf.mxu1  ;;  %v9548_v22 = vor.u32 %v10760_v23, %v9547_v57  ;;  %v7991_v20 = vld [vmem:[%s17021_s10 + $0x18] sm:$0xff]  ;;  %v9667_v23 = vld [vmem:[%s17018_s7 + $0x250] sm:$0xf] }
 0x6c7   :  { %8137 = vperm.xlu1 %11071, %v8011_v35   ;;  %v9635_v35 = vld [vmem:[%s17018_s7 + $0x210] sm:$0xf] }
 0x6c9   :  { %v15289_v24 = vpop.permute.xlu2 %5073  ;;  %v5159_v34 = vpop.permute.xlu1 %5158 }
 0x6ca   :  { %17513 = vst [vmem:[#allocation233_spill] sm:$0xff] %v15289_v24  ;;  %v6626_v43 = vadd.f32 %v14829_v2, %v5159_v34  ;;  %v6633_v24 = vadd.f32 %v14928_v55, %v15163_v48  ;;  %v10783_v2 = vld [vmem:[%s17018_s7 + $0x22c] sm:$0xf0]  ;;  %v15327_v48 = vpop.f32.mrf.mxu2 }
 0x6cb   :  { %8172 = vperm.xlu0 %11066, %v8018_v58   ;;  %v9636_v25 = vor.u32 %v10783_v2, %v9635_v35  ;;  %v8015_v35 = vld [vmem:[%s17021_s10 + $0xd8] sm:$0xff] }
 0x6cc   :  { %v15322_v34 = vadd.f32 %v6794_v16, %v6626_v43  ;;  %v7999_v16 = vld [vmem:[%s17021_s10 + $0x58] sm:$0xff] }
 0x6cd   :  { %v6801_v55 = vpop.f32.mrf.mxu3  ;;  %v15329_v58 = vpop.permute.xlu0 %4988 }
 0x6ce   :  { %17514 = vst [vmem:[#allocation234_spill] sm:$0xff] %v15329_v58  ;;  %8132 = vperm.xlu2 %11070, %v8010_v3   ;;  %v15331_v54 = vadd.f32 %v6801_v55, %v6633_v24  ;;  %7692 = vmatmul.bf16.gmra.mxu1 %v9552_v28  ;;  %v6973_v0 = vpop.f32.mrf.mxu0  ;;  %v15348_v3 = vpop.f32.mrf.mxu1  ;;  %v9581_v28 = vld [vmem:[%s17018_s7 + $0x1b8] sm:$0xf0]  ;;  %v10771_v55 = vld [vmem:[%s17018_s7 + $0x1d4] sm:$0xf] }
 0x6cf   :  { %8042 = vperm.xlu1 %11071, %v7992_v5   ;;  %v8008_v5 = vld [vmem:[%s17021_s10 + $0xa0] sm:$0xff] }
 0x6d1   :  { %v5149_v60 = vpop.permute.xlu2 %5148  ;;  %v15337_v11 = vpop.permute.xlu1 %4973 }
 0x6d2   :  { %v6621_v43 = vadd.f32 %v14767_v52, %v5149_v60  ;;  %7359 = vmatmul.bf16.gmra.mxu3 %v9576_v33  ;;  %7200 = vmatmul.bf16.gmra.mxu2 %v9636_v25 }
 0x6d3   :  { %7523 = vmatmul.bf16.gmra.mxu0 %v9548_v22  ;;  %8077 = vperm.xlu0 %11066, %v7999_v16   ;;  %v9605_v16 = vld [vmem:[%s17018_s7 + $0x1f0] sm:$0xf0] }
 0x6d4   :  { %v15343_v24 = vadd.f32 %v15149_v30, %v6621_v43  ;;  %v10764_v30 = vld [vmem:[%s17018_s7 + $0x19c] sm:$0xf]  ;;  %v6638_v43 = vadd.f32 %v14995_v40, %v15141_v56 }
 0x6d5   :  { %v6804_v60 = vpop.f32.mrf.mxu3  ;;  %v15350_v52 = vpop.permute.xlu0 %5093  ;;  %v9584_v57 = vor.u32 %v10764_v30, %v9581_v28 }
 0x6d6   :  { %17515 = vst [vmem:[#allocation235_spill] sm:$0xff] %v15343_v24  ;;  %v15352_v25 = vpop.f32.mrf.mxu2  ;;  %8037 = vperm.xlu2 %11070, %v7991_v20   ;;  %v6805_v22 = vadd.f32 %v6804_v60, %v15069_v37  ;;  %v8007_v37 = vld [vmem:[%s17021_s10 + $0x98] sm:$0xff]  ;;  %v10791_v20 = vld [vmem:[%s17018_s7 + $0x26c] sm:$0xf0]  ;;  %v7989_v60 = vld [vmem:[%s17021_s10 + $0x8] sm:$0xff]  ;;  %v15399_v42 = vpop.f32.mrf.mxu1 }
 0x6d7   :  { %17516 = vst [vmem:[#allocation236_spill] sm:$0xff] %v15350_v52  ;;  %8122 = vperm.xlu1 %11071, %v8008_v5   ;;  %v10768_v5 = vld [vmem:[%s17018_s7 + $0x1b4] sm:$0xf0]  ;;  %v9668_v52 = vor.u32 %v10791_v20, %v9667_v23  ;;  %v17517_v23 = vld [vmem:[#allocation103_spill] sm:$0xff] }
 0x6d8   :  { %v15355_v33 = vadd.f32 %v6973_v0, %v6805_v22  ;;  %v9579_v0 = vld [vmem:[%s17018_s7 + $0x198] sm:$0xf]  ;;  %v15392_v22 = vpop.f32.mrf.mxu0 }
 0x6d9   :  { %v4879_v2 = vpop.permute.xlu1 %4878  ;;  %v9580_v58 = vor.u32 %v10768_v5, %v9579_v0  ;;  %v8892_v0 = vld [vmem:[%s17023_s12] sm:$0xff] }
 0x6db   :  { %8157 = vperm.xlu0 %11066, %v8015_v35   ;;  %v9608_v35 = vor.u32 %v10771_v55, %v9605_v16  ;;  %v8005_v55 = vld [vmem:[%s17021_s10 + $0x88] sm:$0xff]  ;;  %v10772_v16 = vld [vmem:[%s17018_s7 + $0x1dc] sm:$0xf] }
 0x6dd   :  { %v6806_v40 = vpop.f32.mrf.mxu3  ;;  %v5169_v56 = vpop.permute.xlu0 %5168 }
 0x6de   :  { %v15394_v30 = vpop.f32.mrf.mxu2  ;;  %8117 = vperm.xlu2 %11070, %v8007_v37   ;;  %v15396_v28 = vadd.f32 %v6806_v40, %v6638_v43  ;;  %v6631_v24 = vadd.f32 %v14895_v19, %v5169_v56  ;;  %7697 = vmatmul.bf16.gmra.mxu1 %v9584_v57  ;;  %v7988_v19 = vld [vmem:[%s17021_s10] sm:$0xff]  ;;  %v6964_v57 = vadd.f32 %v15198_v31, %v15322_v34  ;;  %v15442_v20 = vpop.f32.mrf.mxu1  ;;  %v10779_v40 = vld [vmem:[%s17018_s7 + $0x214] sm:$0xf]  ;;  %v17519_v56 = vld [vmem:[#allocation120_spill] sm:$0xff] }
 0x6df   :  { %8027 = vperm.xlu1 %11071, %v7989_v60   ;;  %v6971_v43 = vadd.f32 %v15294_v9, %v15331_v54  ;;  %v9699_v60 = vld [vmem:[%s17018_s7 + $0x290] sm:$0xf]  ;;  %v9637_v54 = vld [vmem:[%s17018_s7 + $0x230] sm:$0xf0]  ;;  %v6643_v9 = vadd.f32 %v15327_v48, %v15215_v63 }
 0x6e0   :  { %v15402_v50 = vadd.f32 %v15279_v36, %v6631_v24  ;;  %v6486_v36 = vadd.f32 %v17517_v23, %v4879_v2  ;;  %v6978_v34 = vpop.f32.mrf.mxu0  ;;  %v8893_v23 = vld [vmem:[%s17023_s12 + $0x8] sm:$0x1] }
 0x6e1   :  { %v5154_v39 = vpop.permute.xlu1 %5153  ;;  %v15472_v48 = vadd.f32 %v15300_v7, %v6971_v43  ;;  %v17521_v7 = vld [vmem:[#allocation108_spill] sm:$0xff] }
 0x6e2   :  { %7364 = vmatmul.bf16.gmra.mxu3 %v9608_v35  ;;  %v6623_v37 = vadd.f32 %v14808_v53, %v5154_v39  ;;  %7205 = vmatmul.bf16.gmra.mxu2 %v9668_v52  ;;  %v15421_v53 = vadd.f32 %v15200_v29, %v6964_v57  ;;  %v9613_v29 = vld [vmem:[%s17018_s7 + $0x1f8] sm:$0xf0]  ;;  %v10776_v57 = vld [vmem:[%s17018_s7 + $0x1f4] sm:$0xf0] }
 0x6e3   :  { %7528 = vmatmul.bf16.gmra.mxu0 %v9580_v58  ;;  %8062 = vperm.xlu0 %11066, %v7996_v62   ;;  %v17518_v62 = vld [vmem:[#allocation122_spill] sm:$0xff]  ;;  %v9616_v5 = vor.u32 %v10772_v16, %v9613_v29 }
 0x6e4   :  { %v15415_v24 = vadd.f32 %v15194_v59, %v6623_v37  ;;  %v6655_v2 = vadd.f32 %v17518_v62, %v6486_v36  ;;  %v10799_v37 = vld [vmem:[%s17018_s7 + $0x2ac] sm:$0xf0]  ;;  %v7993_v29 = vld [vmem:[%s17021_s10 + $0x28] sm:$0xff] }
 0x6e5   :  { %v6809_v39 = vpop.f32.mrf.mxu3  ;;  %v15423_v58 = vpop.permute.xlu0 %4983 }
 0x6e6   :  { %v15425_v52 = vpop.f32.mrf.mxu2  ;;  %8022 = vperm.xlu2 %11070, %v7988_v19   ;;  %v6810_v31 = vadd.f32 %v6809_v39, %v15026_v21  ;;  %v8012_v21 = vld [vmem:[%s17021_s10 + $0xc0] sm:$0xff]  ;;  %v6824_v35 = vadd.f32 %v17519_v56, %v6655_v2  ;;  %v9611_v19 = vld [vmem:[%s17018_s7 + $0x1d8] sm:$0xf] }
 0x6e7   :  { %8107 = vperm.xlu1 %11071, %v8005_v55   ;;  %v9612_v62 = vor.u32 %v10776_v57, %v9611_v19  ;;  %v17520_v2 = vld [vmem:[#allocation121_spill] sm:$0xff]  ;;  %v10780_v57 = vld [vmem:[%s17018_s7 + $0x21c] sm:$0xf] }
 0x6e8   :  { %v15429_v59 = vadd.f32 %v6978_v34, %v6810_v31  ;;  %v9640_v31 = vor.u32 %v10779_v40, %v9637_v54  ;;  %v9700_v34 = vor.u32 %v10799_v37, %v9699_v60  ;;  %v6993_v16 = vadd.f32 %v17520_v2, %v6824_v35  ;;  %v17522_v35 = vld [vmem:[#allocation57_spill] sm:$0xff]  ;;  %v6980_v19 = vpop.f32.mrf.mxu0 }
 0x6e9   :  { %v15488_v60 = vadd.f32 %v15348_v3, %v15355_v33  ;;  %v6969_v3 = vadd.f32 %v15262_v15, %v15402_v50  ;;  %v6976_v33 = vadd.f32 %v15392_v22, %v15396_v28  ;;  %v10787_v50 = vld [vmem:[%s17018_s7 + $0x254] sm:$0xf] }
 0x6ea   :  { %v9669_v15 = vld [vmem:[%s17018_s7 + $0x270] sm:$0xf0] }
 0x6eb   :  { %8142 = vperm.xlu0 %11066, %v8012_v21   ;;  %v15483_v21 = vpop.f32.mrf.mxu1 }
 0x6ed   :  { %v6811_v63 = vpop.f32.mrf.mxu3  ;;  %v4889_v36 = vpop.permute.xlu0 %4888 }
 0x6ee   :  { %v15474_v55 = vpop.f32.mrf.mxu2  ;;  %8896 = vperm.xlu2 %11070, %v8892_v0   ;;  %v15476_v39 = vadd.f32 %v6811_v63, %v6643_v9  ;;  %7702 = vmatmul.bf16.gmra.mxu1 %v9616_v5  ;;  %v6491_v43 = vadd.f32 %v17521_v7, %v4889_v36  ;;  %v7162_v0 = vadd.f32 %v15352_v25, %v6993_v16  ;;  %v9645_v25 = vld [vmem:[%s17018_s7 + $0x238] sm:$0xf0] }
 0x6ef   :  { %8901 = vperm.xlu1 %11071, %v8893_v23   ;;  %v15511_v63 = vadd.f32 %v15269_v4, %v6969_v3  ;;  %v9648_v36 = vor.u32 %v10780_v57, %v9645_v25  ;;  %v10807_v4 = vld [vmem:[%s17018_s7 + $0x2ec] sm:$0xf0]  ;;  %v15535_v16 = vadd.f32 %v15399_v42, %v6976_v33  ;;  %v17526_v3 = vld [vmem:[#allocation61_spill] sm:$0xff] }
 0x6f0   :  { %v6660_v37 = vadd.f32 %v17522_v35, %v6491_v43  ;;  %v7990_v42 = vld [vmem:[%s17021_s10 + $0x10] sm:$0xff] }
 0x6f2   :  { %7369 = vmatmul.bf16.gmra.mxu3 %v9640_v31  ;;  %7210 = vmatmul.bf16.gmra.mxu2 %v9700_v34  ;;  %v9731_v31 = vld [vmem:[%s17018_s7 + $0x2d0] sm:$0xf]  ;;  %v9643_v34 = vld [vmem:[%s17018_s7 + $0x218] sm:$0xf] }
 0x6f3   :  { %7533 = vmatmul.bf16.gmra.mxu0 %v9612_v62  ;;  %8047 = vperm.xlu0 %11066, %v7993_v29   ;;  %v10784_v62 = vld [vmem:[%s17018_s7 + $0x234] sm:$0xf0]  ;;  %v17524_v29 = vld [vmem:[#allocation111_spill] sm:$0xff] }
 0x6f4   :  { %v6493_v7 = vadd.f32 %v17524_v29, %v15227_v45 }
 0x6f5   :  { %v7330_v5 = vpop.f32.mrf.mxu3  ;;  %v5164_v40 = vpop.permute.xlu0 %5163 }
 0x6f6   :  { %v15490_v54 = vpop.f32.mrf.mxu2  ;;  %v7331_v9 = vadd.f32 %v7330_v5, %v7162_v0  ;;  %v6628_v56 = vadd.f32 %v14875_v13, %v5164_v40  ;;  %v8009_v13 = vld [vmem:[%s17021_s10 + $0xa8] sm:$0xff]  ;;  %v9672_v5 = vor.u32 %v10787_v50, %v9669_v15  ;;  %v9732_v40 = vor.u32 %v10807_v4, %v9731_v31  ;;  %v17527_v50 = vld [vmem:[#allocation112_spill] sm:$0xff] }
 0x6f7   :  { %v6662_v33 = vadd.f32 %v17526_v3, %v6493_v7  ;;  %v6496_v15 = vadd.f32 %v17527_v50, %v15136_v14  ;;  %v9677_v14 = vld [vmem:[%s17018_s7 + $0x278] sm:$0xf0] }
 0x6f8   :  { %v15505_v23 = vadd.f32 %v15258_v18, %v6628_v56  ;;  %v17523_v18 = vld [vmem:[#allocation124_spill] sm:$0xff]  ;;  %v9644_v56 = vor.u32 %v10784_v62, %v9643_v34  ;;  %v17529_v62 = vld [vmem:[#allocation105_spill] sm:$0xff] }
 0x6f9   :  { %v6829_v22 = vadd.f32 %v17523_v18, %v6660_v37  ;;  %v17525_v37 = vld [vmem:[#allocation67_spill] sm:$0xff]  ;;  %v17534_v3 = vld [vmem:[#allocation96_spill] sm:$0xff] }
 0x6fb   :  { %8127 = vperm.xlu0 %11066, %v8009_v13   ;;  %v7668_v28 = vpop.f32.mrf.mxu1  ;;  %v6998_v57 = vadd.f32 %v17525_v37, %v6829_v22 }
 0x6fd   :  { %v15532_v2 = vpop.f32.mrf.mxu3  ;;  %v15539_v43 = vpop.permute.xlu0 %5068 }
 0x6fe   :  { %v15541_v0 = vpop.f32.mrf.mxu2  ;;  %7707 = vmatmul.bf16.gmra.mxu1 %v9648_v36  ;;  %v7167_v36 = vadd.f32 %v15425_v52, %v6998_v57  ;;  %v10788_v52 = vld [vmem:[%s17018_s7 + $0x25c] sm:$0xf] }
 0x700   :  { %v7499_v35 = vpop.f32.mrf.mxu0 }
 0x701   :  { %v7500_v25 = vadd.f32 %v7499_v35, %v7331_v9  ;;  %v17528_v9 = vld [vmem:[#allocation97_spill] sm:$0xff] }
 0x702   :  { %7374 = vmatmul.bf16.gmra.mxu3 %v9672_v5  ;;  %7215 = vmatmul.bf16.gmra.mxu2 %v9732_v40  ;;  %v6831_v18 = vadd.f32 %v17528_v9, %v6662_v33  ;;  %v17530_v5 = vld [vmem:[#allocation116_spill] sm:$0xff]  ;;  %v17531_v35 = vld [vmem:[#allocation25_spill] sm:$0xff] }
 0x703   :  { %v15548_v45 = vadd.f32 %v7668_v28, %v7500_v25  ;;  %7538 = vmatmul.bf16.gmra.mxu0 %v9644_v56  ;;  %8032 = vperm.xlu0 %11066, %v7990_v42   ;;  %v7670_v13 = vpop.f32.mrf.mxu1  ;;  %v15558_v28 = vadd.f32 %v15442_v20, %v15429_v59  ;;  %v6506_v40 = vadd.f32 %v17530_v5, %v15196_v51  ;;  %v8006_v59 = vld [vmem:[%s17021_s10 + $0x90] sm:$0xff]  ;;  %v17532_v20 = vld [vmem:[#allocation42_spill] sm:$0xff]  ;;  %v17533_v25 = vld [vmem:[#allocation100_spill] sm:$0xff] }
 0x704   :  { %v6981_v56 = vadd.f32 %v6980_v19, %v15476_v39  ;;  %v6665_v57 = vadd.f32 %v17532_v20, %v6496_v15  ;;  %v7000_v42 = vadd.f32 %v17533_v25, %v6831_v18  ;;  %v10795_v51 = vld [vmem:[%s17018_s7 + $0x294] sm:$0xf]  ;;  %v10815_v15 = vld [vmem:[%s17018_s7 + $0x32c] sm:$0xf0]  ;;  %v9675_v9 = vld [vmem:[%s17018_s7 + $0x258] sm:$0xf] }
 0x705   :  { %v7335_v31 = vpop.f32.mrf.mxu3  ;;  %v4884_v22 = vpop.permute.xlu0 %4883  ;;  %v9701_v39 = vld [vmem:[%s17018_s7 + $0x2b0] sm:$0xf0]  ;;  %v10792_v18 = vld [vmem:[%s17018_s7 + $0x274] sm:$0xf0] }
 0x706   :  { %v15554_v4 = vpop.f32.mrf.mxu2  ;;  %v7336_v34 = vadd.f32 %v7335_v31, %v7167_v36  ;;  %v6488_v29 = vadd.f32 %v17529_v62, %v4884_v22  ;;  %v9680_v36 = vor.u32 %v10788_v52, %v9677_v14  ;;  %v9763_v31 = vld [vmem:[%s17018_s7 + $0x310] sm:$0xf]  ;;  %v7169_v19 = vadd.f32 %v15474_v55, %v7000_v42  ;;  %v17536_v14 = vld [vmem:[#allocation113_spill] sm:$0xff] }
 0x707   :  { %v6675_v22 = vadd.f32 %v13772_v17, %v6506_v40  ;;  %v17535_v62 = vld [vmem:[#allocation123_spill] sm:$0xff]  ;;  %v15599_v55 = vadd.f32 %v15483_v21, %v6981_v56  ;;  %v6498_v5 = vadd.f32 %v17536_v14, %v15207_v38  ;;  %v9704_v25 = vor.u32 %v10795_v51, %v9701_v39  ;;  %v8004_v21 = vld [vmem:[%s17021_s10 + $0x80] sm:$0xff]  ;;  %v17538_v38 = vld [vmem:[#allocation126_spill] sm:$0xff] }
 0x708   :  { %v7501_v7 = vpop.f32.mrf.mxu0  ;;  %v6657_v37 = vadd.f32 %v17531_v35, %v6488_v29  ;;  %v17537_v35 = vld [vmem:[#allocation101_spill] sm:$0xff]  ;;  %v9676_v17 = vor.u32 %v10792_v18, %v9675_v9  ;;  %v17542_v9 = vld [vmem:[#allocation114_spill] sm:$0xff] }
 0x709   :  { %v6844_v56 = vadd.f32 %v17538_v38, %v6675_v22  ;;  %v6501_v18 = vadd.f32 %v17542_v9, %v15099_v41  ;;  %v17543_v22 = vld [vmem:[#allocation80_spill] sm:$0xff] }
 0x70a   :  { %v6826_v33 = vadd.f32 %v17534_v3, %v6657_v37  ;;  %v6834_v37 = vadd.f32 %v17537_v35, %v6665_v57  ;;  %v9764_v3 = vor.u32 %v10815_v15, %v9763_v31  ;;  %v17539_v57 = vld [vmem:[#allocation104_spill] sm:$0xff]  ;;  %v17540_v35 = vld [vmem:[#allocation71_spill] sm:$0xff]  ;;  %v17541_v31 = vld [vmem:[#allocation49_spill] sm:$0xff] }
 0x70b   :  { %8112 = vperm.xlu0 %11066, %v8006_v59   ;;  %v7673_v50 = vpop.f32.mrf.mxu1  ;;  %v6667_v14 = vadd.f32 %v17539_v57, %v6498_v5  ;;  %v7013_v39 = vadd.f32 %v17541_v31, %v6844_v56  ;;  %v10823_v56 = vld [vmem:[%s17018_s7 + $0x36c] sm:$0xf0]  ;;  %v9707_v57 = vld [vmem:[%s17018_s7 + $0x298] sm:$0xf] }
 0x70c   :  { %v6995_v29 = vadd.f32 %v17535_v62, %v6826_v33 }
 0x70d   :  { %v7337_v52 = vpop.f32.mrf.mxu3 }
 0x70e   :  { %v15604_v59 = vpop.f32.mrf.mxu2  ;;  %v7338_v20 = vadd.f32 %v7337_v52, %v7169_v19  ;;  %v7164_v42 = vadd.f32 %v15394_v30, %v6995_v29  ;;  %7712 = vmatmul.bf16.gmra.mxu1 %v9680_v36  ;;  %v7003_v19 = vadd.f32 %v17540_v35, %v6834_v37  ;;  %v6836_v29 = vadd.f32 %v17543_v22, %v6667_v14  ;;  %v10800_v14 = vld [vmem:[%s17018_s7 + $0x2b4] sm:$0xf0] }
 0x70f   :  { %v9708_v9 = vor.u32 %v10800_v14, %v9707_v57 }
 0x710   :  { %v7504_v40 = vpop.f32.mrf.mxu0  ;;  %v7333_v33 = vadd.f32 %v15532_v2, %v7164_v42  ;;  %v7172_v36 = vadd.f32 %v15490_v54, %v7003_v19  ;;  %v10796_v54 = vld [vmem:[%s17018_s7 + $0x29c] sm:$0xf]  ;;  %v17546_v19 = vld [vmem:[#allocation115_spill] sm:$0xff] }
 0x711   :  { %v7505_v62 = vadd.f32 %v7504_v40, %v7336_v34 }
 0x712   :  { %7379 = vmatmul.bf16.gmra.mxu3 %v9704_v25  ;;  %v7502_v51 = vadd.f32 %v7501_v7, %v7333_v33  ;;  %7220 = vmatmul.bf16.gmra.mxu2 %v9764_v3  ;;  %v17544_v25 = vld [vmem:[#allocation125_spill] sm:$0xff]  ;;  %v17545_v3 = vld [vmem:[#allocation16_spill] sm:$0xff]  ;;  %v9795_v33 = vld [vmem:[%s17018_s7 + $0x350] sm:$0xf] }
 0x713   :  { %v15614_v30 = vadd.f32 %v7673_v50, %v7505_v62  ;;  %7543 = vmatmul.bf16.gmra.mxu0 %v9676_v17  ;;  %8102 = vperm.xlu0 %11066, %v8004_v21   ;;  %v7675_v2 = vpop.f32.mrf.mxu1  ;;  %v6670_v42 = vadd.f32 %v17544_v25, %v6501_v18  ;;  %v7005_v41 = vadd.f32 %v17545_v3, %v6836_v29  ;;  %v10803_v62 = vld [vmem:[%s17018_s7 + $0x2d4] sm:$0xf]  ;;  %v17548_v29 = vld [vmem:[#allocation72_spill] sm:$0xff] }
 0x714   :  { %v15617_v34 = vadd.f32 %v7670_v13, %v7502_v51  ;;  %v9709_v13 = vld [vmem:[%s17018_s7 + $0x2b8] sm:$0xf0]  ;;  %v9733_v21 = vld [vmem:[%s17018_s7 + $0x2f0] sm:$0xf0]  ;;  %v6503_v51 = vadd.f32 %v17546_v19, %v15281_v44 }
 0x715   :  { %v7340_v15 = vpop.f32.mrf.mxu3  ;;  %v9712_v40 = vor.u32 %v10796_v54, %v9709_v13  ;;  %v10811_v19 = vld [vmem:[%s17018_s7 + $0x314] sm:$0xf] }
 0x716   :  { %v7181_v52 = vpop.f32.mrf.mxu2  ;;  %v7341_v7 = vadd.f32 %v7340_v15, %v7172_v36  ;;  %v17547_v36 = vld [vmem:[#allocation13_spill] sm:$0xff]  ;;  %v9796_v15 = vor.u32 %v10823_v56, %v9795_v33 }
 0x717   :  { %v15623_v50 = vadd.f32 %v7181_v52, %v7013_v39  ;;  %v9736_v39 = vor.u32 %v10803_v62, %v9733_v21  ;;  %v6672_v52 = vadd.f32 %v17548_v29, %v6503_v51  ;;  %v9741_v62 = vld [vmem:[%s17018_s7 + $0x2f8] sm:$0xf0]  ;;  %v7829_v21 = vmax.f32 %v15617_v34, 0.0  ;;  %v9765_v51 = vld [vmem:[%s17018_s7 + $0x330] sm:$0xf0] }
 0x718   :  { %v7506_v5 = vpop.f32.mrf.mxu0 }
 0x719   :  { %v7507_v37 = vadd.f32 %v7506_v5, %v7338_v20  ;;  %v7174_v20 = vadd.f32 %v15541_v0, %v7005_v41  ;;  %v17549_v5 = vld [vmem:[#allocation85_spill] sm:$0xff] }
 0x71b   :  { %v15633_v17 = vadd.f32 %v7675_v2, %v7507_v37  ;;  %v7678_v38 = vpop.f32.mrf.mxu1  ;;  %v6839_v2 = vadd.f32 %v17547_v36, %v6670_v42  ;;  %v17550_v42 = vld [vmem:[#allocation62_spill] sm:$0xff] }
 0x71c   :  { %v6841_v3 = vadd.f32 %v17550_v42, %v6672_v52 }
 0x71d   :  { %v7342_v35 = vpop.f32.mrf.mxu3  ;;  %v7008_v54 = vadd.f32 %v17549_v5, %v6839_v2  ;;  %v9739_v2 = vld [vmem:[%s17018_s7 + $0x2d8] sm:$0xf] }
 0x71e   :  { %v15657_v0 = vpop.f32.mrf.mxu2  ;;  %v7343_v31 = vadd.f32 %v7342_v35, %v7174_v20  ;;  %7717 = vmatmul.bf16.gmra.mxu1 %v9712_v40  ;;  %v9827_v35 = vld [vmem:[%s17018_s7 + $0x390] sm:$0xf] }
 0x71f   :  { %v7177_v44 = vadd.f32 %v15554_v4, %v7008_v54  ;;  %v7828_v4 = vmax.f32 %v15548_v45, 0.0  ;;  %v10831_v45 = vld [vmem:[%s17018_s7 + $0x3ac] sm:$0xf0]  ;;  %v7830_v54 = vmax.f32 %v15614_v30, 0.0  ;;  %v9773_v30 = vld [vmem:[%s17018_s7 + $0x338] sm:$0xf0] }
 0x720   :  { %v7509_v18 = vpop.f32.mrf.mxu0  ;;  %v9828_v29 = vor.u32 %v10831_v45, %v9827_v35  ;;  %v9771_v35 = vld [vmem:[%s17018_s7 + $0x318] sm:$0xf] }
 0x721   :  { %v7510_v22 = vadd.f32 %v7509_v18, %v7341_v7  ;;  %v10804_v7 = vld [vmem:[%s17018_s7 + $0x2dc] sm:$0xf] }
 0x722   :  { %7384 = vmatmul.bf16.gmra.mxu3 %v9736_v39  ;;  %7225 = vmatmul.bf16.gmra.mxu2 %v9796_v15  ;;  %v9744_v14 = vor.u32 %v10804_v7, %v9741_v62  ;;  %v15695_v15 = vpack.c.bf16 %v7829_v21, %v7828_v4  ;;  %v10812_v62 = vld [vmem:[%s17018_s7 + $0x31c] sm:$0xf]  ;;  %v9859_v4 = vld [vmem:[%s17018_s7 + $0x3d0] sm:$0xf] }
 0x723   :  { %v15661_v13 = vadd.f32 %v7678_v38, %v7510_v22  ;;  %7548 = vmatmul.bf16.gmra.mxu0 %v9708_v9  ;;  %v7680_v37 = vpop.f32.mrf.mxu1  ;;  %v17551_v38 = vld [vmem:[#allocation88_spill] sm:$0xff]  ;;  %v7831_v22 = vmax.f32 %v15633_v17, 0.0 }
 0x724   :  { %v7010_v56 = vadd.f32 %v17551_v38, %v6841_v3  ;;  %v9797_v38 = vld [vmem:[%s17018_s7 + $0x370] sm:$0xf0] }
 0x725   :  { %v7345_v25 = vpop.f32.mrf.mxu3 }
 0x726   :  { %v15665_v41 = vpop.f32.mrf.mxu2  ;;  %v7346_v40 = vadd.f32 %v7345_v25, %v7177_v44  ;;  %v7179_v34 = vadd.f32 %v15604_v59, %v7010_v56  ;;  %v9768_v59 = vor.u32 %v10811_v19, %v9765_v51  ;;  %v15703_v25 = vpack.c.bf16 %v7831_v22, %v7830_v54  ;;  %v10816_v19 = vld [vmem:[%s17018_s7 + $0x334] sm:$0xf0] }
 0x728   :  { %v7511_v33 = vpop.f32.mrf.mxu0 }
 0x729   :  { %v7512_v20 = vadd.f32 %v7511_v33, %v7343_v31  ;;  %v10808_v31 = vld [vmem:[%s17018_s7 + $0x2f4] sm:$0xf0] }
 0x72a   :  { %v9740_v52 = vor.u32 %v10808_v31, %v9739_v2  ;;  %v9772_v31 = vor.u32 %v10816_v19, %v9771_v35 }
 0x72b   :  { %v7681_v57 = vadd.f32 %v7680_v37, %v7512_v20  ;;  %v7683_v36 = vpop.f32.mrf.mxu1  ;;  %v9776_v20 = vor.u32 %v10812_v62, %v9773_v30  ;;  %v10847_v30 = vld [vmem:[%s17018_s7 + $0x42c] sm:$0xf0] }
 0x72d   :  { %v7347_v39 = vpop.f32.mrf.mxu3  ;;  %v7833_v45 = vmax.f32 %v7681_v57, 0.0 }
 0x72e   :  { %v15697_v9 = vpop.f32.mrf.mxu2  ;;  %v7348_v18 = vadd.f32 %v7347_v39, %v7179_v34  ;;  %7722 = vmatmul.bf16.gmra.mxu1 %v9744_v14  ;;  %v10839_v14 = vld [vmem:[%s17018_s7 + $0x3ec] sm:$0xf0] }
 0x72f   :  { %v9860_v2 = vor.u32 %v10839_v14, %v9859_v4 }
 0x730   :  { %v7514_v5 = vpop.f32.mrf.mxu0 }
 0x731   :  { %v7515_v44 = vadd.f32 %v7514_v5, %v7346_v40 }
 0x732   :  { %7389 = vmatmul.bf16.gmra.mxu3 %v9768_v59  ;;  %7230 = vmatmul.bf16.gmra.mxu2 %v9828_v29 }
 0x733   :  { %v15701_v37 = vadd.f32 %v7683_v36, %v7515_v44  ;;  %7553 = vmatmul.bf16.gmra.mxu0 %v9740_v52  ;;  %v7685_v42 = vpop.f32.mrf.mxu1  ;;  %v9805_v44 = vld [vmem:[%s17018_s7 + $0x378] sm:$0xf0] }
 0x735   :  { %v7350_v3 = vpop.f32.mrf.mxu3 }
 0x736   :  { %v15705_v33 = vpop.f32.mrf.mxu2  ;;  %v7351_v17 = vadd.f32 %v7350_v3, %v15623_v50  ;;  %v10819_v50 = vld [vmem:[%s17018_s7 + $0x354] sm:$0xf]  ;;  %v9891_v3 = vld [vmem:[%s17018_s7 + $0x410] sm:$0xf] }
 0x737   :  { %v9800_v36 = vor.u32 %v10819_v50, %v9797_v38  ;;  %v9892_v19 = vor.u32 %v10847_v30, %v9891_v3  ;;  %v10828_v30 = vld [vmem:[%s17018_s7 + $0x39c] sm:$0xf] }
 0x738   :  { %v7516_v7 = vpop.f32.mrf.mxu0 }
 0x739   :  { %v7517_v40 = vadd.f32 %v7516_v7, %v7348_v18  ;;  %v7832_v18 = vmax.f32 %v15661_v13, 0.0  ;;  %v10820_v13 = vld [vmem:[%s17018_s7 + $0x35c] sm:$0xf]  ;;  %v9829_v7 = vld [vmem:[%s17018_s7 + $0x3b0] sm:$0xf0] }
 0x73b   :  { %v7686_v21 = vadd.f32 %v7685_v42, %v7517_v40  ;;  %v7688_v56 = vpop.f32.mrf.mxu1  ;;  %v15739_v29 = vpack.c.bf16 %v7833_v45, %v7832_v18  ;;  %v9808_v42 = vor.u32 %v10820_v13, %v9805_v44  ;;  %v9803_v40 = vld [vmem:[%s17018_s7 + $0x358] sm:$0xf]  ;;  %v17553_v45 = vld [vmem:[#allocation119_spill] sm:$0xff]  ;;  %v17554_v18 = vld [vmem:[#allocation93_spill] sm:$0xff] }
 0x73d   :  { %v15732_v51 = vpop.f32.mrf.mxu3  ;;  %v7835_v35 = vmax.f32 %v7686_v21, 0.0 }
 0x73e   :  { %v15734_v34 = vpop.f32.mrf.mxu2  ;;  %7727 = vmatmul.bf16.gmra.mxu1 %v9776_v20  ;;  %v10824_v20 = vld [vmem:[%s17018_s7 + $0x374] sm:$0xf0] }
 0x740   :  { %v7519_v39 = vpop.f32.mrf.mxu0 }
 0x741   :  { %v7520_v59 = vadd.f32 %v7519_v39, %v7351_v17  ;;  %v10827_v17 = vld [vmem:[%s17018_s7 + $0x394] sm:$0xf]  ;;  %v7834_v39 = vmax.f32 %v15701_v37, 0.0 }
 0x742   :  { %7394 = vmatmul.bf16.gmra.mxu3 %v9800_v36  ;;  %7235 = vmatmul.bf16.gmra.mxu2 %v9860_v2  ;;  %v9832_v38 = vor.u32 %v10827_v17, %v9829_v7  ;;  %v9804_v36 = vor.u32 %v10824_v20, %v9803_v40  ;;  %v6511_v2 = vadd.f32 %v17553_v45, %v15130_v32  ;;  %v17555_v17 = vld [vmem:[#allocation107_spill] sm:$0xff]  ;;  %v17556_v40 = vld [vmem:[#allocation20_spill] sm:$0xff] }
 0x743   :  { %v15737_v22 = vadd.f32 %v7688_v56, %v7520_v59  ;;  %7558 = vmatmul.bf16.gmra.mxu0 %v9772_v31  ;;  %v15741_v52 = vpop.f32.mrf.mxu1  ;;  %v17552_v56 = vld [vmem:[#allocation44_spill] sm:$0xff]  ;;  %v6516_v59 = vadd.f32 %v17554_v18, %v14893_v8  ;;  %v15785_v44 = vpack.c.bf16 %v7835_v35, %v7834_v39  ;;  %v6518_v8 = vadd.f32 %v17555_v17, %v15081_v1  ;;  %v10835_v1 = vld [vmem:[%s17018_s7 + $0x3d4] sm:$0xf] }
 0x744   :  { %v6513_v14 = vadd.f32 %v17552_v56, %v14888_v47  ;;  %v6680_v47 = vadd.f32 %v13830_v26, %v6511_v2  ;;  %v9837_v26 = vld [vmem:[%s17018_s7 + $0x3b8] sm:$0xf0]  ;;  %v17558_v35 = vld [vmem:[#allocation39_spill] sm:$0xff]  ;;  %v9835_v45 = vld [vmem:[%s17018_s7 + $0x398] sm:$0xf] }
 0x745   :  { %v15743_v5 = vpop.f32.mrf.mxu3  ;;  %v6685_v3 = vadd.f32 %v13888_v6, %v6516_v59  ;;  %v6687_v20 = vadd.f32 %v13923_v10, %v6518_v8  ;;  %v9840_v56 = vor.u32 %v10828_v30, %v9837_v26  ;;  %v10855_v10 = vld [vmem:[%s17018_s7 + $0x46c] sm:$0xf0]  ;;  %v10832_v2 = vld [vmem:[%s17018_s7 + $0x3b4] sm:$0xf0] }
 0x746   :  { %v15745_v54 = vpop.f32.mrf.mxu2  ;;  %v6682_v13 = vadd.f32 %v13865_v46, %v6513_v14  ;;  %v6849_v7 = vadd.f32 %v13810_v12, %v6680_v47  ;;  %v9923_v12 = vld [vmem:[%s17018_s7 + $0x450] sm:$0xf]  ;;  %v9861_v14 = vld [vmem:[%s17018_s7 + $0x3f0] sm:$0xf0]  ;;  %v9836_v30 = vor.u32 %v10832_v2, %v9835_v45 }
 0x747   :  { %v6854_v6 = vadd.f32 %v17556_v40, %v6685_v3  ;;  %v6856_v17 = vadd.f32 %v13893_v49, %v6687_v20  ;;  %v17562_v49 = vld [vmem:[#allocation81_spill] sm:$0xff] }
 0x748   :  { %v15747_v57 = vpop.f32.mrf.mxu0  ;;  %v6851_v37 = vadd.f32 %v13835_v61, %v6682_v13  ;;  %v17559_v13 = vld [vmem:[#allocation68_spill] sm:$0xff] }
 0x749   :  { %v7023_v47 = vadd.f32 %v17559_v13, %v6854_v6  ;;  %v17561_v6 = vld [vmem:[#allocation40_spill] sm:$0xff] }
 0x74b   :  { %v15764_v62 = vpop.f32.mrf.mxu1 }
 0x74d   :  { %v7357_v4 = vpop.f32.mrf.mxu3 }
 0x74e   :  { %v15775_v50 = vpop.f32.mrf.mxu2  ;;  %7732 = vmatmul.bf16.gmra.mxu1 %v9808_v42 }
 0x750   :  { %v7524_v31 = vpop.f32.mrf.mxu0 }
 0x752   :  { %7399 = vmatmul.bf16.gmra.mxu3 %v9832_v38  ;;  %7240 = vmatmul.bf16.gmra.mxu2 %v9892_v19  ;;  %v17557_v38 = vld [vmem:[#allocation9_spill] sm:$0xff]  ;;  %v7018_v19 = vadd.f32 %v17558_v35, %v6849_v7  ;;  %v9924_v7 = vor.u32 %v10855_v10, %v9923_v12  ;;  %v6521_v35 = vadd.f32 %v17561_v6, %v15007_v27  ;;  %v17565_v10 = vld [vmem:[#allocation28_spill] sm:$0xff]  ;;  %v17566_v27 = vld [vmem:[#allocation54_spill] sm:$0xff] }
 0x753   :  { %7563 = vmatmul.bf16.gmra.mxu0 %v9804_v36  ;;  %v7695_v21 = vpop.f32.mrf.mxu1  ;;  %v7020_v61 = vadd.f32 %v17557_v38, %v6851_v37  ;;  %v9864_v37 = vor.u32 %v10835_v1, %v9861_v14  ;;  %v17560_v38 = vld [vmem:[#allocation31_spill] sm:$0xff]  ;;  %v4959_v1 = vpop.permute.xlu0 %4958  ;;  %v17573_v6 = vld [vmem:[#allocation50_spill] sm:$0xff] }
 0x754   :  { %v7187_v59 = vadd.f32 %v15665_v41, %v7018_v19 }
 0x755   :  { %v7360_v42 = vpop.f32.mrf.mxu3  ;;  %v7189_v39 = vadd.f32 %v15697_v9, %v7020_v61  ;;  %v6533_v9 = vadd.f32 %v17560_v38, %v15337_v11  ;;  %v7192_v61 = vadd.f32 %v15705_v33, %v7023_v47 }
 0x756   :  { %v15789_v32 = vpop.f32.mrf.mxu2  ;;  %v7356_v26 = vadd.f32 %v15743_v5, %v7187_v59  ;;  %v17564_v5 = vld [vmem:[#allocation36_spill] sm:$0xff] }
 0x757   :  { %v7358_v8 = vadd.f32 %v7357_v4, %v7189_v39  ;;  %v7025_v4 = vadd.f32 %v17562_v49, %v6856_v17  ;;  %v7361_v20 = vadd.f32 %v7360_v42, %v7192_v61  ;;  %v6702_v11 = vadd.f32 %v17565_v10, %v6533_v9  ;;  %v17567_v39 = vld [vmem:[#allocation86_spill] sm:$0xff] }
 0x758   :  { %v7526_v46 = vpop.f32.mrf.mxu0  ;;  %v7525_v19 = vadd.f32 %v7524_v31, %v7356_v26  ;;  %v6690_v31 = vadd.f32 %v17566_v27, %v6521_v35  ;;  %v6526_v59 = vadd.f32 %v17567_v39, %v4959_v1  ;;  %v4964_v1 = vpop.permute.xlu2 %4963  ;;  %v17575_v10 = vld [vmem:[#allocation198_spill] sm:$0xff]  ;;  %v10863_v27 = vld [vmem:[%s17018_s7 + $0x4ac] sm:$0xf0]  ;;  %v10840_v39 = vld [vmem:[%s17018_s7 + $0x3f4] sm:$0xf0] }
 0x759   :  { %v7527_v41 = vadd.f32 %v7526_v46, %v7358_v8  ;;  %v7194_v33 = vadd.f32 %v15734_v34, %v7025_v4  ;;  %v17569_v8 = vld [vmem:[#allocation229_spill] sm:$0xff]  ;;  %v10836_v34 = vld [vmem:[%s17018_s7 + $0x3dc] sm:$0xf] }
 0x75a   :  { %v7694_v13 = vadd.f32 %v15764_v62, %v7525_v19  ;;  %v6859_v35 = vadd.f32 %v17573_v6, %v6690_v31  ;;  %v9867_v31 = vld [vmem:[%s17018_s7 + $0x3d8] sm:$0xf] }
 0x75b   :  { %v7698_v36 = vpop.f32.mrf.mxu1  ;;  %v7696_v46 = vadd.f32 %v7695_v21, %v7527_v41  ;;  %v9869_v21 = vld [vmem:[%s17018_s7 + $0x3f8] sm:$0xf0] }
 0x75c   :  { %v7838_v19 = vmax.f32 %v7694_v13, 0.0  ;;  %v9872_v4 = vor.u32 %v10836_v34, %v9869_v21  ;;  %v17581_v21 = vld [vmem:[#allocation30_spill] sm:$0xff] }
 0x75d   :  { %v7362_v18 = vpop.f32.mrf.mxu3  ;;  %v7839_v62 = vmax.f32 %v7696_v46, 0.0  ;;  %v17577_v46 = vld [vmem:[#allocation130_spill] sm:$0xff] }
 0x75e   :  { %v15826_v3 = vpop.f32.mrf.mxu2  ;;  %7737 = vmatmul.bf16.gmra.mxu1 %v9840_v56  ;;  %v17563_v56 = vld [vmem:[#allocation191_spill] sm:$0xff]  ;;  %v7363_v47 = vadd.f32 %v7362_v18, %v7194_v33  ;;  %v17572_v18 = vld [vmem:[#allocation69_spill] sm:$0xff] }
 0x75f   :  { %v6523_v12 = vadd.f32 %v17564_v5, %v17563_v56  ;;  %v6695_v41 = vadd.f32 %v17572_v18, %v6526_v59  ;;  %v10843_v56 = vld [vmem:[%s17018_s7 + $0x414] sm:$0xf] }
 0x760   :  { %v7529_v40 = vpop.f32.mrf.mxu0  ;;  %v17574_v5 = vld [vmem:[#allocation47_spill] sm:$0xff] }
 0x761   :  { %v7530_v45 = vadd.f32 %v7529_v40, %v7361_v20  ;;  %v17571_v40 = vld [vmem:[#allocation128_spill] sm:$0xff]  ;;  %v9955_v20 = vld [vmem:[%s17018_s7 + $0x490] sm:$0xf] }
 0x762   :  { %7404 = vmatmul.bf16.gmra.mxu3 %v9864_v37  ;;  %7245 = vmatmul.bf16.gmra.mxu2 %v9924_v7  ;;  %v17568_v37 = vld [vmem:[#allocation23_spill] sm:$0xff]  ;;  %v17570_v7 = vld [vmem:[#allocation34_spill] sm:$0xff]  ;;  %v6871_v38 = vadd.f32 %v17571_v40, %v6702_v11  ;;  %v6864_v40 = vadd.f32 %v17581_v21, %v6695_v41 }
 0x763   :  { %7568 = vmatmul.bf16.gmra.mxu0 %v9836_v30  ;;  %v7700_v14 = vpop.f32.mrf.mxu1  ;;  %v6692_v17 = vadd.f32 %v17568_v37, %v6523_v12  ;;  %v6536_v30 = vadd.f32 %v17570_v7, %v17569_v8  ;;  %v7699_v9 = vadd.f32 %v7698_v36, %v7530_v45  ;;  %v9893_v36 = vld [vmem:[%s17018_s7 + $0x430] sm:$0xf0]  ;;  %v17576_v11 = vld [vmem:[#allocation118_spill] sm:$0xff]  ;;  %v15880_v8 = vpack.c.bf16 %v7839_v62, %v7838_v19  ;;  %v17579_v7 = vld [vmem:[#allocation92_spill] sm:$0xff] }
 0x764   :  { %v6508_v33 = vadd.f32 %v17576_v11, %v17575_v10  ;;  %v9896_v18 = vor.u32 %v10843_v56, %v9893_v36  ;;  %v9868_v10 = vor.u32 %v10840_v39, %v9867_v31  ;;  %v17583_v62 = vld [vmem:[#allocation63_spill] sm:$0xff]  ;;  %v17588_v31 = vld [vmem:[#allocation82_spill] sm:$0xff] }
 0x765   :  { %v7365_v2 = vpop.f32.mrf.mxu3  ;;  %v6861_v12 = vadd.f32 %v17574_v5, %v6692_v17  ;;  %v7840_v59 = vmax.f32 %v7699_v9, 0.0  ;;  %v9956_v5 = vor.u32 %v10863_v27, %v9955_v20  ;;  %v6538_v19 = vadd.f32 %v17583_v62, %v15423_v58  ;;  %v17585_v41 = vld [vmem:[#allocation79_spill] sm:$0xff]  ;;  %v17589_v58 = vld [vmem:[#allocation74_spill] sm:$0xff] }
 0x766   :  { %v15843_v42 = vpop.f32.mrf.mxu2  ;;  %v17586_v56 = vld [vmem:[#allocation27_spill] sm:$0xff]  ;;  %v17596_v62 = vld [vmem:[#allocation66_spill] sm:$0xff] }
 0x767   :  { %v7033_v36 = vadd.f32 %v17586_v56, %v6864_v40 }
 0x768   :  { %v7531_v26 = vpop.f32.mrf.mxu0 }
 0x769   :  { %v7532_v61 = vadd.f32 %v7531_v26, %v7363_v47  ;;  %v17578_v47 = vld [vmem:[#allocation19_spill] sm:$0xff]  ;;  %v17580_v26 = vld [vmem:[#allocation76_spill] sm:$0xff]  ;;  %v7202_v39 = vadd.f32 %v15789_v32, %v7033_v36  ;;  %v17594_v32 = vld [vmem:[#allocation37_spill] sm:$0xff] }
 0x76a   :  { %v7040_v37 = vadd.f32 %v17578_v47, %v6871_v38  ;;  %v7028_v34 = vadd.f32 %v17580_v26, %v6859_v35  ;;  %v17584_v35 = vld [vmem:[#allocation129_spill] sm:$0xff]  ;;  %v17591_v26 = vld [vmem:[#allocation231_spill] sm:$0xff] }
 0x76b   :  { %v7701_v49 = vadd.f32 %v7700_v14, %v7532_v61  ;;  %v6705_v14 = vadd.f32 %v17577_v46, %v6536_v30  ;;  %v7703_v45 = vpop.f32.mrf.mxu1  ;;  %v6528_v30 = vadd.f32 %v17579_v7, %v4964_v1  ;;  %v17599_v36 = vld [vmem:[#allocation73_spill] sm:$0xff] }
 0x76c   :  { %v7197_v1 = vadd.f32 %v15745_v54, %v7028_v34  ;;  %v17592_v34 = vld [vmem:[#allocation98_spill] sm:$0xff] }
 0x76d   :  { %v7841_v13 = vmax.f32 %v7701_v49, 0.0  ;;  %v7367_v17 = vpop.f32.mrf.mxu3  ;;  %v17582_v49 = vld [vmem:[#allocation33_spill] sm:$0xff]  ;;  %v6874_v46 = vadd.f32 %v17584_v35, %v6705_v14  ;;  %v6697_v47 = vadd.f32 %v17585_v41, %v6528_v30  ;;  %v6531_v21 = vadd.f32 %v17592_v34, %v17591_v26 }
 0x76e   :  { %v7208_v61 = vpop.f32.mrf.mxu2  ;;  %7742 = vmatmul.bf16.gmra.mxu1 %v9872_v4  ;;  %v6677_v38 = vadd.f32 %v17582_v49, %v6508_v33  ;;  %v17587_v4 = vld [vmem:[#allocation53_spill] sm:$0xff]  ;;  %v7366_v27 = vadd.f32 %v7365_v2, %v7197_v1  ;;  %v17597_v1 = vld [vmem:[#allocation131_spill] sm:$0xff] }
 0x76f   :  { %v15885_v6 = vadd.f32 %v7208_v61, %v7040_v37  ;;  %v15887_v9 = vpack.c.bf16 %v7841_v13, %v7840_v59  ;;  %v7030_v20 = vadd.f32 %v17587_v4, %v6861_v12  ;;  %v6707_v13 = vadd.f32 %v17589_v58, %v6538_v19  ;;  %v17590_v37 = vld [vmem:[#allocation60_spill] sm:$0xff]  ;;  %v17593_v12 = vld [vmem:[#allocation77_spill] sm:$0xff] }
 0x770   :  { %v7534_v11 = vpop.f32.mrf.mxu0  ;;  %v6846_v33 = vadd.f32 %v17588_v31, %v6677_v38  ;;  %v7043_v7 = vadd.f32 %v17590_v37, %v6874_v46  ;;  %v6866_v2 = vadd.f32 %v17593_v12, %v6697_v47  ;;  %v9901_v38 = vld [vmem:[%s17018_s7 + $0x438] sm:$0xf0]  ;;  %v17598_v41 = vld [vmem:[#allocation45_spill] sm:$0xff]  ;;  %v9987_v31 = vld [vmem:[%s17018_s7 + $0x4d0] sm:$0xf] }
 0x771   :  { %v7199_v54 = vadd.f32 %v15775_v50, %v7030_v20  ;;  %v7535_v14 = vadd.f32 %v7534_v11, %v7366_v27  ;;  %v10844_v50 = vld [vmem:[%s17018_s7 + $0x41c] sm:$0xf]  ;;  %v17595_v11 = vld [vmem:[#allocation234_spill] sm:$0xff]  ;;  %v6876_v35 = vadd.f32 %v17597_v1, %v6707_v13  ;;  %v6700_v47 = vadd.f32 %v17598_v41, %v6531_v21  ;;  %v9899_v13 = vld [vmem:[%s17018_s7 + $0x418] sm:$0xf] }
 0x772   :  { %7409 = vmatmul.bf16.gmra.mxu3 %v9896_v18  ;;  %7250 = vmatmul.bf16.gmra.mxu2 %v9956_v5  ;;  %v6541_v19 = vadd.f32 %v17596_v62, %v17595_v11  ;;  %v7035_v4 = vadd.f32 %v17599_v36, %v6866_v2  ;;  %v9904_v27 = vor.u32 %v10844_v50, %v9901_v38  ;;  %v17602_v21 = vld [vmem:[#allocation127_spill] sm:$0xff]  ;;  %v17603_v11 = vld [vmem:[#allocation217_spill] sm:$0xff]  ;;  %v17604_v62 = vld [vmem:[#allocation18_spill] sm:$0xff] }
 0x773   :  { %7573 = vmatmul.bf16.gmra.mxu0 %v9868_v10  ;;  %v7705_v59 = vpop.f32.mrf.mxu1  ;;  %v7368_v18 = vadd.f32 %v7367_v17, %v7199_v54  ;;  %v7015_v10 = vadd.f32 %v17594_v32, %v6846_v33  ;;  %v7704_v46 = vadd.f32 %v7703_v45, %v7535_v14  ;;  %v10851_v33 = vld [vmem:[%s17018_s7 + $0x454] sm:$0xf]  ;;  %v10848_v54 = vld [vmem:[%s17018_s7 + $0x434] sm:$0xf0]  ;;  %v17600_v14 = vld [vmem:[#allocation109_spill] sm:$0xff]  ;;  %v6869_v12 = vadd.f32 %v17602_v21, %v6700_v47 }
 0x774   :  { %v9925_v45 = vld [vmem:[%s17018_s7 + $0x470] sm:$0xf0]  ;;  %v6710_v37 = vadd.f32 %v17600_v14, %v6541_v19  ;;  %v9900_v50 = vor.u32 %v10848_v54, %v9899_v13  ;;  %v6543_v19 = vadd.f32 %v17604_v62, %v17603_v11  ;;  %v17610_v13 = vld [vmem:[#allocation89_spill] sm:$0xff]  ;;  %v17611_v54 = vld [vmem:[#allocation46_spill] sm:$0xff] }
 0x775   :  { %v7370_v30 = vpop.f32.mrf.mxu3  ;;  %v7184_v56 = vadd.f32 %v15657_v0, %v7015_v10  ;;  %v7204_v0 = vadd.f32 %v15826_v3, %v7035_v4  ;;  %v17607_v4 = vld [vmem:[#allocation102_spill] sm:$0xff]  ;;  %v9957_v21 = vld [vmem:[%s17018_s7 + $0x4b0] sm:$0xf0] }
 0x776   :  { %v7211_v40 = vpop.f32.mrf.mxu2  ;;  %v7371_v61 = vadd.f32 %v7370_v30, %v7202_v39 }
 0x777   :  { %v15905_v5 = vadd.f32 %v7211_v40, %v7043_v7  ;;  %v7353_v39 = vadd.f32 %v15732_v51, %v7184_v56  ;;  %v7842_v7 = vmax.f32 %v7704_v46, 0.0  ;;  %v17601_v51 = vld [vmem:[#allocation64_spill] sm:$0xff] }
 0x778   :  { %v7536_v49 = vpop.f32.mrf.mxu0  ;;  %v7045_v26 = vadd.f32 %v17601_v51, %v6876_v35  ;;  %v17605_v35 = vld [vmem:[#allocation132_spill] sm:$0xff] }
 0x779   :  { %v7537_v17 = vadd.f32 %v7536_v49, %v7368_v18  ;;  %v7522_v34 = vadd.f32 %v15747_v57, %v7353_v39  ;;  %v9928_v18 = vor.u32 %v10851_v33, %v9925_v45  ;;  %v6879_v46 = vadd.f32 %v17605_v35, %v6710_v37  ;;  %v17606_v57 = vld [vmem:[#allocation17_spill] sm:$0xff] }
 0x77a   :  { %v7836_v37 = vmax.f32 %v15737_v22, 0.0 }
 0x77b   :  { %v7706_v20 = vadd.f32 %v7705_v59, %v7537_v17  ;;  %v7708_v58 = vpop.f32.mrf.mxu1  ;;  %v10871_v59 = vld [vmem:[%s17018_s7 + $0x4ec] sm:$0xf0]  ;;  %v7038_v17 = vadd.f32 %v17606_v57, %v6869_v12  ;;  %v7691_v41 = vadd.f32 %v15741_v52, %v7522_v34  ;;  %v10859_v34 = vld [vmem:[%s17018_s7 + $0x494] sm:$0xf]  ;;  %v9931_v12 = vld [vmem:[%s17018_s7 + $0x458] sm:$0xf] }
 0x77c   :  { %v9988_v49 = vor.u32 %v10871_v59, %v9987_v31  ;;  %v17609_v59 = vld [vmem:[#allocation203_spill] sm:$0xff]  ;;  %v9960_v62 = vor.u32 %v10859_v34, %v9957_v21 }
 0x77d   :  { %v7843_v30 = vmax.f32 %v7706_v20, 0.0  ;;  %v7372_v3 = vpop.f32.mrf.mxu3  ;;  %v7207_v56 = vadd.f32 %v15843_v42, %v7038_v17  ;;  %v6712_v20 = vadd.f32 %v17607_v4, %v6543_v19  ;;  %v7837_v39 = vmax.f32 %v7691_v41, 0.0  ;;  %v9933_v42 = vld [vmem:[%s17018_s7 + $0x478] sm:$0xf0]  ;;  %v17614_v17 = vld [vmem:[#allocation22_spill] sm:$0xff] }
 0x77e   :  { %v7213_v2 = vpop.f32.mrf.mxu2  ;;  %v7373_v40 = vadd.f32 %v7372_v3, %v7204_v0  ;;  %7747 = vmatmul.bf16.gmra.mxu1 %v9904_v27  ;;  %v10019_v3 = vld [vmem:[%s17018_s7 + $0x510] sm:$0xf] }
 0x77f   :  { %v7963_v32 = vpack.c.bf16 %v7843_v30, %v7842_v7  ;;  %v15944_v10 = vadd.f32 %v7213_v2, %v7045_v26  ;;  %v6881_v14 = vadd.f32 %v17611_v54, %v6712_v20  ;;  %v7960_v51 = vpack.c.bf16 %v7837_v39, %v7836_v37  ;;  %v10856_v2 = vld [vmem:[%s17018_s7 + $0x474] sm:$0xf0] }
 0x780   :  { %v7539_v38 = vpop.f32.mrf.mxu0  ;;  %v9932_v35 = vor.u32 %v10856_v2, %v9931_v12 }
 0x781   :  { %v7540_v1 = vadd.f32 %v7539_v38, %v7371_v61  ;;  %8500 = vmatpush.bf16.msrb.mxu2 %v7963_v32  ;;  %v17608_v61 = vld [vmem:[#allocation15_spill] sm:$0xff]  ;;  %v17613_v32 = vld [vmem:[#allocation90_spill] sm:$0xff] }
 0x782   :  { %7414 = vmatmul.bf16.gmra.mxu3 %v9928_v18  ;;  %7255 = vmatmul.bf16.gmra.mxu2 %v9988_v49  ;;  %v7048_v27 = vadd.f32 %v17608_v61, %v6879_v46  ;;  %v7050_v49 = vadd.f32 %v17613_v32, %v6881_v14 }
 0x783   :  { %v15951_v47 = vadd.f32 %v7708_v58, %v7540_v1  ;;  %7578 = vmatmul.bf16.gmra.mxu0 %v9900_v50  ;;  %v7710_v36 = vpop.f32.mrf.mxu1  ;;  %v10852_v58 = vld [vmem:[%s17018_s7 + $0x45c] sm:$0xf] }
 0x784   :  { %v9936_v26 = vor.u32 %v10852_v58, %v9933_v42  ;;  %v10867_v58 = vld [vmem:[%s17018_s7 + $0x4d4] sm:$0xf] }
 0x785   :  { %8501 = vmatpush.bf16.msrb.mxu2 %v15887_v9  ;;  %v7375_v31 = vpop.f32.mrf.mxu3  ;;  %v6546_v9 = vadd.f32 %v17610_v13, %v17609_v59  ;;  %v9989_v42 = vld [vmem:[%s17018_s7 + $0x4f0] sm:$0xf0]  ;;  %v10887_v13 = vld [vmem:[%s17018_s7 + $0x56c] sm:$0xf0]  ;;  %v7844_v21 = vmax.f32 %v15951_v47, 0.0 }
 0x786   :  { %v7216_v33 = vpop.f32.mrf.mxu2  ;;  %v7376_v45 = vadd.f32 %v7375_v31, %v7207_v56  ;;  %v9997_v47 = vld [vmem:[%s17018_s7 + $0x4f8] sm:$0xf0] }
 0x787   :  { %v15957_v0 = vadd.f32 %v7216_v33, %v7048_v27 }
 0x788   :  { %v7541_v52 = vpop.f32.mrf.mxu0 }
 0x789   :  { %v7542_v7 = vadd.f32 %v7541_v52, %v7373_v40  ;;  %8502 = vmatpush.bf16.msrb.mxu2 %v15880_v8  ;;  %v10879_v8 = vld [vmem:[%s17018_s7 + $0x52c] sm:$0xf0] }
 0x78a   :  { %v17612_v40 = vld [vmem:[#allocation51_spill] sm:$0xff]  ;;  %v10020_v1 = vor.u32 %v10879_v8, %v10019_v3 }
 0x78b   :  { %v15970_v30 = vadd.f32 %v7710_v36, %v7542_v7  ;;  %v7713_v22 = vpop.f32.mrf.mxu1  ;;  %v6715_v18 = vadd.f32 %v17612_v40, %v6546_v9  ;;  %v10864_v9 = vld [vmem:[%s17018_s7 + $0x4b4] sm:$0xf0]  ;;  %v9992_v7 = vor.u32 %v10867_v58, %v9989_v42  ;;  %v10876_v58 = vld [vmem:[%s17018_s7 + $0x51c] sm:$0xf] }
 0x78d   :  { %8503 = vmatpush.bf16.msrb.mxu2 %v7960_v51  ;;  %v7377_v50 = vpop.f32.mrf.mxu3  ;;  %v6884_v41 = vadd.f32 %v17614_v17, %v6715_v18  ;;  %v7845_v51 = vmax.f32 %v15970_v30, 0.0  ;;  %v10868_v18 = vld [vmem:[%s17018_s7 + $0x4dc] sm:$0xf] }
 0x78e   :  { %v7218_v38 = vpop.f32.mrf.mxu2  ;;  %v7378_v11 = vadd.f32 %v7377_v50, %v15885_v6  ;;  %7752 = vmatmul.bf16.gmra.mxu1 %v9936_v26  ;;  %v17615_v6 = vld [vmem:[#allocation52_spill] sm:$0xff]  ;;  %v10000_v50 = vor.u32 %v10868_v18, %v9997_v47 }
 0x78f   :  { %v15993_v19 = vadd.f32 %v7218_v38, %v7050_v49  ;;  %v7053_v4 = vadd.f32 %v17615_v6, %v6884_v41  ;;  %v10083_v38 = vld [vmem:[%s17018_s7 + $0x590] sm:$0xf] }
 0x790   :  { %v7544_v46 = vpop.f32.mrf.mxu0 }
 0x791   :  { %v7545_v57 = vadd.f32 %v7544_v46, %v7376_v45  ;;  %8504 = vmatpush.bf16.msrb.mxu2 %v15785_v44  ;;  %v10860_v44 = vld [vmem:[%s17018_s7 + $0x49c] sm:$0xf]  ;;  %v10872_v46 = vld [vmem:[%s17018_s7 + $0x4f4] sm:$0xf0] }
 0x792   :  { %7419 = vmatmul.bf16.gmra.mxu3 %v9960_v62  ;;  %7260 = vmatmul.bf16.gmra.mxu2 %v10020_v1  ;;  %v9965_v45 = vld [vmem:[%s17018_s7 + $0x4b8] sm:$0xf0]  ;;  %v10895_v1 = vld [vmem:[%s17018_s7 + $0x5ac] sm:$0xf0] }
 0x793   :  { %v15997_v56 = vadd.f32 %v7713_v22, %v7545_v57  ;;  %7583 = vmatmul.bf16.gmra.mxu0 %v9932_v35  ;;  %v7715_v36 = vpop.f32.mrf.mxu1  ;;  %v9968_v52 = vor.u32 %v10860_v44, %v9965_v45  ;;  %v9995_v35 = vld [vmem:[%s17018_s7 + $0x4d8] sm:$0xf] }
 0x795   :  { %8505 = vmatpush.bf16.msrb.mxu2 %v15739_v29  ;;  %v7380_v20 = vpop.f32.mrf.mxu3 }
 0x796   :  { %v7221_v61 = vpop.f32.mrf.mxu2  ;;  %v7381_v27 = vadd.f32 %v7380_v20, %v15905_v5  ;;  %v10051_v5 = vld [vmem:[%s17018_s7 + $0x550] sm:$0xf]  ;;  %v9996_v20 = vor.u32 %v10872_v46, %v9995_v35 }
 0x797   :  { %v16002_v31 = vadd.f32 %v7221_v61, %v7053_v4  ;;  %v10052_v26 = vor.u32 %v10887_v13, %v10051_v5  ;;  %v10084_v4 = vor.u32 %v10895_v1, %v10083_v38  ;;  %v17617_v38 = vld [vmem:[#allocation58_spill] sm:$0xff]  ;;  %v10061_v1 = vld [vmem:[%s17018_s7 + $0x578] sm:$0xf0]  ;;  %v17618_v35 = vld [vmem:[#allocation55_spill] sm:$0xff] }
 0x798   :  { %v7546_v33 = vpop.f32.mrf.mxu0 }
 0x799   :  { %v7547_v39 = vadd.f32 %v7546_v33, %v7378_v11  ;;  %8506 = vmatpush.bf16.msrb.mxu2 %v15703_v25  ;;  %v9963_v25 = vld [vmem:[%s17018_s7 + $0x498] sm:$0xf]  ;;  %v10021_v11 = vld [vmem:[%s17018_s7 + $0x530] sm:$0xf0] }
 0x79a   :  { %v9964_v3 = vor.u32 %v10864_v9, %v9963_v25  ;;  %v10115_v25 = vld [vmem:[%s17018_s7 + $0x5d0] sm:$0xf]  ;;  %v10053_v9 = vld [vmem:[%s17018_s7 + $0x570] sm:$0xf0] }
 0x79b   :  { %v7716_v29 = vadd.f32 %v7715_v36, %v7547_v39  ;;  %v7718_v59 = vpop.f32.mrf.mxu1 }
 0x79d   :  { %8507 = vmatpush.bf16.msrb.mxu2 %v15695_v15  ;;  %v7382_v54 = vpop.f32.mrf.mxu3  ;;  %v16037_v15 = vpack.c.bf16 %v7845_v51, %v7844_v21  ;;  %v7847_v6 = vmax.f32 %v7716_v29, 0.0  ;;  %v10880_v51 = vld [vmem:[%s17018_s7 + $0x534] sm:$0xf0] }
 0x79e   :  { %v16030_v14 = vpop.f32.mrf.mxu2  ;;  %v7383_v37 = vadd.f32 %v7382_v54, %v15944_v10  ;;  %7757 = vmatmul.bf16.gmra.mxu1 %v9968_v52 }
 0x7a0   :  { %v7549_v34 = vpop.f32.mrf.mxu0 }
 0x7a1   :  { %v7550_v22 = vadd.f32 %v7549_v34, %v7381_v27  ;;  %v7846_v27 = vmax.f32 %v15997_v56, 0.0  ;;  %v10029_v56 = vld [vmem:[%s17018_s7 + $0x538] sm:$0xf0] }
 0x7a2   :  { %7424 = vmatmul.bf16.gmra.mxu3 %v9992_v7  ;;  %7265 = vmatmul.bf16.gmra.mxu2 %v10052_v26  ;;  %v10032_v13 = vor.u32 %v10876_v58, %v10029_v56  ;;  %v10027_v7 = vld [vmem:[%s17018_s7 + $0x518] sm:$0xf]  ;;  %v17620_v56 = vld [vmem:[#allocation222_spill] sm:$0xff] }
 0x7a3   :  { %v16035_v8 = vadd.f32 %v7718_v59, %v7550_v22  ;;  %7588 = vmatmul.bf16.gmra.mxu0 %v9964_v3  ;;  %v7720_v12 = vpop.f32.mrf.mxu1  ;;  %v16072_v45 = vpack.c.bf16 %v7847_v6, %v7846_v27  ;;  %v10085_v6 = vld [vmem:[%s17018_s7 + $0x5b0] sm:$0xf0]  ;;  %v10888_v27 = vld [vmem:[%s17018_s7 + $0x574] sm:$0xf0] }
 0x7a5   :  { %v7385_v2 = vpop.f32.mrf.mxu3 }
 0x7a6   :  { %v16039_v10 = vpop.f32.mrf.mxu2  ;;  %v7386_v30 = vadd.f32 %v7385_v2, %v15957_v0  ;;  %v10875_v0 = vld [vmem:[%s17018_s7 + $0x514] sm:$0xf] }
 0x7a7   :  { %v10024_v36 = vor.u32 %v10875_v0, %v10021_v11 }
 0x7a8   :  { %v7551_v40 = vpop.f32.mrf.mxu0 }
 0x7a9   :  { %v7552_v32 = vadd.f32 %v7551_v40, %v7383_v37  ;;  %v10903_v37 = vld [vmem:[%s17018_s7 + $0x5ec] sm:$0xf0] }
 0x7aa   :  { %v10116_v22 = vor.u32 %v10903_v37, %v10115_v25  ;;  %v16148_v25 = vpop.permute.xlu2 %5138  ;;  %v17622_v37 = vld [vmem:[#allocation199_spill] sm:$0xff] }
 0x7ab   :  { %v7721_v49 = vadd.f32 %v7720_v12, %v7552_v32  ;;  %v7723_v62 = vpop.f32.mrf.mxu1  ;;  %v10028_v12 = vor.u32 %v10880_v51, %v10027_v7  ;;  %v17623_v7 = vld [vmem:[#allocation24_spill] sm:$0xff] }
 0x7ac   :  { %v6551_v51 = vadd.f32 %v17623_v7, %v17622_v37  ;;  %v17635_v37 = vld [vmem:[#allocation133_spill] sm:$0xff] }
 0x7ad   :  { %v7387_v57 = vpop.f32.mrf.mxu3  ;;  %v7849_v21 = vmax.f32 %v7721_v49, 0.0 }
 0x7ae   :  { %v16066_v17 = vpop.f32.mrf.mxu2  ;;  %v7388_v41 = vadd.f32 %v7387_v57, %v15993_v19  ;;  %7762 = vmatmul.bf16.gmra.mxu1 %v10000_v50  ;;  %v17616_v50 = vld [vmem:[#allocation213_spill] sm:$0xff] }
 0x7af   :  { %v6548_v0 = vadd.f32 %v17617_v38, %v17616_v50  ;;  %v17627_v50 = vld [vmem:[#allocation21_spill] sm:$0xff] }
 0x7b0   :  { %v7554_v61 = vpop.f32.mrf.mxu0 }
 0x7b1   :  { %v7555_v33 = vadd.f32 %v7554_v61, %v7386_v30  ;;  %v7848_v30 = vmax.f32 %v16035_v8, 0.0  ;;  %v10884_v8 = vld [vmem:[%s17018_s7 + $0x55c] sm:$0xf]  ;;  %v6717_v46 = vadd.f32 %v17618_v35, %v6548_v0  ;;  %v10059_v61 = vld [vmem:[%s17018_s7 + $0x558] sm:$0xf] }
 0x7b2   :  { %7429 = vmatmul.bf16.gmra.mxu3 %v10024_v36  ;;  %7270 = vmatmul.bf16.gmra.mxu2 %v10084_v4  ;;  %v10064_v57 = vor.u32 %v10884_v8, %v10061_v1  ;;  %v10891_v36 = vld [vmem:[%s17018_s7 + $0x594] sm:$0xf]  ;;  %v17628_v8 = vld [vmem:[#allocation29_spill] sm:$0xff] }
 0x7b3   :  { %v16070_v44 = vadd.f32 %v7723_v62, %v7555_v33  ;;  %7593 = vmatmul.bf16.gmra.mxu0 %v9996_v20  ;;  %v7725_v39 = vpop.f32.mrf.mxu1  ;;  %v16106_v47 = vpack.c.bf16 %v7849_v21, %v7848_v30  ;;  %v10911_v20 = vld [vmem:[%s17018_s7 + $0x62c] sm:$0xf0]  ;;  %v17619_v33 = vld [vmem:[#allocation117_spill] sm:$0xff]  ;;  %v10088_v58 = vor.u32 %v10891_v36, %v10085_v6  ;;  %v17624_v21 = vld [vmem:[#allocation106_spill] sm:$0xff]  ;;  %v6720_v1 = vadd.f32 %v17628_v8, %v6551_v51 }
 0x7b4   :  { %v17626_v30 = vld [vmem:[#allocation48_spill] sm:$0xff]  ;;  %v17631_v6 = vld [vmem:[#allocation14_spill] sm:$0xff] }
 0x7b5   :  { %v7390_v52 = vpop.f32.mrf.mxu3  ;;  %v17636_v51 = vld [vmem:[#allocation32_spill] sm:$0xff] }
 0x7b6   :  { %v16074_v5 = vpop.f32.mrf.mxu2  ;;  %v7391_v19 = vadd.f32 %v7390_v52, %v16002_v31  ;;  %v10883_v31 = vld [vmem:[%s17018_s7 + $0x554] sm:$0xf]  ;;  %v16142_v52 = vpop.permute.xlu1 %5058  ;;  %v10896_v8 = vld [vmem:[%s17018_s7 + $0x5b4] sm:$0xf0] }
 0x7b7   :  { %v10056_v34 = vor.u32 %v10883_v31, %v10053_v9 }
 0x7b8   :  { %v7556_v29 = vpop.f32.mrf.mxu0 }
 0x7b9   :  { %v7557_v42 = vadd.f32 %v7556_v29, %v7388_v41  ;;  %v10147_v41 = vld [vmem:[%s17018_s7 + $0x610] sm:$0xf] }
 0x7ba   :  { %v10148_v9 = vor.u32 %v10911_v20, %v10147_v41  ;;  %v17629_v41 = vld [vmem:[#allocation99_spill] sm:$0xff] }
 0x7bb   :  { %v7726_v59 = vadd.f32 %v7725_v39, %v7557_v42  ;;  %v7728_v54 = vpop.f32.mrf.mxu1  ;;  %v6886_v39 = vadd.f32 %v17619_v33, %v6717_v46  ;;  %v17621_v42 = vld [vmem:[#allocation70_spill] sm:$0xff] }
 0x7bd   :  { %v7392_v26 = vpop.f32.mrf.mxu3  ;;  %v7851_v31 = vmax.f32 %v7726_v59, 0.0 }
 0x7be   :  { %v16101_v3 = vpop.f32.mrf.mxu2  ;;  %7767 = vmatmul.bf16.gmra.mxu1 %v10032_v13  ;;  %v6553_v13 = vadd.f32 %v17621_v42, %v17620_v56 }
 0x7c0   :  { %v7559_v2 = vpop.f32.mrf.mxu0  ;;  %v6722_v38 = vadd.f32 %v17627_v50, %v6553_v13  ;;  %v10093_v13 = vld [vmem:[%s17018_s7 + $0x5b8] sm:$0xf0] }
 0x7c1   :  { %v7560_v40 = vadd.f32 %v7559_v2, %v7391_v19  ;;  %v17625_v2 = vld [vmem:[#allocation190_spill] sm:$0xff] }
 0x7c2   :  { %7434 = vmatmul.bf16.gmra.mxu3 %v10056_v34  ;;  %7275 = vmatmul.bf16.gmra.mxu2 %v10116_v22  ;;  %v7055_v22 = vadd.f32 %v17624_v21, %v6886_v39  ;;  %v16167_v39 = vpop.permute.xlu1 %5143 }
 0x7c3   :  { %v16104_v18 = vadd.f32 %v7728_v54, %v7560_v40  ;;  %7598 = vmatmul.bf16.gmra.mxu0 %v10028_v12  ;;  %v7730_v32 = vpop.f32.mrf.mxu1  ;;  %v10060_v54 = vor.u32 %v10888_v27, %v10059_v61  ;;  %v7850_v12 = vmax.f32 %v16070_v44, 0.0  ;;  %v6556_v40 = vadd.f32 %v17626_v30, %v17625_v2  ;;  %v17630_v44 = vld [vmem:[#allocation194_spill] sm:$0xff]  ;;  %v17632_v27 = vld [vmem:[#allocation41_spill] sm:$0xff]  ;;  %v10899_v2 = vld [vmem:[%s17018_s7 + $0x5d4] sm:$0xf] }
 0x7c4   :  { %v7224_v0 = vadd.f32 %v16030_v14, %v7055_v22  ;;  %v6558_v20 = vadd.f32 %v17631_v6, %v17630_v44  ;;  %v6891_v33 = vadd.f32 %v17632_v27, %v6722_v38  ;;  %v10117_v30 = vld [vmem:[%s17018_s7 + $0x5f0] sm:$0xf0] }
 0x7c5   :  { %v16110_v11 = vpop.f32.mrf.mxu3  ;;  %v16158_v59 = vpack.c.bf16 %v7851_v31, %v7850_v12  ;;  %v6725_v36 = vadd.f32 %v17629_v41, %v6556_v40  ;;  %v16176_v31 = vpop.permute.xlu2 %5053  ;;  %v10179_v12 = vld [vmem:[%s17018_s7 + $0x650] sm:$0xf]  ;;  %v17637_v40 = vld [vmem:[#allocation65_spill] sm:$0xff]  ;;  %v17638_v41 = vld [vmem:[#allocation134_spill] sm:$0xff] }
 0x7c6   :  { %v16112_v49 = vpop.f32.mrf.mxu2  ;;  %v7393_v46 = vadd.f32 %v7392_v26, %v7224_v0  ;;  %v10892_v26 = vld [vmem:[%s17018_s7 + $0x59c] sm:$0xf]  ;;  %v7060_v21 = vadd.f32 %v17636_v51, %v6891_v33  ;;  %v10091_v0 = vld [vmem:[%s17018_s7 + $0x598] sm:$0xf]  ;;  %v17639_v6 = vld [vmem:[#allocation11_spill] sm:$0xff]  ;;  %v10120_v33 = vor.u32 %v10899_v2, %v10117_v30 }
 0x7c7   :  { %v6894_v7 = vadd.f32 %v17635_v37, %v6725_v36  ;;  %v10096_v22 = vor.u32 %v10892_v26, %v10093_v13  ;;  %v10092_v26 = vor.u32 %v10896_v8, %v10091_v0  ;;  %v17640_v51 = vld [vmem:[#allocation189_spill] sm:$0xff]  ;;  %v17644_v0 = vld [vmem:[#allocation43_spill] sm:$0xff] }
 0x7c8   :  { %v7561_v62 = vpop.f32.mrf.mxu0 }
 0x7c9   :  { %v7562_v14 = vadd.f32 %v7561_v62, %v7393_v46 }
 0x7ca   :  { %v16207_v37 = vpop.permute.xlu1 %5128 }
 0x7cb   :  { %v16130_v4 = vpop.f32.mrf.mxu1  ;;  %v7731_v62 = vadd.f32 %v7730_v32, %v7562_v14  ;;  %v10919_v32 = vld [vmem:[%s17018_s7 + $0x66c] sm:$0xf0] }
 0x7cd   :  { %v7397_v19 = vpop.f32.mrf.mxu3  ;;  %v7853_v14 = vmax.f32 %v7731_v62, 0.0  ;;  %v5039_v62 = vpop.permute.xlu2 %5038 }
 0x7ce   :  { %v16144_v29 = vpop.f32.mrf.mxu2  ;;  %7772 = vmatmul.bf16.gmra.mxu1 %v10064_v57  ;;  %v6566_v8 = vadd.f32 %v17644_v0, %v5039_v62  ;;  %v10927_v62 = vld [vmem:[%s17018_s7 + $0x6ac] sm:$0xf0] }
 0x7d0   :  { %v7564_v34 = vpop.f32.mrf.mxu0 }
 0x7d2   :  { %7439 = vmatmul.bf16.gmra.mxu3 %v10088_v58  ;;  %7280 = vmatmul.bf16.gmra.mxu2 %v10148_v9  ;;  %v17633_v58 = vld [vmem:[#allocation38_spill] sm:$0xff]  ;;  %v17634_v9 = vld [vmem:[#allocation135_spill] sm:$0xff] }
 0x7d3   :  { %7603 = vmatmul.bf16.gmra.mxu0 %v10060_v54  ;;  %v7735_v35 = vpop.f32.mrf.mxu1  ;;  %v6889_v56 = vadd.f32 %v17633_v58, %v6720_v1  ;;  %v6727_v54 = vadd.f32 %v17634_v9, %v6558_v20  ;;  %v7229_v1 = vadd.f32 %v16066_v17, %v7060_v21  ;;  %v7063_v20 = vadd.f32 %v17639_v6, %v6894_v7  ;;  %v17641_v7 = vld [vmem:[#allocation110_spill] sm:$0xff] }
 0x7d4   :  { %v6561_v21 = vadd.f32 %v17641_v7, %v17640_v51  ;;  %v10211_v7 = vld [vmem:[%s17018_s7 + $0x690] sm:$0xf] }
 0x7d5   :  { %v7400_v57 = vpop.f32.mrf.mxu3  ;;  %v7058_v50 = vadd.f32 %v17637_v40, %v6889_v56  ;;  %v6896_v36 = vadd.f32 %v17638_v41, %v6727_v54  ;;  %v7398_v58 = vadd.f32 %v7397_v19, %v7229_v1  ;;  %v10180_v56 = vor.u32 %v10919_v32, %v10179_v12  ;;  %v17642_v19 = vld [vmem:[#allocation78_spill] sm:$0xff] }
 0x7d6   :  { %v16164_v61 = vpop.f32.mrf.mxu2  ;;  %v7232_v17 = vadd.f32 %v16074_v5, %v7063_v20  ;;  %v7852_v54 = vmax.f32 %v16104_v18, 0.0  ;;  %v17645_v41 = vld [vmem:[#allocation210_spill] sm:$0xff]  ;;  %v16230_v20 = vpop.permute.xlu0 %5063 }
 0x7d7   :  { %v7227_v44 = vadd.f32 %v16039_v10, %v7058_v50 }
 0x7d8   :  { %v7566_v42 = vpop.f32.mrf.mxu0  ;;  %v7401_v12 = vadd.f32 %v7400_v57, %v7232_v17  ;;  %v17646_v57 = vld [vmem:[#allocation59_spill] sm:$0xff] }
 0x7d9   :  { %v7396_v13 = vadd.f32 %v16110_v11, %v7227_v44  ;;  %v7567_v10 = vadd.f32 %v7566_v42, %v7398_v58  ;;  %v16214_v11 = vpack.c.bf16 %v7853_v14, %v7852_v54  ;;  %v17643_v42 = vld [vmem:[#allocation138_spill] sm:$0xff]  ;;  %v17647_v58 = vld [vmem:[#allocation144_spill] sm:$0xff]  ;;  %v5044_v54 = vpop.permute.xlu1 %5043 }
 0x7da   :  { %v6730_v32 = vadd.f32 %v17643_v42, %v6561_v21  ;;  %v10907_v21 = vld [vmem:[%s17018_s7 + $0x614] sm:$0xf] }
 0x7db   :  { %v7738_v38 = vpop.f32.mrf.mxu1  ;;  %v7565_v40 = vadd.f32 %v7564_v34, %v7396_v13  ;;  %v7736_v5 = vadd.f32 %v7735_v35, %v7567_v10  ;;  %v10125_v35 = vld [vmem:[%s17018_s7 + $0x5f8] sm:$0xf0] }
 0x7dd   :  { %v7402_v46 = vpop.f32.mrf.mxu3  ;;  %v7734_v34 = vadd.f32 %v16130_v4, %v7565_v40 }
 0x7de   :  { %v16204_v27 = vpop.f32.mrf.mxu2  ;;  %7777 = vmatmul.bf16.gmra.mxu1 %v10096_v22  ;;  %v7065_v22 = vadd.f32 %v17642_v19, %v6896_v36  ;;  %v6563_v36 = vadd.f32 %v17646_v57, %v17645_v41  ;;  %v10123_v19 = vld [vmem:[%s17018_s7 + $0x5d8] sm:$0xf] }
 0x7e0   :  { %v7569_v9 = vpop.f32.mrf.mxu0  ;;  %v7234_v30 = vadd.f32 %v16101_v3, %v7065_v22  ;;  %v10900_v3 = vld [vmem:[%s17018_s7 + $0x5dc] sm:$0xf]  ;;  %v10904_v22 = vld [vmem:[%s17018_s7 + $0x5f4] sm:$0xf0] }
 0x7e1   :  { %v7570_v50 = vadd.f32 %v7569_v9, %v7401_v12  ;;  %v7854_v9 = vmax.f32 %v7734_v34, 0.0  ;;  %v10128_v51 = vor.u32 %v10900_v3, %v10125_v35  ;;  %v10124_v3 = vor.u32 %v10904_v22, %v10123_v19 }
 0x7e2   :  { %7444 = vmatmul.bf16.gmra.mxu3 %v10120_v33  ;;  %7285 = vmatmul.bf16.gmra.mxu2 %v10180_v56  ;;  %v7403_v44 = vadd.f32 %v7402_v46, %v7234_v30  ;;  %v7855_v33 = vmax.f32 %v7736_v5, 0.0  ;;  %v6735_v56 = vadd.f32 %v17647_v58, %v6566_v8  ;;  %v17649_v46 = vld [vmem:[#allocation141_spill] sm:$0xff]  ;;  %v17652_v8 = vld [vmem:[#allocation142_spill] sm:$0xff] }
 0x7e3   :  { %7608 = vmatmul.bf16.gmra.mxu0 %v10092_v26  ;;  %v7740_v2 = vpop.f32.mrf.mxu1  ;;  %v7739_v14 = vadd.f32 %v7738_v38, %v7570_v50  ;;  %v17648_v26 = vld [vmem:[#allocation136_spill] sm:$0xff]  ;;  %v6732_v17 = vadd.f32 %v17649_v46, %v6563_v36  ;;  %v10149_v38 = vld [vmem:[%s17018_s7 + $0x630] sm:$0xf0] }
 0x7e4   :  { %v6899_v13 = vadd.f32 %v17648_v26, %v6730_v32  ;;  %v16253_v5 = vpack.c.bf16 %v7855_v33, %v7854_v9  ;;  %v17650_v50 = vld [vmem:[#allocation12_spill] sm:$0xff]  ;;  %v17651_v32 = vld [vmem:[#allocation137_spill] sm:$0xff]  ;;  %v6904_v34 = vadd.f32 %v17652_v8, %v6735_v56  ;;  %v10152_v57 = vor.u32 %v10907_v21, %v10149_v38  ;;  %v17653_v36 = vld [vmem:[#allocation139_spill] sm:$0xff] }
 0x7e5   :  { %v7405_v18 = vpop.f32.mrf.mxu3  ;;  %v7856_v12 = vmax.f32 %v7739_v14, 0.0  ;;  %v6568_v42 = vadd.f32 %v17650_v50, %v5044_v54  ;;  %v17655_v26 = vld [vmem:[#allocation143_spill] sm:$0xff]  ;;  %v17656_v56 = vld [vmem:[#allocation140_spill] sm:$0xff]  ;;  %v17657_v38 = vld [vmem:[#allocation145_spill] sm:$0xff] }
 0x7e6   :  { %v16220_v1 = vpop.f32.mrf.mxu2  ;;  %v7068_v0 = vadd.f32 %v17651_v32, %v6899_v13  ;;  %v7073_v9 = vadd.f32 %v17655_v26, %v6904_v34  ;;  %v5049_v13 = vpop.permute.xlu0 %5048  ;;  %v17660_v8 = vld [vmem:[#allocation150_spill] sm:$0xff]  ;;  %v17662_v26 = vld [vmem:[#allocation164_spill] sm:$0xff] }
 0x7e8   :  { %v7571_v6 = vpop.f32.mrf.mxu0  ;;  %v7237_v33 = vadd.f32 %v16112_v49, %v7068_v0 }
 0x7e9   :  { %v7572_v4 = vadd.f32 %v7571_v6, %v7403_v44  ;;  %v6901_v44 = vadd.f32 %v17653_v36, %v6732_v17  ;;  %v10212_v6 = vor.u32 %v10927_v62, %v10211_v7  ;;  %v7242_v17 = vadd.f32 %v16164_v61, %v7073_v9  ;;  %v17658_v62 = vld [vmem:[#allocation10_spill] sm:$0xff]  ;;  %v10157_v61 = vld [vmem:[%s17018_s7 + $0x638] sm:$0xf0] }
 0x7ea   :  { %v7406_v54 = vadd.f32 %v7405_v18, %v7237_v33  ;;  %v6571_v19 = vadd.f32 %v17658_v62, %v5049_v13  ;;  %v10908_v18 = vld [vmem:[%s17018_s7 + $0x61c] sm:$0xf]  ;;  %v10935_v33 = vld [vmem:[%s17018_s7 + $0x6ec] sm:$0xf0] }
 0x7eb   :  { %v7741_v10 = vadd.f32 %v7740_v2, %v7572_v4  ;;  %v7743_v40 = vpop.f32.mrf.mxu1  ;;  %v17654_v4 = vld [vmem:[#allocation147_spill] sm:$0xff]  ;;  %v7070_v46 = vadd.f32 %v17656_v56, %v6901_v44 }
 0x7ec   :  { %v6737_v58 = vadd.f32 %v17654_v4, %v6568_v42  ;;  %v6740_v34 = vadd.f32 %v17660_v8, %v6571_v19  ;;  %v10155_v4 = vld [vmem:[%s17018_s7 + $0x618] sm:$0xf] }
 0x7ed   :  { %v7857_v2 = vmax.f32 %v7741_v10, 0.0  ;;  %v7407_v30 = vpop.f32.mrf.mxu3 }
 0x7ee   :  { %v16258_v41 = vpop.f32.mrf.mxu2  ;;  %7782 = vmatmul.bf16.gmra.mxu1 %v10128_v51  ;;  %v7239_v51 = vadd.f32 %v16144_v29, %v7070_v46  ;;  %v6906_v49 = vadd.f32 %v17657_v38, %v6737_v58  ;;  %v17659_v29 = vld [vmem:[#allocation87_spill] sm:$0xff]  ;;  %v10912_v58 = vld [vmem:[%s17018_s7 + $0x634] sm:$0xf0] }
 0x7ef   :  { %v16261_v35 = vpack.c.bf16 %v7857_v2, %v7856_v12  ;;  %v6581_v42 = vadd.f32 %v17659_v29, %v15539_v43  ;;  %v10181_v43 = vld [vmem:[%s17018_s7 + $0x670] sm:$0xf0]  ;;  %v10156_v62 = vor.u32 %v10912_v58, %v10155_v4  ;;  %v17667_v29 = vld [vmem:[#allocation161_spill] sm:$0xff] }
 0x7f0   :  { %v7574_v14 = vpop.f32.mrf.mxu0  ;;  %v7408_v2 = vadd.f32 %v7407_v30, %v7239_v51  ;;  %v10160_v30 = vor.u32 %v10908_v18, %v10157_v61 }
 0x7f1   :  { %v7575_v7 = vadd.f32 %v7574_v14, %v7406_v54  ;;  %v6750_v9 = vadd.f32 %v17662_v26, %v6581_v42 }
 0x7f2   :  { %7449 = vmatmul.bf16.gmra.mxu3 %v10152_v57  ;;  %7290 = vmatmul.bf16.gmra.mxu2 %v10212_v6  ;;  %v17661_v57 = vld [vmem:[#allocation146_spill] sm:$0xff]  ;;  %v10243_v6 = vld [vmem:[%s17018_s7 + $0x6d0] sm:$0xf] }
 0x7f3   :  { %7613 = vmatmul.bf16.gmra.mxu0 %v10124_v3  ;;  %v7745_v10 = vpop.f32.mrf.mxu1  ;;  %v7744_v32 = vadd.f32 %v7743_v40, %v7575_v7  ;;  %v7075_v36 = vadd.f32 %v17661_v57, %v6906_v49  ;;  %v10915_v3 = vld [vmem:[%s17018_s7 + $0x654] sm:$0xf]  ;;  %v10244_v49 = vor.u32 %v10935_v33, %v10243_v6  ;;  %v6919_v42 = vadd.f32 %v17667_v29, %v6750_v9  ;;  %v17673_v33 = vld [vmem:[#allocation84_spill] sm:$0xff] }
 0x7f4   :  { %v6576_v4 = vadd.f32 %v17673_v33, %v16142_v52  ;;  %v17677_v52 = vld [vmem:[#allocation156_spill] sm:$0xff] }
 0x7f5   :  { %v7410_v21 = vpop.f32.mrf.mxu3  ;;  %v7244_v40 = vadd.f32 %v16204_v27, %v7075_v36  ;;  %v7858_v13 = vmax.f32 %v7744_v32, 0.0  ;;  %v17663_v27 = vld [vmem:[#allocation95_spill] sm:$0xff]  ;;  %v17668_v32 = vld [vmem:[#allocation153_spill] sm:$0xff]  ;;  %v10920_v29 = vld [vmem:[%s17018_s7 + $0x674] sm:$0xf0] }
 0x7f6   :  { %v16271_v22 = vpop.f32.mrf.mxu2  ;;  %v7411_v12 = vadd.f32 %v7410_v21, %v7242_v17  ;;  %v6573_v54 = vadd.f32 %v17663_v27, %v16176_v31  ;;  %v17664_v17 = vld [vmem:[#allocation148_spill] sm:$0xff]  ;;  %v10184_v21 = vor.u32 %v10915_v3, %v10181_v43  ;;  %v17672_v43 = vld [vmem:[#allocation151_spill] sm:$0xff]  ;;  %v17676_v27 = vld [vmem:[#allocation165_spill] sm:$0xff] }
 0x7f8   :  { %v7576_v50 = vpop.f32.mrf.mxu0  ;;  %v6742_v31 = vadd.f32 %v17668_v32, %v6573_v54 }
 0x7f9   :  { %v7577_v0 = vadd.f32 %v7576_v50, %v7408_v2  ;;  %v17665_v2 = vld [vmem:[#allocation233_spill] sm:$0xff]  ;;  %v17666_v50 = vld [vmem:[#allocation75_spill] sm:$0xff] }
 0x7fa   :  { %v6583_v18 = vadd.f32 %v17666_v50, %v17665_v2  ;;  %v10923_v2 = vld [vmem:[%s17018_s7 + $0x694] sm:$0xf] }
 0x7fb   :  { %v7746_v44 = vadd.f32 %v7745_v10, %v7577_v0  ;;  %v7748_v14 = vpop.f32.mrf.mxu1  ;;  %v6909_v10 = vadd.f32 %v17664_v17, %v6740_v34  ;;  %v17669_v0 = vld [vmem:[#allocation149_spill] sm:$0xff] }
 0x7fd   :  { %v7859_v56 = vmax.f32 %v7746_v44, 0.0  ;;  %v7412_v46 = vpop.f32.mrf.mxu3  ;;  %v7078_v8 = vadd.f32 %v17669_v0, %v6909_v10  ;;  %v17670_v44 = vld [vmem:[#allocation168_spill] sm:$0xff]  ;;  %v6745_v10 = vadd.f32 %v17677_v52, %v6576_v4 }
 0x7fe   :  { %v16306_v51 = vpop.f32.mrf.mxu2  ;;  %v7413_v7 = vadd.f32 %v7412_v46, %v7244_v40  ;;  %7787 = vmatmul.bf16.gmra.mxu1 %v10160_v30  ;;  %v6752_v30 = vadd.f32 %v17670_v44, %v6583_v18  ;;  %v6911_v40 = vadd.f32 %v17672_v43, %v6742_v31  ;;  %v10943_v18 = vld [vmem:[%s17018_s7 + $0x72c] sm:$0xf0]  ;;  %v17680_v31 = vld [vmem:[#allocation166_spill] sm:$0xff] }
 0x7ff   :  { %v7971_v38 = vpack.c.bf16 %v7859_v56, %v7858_v13  ;;  %v7247_v57 = vadd.f32 %v16220_v1, %v7078_v8  ;;  %v10916_v1 = vld [vmem:[%s17018_s7 + $0x65c] sm:$0xf]  ;;  %v17674_v13 = vld [vmem:[#allocation226_spill] sm:$0xff]  ;;  %v17681_v8 = vld [vmem:[#allocation91_spill] sm:$0xff] }
 0x800   :  { %v7579_v19 = vpop.f32.mrf.mxu0  ;;  %v17675_v56 = vld [vmem:[#allocation56_spill] sm:$0xff]  ;;  %v6921_v54 = vadd.f32 %v17676_v27, %v6752_v30  ;;  %v17686_v27 = vld [vmem:[#allocation170_spill] sm:$0xff] }
 0x801   :  { %v7580_v61 = vadd.f32 %v7579_v19, %v7411_v12  ;;  %8589 = vmatpush.bf16.msrb.mxu3 %v7971_v38  ;;  %v17671_v12 = vld [vmem:[#allocation162_spill] sm:$0xff]  ;;  %v6586_v46 = vadd.f32 %v17675_v56, %v17674_v13  ;;  %v10275_v19 = vld [vmem:[%s17018_s7 + $0x710] sm:$0xf] }
 0x802   :  { %7454 = vmatmul.bf16.gmra.mxu3 %v10184_v21  ;;  %7295 = vmatmul.bf16.gmra.mxu2 %v10244_v49  ;;  %v7088_v6 = vadd.f32 %v17671_v12, %v6919_v42  ;;  %v17678_v21 = vld [vmem:[#allocation152_spill] sm:$0xff]  ;;  %v7090_v0 = vadd.f32 %v17680_v31, %v6921_v54  ;;  %v10276_v43 = vor.u32 %v10943_v18, %v10275_v19  ;;  %v10931_v18 = vld [vmem:[%s17018_s7 + $0x6d4] sm:$0xf] }
 0x803   :  { %v16313_v34 = vadd.f32 %v7748_v14, %v7580_v61  ;;  %7618 = vmatmul.bf16.gmra.mxu0 %v10156_v62  ;;  %v7750_v36 = vpop.f32.mrf.mxu1  ;;  %v7080_v38 = vadd.f32 %v17678_v21, %v6911_v40  ;;  %v10187_v61 = vld [vmem:[%s17018_s7 + $0x658] sm:$0xf] }
 0x804   :  { %v17679_v42 = vld [vmem:[#allocation172_spill] sm:$0xff]  ;;  %v10188_v40 = vor.u32 %v10920_v29, %v10187_v61  ;;  %v10245_v61 = vld [vmem:[%s17018_s7 + $0x6f0] sm:$0xf0] }
 0x805   :  { %8590 = vmatpush.bf16.msrb.mxu3 %v16261_v35  ;;  %v7415_v3 = vpop.f32.mrf.mxu3  ;;  %v10189_v35 = vld [vmem:[%s17018_s7 + $0x678] sm:$0xf0]  ;;  %v6755_v32 = vadd.f32 %v17679_v42, %v6586_v46  ;;  %v10928_v31 = vld [vmem:[%s17018_s7 + $0x6b4] sm:$0xf0] }
 0x806   :  { %v7256_v58 = vpop.f32.mrf.mxu2  ;;  %v7416_v14 = vadd.f32 %v7415_v3, %v7247_v57  ;;  %v10192_v62 = vor.u32 %v10916_v1, %v10189_v35  ;;  %v6578_v57 = vadd.f32 %v17681_v8, %v16230_v20  ;;  %v17685_v35 = vld [vmem:[#allocation155_spill] sm:$0xff] }
 0x807   :  { %v16322_v26 = vadd.f32 %v7256_v58, %v7088_v6 }
 0x808   :  { %v7581_v9 = vpop.f32.mrf.mxu0 }
 0x809   :  { %v7582_v17 = vadd.f32 %v7581_v9, %v7413_v7  ;;  %8591 = vmatpush.bf16.msrb.mxu3 %v16253_v5  ;;  %v10213_v7 = vld [vmem:[%s17018_s7 + $0x6b0] sm:$0xf0]  ;;  %v7249_v5 = vadd.f32 %v16258_v41, %v7080_v38  ;;  %v17684_v9 = vld [vmem:[#allocation160_spill] sm:$0xff] }
 0x80a   :  { %v10216_v6 = vor.u32 %v10923_v2, %v10213_v7  ;;  %v6747_v1 = vadd.f32 %v17684_v9, %v6578_v57 }
 0x80b   :  { %v16336_v49 = vadd.f32 %v7750_v36, %v7582_v17  ;;  %v7753_v50 = vpop.f32.mrf.mxu1  ;;  %v17682_v36 = vld [vmem:[#allocation154_spill] sm:$0xff] }
 0x80c   :  { %v6914_v44 = vadd.f32 %v17682_v36, %v6745_v10 }
 0x80d   :  { %8592 = vmatpush.bf16.msrb.mxu3 %v16214_v11  ;;  %v7417_v41 = vpop.f32.mrf.mxu3  ;;  %v17683_v11 = vld [vmem:[#allocation169_spill] sm:$0xff]  ;;  %v7861_v57 = vmax.f32 %v16336_v49, 0.0 }
 0x80e   :  { %v7258_v30 = vpop.f32.mrf.mxu2  ;;  %v7418_v12 = vadd.f32 %v7417_v41, %v7249_v5  ;;  %7792 = vmatmul.bf16.gmra.mxu1 %v10192_v62  ;;  %v6924_v58 = vadd.f32 %v17683_v11, %v6755_v32  ;;  %v7083_v20 = vadd.f32 %v17685_v35, %v6914_v44  ;;  %v10924_v62 = vld [vmem:[%s17018_s7 + $0x69c] sm:$0xf]  ;;  %v10219_v32 = vld [vmem:[%s17018_s7 + $0x698] sm:$0xf] }
 0x80f   :  { %v16363_v3 = vadd.f32 %v7258_v30, %v7090_v0  ;;  %v10220_v44 = vor.u32 %v10928_v31, %v10219_v32 }
 0x810   :  { %v7584_v33 = vpop.f32.mrf.mxu0  ;;  %v7252_v56 = vadd.f32 %v16271_v22, %v7083_v20  ;;  %v10221_v22 = vld [vmem:[%s17018_s7 + $0x6b8] sm:$0xf0]  ;;  %v10339_v20 = vld [vmem:[%s17018_s7 + $0x790] sm:$0xf] }
 0x811   :  { %v7585_v4 = vadd.f32 %v7584_v33, %v7416_v14  ;;  %8593 = vmatpush.bf16.msrb.mxu3 %v16158_v59  ;;  %v7093_v14 = vadd.f32 %v17686_v27, %v6924_v58  ;;  %v17687_v59 = vld [vmem:[#allocation157_spill] sm:$0xff]  ;;  %v10224_v5 = vor.u32 %v10924_v62, %v10221_v22  ;;  %v10932_v58 = vld [vmem:[%s17018_s7 + $0x6dc] sm:$0xf]  ;;  %v10959_v27 = vld [vmem:[%s17018_s7 + $0x7ac] sm:$0xf0] }
 0x812   :  { %7459 = vmatmul.bf16.gmra.mxu3 %v10216_v6  ;;  %7300 = vmatmul.bf16.gmra.mxu2 %v10276_v43  ;;  %v6916_v17 = vadd.f32 %v17687_v59, %v6747_v1  ;;  %v10340_v62 = vor.u32 %v10959_v27, %v10339_v20 }
 0x813   :  { %v16369_v13 = vadd.f32 %v7753_v50, %v7585_v4  ;;  %7623 = vmatmul.bf16.gmra.mxu0 %v10188_v40  ;;  %v7755_v46 = vpop.f32.mrf.mxu1  ;;  %v10307_v50 = vld [vmem:[%s17018_s7 + $0x750] sm:$0xf] }
 0x815   :  { %8594 = vmatpush.bf16.msrb.mxu3 %v16106_v47  ;;  %v7420_v54 = vpop.f32.mrf.mxu3  ;;  %v17688_v47 = vld [vmem:[#allocation158_spill] sm:$0xff] }
 0x816   :  { %v7261_v52 = vpop.f32.mrf.mxu2  ;;  %v7421_v10 = vadd.f32 %v7420_v54, %v7252_v56  ;;  %v7085_v2 = vadd.f32 %v17688_v47, %v6916_v17  ;;  %v10277_v56 = vld [vmem:[%s17018_s7 + $0x730] sm:$0xf0]  ;;  %v10936_v54 = vld [vmem:[%s17018_s7 + $0x6f4] sm:$0xf0]  ;;  %v7862_v47 = vmax.f32 %v16369_v13, 0.0 }
 0x817   :  { %v16375_v21 = vadd.f32 %v7261_v52, %v7093_v14  ;;  %v10251_v14 = vld [vmem:[%s17018_s7 + $0x6d8] sm:$0xf]  ;;  %v10285_v13 = vld [vmem:[%s17018_s7 + $0x738] sm:$0xf0] }
 0x818   :  { %v7586_v38 = vpop.f32.mrf.mxu0  ;;  %v7254_v29 = vadd.f32 %v16306_v51, %v7085_v2  ;;  %v10248_v51 = vor.u32 %v10931_v18, %v10245_v61  ;;  %v10252_v22 = vor.u32 %v10936_v54, %v10251_v14  ;;  %v10317_v54 = vld [vmem:[%s17018_s7 + $0x778] sm:$0xf0] }
 0x819   :  { %v7587_v19 = vadd.f32 %v7586_v38, %v7418_v12  ;;  %8595 = vmatpush.bf16.msrb.mxu3 %v16072_v45  ;;  %v10951_v45 = vld [vmem:[%s17018_s7 + $0x76c] sm:$0xf0]  ;;  %v7860_v12 = vmax.f32 %v16313_v34, 0.0  ;;  %v10253_v34 = vld [vmem:[%s17018_s7 + $0x6f8] sm:$0xf0] }
 0x81a   :  { %v10308_v36 = vor.u32 %v10951_v45, %v10307_v50  ;;  %v10256_v35 = vor.u32 %v10932_v58, %v10253_v34 }
 0x81b   :  { %v7756_v7 = vadd.f32 %v7755_v46, %v7587_v19  ;;  %v7758_v42 = vpop.f32.mrf.mxu1 }
 0x81d   :  { %8596 = vmatpush.bf16.msrb.mxu3 %v16037_v15  ;;  %v7422_v0 = vpop.f32.mrf.mxu3  ;;  %v16411_v15 = vpack.c.bf16 %v7861_v57, %v7860_v12  ;;  %v7863_v38 = vmax.f32 %v7756_v7, 0.0  ;;  %v10967_v57 = vld [vmem:[%s17018_s7 + $0x7ec] sm:$0xf0] }
 0x81e   :  { %v16405_v41 = vpop.f32.mrf.mxu2  ;;  %v7423_v8 = vadd.f32 %v7422_v0, %v7254_v29  ;;  %7797 = vmatmul.bf16.gmra.mxu1 %v10224_v5  ;;  %v10371_v0 = vld [vmem:[%s17018_s7 + $0x7d0] sm:$0xf] }
 0x81f   :  { %v16446_v50 = vpack.c.bf16 %v7863_v38, %v7862_v47  ;;  %v10315_v38 = vld [vmem:[%s17018_s7 + $0x758] sm:$0xf] }
 0x820   :  { %v7589_v30 = vpop.f32.mrf.mxu0  ;;  %v10952_v47 = vld [vmem:[%s17018_s7 + $0x774] sm:$0xf0] }
 0x821   :  { %v7590_v6 = vadd.f32 %v7589_v30, %v7421_v10 }
 0x822   :  { %7464 = vmatmul.bf16.gmra.mxu3 %v10248_v51  ;;  %7305 = vmatmul.bf16.gmra.mxu2 %v10308_v36  ;;  %v10283_v36 = vld [vmem:[%s17018_s7 + $0x718] sm:$0xf] }
 0x823   :  { %v16409_v43 = vadd.f32 %v7758_v42, %v7590_v6  ;;  %7628 = vmatmul.bf16.gmra.mxu0 %v10220_v44  ;;  %v7760_v40 = vpop.f32.mrf.mxu1  ;;  %v10940_v42 = vld [vmem:[%s17018_s7 + $0x71c] sm:$0xf]  ;;  %v10944_v44 = vld [vmem:[%s17018_s7 + $0x734] sm:$0xf0] }
 0x824   :  { %v10288_v31 = vor.u32 %v10940_v42, %v10285_v13 }
 0x825   :  { %v7425_v33 = vpop.f32.mrf.mxu3  ;;  %v7864_v58 = vmax.f32 %v16409_v43, 0.0  ;;  %v10948_v43 = vld [vmem:[%s17018_s7 + $0x75c] sm:$0xf] }
 0x826   :  { %v16413_v4 = vpop.f32.mrf.mxu2  ;;  %v7426_v49 = vadd.f32 %v7425_v33, %v16322_v26  ;;  %v10939_v26 = vld [vmem:[%s17018_s7 + $0x714] sm:$0xf]  ;;  %v10372_v33 = vor.u32 %v10967_v57, %v10371_v0  ;;  %v17695_v57 = vld [vmem:[#allocation225_spill] sm:$0xff] }
 0x827   :  { %v10280_v10 = vor.u32 %v10939_v26, %v10277_v56  ;;  %v17689_v26 = vld [vmem:[#allocation232_spill] sm:$0xff]  ;;  %v17690_v56 = vld [vmem:[#allocation35_spill] sm:$0xff] }
 0x828   :  { %v7591_v11 = vpop.f32.mrf.mxu0 }
 0x829   :  { %v7592_v9 = vadd.f32 %v7591_v11, %v7423_v8  ;;  %v10309_v8 = vld [vmem:[%s17018_s7 + $0x770] sm:$0xf0] }
 0x82b   :  { %v7761_v1 = vadd.f32 %v7760_v40, %v7592_v9  ;;  %v7763_v46 = vpop.f32.mrf.mxu1 }
 0x82d   :  { %v7427_v59 = vpop.f32.mrf.mxu3  ;;  %v7865_v40 = vmax.f32 %v7761_v1, 0.0 }
 0x82e   :  { %v16440_v17 = vpop.f32.mrf.mxu2  ;;  %v7428_v52 = vadd.f32 %v7427_v59, %v16363_v3  ;;  %7802 = vmatmul.bf16.gmra.mxu1 %v10256_v35  ;;  %v17691_v59 = vld [vmem:[#allocation176_spill] sm:$0xff] }
 0x82f   :  { %v16480_v35 = vpack.c.bf16 %v7865_v40, %v7864_v58  ;;  %v17697_v40 = vld [vmem:[#allocation174_spill] sm:$0xff] }
 0x830   :  { %v7594_v19 = vpop.f32.mrf.mxu0  ;;  %v17699_v58 = vld [vmem:[#allocation26_spill] sm:$0xff] }
 0x831   :  { %v7595_v2 = vadd.f32 %v7594_v19, %v7426_v49  ;;  %v10284_v49 = vor.u32 %v10944_v44, %v10283_v36  ;;  %v17696_v36 = vld [vmem:[#allocation94_spill] sm:$0xff] }
 0x832   :  { %7469 = vmatmul.bf16.gmra.mxu3 %v10280_v10  ;;  %7310 = vmatmul.bf16.gmra.mxu2 %v10340_v62  ;;  %v10320_v10 = vor.u32 %v10948_v43, %v10317_v54  ;;  %v10955_v62 = vld [vmem:[%s17018_s7 + $0x794] sm:$0xf]  ;;  %v6591_v44 = vadd.f32 %v17696_v36, %v17695_v57  ;;  %v17701_v43 = vld [vmem:[#allocation180_spill] sm:$0xff] }
 0x833   :  { %v16444_v5 = vadd.f32 %v7763_v46, %v7595_v2  ;;  %7633 = vmatmul.bf16.gmra.mxu0 %v10252_v22  ;;  %v7765_v18 = vpop.f32.mrf.mxu1  ;;  %v6588_v46 = vadd.f32 %v17690_v56, %v17689_v26  ;;  %v10341_v22 = vld [vmem:[%s17018_s7 + $0x7b0] sm:$0xf0]  ;;  %v10387_v2 = vld [vmem:[#allocation5] sm:$0xf]  ;;  %v10347_v36 = vld [vmem:[%s17018_s7 + $0x798] sm:$0xf] }
 0x834   :  { %v10344_v13 = vor.u32 %v10955_v62, %v10341_v22  ;;  %v17700_v26 = vld [vmem:[#allocation183_spill] sm:$0xff]  ;;  %v6760_v54 = vadd.f32 %v17701_v43, %v6591_v44  ;;  %v17703_v22 = vld [vmem:[#allocation181_spill] sm:$0xff] }
 0x835   :  { %v7430_v61 = vpop.f32.mrf.mxu3  ;;  %v10963_v44 = vld [vmem:[%s17018_s7 + $0x7d4] sm:$0xf] }
 0x836   :  { %v16448_v29 = vpop.f32.mrf.mxu2  ;;  %v7431_v3 = vadd.f32 %v7430_v61, %v16375_v21  ;;  %v10947_v21 = vld [vmem:[%s17018_s7 + $0x754] sm:$0xf]  ;;  %v17692_v61 = vld [vmem:[#allocation173_spill] sm:$0xff] }
 0x837   :  { %v10312_v6 = vor.u32 %v10947_v21, %v10309_v8  ;;  %v10316_v8 = vor.u32 %v10952_v47, %v10315_v38  ;;  %v17702_v38 = vld [vmem:[#allocation186_spill] sm:$0xff]  ;;  %v17710_v43 = vld [vmem:[#allocation207_spill] sm:$0xff] }
 0x838   :  { %v7596_v7 = vpop.f32.mrf.mxu0 }
 0x839   :  { %v7597_v45 = vadd.f32 %v7596_v7, %v7428_v52  ;;  %v6757_v52 = vadd.f32 %v17691_v59, %v6588_v46 }
 0x83b   :  { %v7766_v32 = vadd.f32 %v7765_v18, %v7597_v45  ;;  %v7768_v51 = vpop.f32.mrf.mxu1  ;;  %v10971_v18 = vld [vmem:[#allocation5 + $0xc] sm:$0xf0]  ;;  %v17693_v45 = vld [vmem:[#allocation236_spill] sm:$0xff] }
 0x83d   :  { %v7432_v30 = vpop.f32.mrf.mxu3  ;;  %v7867_v21 = vmax.f32 %v7766_v32, 0.0 }
 0x83e   :  { %v16475_v12 = vpop.f32.mrf.mxu2  ;;  %7807 = vmatmul.bf16.gmra.mxu1 %v10288_v31  ;;  %v17694_v31 = vld [vmem:[#allocation83_spill] sm:$0xff] }
 0x83f   :  { %v6593_v0 = vadd.f32 %v17694_v31, %v17693_v45  ;;  %v16538_v31 = vpop.permute.xlu0 %5133 }
 0x840   :  { %v7599_v11 = vpop.f32.mrf.mxu0 }
 0x841   :  { %v7600_v34 = vadd.f32 %v7599_v11, %v7431_v3  ;;  %v6926_v3 = vadd.f32 %v17692_v61, %v6757_v52  ;;  %v17698_v11 = vld [vmem:[#allocation230_spill] sm:$0xff]  ;;  %v6762_v56 = vadd.f32 %v17700_v26, %v6593_v0  ;;  %v17706_v0 = vld [vmem:[#allocation184_spill] sm:$0xff] }
 0x842   :  { %7474 = vmatmul.bf16.gmra.mxu3 %v10312_v6  ;;  %7315 = vmatmul.bf16.gmra.mxu2 %v10372_v33 }
 0x843   :  { %v16478_v9 = vadd.f32 %v7768_v51, %v7600_v34  ;;  %7638 = vmatmul.bf16.gmra.mxu0 %v10284_v49  ;;  %v7770_v20 = vpop.f32.mrf.mxu1  ;;  %v10388_v51 = vor.u32 %v10971_v18, %v10387_v2  ;;  %v7095_v33 = vadd.f32 %v17697_v40, %v6926_v3  ;;  %v7866_v49 = vmax.f32 %v16444_v5, 0.0  ;;  %v17704_v18 = vld [vmem:[#allocation177_spill] sm:$0xff]  ;;  %v17708_v40 = vld [vmem:[#allocation178_spill] sm:$0xff] }
 0x844   :  { %v6596_v34 = vadd.f32 %v17699_v58, %v17698_v11  ;;  %v6931_v47 = vadd.f32 %v17703_v22, %v6762_v56  ;;  %v6929_v61 = vadd.f32 %v17704_v18, %v6760_v54  ;;  %v10403_v11 = vld [vmem:[#allocation5 + $0x20] sm:$0xf]  ;;  %v10975_v58 = vld [vmem:[#allocation5 + $0x2c] sm:$0xf0] }
 0x845   :  { %v16484_v27 = vpop.f32.mrf.mxu3  ;;  %v7264_v46 = vadd.f32 %v16405_v41, %v7095_v33  ;;  %v16522_v32 = vpack.c.bf16 %v7867_v21, %v7866_v49  ;;  %v10956_v41 = vld [vmem:[%s17018_s7 + $0x79c] sm:$0xf]  ;;  %v17711_v54 = vld [vmem:[#allocation187_spill] sm:$0xff] }
 0x846   :  { %v16486_v1 = vpop.f32.mrf.mxu2  ;;  %v6765_v62 = vadd.f32 %v17702_v38, %v6596_v34  ;;  %v7098_v33 = vadd.f32 %v17708_v40, %v6929_v61  ;;  %v17709_v34 = vld [vmem:[#allocation204_spill] sm:$0xff] }
 0x847   :  { %v7433_v52 = vadd.f32 %v7432_v30, %v7264_v46  ;;  %v17705_v30 = vld [vmem:[#allocation167_spill] sm:$0xff] }
 0x848   :  { %v7601_v14 = vpop.f32.mrf.mxu0  ;;  %v6611_v45 = vadd.f32 %v17705_v30, %v16207_v37  ;;  %v6934_v21 = vadd.f32 %v17706_v0, %v6765_v62  ;;  %v10373_v37 = vld [vmem:[%s17018_s7 + $0x7f0] sm:$0xf0]  ;;  %v7267_v38 = vadd.f32 %v16413_v4, %v7098_v33  ;;  %v17712_v62 = vld [vmem:[#allocation185_spill] sm:$0xff]  ;;  %v7868_v0 = vmax.f32 %v16478_v9, 0.0  ;;  %v17714_v33 = vld [vmem:[#allocation188_spill] sm:$0xff] }
 0x849   :  { %v7602_v2 = vadd.f32 %v7601_v14, %v7433_v52  ;;  %v6936_v52 = vadd.f32 %v17711_v54, %v17710_v43 }
 0x84a   :  { %v6780_v26 = vadd.f32 %v17709_v34, %v6611_v45  ;;  %v7103_v22 = vadd.f32 %v17712_v62, %v6934_v21  ;;  %v7436_v30 = vadd.f32 %v16484_v27, %v7267_v38  ;;  %v5119_v21 = vpop.permute.xlu0 %5118 }
 0x84b   :  { %v16504_v19 = vpop.f32.mrf.mxu1 }
 0x84d   :  { %v7437_v7 = vpop.f32.mrf.mxu3 }
 0x84e   :  { %v16510_v42 = vpop.f32.mrf.mxu2  ;;  %7812 = vmatmul.bf16.gmra.mxu1 %v10320_v10 }
 0x850   :  { %v7604_v6 = vpop.f32.mrf.mxu0 }
 0x851   :  { %v7605_v40 = vadd.f32 %v7604_v6, %v7436_v30 }
 0x852   :  { %7479 = vmatmul.bf16.gmra.mxu3 %v10344_v13  ;;  %8508 = vmatmul.bf16.vlgmr.msrb.gmra.mxu2 %v10388_v51  ;;  %v10349_v13 = vld [vmem:[%s17018_s7 + $0x7b8] sm:$0xf0]  ;;  %v7771_v51 = vadd.f32 %v7770_v20, %v7602_v2  ;;  %v10960_v20 = vld [vmem:[%s17018_s7 + $0x7b4] sm:$0xf0]  ;;  %v10376_v2 = vor.u32 %v10963_v44, %v10373_v37  ;;  %v7105_v44 = vadd.f32 %v17714_v33, %v6936_v52  ;;  %v17715_v37 = vld [vmem:[#allocation202_spill] sm:$0xff] }
 0x853   :  { %7643 = vmatmul.bf16.gmra.mxu0 %v10316_v8  ;;  %v7775_v59 = vpop.f32.mrf.mxu1  ;;  %v17707_v8 = vld [vmem:[#allocation182_spill] sm:$0xff]  ;;  %v10352_v57 = vor.u32 %v10956_v41, %v10349_v13  ;;  %v10348_v41 = vor.u32 %v10960_v20, %v10347_v36  ;;  %v10404_v13 = vor.u32 %v10975_v58, %v10403_v11  ;;  %v17716_v20 = vld [vmem:[#allocation159_spill] sm:$0xff]  ;;  %v7774_v6 = vadd.f32 %v16504_v19, %v7605_v40 }
 0x854   :  { %v7100_v14 = vadd.f32 %v17707_v8, %v6931_v47  ;;  %v7869_v18 = vmax.f32 %v7771_v51, 0.0  ;;  %v7274_v27 = vadd.f32 %v16475_v12, %v7105_v44  ;;  %v6606_v11 = vadd.f32 %v17716_v20, %v5119_v21  ;;  %v10381_v12 = vld [vmem:[%s17018_s7 + $0x7f8] sm:$0xf0]  ;;  %v17718_v19 = vld [vmem:[#allocation195_spill] sm:$0xff] }
 0x855   :  { %v7440_v10 = vpop.f32.mrf.mxu3  ;;  %v17720_v21 = vld [vmem:[#allocation163_spill] sm:$0xff]  ;;  %v17721_v44 = vld [vmem:[#allocation192_spill] sm:$0xff] }
 0x856   :  { %v16526_v5 = vpop.f32.mrf.mxu2  ;;  %v7269_v56 = vadd.f32 %v16440_v17, %v7100_v14  ;;  %v7272_v17 = vadd.f32 %v16448_v29, %v7103_v22  ;;  %v17713_v14 = vld [vmem:[#allocation201_spill] sm:$0xff]  ;;  %v6775_v62 = vadd.f32 %v17718_v19, %v6606_v11  ;;  %v5124_v22 = vpop.permute.xlu2 %5123  ;;  %v17722_v20 = vld [vmem:[#allocation179_spill] sm:$0xff]  ;;  %v17727_v19 = vld [vmem:[#allocation218_spill] sm:$0xff] }
 0x857   :  { %v6949_v4 = vadd.f32 %v17713_v14, %v6780_v26  ;;  %v6608_v33 = vadd.f32 %v17720_v21, %v5124_v22  ;;  %v6618_v11 = vadd.f32 %v17722_v20, %v16167_v39 }
 0x858   :  { %v7606_v3 = vpop.f32.mrf.mxu0  ;;  %v7438_v61 = vadd.f32 %v7437_v7, %v7269_v56  ;;  %v7441_v51 = vadd.f32 %v7440_v10, %v7272_v17  ;;  %v16568_v7 = vpack.c.bf16 %v7869_v18, %v7868_v0  ;;  %v10964_v56 = vld [vmem:[%s17018_s7 + $0x7dc] sm:$0xf]  ;;  %v17719_v17 = vld [vmem:[#allocation214_spill] sm:$0xff] }
 0x859   :  { %v7118_v9 = vadd.f32 %v17715_v37, %v6949_v4  ;;  %v10384_v18 = vor.u32 %v10964_v56, %v10381_v12  ;;  %v17725_v56 = vld [vmem:[#allocation200_spill] sm:$0xff] }
 0x85a   :  { %v7607_v8 = vadd.f32 %v7606_v3, %v7438_v61  ;;  %v10379_v61 = vld [vmem:[%s17018_s7 + $0x7d8] sm:$0xf]  ;;  %v6777_v12 = vadd.f32 %v17725_v56, %v6608_v33 }
 0x85b   :  { %v7778_v49 = vpop.f32.mrf.mxu1 }
 0x85c   :  { %v7776_v36 = vadd.f32 %v7775_v59, %v7607_v8  ;;  %v17717_v59 = vld [vmem:[#allocation175_spill] sm:$0xff] }
 0x85d   :  { %v7442_v46 = vpop.f32.mrf.mxu3  ;;  %v6616_v43 = vadd.f32 %v17717_v59, %v16148_v25  ;;  %v10968_v25 = vld [vmem:[%s17018_s7 + $0x7f4] sm:$0xf0]  ;;  %v17726_v59 = vld [vmem:[#allocation193_spill] sm:$0xff] }
 0x85e   :  { %v16561_v47 = vpop.f32.mrf.mxu2  ;;  %7817 = vmatmul.bf16.gmra.mxu1 %v10352_v57  ;;  %v7443_v34 = vadd.f32 %v7442_v46, %v7274_v27  ;;  %v7871_v54 = vmax.f32 %v7776_v36, 0.0  ;;  %v7870_v46 = vmax.f32 %v7774_v6, 0.0  ;;  %v10380_v36 = vor.u32 %v10968_v25, %v10379_v61  ;;  %v17723_v6 = vld [vmem:[#allocation209_spill] sm:$0xff]  ;;  %v17730_v61 = vld [vmem:[#allocation196_spill] sm:$0xff] }
 0x85f   :  { %v6785_v0 = vadd.f32 %v17719_v17, %v6616_v43  ;;  %v17731_v17 = vld [vmem:[#allocation215_spill] sm:$0xff] }
 0x860   :  { %v7609_v45 = vpop.f32.mrf.mxu0  ;;  %v16592_v40 = vpack.c.bf16 %v7871_v54, %v7870_v46  ;;  %v17728_v46 = vld [vmem:[#allocation219_spill] sm:$0xff] }
 0x861   :  { %v7610_v29 = vadd.f32 %v7609_v45, %v7441_v51  ;;  %v10419_v45 = vld [vmem:[#allocation5 + $0x40] sm:$0xf]  ;;  %v6944_v51 = vadd.f32 %v17721_v44, %v6775_v62  ;;  %v6787_v62 = vadd.f32 %v17727_v19, %v6618_v11  ;;  %v7279_v39 = vadd.f32 %v16510_v42, %v17728_v46  ;;  %v10973_v42 = vld [vmem:[#allocation5 + $0x24] sm:$0xf]  ;;  %v10405_v44 = vld [vmem:[#allocation5 + $0x30] sm:$0xf0] }
 0x862   :  { %7484 = vmatmul.bf16.gmra.mxu3 %v10376_v2  ;;  %8513 = vmatmul.bf16.gmra.mxu2 %v10404_v13  ;;  %v10389_v13 = vld [vmem:[#allocation5 + $0x10] sm:$0xf0]  ;;  %v10408_v56 = vor.u32 %v10973_v42, %v10405_v44  ;;  %v10987_v42 = vld [vmem:[#allocation5 + $0x8c] sm:$0xf0] }
 0x863   :  { %7648 = vmatmul.bf16.gmra.mxu0 %v10348_v41  ;;  %v7780_v57 = vpop.f32.mrf.mxu1  ;;  %v7779_v52 = vadd.f32 %v7778_v49, %v7610_v29  ;;  %v10969_v41 = vld [vmem:[#allocation5 + $0x4] sm:$0xf]  ;;  %v10979_v49 = vld [vmem:[#allocation5 + $0x4c] sm:$0xf0]  ;;  %v7113_v43 = vadd.f32 %v17726_v59, %v6944_v51 }
 0x864   :  { %v10392_v27 = vor.u32 %v10969_v41, %v10389_v13  ;;  %v10420_v29 = vor.u32 %v10979_v49, %v10419_v45  ;;  %v6946_v41 = vadd.f32 %v17730_v61, %v6777_v12 }
 0x865   :  { %v7445_v3 = vpop.f32.mrf.mxu3  ;;  %v7872_v8 = vmax.f32 %v7779_v52, 0.0  ;;  %v7282_v52 = vadd.f32 %v16526_v5, %v7113_v43  ;;  %v6956_v5 = vadd.f32 %v17731_v17, %v6787_v62  ;;  %v17737_v62 = vld [vmem:[#allocation208_spill] sm:$0xff] }
 0x866   :  { %v7286_v58 = vpop.f32.mrf.mxu2 }
 0x867   :  { %v16574_v26 = vadd.f32 %v7286_v58, %v7118_v9  ;;  %v7277_v58 = vadd.f32 %v16486_v1, %v17723_v6  ;;  %v17729_v1 = vld [vmem:[#allocation212_spill] sm:$0xff] }
 0x868   :  { %v7611_v10 = vpop.f32.mrf.mxu0 }
 0x869   :  { %v7612_v38 = vadd.f32 %v7611_v10, %v7443_v34  ;;  %v17724_v34 = vld [vmem:[#allocation211_spill] sm:$0xff]  ;;  %v7446_v54 = vadd.f32 %v7445_v3, %v7277_v58 }
 0x86a   :  { %v6954_v10 = vadd.f32 %v17724_v34, %v6785_v0  ;;  %v17734_v58 = vld [vmem:[#allocation171_spill] sm:$0xff] }
 0x86b   :  { %v7781_v2 = vadd.f32 %v7780_v57, %v7612_v38  ;;  %v7783_v30 = vpop.f32.mrf.mxu1  ;;  %v6613_v34 = vadd.f32 %v17734_v58, %v16538_v31 }
 0x86d   :  { %v7873_v14 = vmax.f32 %v7781_v2, 0.0  ;;  %v7447_v4 = vpop.f32.mrf.mxu3  ;;  %v7123_v2 = vadd.f32 %v17729_v1, %v6954_v10  ;;  %v6782_v46 = vadd.f32 %v17737_v62, %v6613_v34 }
 0x86e   :  { %v16596_v57 = vpop.f32.mrf.mxu2  ;;  %7822 = vmatmul.bf16.gmra.mxu1 %v10384_v18  ;;  %v7448_v45 = vadd.f32 %v7447_v4, %v7279_v39  ;;  %v17733_v4 = vld [vmem:[#allocation216_spill] sm:$0xff] }
 0x86f   :  { %v7978_v37 = vpack.c.bf16 %v7873_v14, %v7872_v8  ;;  %v17732_v14 = vld [vmem:[#allocation197_spill] sm:$0xff]  ;;  %v7125_v11 = vadd.f32 %v17733_v4, %v6956_v5  ;;  %v17741_v5 = vld [vmem:[#allocation206_spill] sm:$0xff] }
 0x870   :  { %v7614_v9 = vpop.f32.mrf.mxu0  ;;  %v7115_v21 = vadd.f32 %v17732_v14, %v6946_v41 }
 0x871   :  { %v7615_v22 = vadd.f32 %v7614_v9, %v7446_v54 }
 0x872   :  { %8597 = vmatmul.bf16.vlgmr.msrb.gmra.mxu3 %v10392_v27  ;;  %8518 = vmatmul.bf16.gmra.mxu2 %v10420_v29  ;;  %v7284_v51 = vadd.f32 %v16561_v47, %v7115_v21  ;;  %v10983_v29 = vld [vmem:[#allocation5 + $0x6c] sm:$0xf0] }
 0x873   :  { %7653 = vmatmul.bf16.gmra.mxu0 %v10380_v36  ;;  %v7785_v38 = vpop.f32.mrf.mxu1  ;;  %v7784_v0 = vadd.f32 %v7783_v30, %v7615_v22  ;;  %v10435_v36 = vld [vmem:[#allocation5 + $0x60] sm:$0xf] }
 0x874   :  { %v10436_v43 = vor.u32 %v10983_v29, %v10435_v36  ;;  %v17738_v22 = vld [vmem:[#allocation221_spill] sm:$0xff] }
 0x875   :  { %v7450_v18 = vpop.f32.mrf.mxu3  ;;  %v7874_v9 = vmax.f32 %v7784_v0, 0.0 }
 0x876   :  { %v7291_v13 = vpop.f32.mrf.mxu2  ;;  %v7451_v25 = vadd.f32 %v7450_v18, %v7282_v52  ;;  %v17735_v52 = vld [vmem:[#allocation235_spill] sm:$0xff]  ;;  %v17739_v18 = vld [vmem:[#allocation205_spill] sm:$0xff] }
 0x877   :  { %v16611_v3 = vadd.f32 %v7291_v13, %v7123_v2  ;;  %v6951_v61 = vadd.f32 %v17739_v18, %v6782_v46 }
 0x878   :  { %v7616_v49 = vpop.f32.mrf.mxu0 }
 0x879   :  { %v7617_v8 = vadd.f32 %v7616_v49, %v7448_v45  ;;  %v17740_v49 = vld [vmem:[#allocation223_spill] sm:$0xff]  ;;  %v7120_v0 = vadd.f32 %v17741_v5, %v6951_v61  ;;  %v10411_v5 = vld [vmem:[#allocation5 + $0x28] sm:$0xf] }
 0x87a   :  { %v6961_v17 = vadd.f32 %v17740_v49, %v15415_v24 }
 0x87b   :  { %v7786_v33 = vadd.f32 %v7785_v38, %v7617_v8  ;;  %v7788_v27 = vpop.f32.mrf.mxu1  ;;  %v17736_v38 = vld [vmem:[#allocation220_spill] sm:$0xff]  ;;  %v10977_v8 = vld [vmem:[#allocation5 + $0x44] sm:$0xf]  ;;  %v7289_v14 = vadd.f32 %v16596_v57, %v7120_v0 }
 0x87c   :  { %v6959_v19 = vadd.f32 %v17736_v38, %v17735_v52  ;;  %v10467_v38 = vld [vmem:[#allocation5 + $0xa0] sm:$0xf]  ;;  %v10976_v0 = vld [vmem:[#allocation5 + $0x34] sm:$0xf0] }
 0x87d   :  { %v7875_v20 = vmax.f32 %v7786_v33, 0.0  ;;  %v7452_v6 = vpop.f32.mrf.mxu3  ;;  %v10451_v33 = vld [vmem:[#allocation5 + $0x80] sm:$0xf] }
 0x87e   :  { %v7293_v30 = vpop.f32.mrf.mxu2  ;;  %v7453_v10 = vadd.f32 %v7452_v6, %v7284_v51  ;;  %v7128_v1 = vadd.f32 %v17738_v22, %v6959_v19  ;;  %v10991_v19 = vld [vmem:[#allocation5 + $0xac] sm:$0xf0] }
 0x87f   :  { %v7979_v12 = vpack.c.bf16 %v7875_v20, %v7874_v9  ;;  %v16619_v59 = vadd.f32 %v7293_v30, %v7125_v11  ;;  %v10468_v22 = vor.u32 %v10991_v19, %v10467_v38  ;;  %v10989_v38 = vld [vmem:[#allocation5 + $0xa4] sm:$0xf]  ;;  %v10469_v19 = vld [vmem:[#allocation5 + $0xb0] sm:$0xf0] }
 0x880   :  { %v7619_v54 = vpop.f32.mrf.mxu0 }
 0x881   :  { %v7620_v47 = vadd.f32 %v7619_v54, %v7451_v25  ;;  %8678 = vmatpush.bf16.msrb.mxu0 %v7979_v12  ;;  %v10972_v12 = vld [vmem:[#allocation5 + $0x14] sm:$0xf0]  ;;  %v10981_v54 = vld [vmem:[#allocation5 + $0x64] sm:$0xf] }
 0x882   :  { %8602 = vmatmul.bf16.gmra.mxu3 %v10408_v56  ;;  %8523 = vmatmul.bf16.gmra.mxu2 %v10436_v43  ;;  %v16648_v56 = vpop.permute.xlu2 %8177 }
 0x883   :  { %v16624_v39 = vadd.f32 %v7788_v27, %v7620_v47  ;;  %v7790_v31 = vpop.f32.mrf.mxu1  ;;  %17743 = vst [vmem:[#allocation103_spill] sm:$0xff] %v16648_v56  ;;  %v10437_v47 = vld [vmem:[#allocation5 + $0x70] sm:$0xf0] }
 0x884   :  { %v10440_v62 = vor.u32 %v10981_v54, %v10437_v47  ;;  %v10427_v47 = vld [vmem:[#allocation5 + $0x48] sm:$0xf] }
 0x885   :  { %8679 = vmatpush.bf16.msrb.mxu0 %v7978_v37  ;;  %v7455_v2 = vpop.f32.mrf.mxu3  ;;  %v10421_v37 = vld [vmem:[#allocation5 + $0x50] sm:$0xf0] }
 0x886   :  { %v7296_v41 = vpop.f32.mrf.mxu2  ;;  %v7456_v13 = vadd.f32 %v7455_v2, %v16574_v26  ;;  %v17742_v26 = vld [vmem:[#allocation224_spill] sm:$0xff]  ;;  %v10424_v29 = vor.u32 %v10977_v8, %v10421_v37  ;;  %v10985_v37 = vld [vmem:[#allocation5 + $0x84] sm:$0xf] }
 0x887   :  { %v16629_v25 = vadd.f32 %v7296_v41, %v7128_v1  ;;  %v7130_v44 = vadd.f32 %v17742_v26, %v6961_v17  ;;  %v16655_v1 = vpop.permute.xlu1 %8097  ;;  %v10995_v26 = vld [vmem:[#allocation5 + $0xcc] sm:$0xf0] }
 0x888   :  { %v7621_v45 = vpop.f32.mrf.mxu0 }
 0x889   :  { %8680 = vmatpush.bf16.msrb.mxu0 %v16592_v40  ;;  %v10452_v40 = vor.u32 %v10987_v42, %v10451_v33  ;;  %v7622_v58 = vadd.f32 %v7621_v45, %v7453_v10  ;;  %v10412_v33 = vor.u32 %v10976_v0, %v10411_v5  ;;  %v10483_v42 = vld [vmem:[#allocation5 + $0xc0] sm:$0xf] }
 0x88a   :  { %v16658_v18 = vpop.permute.xlu2 %8082 }
 0x88b   :  { %v7793_v21 = vpop.f32.mrf.mxu1  ;;  %v7791_v43 = vadd.f32 %v7790_v31, %v7622_v58  ;;  %v7876_v31 = vmax.f32 %v16624_v39, 0.0 }
 0x88d   :  { %8681 = vmatpush.bf16.msrb.mxu0 %v16568_v7  ;;  %v7457_v51 = vpop.f32.mrf.mxu3  ;;  %v7877_v46 = vmax.f32 %v7791_v43, 0.0 }
 0x88e   :  { %v7298_v27 = vpop.f32.mrf.mxu2  ;;  %v7458_v36 = vadd.f32 %v7457_v51, %v7289_v14  ;;  %v10453_v14 = vld [vmem:[#allocation5 + $0x90] sm:$0xf0] }
 0x88f   :  { %v16638_v24 = vadd.f32 %v7298_v27, %v7130_v44  ;;  %v16667_v39 = vpop.permute.xlu1 %8087 }
 0x890   :  { %v7624_v9 = vpop.f32.mrf.mxu0 }
 0x891   :  { %v7625_v20 = vadd.f32 %v7624_v9, %v7456_v13  ;;  %8682 = vmatpush.bf16.msrb.mxu0 %v16522_v32  ;;  %v10395_v32 = vld [vmem:[#allocation5 + $0x8] sm:$0xf] }
 0x892   :  { %8607 = vmatmul.bf16.gmra.mxu3 %v10424_v29  ;;  %8528 = vmatmul.bf16.gmra.mxu2 %v10452_v40  ;;  %v16669_v44 = vpop.permute.xlu2 %8162  ;;  %v10484_v40 = vor.u32 %v10995_v26, %v10483_v42 }
 0x893   :  { %v16641_v57 = vadd.f32 %v7793_v21, %v7625_v20  ;;  %v7795_v4 = vpop.f32.mrf.mxu1  ;;  %17744 = vst [vmem:[#allocation122_spill] sm:$0xff] %v16669_v44 }
 0x895   :  { %8683 = vmatpush.bf16.msrb.mxu0 %v16480_v35  ;;  %v7460_v7 = vpop.f32.mrf.mxu3  ;;  %v10396_v35 = vor.u32 %v10972_v12, %v10395_v32  ;;  %v7878_v20 = vmax.f32 %v16641_v57, 0.0 }
 0x896   :  { %v7301_v11 = vpop.f32.mrf.mxu2  ;;  %v7461_v6 = vadd.f32 %v7460_v7, %v16611_v3  ;;  %v16675_v7 = vpop.permute.xlu0 %8092 }
 0x897   :  { %v16646_v34 = vadd.f32 %v7301_v11, %v15421_v53 }
 0x898   :  { %v7626_v30 = vpop.f32.mrf.mxu0 }
 0x899   :  { %8684 = vmatpush.bf16.msrb.mxu0 %v16446_v50  ;;  %v7627_v49 = vadd.f32 %v7626_v30, %v7458_v36  ;;  %v10456_v36 = vor.u32 %v10985_v37, %v10453_v14  ;;  %v16681_v30 = vpop.permute.xlu1 %8167 }
 0x89a   :  { %17745 = vst [vmem:[#allocation120_spill] sm:$0xff] %v16681_v30  ;;  %v16686_v43 = vpop.permute.xlu2 %8067 }
 0x89b   :  { %v7798_v52 = vpop.f32.mrf.mxu1  ;;  %v7796_v8 = vadd.f32 %v7795_v4, %v7627_v49 }
 0x89d   :  { %8685 = vmatpush.bf16.msrb.mxu0 %v16411_v15  ;;  %v7462_v3 = vpop.f32.mrf.mxu3  ;;  %v16662_v15 = vpack.c.bf16 %v7877_v46, %v7876_v31  ;;  %v7879_v29 = vmax.f32 %v7796_v8, 0.0  ;;  %v10499_v46 = vld [vmem:[#allocation5 + $0xe0] sm:$0xf] }
 0x89e   :  { %v16652_v10 = vpop.f32.mrf.mxu2  ;;  %v7463_v53 = vadd.f32 %v7462_v3, %v16619_v59 }
 0x8a0   :  { %v7629_v50 = vpop.f32.mrf.mxu0  ;;  %8686 = vmatmul.bf16.vlgmr.msrb.gmra.mxu0 %v10396_v35 }
 0x8a1   :  { %v7630_v2 = vadd.f32 %v7629_v50, %v7461_v6  ;;  %v16679_v6 = vpack.c.bf16 %v7879_v29, %v7878_v20  ;;  %v16688_v50 = vpop.permute.xlu0 %8172  ;;  %v10984_v29 = vld [vmem:[#allocation5 + $0x74] sm:$0xf0]  ;;  %v10485_v20 = vld [vmem:[#allocation5 + $0xd0] sm:$0xf0] }
 0x8a2   :  { %8612 = vmatmul.bf16.gmra.mxu3 %v10440_v62  ;;  %8533 = vmatmul.bf16.gmra.mxu2 %v10468_v22  ;;  %v10999_v22 = vld [vmem:[#allocation5 + $0xec] sm:$0xf0]  ;;  %17746 = vst [vmem:[#allocation121_spill] sm:$0xff] %v16688_v50  ;;  %v11032_v50 = vld [vmem:[#allocation5 + $0x1f4] sm:$0xf0] }
 0x8a3   :  { %v16660_v61 = vadd.f32 %v7798_v52, %v7630_v2  ;;  %v7800_v41 = vpop.f32.mrf.mxu1  ;;  %v10980_v52 = vld [vmem:[#allocation5 + $0x54] sm:$0xf0] }
 0x8a4   :  { %v10428_v62 = vor.u32 %v10980_v52, %v10427_v47  ;;  %v17749_v47 = vld [vmem:[#allocation227_spill] sm:$0xff] }
 0x8a5   :  { %v7465_v59 = vpop.f32.mrf.mxu3  ;;  %v6966_v52 = vadd.f32 %v17749_v47, %v15505_v23 }
 0x8a6   :  { %v16664_v13 = vpop.f32.mrf.mxu2  ;;  %v7466_v45 = vadd.f32 %v7465_v59, %v16629_v25  ;;  %v10472_v59 = vor.u32 %v10989_v38, %v10469_v19 }
 0x8a8   :  { %v7631_v17 = vpop.f32.mrf.mxu0 }
 0x8a9   :  { %v7632_v57 = vadd.f32 %v7631_v17, %v7463_v53  ;;  %v10500_v53 = vor.u32 %v10999_v22, %v10499_v46  ;;  %v16694_v17 = vpop.permute.xlu2 %8147 }
 0x8aa   :  { %17747 = vst [vmem:[#allocation108_spill] sm:$0xff] %v16694_v17  ;;  %v11028_v17 = vld [vmem:[#allocation5 + $0x1d4] sm:$0xf0] }
 0x8ab   :  { %v7803_v21 = vpop.f32.mrf.mxu1  ;;  %v7801_v35 = vadd.f32 %v7800_v41, %v7632_v57  ;;  %v7880_v41 = vmax.f32 %v16660_v61, 0.0  ;;  %v11003_v57 = vld [vmem:[#allocation5 + $0x10c] sm:$0xf0] }
 0x8ad   :  { %v7467_v51 = vpop.f32.mrf.mxu3 }
 0x8ae   :  { %v16671_v27 = vpop.f32.mrf.mxu2  ;;  %v7468_v25 = vadd.f32 %v7467_v51, %v16638_v24 }
 0x8b0   :  { %v7634_v9 = vpop.f32.mrf.mxu0  ;;  %8691 = vmatmul.bf16.gmra.mxu0 %v10412_v33  ;;  %v16703_v33 = vpop.permute.xlu0 %8077 }
 0x8b1   :  { %v7635_v4 = vadd.f32 %v7634_v9, %v7466_v45  ;;  %v7881_v45 = vmax.f32 %v7801_v35, 0.0  ;;  %v16707_v61 = vpop.permute.xlu2 %8052  ;;  %v10993_v9 = vld [vmem:[#allocation5 + $0xc4] sm:$0xf] }
 0x8b2   :  { %8617 = vmatmul.bf16.gmra.mxu3 %v10456_v36  ;;  %8538 = vmatmul.bf16.gmra.mxu2 %v10484_v40  ;;  %v10443_v36 = vld [vmem:[#allocation5 + $0x68] sm:$0xf] }
 0x8b3   :  { %v16677_v11 = vadd.f32 %v7803_v21, %v7635_v4  ;;  %v7805_v58 = vpop.f32.mrf.mxu1  ;;  %v16699_v8 = vpack.c.bf16 %v7881_v45, %v7880_v41 }
 0x8b5   :  { %v7470_v24 = vpop.f32.mrf.mxu3  ;;  %v7882_v22 = vmax.f32 %v16677_v11, 0.0 }
 0x8b6   :  { %v16683_v32 = vpop.f32.mrf.mxu2  ;;  %v7471_v12 = vadd.f32 %v7470_v24, %v16646_v34  ;;  %v16692_v34 = vpop.permute.xlu1 %8072  ;;  %v10444_v24 = vor.u32 %v10984_v29, %v10443_v36  ;;  %v7309_v36 = vadd.f32 %v16671_v27, %v15472_v48 }
 0x8b8   :  { %v7636_v54 = vpop.f32.mrf.mxu0 }
 0x8b9   :  { %v7637_v42 = vadd.f32 %v7636_v54, %v7468_v25  ;;  %v10488_v25 = vor.u32 %v10993_v9, %v10485_v20  ;;  %v10988_v20 = vld [vmem:[#allocation5 + $0x94] sm:$0xf0] }
 0x8bb   :  { %v7808_v3 = vpop.f32.mrf.mxu1  ;;  %v7806_v40 = vadd.f32 %v7805_v58, %v7637_v42  ;;  %v17751_v58 = vld [vmem:[#allocation228_spill] sm:$0xff] }
 0x8bc   :  { %v7135_v46 = vadd.f32 %v17751_v58, %v6966_v52  ;;  %v10501_v52 = vld [vmem:[#allocation5 + $0xf0] sm:$0xf0]  ;;  %v11007_v58 = vld [vmem:[#allocation5 + $0x12c] sm:$0xf0] }
 0x8bd   :  { %v7472_v31 = vpop.f32.mrf.mxu3  ;;  %v7883_v54 = vmax.f32 %v7806_v40, 0.0  ;;  %v7307_v40 = vadd.f32 %v16664_v13, %v15511_v63 }
 0x8be   :  { %v16690_v2 = vpop.f32.mrf.mxu2  ;;  %v16705_v51 = vpop.permute.xlu1 %8152  ;;  %v7304_v45 = vadd.f32 %v16652_v10, %v7135_v46  ;;  %v10459_v10 = vld [vmem:[#allocation5 + $0x88] sm:$0xf] }
 0x8bf   :  { %17748 = vst [vmem:[#allocation57_spill] sm:$0xff] %v16705_v51  ;;  %v16720_v23 = vpack.c.bf16 %v7883_v54, %v7882_v22  ;;  %v10460_v54 = vor.u32 %v10988_v20, %v10459_v10  ;;  %v10994_v51 = vld [vmem:[#allocation5 + $0xcc] sm:$0xf] }
 0x8c0   :  { %v7639_v49 = vpop.f32.mrf.mxu0  ;;  %8696 = vmatmul.bf16.gmra.mxu0 %v10428_v62  ;;  %v16713_v62 = vpop.permute.xlu0 %8157  ;;  %v7473_v41 = vadd.f32 %v7472_v31, %v7304_v45  ;;  %v10997_v31 = vld [vmem:[#allocation5 + $0xe4] sm:$0xf]  ;;  %v7312_v45 = vadd.f32 %v16683_v32, %v15488_v60 }
 0x8c1   :  { %v7640_v5 = vadd.f32 %v7639_v49, %v7471_v12  ;;  %v10515_v12 = vld [vmem:[#allocation5 + $0x100] sm:$0xf]  ;;  %17750 = vst [vmem:[#allocation124_spill] sm:$0xff] %v16713_v62  ;;  %v16722_v49 = vpop.permute.xlu2 %8132  ;;  %v10504_v63 = vor.u32 %v10997_v31, %v10501_v52  ;;  %v10475_v52 = vld [vmem:[#allocation5 + $0xa8] sm:$0xf] }
 0x8c2   :  { %8622 = vmatmul.bf16.gmra.mxu3 %v10472_v59  ;;  %8543 = vmatmul.bf16.gmra.mxu2 %v10500_v53  ;;  %v10516_v19 = vor.u32 %v11003_v57, %v10515_v12  ;;  %v10493_v62 = vld [vmem:[#allocation5 + $0xd8] sm:$0xf0] }
 0x8c3   :  { %v16697_v0 = vadd.f32 %v7808_v3, %v7640_v5  ;;  %v7810_v37 = vpop.f32.mrf.mxu1 }
 0x8c5   :  { %v7475_v14 = vpop.f32.mrf.mxu3 }
 0x8c6   :  { %v16701_v21 = vpop.f32.mrf.mxu2  ;;  %v16717_v59 = vpop.permute.xlu1 %8057  ;;  %v7476_v57 = vadd.f32 %v7475_v14, %v7307_v40 }
 0x8c8   :  { %v7641_v26 = vpop.f32.mrf.mxu0 }
 0x8c9   :  { %v7642_v29 = vadd.f32 %v7641_v26, %v7473_v41  ;;  %v16736_v13 = vpop.permute.xlu2 %8037  ;;  %v7884_v41 = vmax.f32 %v16697_v0, 0.0 }
 0x8cb   :  { %v7813_v4 = vpop.f32.mrf.mxu1  ;;  %v7811_v12 = vadd.f32 %v7810_v37, %v7642_v29 }
 0x8cd   :  { %v7477_v35 = vpop.f32.mrf.mxu3 }
 0x8ce   :  { %v16711_v38 = vpop.f32.mrf.mxu2  ;;  %v7478_v9 = vadd.f32 %v7477_v35, %v7309_v36  ;;  %v16732_v48 = vpop.permute.xlu1 %8137  ;;  %v7885_v35 = vmax.f32 %v7811_v12, 0.0 }
 0x8d0   :  { %v7644_v3 = vpop.f32.mrf.mxu0  ;;  %8701 = vmatmul.bf16.gmra.mxu0 %v10444_v24  ;;  %v16730_v24 = vpop.permute.xlu0 %8062 }
 0x8d1   :  { %v7645_v27 = vadd.f32 %v7644_v3, %v7476_v57 }
 0x8d2   :  { %8627 = vmatmul.bf16.gmra.mxu3 %v10488_v25  ;;  %8548 = vmatmul.bf16.gmra.mxu2 %v10516_v19  ;;  %v10531_v19 = vld [vmem:[#allocation5 + $0x120] sm:$0xf] }
 0x8d3   :  { %v7815_v53 = vpop.f32.mrf.mxu1  ;;  %v10532_v37 = vor.u32 %v11007_v58, %v10531_v19  ;;  %v7814_v36 = vadd.f32 %v7813_v4, %v7645_v27  ;;  %v10547_v27 = vld [vmem:[#allocation5 + $0x140] sm:$0xf] }
 0x8d5   :  { %v7480_v5 = vpop.f32.mrf.mxu3 }
 0x8d6   :  { %v16724_v42 = vpop.f32.mrf.mxu2  ;;  %v7481_v3 = vadd.f32 %v7480_v5, %v7312_v45  ;;  %v16749_v60 = vpop.permute.xlu1 %8042 }
 0x8d7   :  { %v16753_v5 = vpop.permute.xlu2 %8117 }
 0x8d8   :  { %v7646_v11 = vpop.f32.mrf.mxu0  ;;  %v16743_v40 = vpop.permute.xlu0 %8142 }
 0x8d9   :  { %v7647_v47 = vadd.f32 %v7646_v11, %v7478_v9  ;;  %v16741_v11 = vpack.c.bf16 %v7885_v35, %v7884_v41  ;;  %v7886_v9 = vmax.f32 %v7814_v36, 0.0 }
 0x8db   :  { %v7818_v25 = vpop.f32.mrf.mxu1  ;;  %v7816_v22 = vadd.f32 %v7815_v53, %v7647_v47  ;;  %v7314_v53 = vadd.f32 %v16690_v2, %v15535_v16  ;;  %v11001_v16 = vld [vmem:[#allocation5 + $0x104] sm:$0xf]  ;;  %v10517_v2 = vld [vmem:[#allocation5 + $0x110] sm:$0xf0] }
 0x8dd   :  { %v7482_v26 = vpop.f32.mrf.mxu3  ;;  %v7887_v29 = vmax.f32 %v7816_v22, 0.0 }
 0x8de   :  { %v16734_v46 = vpop.f32.mrf.mxu2  ;;  %v7483_v32 = vadd.f32 %v7482_v26, %v7314_v53  ;;  %v10520_v26 = vor.u32 %v11001_v16, %v10517_v2  ;;  %v7317_v53 = vadd.f32 %v16701_v21, %v15558_v28  ;;  %v10491_v21 = vld [vmem:[#allocation5 + $0xc8] sm:$0xf] }
 0x8df   :  { %v16751_v0 = vpack.c.bf16 %v7887_v29, %v7886_v9  ;;  %v8023_v9 = vpop.permute.xlu2 %8022 }
 0x8e0   :  { %v7649_v14 = vpop.f32.mrf.mxu0  ;;  %8706 = vmatmul.bf16.gmra.mxu0 %v10460_v54  ;;  %v10992_v54 = vld [vmem:[#allocation5 + $0xb4] sm:$0xf0]  ;;  %v16755_v45 = vpop.permute.xlu0 %8047 }
 0x8e1   :  { %v7650_v10 = vadd.f32 %v7649_v14, %v7481_v3  ;;  %v10476_v58 = vor.u32 %v10992_v54, %v10475_v52  ;;  %v16757_v3 = vpop.permute.xlu1 %8122 }
 0x8e2   :  { %8632 = vmatmul.bf16.gmra.mxu3 %v10504_v63  ;;  %8553 = vmatmul.bf16.gmra.mxu2 %v10532_v37  ;;  %v11011_v63 = vld [vmem:[#allocation5 + $0x14c] sm:$0xf0] }
 0x8e3   :  { %v7820_v12 = vpop.f32.mrf.mxu1  ;;  %v7819_v47 = vadd.f32 %v7818_v25, %v7650_v10  ;;  %v10548_v41 = vor.u32 %v11011_v63, %v10547_v27 }
 0x8e5   :  { %v7485_v20 = vpop.f32.mrf.mxu3  ;;  %v7888_v35 = vmax.f32 %v7819_v47, 0.0 }
 0x8e6   :  { %v16747_v57 = vpop.f32.mrf.mxu2  ;;  %v7486_v10 = vadd.f32 %v7485_v20, %v7317_v53 }
 0x8e8   :  { %v7651_v4 = vpop.f32.mrf.mxu0  ;;  %v16766_v16 = vpop.permute.xlu0 %8127 }
 0x8e9   :  { %v7652_v31 = vadd.f32 %v7651_v4, %v7483_v32  ;;  %v7319_v32 = vadd.f32 %v16711_v38, %v15599_v55  ;;  %v8028_v27 = vpop.permute.xlu1 %8027 }
 0x8ea   :  { %v8512_v55 = vadd.f32 %v16734_v46, %v8028_v27  ;;  %v10579_v27 = vld [vmem:[#allocation5 + $0x180] sm:$0xf] }
 0x8eb   :  { %v7821_v19 = vadd.f32 %v7820_v12, %v7652_v31  ;;  %v7823_v29 = vpop.f32.mrf.mxu1  ;;  %v8510_v12 = vadd.f32 %v16724_v42, %v8023_v9  ;;  %v11005_v42 = vld [vmem:[#allocation5 + $0x124] sm:$0xf] }
 0x8ed   :  { %v7889_v22 = vmax.f32 %v7821_v19, 0.0  ;;  %v7487_v37 = vpop.f32.mrf.mxu3 }
 0x8ee   :  { %v8516_v14 = vpop.f32.mrf.mxu2  ;;  %v7488_v54 = vadd.f32 %v7487_v37, %v7319_v32 }
 0x8ef   :  { %v7986_v36 = vpack.c.bf16 %v7889_v22, %v7888_v35  ;;  %v10533_v35 = vld [vmem:[#allocation5 + $0x130] sm:$0xf0]  ;;  %v10563_v22 = vld [vmem:[#allocation5 + $0x160] sm:$0xf] }
 0x8f0   :  { %v7654_v25 = vpop.f32.mrf.mxu0  ;;  %8711 = vmatmul.bf16.gmra.mxu0 %v10476_v58  ;;  %v10996_v58 = vld [vmem:[#allocation5 + $0xd4] sm:$0xf0]  ;;  %v8033_v32 = vpop.permute.xlu0 %8032 }
 0x8f1   :  { %v7655_v4 = vadd.f32 %v7654_v25, %v7486_v10  ;;  %v10492_v38 = vor.u32 %v10996_v58, %v10491_v21  ;;  %v10549_v21 = vld [vmem:[#allocation5 + $0x150] sm:$0xf0]  ;;  %v8517_v58 = vadd.f32 %v8516_v14, %v16736_v13  ;;  %v8108_v44 = vpop.permute.xlu1 %8107 }
 0x8f2   :  { %8637 = vmatmul.bf16.gmra.mxu3 %v10520_v26  ;;  %8558 = vmatmul.bf16.gmra.mxu2 %v10548_v41  ;;  %v11015_v26 = vld [vmem:[#allocation5 + $0x16c] sm:$0xf0] }
 0x8f3   :  { %v7824_v2 = vadd.f32 %v7823_v29, %v7655_v4  ;;  %v7825_v20 = vpop.f32.mrf.mxu1  ;;  %v10536_v29 = vor.u32 %v11005_v42, %v10533_v35  ;;  %v8515_v4 = vadd.f32 %v16747_v57, %v8033_v32 }
 0x8f5   :  { %v8598_v47 = vpop.f32.mrf.mxu3  ;;  %v7890_v41 = vmax.f32 %v7824_v2, 0.0  ;;  %v11000_v2 = vld [vmem:[#allocation5 + $0xf4] sm:$0xf0] }
 0x8f6   :  { %v8519_v31 = vpop.f32.mrf.mxu2  ;;  %v16764_v52 = vadd.f32 %v8598_v47, %v8510_v12  ;;  %v10564_v12 = vor.u32 %v11015_v26, %v10563_v22  ;;  %v11004_v22 = vld [vmem:[#allocation5 + $0x114] sm:$0xf0]  ;;  %v10970_v26 = vld [vmem:[#allocation5 + $0xc] sm:$0xf] }
 0x8f8   :  { %v7656_v19 = vpop.f32.mrf.mxu0 }
 0x8f9   :  { %v7657_v28 = vadd.f32 %v7656_v19, %v7488_v54  ;;  %v10507_v19 = vld [vmem:[#allocation5 + $0xe8] sm:$0xf] }
 0x8fb   :  { %v7826_v63 = vadd.f32 %v7825_v20, %v7657_v28  ;;  %v11009_v28 = vld [vmem:[#allocation5 + $0x144] sm:$0xf]  ;;  %v10508_v20 = vor.u32 %v11000_v2, %v10507_v19 }
 0x8fc   :  { %v10552_v35 = vor.u32 %v11009_v28, %v10549_v21  ;;  %v10539_v21 = vld [vmem:[#allocation5 + $0x128] sm:$0xf] }
 0x8fd   :  { %v7891_v25 = vmax.f32 %v7826_v63, 0.0  ;;  %v8600_v37 = vpop.f32.mrf.mxu3  ;;  %v11019_v63 = vld [vmem:[#allocation5 + $0x18c] sm:$0xf0] }
 0x8fe   :  { %v8521_v53 = vpop.f32.mrf.mxu2  ;;  %v16769_v9 = vadd.f32 %v8600_v37, %v8512_v55  ;;  %v10580_v55 = vor.u32 %v11019_v63, %v10579_v27  ;;  %v10565_v37 = vld [vmem:[#allocation5 + $0x170] sm:$0xf0]  ;;  %v10413_v27 = vld [vmem:[#allocation5 + $0x38] sm:$0xf0]  ;;  %v11017_v63 = vld [vmem:[#allocation5 + $0x184] sm:$0xf] }
 0x8ff   :  { %v7987_v10 = vpack.c.bf16 %v7891_v25, %v7890_v41  ;;  %v10397_v41 = vld [vmem:[#allocation5 + $0x18] sm:$0xf0]  ;;  %v11013_v25 = vld [vmem:[#allocation5 + $0x164] sm:$0xf] }
 0x900   :  { %8716 = vmatmul.bf16.gmra.mxu0 %v10492_v38 }
 0x901   :  { %8767 = vmatpush.bf16.msrb.mxu1 %v7987_v10  ;;  %v10400_v10 = vor.u32 %v10970_v26, %v10397_v41 }
 0x902   :  { %8642 = vmatmul.bf16.gmra.mxu3 %v10536_v29  ;;  %8563 = vmatmul.bf16.gmra.mxu2 %v10564_v12 }
 0x905   :  { %8768 = vmatpush.bf16.msrb.mxu1 %v7986_v36  ;;  %v8603_v46 = vpop.f32.mrf.mxu3 }
 0x906   :  { %v8524_v47 = vpop.f32.mrf.mxu2  ;;  %v16772_v54 = vadd.f32 %v8603_v46, %v8515_v4  ;;  %v10568_v46 = vor.u32 %v11013_v25, %v10565_v37 }
 0x909   :  { %8769 = vmatpush.bf16.msrb.mxu1 %v16751_v0  ;;  %v8520_v0 = vadd.f32 %v8519_v31, %v16749_v60  ;;  %v10595_v60 = vld [vmem:[#allocation5 + $0x1a0] sm:$0xf]  ;;  %v11023_v31 = vld [vmem:[#allocation5 + $0x1ac] sm:$0xf0] }
 0x90a   :  { %v10596_v19 = vor.u32 %v11023_v31, %v10595_v60  ;;  %v11021_v31 = vld [vmem:[#allocation5 + $0x1a4] sm:$0xf] }
 0x90d   :  { %8770 = vmatpush.bf16.msrb.mxu1 %v16741_v11  ;;  %v8605_v42 = vpop.f32.mrf.mxu3  ;;  %v10523_v11 = vld [vmem:[#allocation5 + $0x108] sm:$0xf] }
 0x90e   :  { %v8526_v57 = vpop.f32.mrf.mxu2  ;;  %v16777_v36 = vadd.f32 %v8605_v42, %v8517_v58  ;;  %v10524_v29 = vor.u32 %v11004_v22, %v10523_v11  ;;  %v11008_v58 = vld [vmem:[#allocation5 + $0x134] sm:$0xf0]  ;;  %v10581_v42 = vld [vmem:[#allocation5 + $0x190] sm:$0xf0] }
 0x90f   :  { %v10584_v26 = vor.u32 %v11017_v63, %v10581_v42 }
 0x910   :  { %8721 = vmatmul.bf16.gmra.mxu0 %v10508_v20  ;;  %v10974_v20 = vld [vmem:[#allocation5 + $0x2c] sm:$0xf] }
 0x911   :  { %8771 = vmatpush.bf16.msrb.mxu1 %v16720_v23  ;;  %v8522_v23 = vadd.f32 %v8521_v53, %v16755_v45  ;;  %v8525_v45 = vadd.f32 %v8524_v47, %v16707_v61  ;;  %v11027_v61 = vld [vmem:[#allocation5 + $0x1cc] sm:$0xf0] }
 0x912   :  { %8647 = vmatmul.bf16.gmra.mxu3 %v10552_v35  ;;  %8568 = vmatmul.bf16.gmra.mxu2 %v10580_v55  ;;  %v8527_v35 = vadd.f32 %v8526_v57, %v16717_v59  ;;  %v10540_v55 = vor.u32 %v11008_v58, %v10539_v21 }
 0x915   :  { %8772 = vmatpush.bf16.msrb.mxu1 %v16699_v8  ;;  %v8608_v13 = vpop.f32.mrf.mxu3 }
 0x916   :  { %v16782_v14 = vpop.f32.mrf.mxu2  ;;  %v16784_v38 = vadd.f32 %v8608_v13, %v8520_v0  ;;  %v10416_v0 = vor.u32 %v10974_v20, %v10413_v27  ;;  %v10611_v13 = vld [vmem:[#allocation5 + $0x1c0] sm:$0xf] }
 0x917   :  { %v10612_v41 = vor.u32 %v11027_v61, %v10611_v13  ;;  %v10445_v13 = vld [vmem:[#allocation5 + $0x78] sm:$0xf0]  ;;  %v11025_v61 = vld [vmem:[#allocation5 + $0x1c4] sm:$0xf] }
 0x919   :  { %8773 = vmatpush.bf16.msrb.mxu1 %v16679_v6 }
 0x91d   :  { %v8687_v8 = vpop.f32.mrf.mxu0  ;;  %8774 = vmatpush.bf16.msrb.mxu1 %v16662_v15  ;;  %v8610_v12 = vpop.f32.mrf.mxu3 }
 0x91e   :  { %v16790_v32 = vadd.f32 %v8687_v8, %v16764_v52  ;;  %v16792_v4 = vpop.f32.mrf.mxu2  ;;  %v8611_v6 = vadd.f32 %v8610_v12, %v8522_v23  ;;  %v10555_v23 = vld [vmem:[#allocation5 + $0x148] sm:$0xf]  ;;  %v10597_v8 = vld [vmem:[#allocation5 + $0x1b0] sm:$0xf0] }
 0x920   :  { %8726 = vmatmul.bf16.gmra.mxu0 %v10524_v29  ;;  %8775 = vmatmul.bf16.vlgmr.msrb.gmra.mxu1 %v10400_v10  ;;  %v11012_v29 = vld [vmem:[#allocation5 + $0x154] sm:$0xf0]  ;;  %v10978_v10 = vld [vmem:[#allocation5 + $0x4c] sm:$0xf] }
 0x921   :  { %v10556_v12 = vor.u32 %v11012_v29, %v10555_v23 }
 0x922   :  { %8652 = vmatmul.bf16.gmra.mxu3 %v10568_v46  ;;  %8573 = vmatmul.bf16.gmra.mxu2 %v10596_v19  ;;  %v10627_v19 = vld [vmem:[#allocation5 + $0x1e0] sm:$0xf] }
 0x925   :  { %v8689_v53 = vpop.f32.mrf.mxu0  ;;  %v8613_v2 = vpop.f32.mrf.mxu3 }
 0x926   :  { %v16796_v28 = vadd.f32 %v8689_v53, %v16769_v9  ;;  %v16798_v15 = vpop.f32.mrf.mxu2  ;;  %v8614_v52 = vadd.f32 %v8613_v2, %v8525_v45  ;;  %v11031_v45 = vld [vmem:[#allocation5 + $0x1ec] sm:$0xf0] }
 0x927   :  { %v10628_v58 = vor.u32 %v11031_v45, %v10627_v19  ;;  %v10461_v19 = vld [vmem:[#allocation5 + $0x98] sm:$0xf0]  ;;  %v11029_v45 = vld [vmem:[#allocation5 + $0x1e4] sm:$0xf] }
 0x92d   :  { %v8692_v47 = vpop.f32.mrf.mxu0  ;;  %v8615_v11 = vpop.f32.mrf.mxu3 }
 0x92e   :  { %v16802_v9 = vadd.f32 %v8692_v47, %v16772_v54  ;;  %v8616_v22 = vadd.f32 %v8615_v11, %v8527_v35  ;;  %v16804_v25 = vpop.f32.mrf.mxu2  ;;  %v10429_v54 = vld [vmem:[#allocation5 + $0x58] sm:$0xf0]  ;;  %v10571_v35 = vld [vmem:[#allocation5 + $0x168] sm:$0xf] }
 0x92f   :  { %v10432_v46 = vor.u32 %v10978_v10, %v10429_v54 }
 0x930   :  { %8731 = vmatmul.bf16.gmra.mxu0 %v10540_v55  ;;  %8780 = vmatmul.bf16.gmra.mxu1 %v10416_v0  ;;  %v11016_v55 = vld [vmem:[#allocation5 + $0x174] sm:$0xf0]  ;;  %v10982_v0 = vld [vmem:[#allocation5 + $0x6c] sm:$0xf] }
 0x931   :  { %v10572_v47 = vor.u32 %v11016_v55, %v10571_v35  ;;  %v10448_v11 = vor.u32 %v10982_v0, %v10445_v13  ;;  %v10603_v13 = vld [vmem:[#allocation5 + $0x1a8] sm:$0xf] }
 0x932   :  { %8657 = vmatmul.bf16.gmra.mxu3 %v10584_v26  ;;  %8578 = vmatmul.bf16.gmra.mxu2 %v10612_v41 }
 0x935   :  { %v8694_v37 = vpop.f32.mrf.mxu0  ;;  %v16806_v59 = vpop.f32.mrf.mxu3 }
 0x936   :  { %v16809_v57 = vadd.f32 %v8694_v37, %v16777_v36  ;;  %v16811_v60 = vpop.f32.mrf.mxu2  ;;  %v10600_v36 = vor.u32 %v11021_v31, %v10597_v8  ;;  %v10587_v8 = vld [vmem:[#allocation5 + $0x188] sm:$0xf] }
 0x93d   :  { %v8697_v53 = vpop.f32.mrf.mxu0  ;;  %v16813_v2 = vpop.f32.mrf.mxu3 }
 0x93e   :  { %17752 = vst [vmem:[#allocation111_spill] sm:$0xff] %v16813_v2  ;;  %v16816_v21 = vadd.f32 %v8697_v53, %v16784_v38  ;;  %v16818_v20 = vpop.f32.mrf.mxu2  ;;  %v10613_v38 = vld [vmem:[#allocation5 + $0x1d0] sm:$0xf0] }
 0x93f   :  { %v10616_v29 = vor.u32 %v11025_v61, %v10613_v38  ;;  %v10629_v53 = vld [vmem:[#allocation5 + $0x1f0] sm:$0xf0]  ;;  %v8113_v61 = vpop.permute.xlu0 %8112  ;;  %v11024_v38 = vld [vmem:[#allocation5 + $0x1b4] sm:$0xf0] }
 0x940   :  { %8736 = vmatmul.bf16.gmra.mxu0 %v10556_v12  ;;  %8785 = vmatmul.bf16.gmra.mxu1 %v10432_v46  ;;  %v11020_v12 = vld [vmem:[#allocation5 + $0x194] sm:$0xf0]  ;;  %v10986_v46 = vld [vmem:[#allocation5 + $0x8c] sm:$0xf]  ;;  %v10632_v35 = vor.u32 %v11029_v45, %v10629_v53 }
 0x942   :  { %8662 = vmatmul.bf16.gmra.mxu3 %v10600_v36  ;;  %8583 = vmatmul.bf16.gmra.mxu2 %v10628_v58  ;;  %v10588_v36 = vor.u32 %v11020_v12, %v10587_v8 }
 0x945   :  { %v8699_v27 = vpop.f32.mrf.mxu0  ;;  %v16820_v63 = vpop.f32.mrf.mxu3 }
 0x946   :  { %v16822_v42 = vadd.f32 %v8699_v27, %v8611_v6  ;;  %v16826_v37 = vpop.f32.mrf.mxu2 }
 0x94d   :  { %v8702_v26 = vpop.f32.mrf.mxu0  ;;  %v16824_v41 = vpop.f32.mrf.mxu3 }
 0x94e   :  { %v16828_v23 = vadd.f32 %v8702_v26, %v8614_v52  ;;  %v16834_v31 = vpop.f32.mrf.mxu2  ;;  %v10464_v52 = vor.u32 %v10986_v46, %v10461_v19  ;;  %v8103_v46 = vpop.permute.xlu0 %8102 }
 0x950   :  { %8741 = vmatmul.bf16.gmra.mxu0 %v10572_v47  ;;  %8790 = vmatmul.bf16.gmra.mxu1 %v10448_v11  ;;  %v10990_v47 = vld [vmem:[#allocation5 + $0xac] sm:$0xf]  ;;  %v10477_v11 = vld [vmem:[#allocation5 + $0xb8] sm:$0xf0] }
 0x952   :  { %8667 = vmatmul.bf16.gmra.mxu3 %v10616_v29  ;;  %v10604_v29 = vor.u32 %v11024_v38, %v10603_v13 }
 0x955   :  { %v8704_v6 = vpop.f32.mrf.mxu0  ;;  %v16830_v10 = vpop.f32.mrf.mxu3 }
 0x956   :  { %v16832_v54 = vadd.f32 %v8704_v6, %v8616_v22  ;;  %v8549_v55 = vpop.f32.mrf.mxu2  ;;  %v10480_v6 = vor.u32 %v10990_v47, %v10477_v11  ;;  %v10496_v47 = vor.u32 %v10994_v51, %v10493_v62 }
 0x957   :  { %v8550_v19 = vadd.f32 %v8549_v55, %v8103_v46 }
 0x95d   :  { %v16836_v58 = vpop.f32.mrf.mxu0  ;;  %v16838_v27 = vpop.f32.mrf.mxu3 }
 0x95e   :  { %v8551_v26 = vpop.f32.mrf.mxu2 }
 0x95f   :  { %v8552_v13 = vadd.f32 %v8551_v26, %v8108_v44 }
 0x960   :  { %8746 = vmatmul.bf16.gmra.mxu0 %v10588_v36  ;;  %8795 = vmatmul.bf16.gmra.mxu1 %v10464_v52 }
 0x962   :  { %8672 = vmatmul.bf16.gmra.mxu3 %v10632_v35  ;;  %v10619_v35 = vld [vmem:[#allocation5 + $0x1c8] sm:$0xf] }
 0x963   :  { %v10620_v38 = vor.u32 %v11028_v17, %v10619_v35 }
 0x965   :  { %v16840_v22 = vpop.f32.mrf.mxu0  ;;  %v16842_v0 = vpop.f32.mrf.mxu3 }
 0x966   :  { %17753 = vst [vmem:[#allocation67_spill] sm:$0xff] %v16840_v22  ;;  %v8554_v36 = vpop.f32.mrf.mxu2  ;;  %v10998_v22 = vld [vmem:[#allocation5 + $0xec] sm:$0xf] }
 0x967   :  { %v8555_v55 = vadd.f32 %v8554_v36, %v8113_v61 }
 0x96d   :  { %v16844_v8 = vpop.f32.mrf.mxu0  ;;  %v16846_v12 = vpop.f32.mrf.mxu3 }
 0x96e   :  { %17754 = vst [vmem:[#allocation61_spill] sm:$0xff] %v16844_v8  ;;  %v10509_v8 = vld [vmem:[#allocation5 + $0xf8] sm:$0xf0] }
 0x96f   :  { %v10512_v51 = vor.u32 %v10998_v22, %v10509_v8 }
 0x970   :  { %8751 = vmatmul.bf16.gmra.mxu0 %v10604_v29  ;;  %8800 = vmatmul.bf16.gmra.mxu1 %v10480_v6  ;;  %v8556_v6 = vpop.f32.mrf.mxu2 }
 0x971   :  { %v8557_v44 = vadd.f32 %v8556_v6, %v16753_v5 }
 0x975   :  { %v16848_v45 = vpop.f32.mrf.mxu0  ;;  %v8638_v53 = vpop.f32.mrf.mxu3 }
 0x976   :  { %v8639_v52 = vadd.f32 %v8638_v53, %v8550_v19  ;;  %v10635_v53 = vld [vmem:[#allocation5 + $0x1e8] sm:$0xf] }
 0x977   :  { %v10636_v17 = vor.u32 %v11032_v50, %v10635_v53 }
 0x978   :  { %v8559_v2 = vpop.f32.mrf.mxu2 }
 0x979   :  { %v8560_v61 = vadd.f32 %v8559_v2, %v16757_v3 }
 0x97d   :  { %v16850_v11 = vpop.f32.mrf.mxu0  ;;  %v8640_v30 = vpop.f32.mrf.mxu3 }
 0x97e   :  { %v8641_v29 = vadd.f32 %v8640_v30, %v8552_v13 }
 0x980   :  { %8756 = vmatmul.bf16.gmra.mxu0 %v10620_v38  ;;  %8805 = vmatmul.bf16.gmra.mxu1 %v10496_v47  ;;  %v8561_v36 = vpop.f32.mrf.mxu2  ;;  %v11002_v38 = vld [vmem:[#allocation5 + $0x10c] sm:$0xf]  ;;  %v10525_v47 = vld [vmem:[#allocation5 + $0x118] sm:$0xf0] }
 0x981   :  { %v8562_v5 = vadd.f32 %v8561_v36, %v16766_v16 }
 0x985   :  { %v16852_v46 = vpop.f32.mrf.mxu0  ;;  %v8643_v56 = vpop.f32.mrf.mxu3 }
 0x986   :  { %v8644_v19 = vadd.f32 %v8643_v56, %v8555_v55  ;;  %v10528_v55 = vor.u32 %v11002_v38, %v10525_v47  ;;  %v10541_v38 = vld [vmem:[#allocation5 + $0x138] sm:$0xf0] }
 0x988   :  { %v8564_v8 = vpop.f32.mrf.mxu2 }
 0x989   :  { %v8565_v2 = vadd.f32 %v8564_v8, %v16722_v49 }
 0x98d   :  { %v16855_v62 = vpop.f32.mrf.mxu0  ;;  %v8645_v30 = vpop.f32.mrf.mxu3 }
 0x98e   :  { %v8646_v26 = vadd.f32 %v8645_v30, %v8557_v44 }
 0x990   :  { %8761 = vmatmul.bf16.gmra.mxu0 %v10636_v17  ;;  %8810 = vmatmul.bf16.gmra.mxu1 %v10512_v51 }
 0x995   :  { %v16858_v35 = vpop.f32.mrf.mxu0  ;;  %v8648_v56 = vpop.f32.mrf.mxu3 }
 0x996   :  { %v8649_v13 = vadd.f32 %v8648_v56, %v8560_v61  ;;  %v8566_v56 = vpop.f32.mrf.mxu2 }
 0x99d   :  { %v8727_v50 = vpop.f32.mrf.mxu0  ;;  %v8776_v22 = vpop.f32.mrf.mxu1 }
 0x99e   :  { %v16861_v6 = vadd.f32 %v8727_v50, %v8639_v52  ;;  %v16864_v53 = vadd.f32 %v8776_v22, %v16790_v32  ;;  %v8650_v44 = vpop.f32.mrf.mxu3  ;;  %v11006_v52 = vld [vmem:[#allocation5 + $0x12c] sm:$0xf]  ;;  %v8567_v32 = vadd.f32 %v8566_v56, %v16732_v48  ;;  %v10557_v56 = vld [vmem:[#allocation5 + $0x158] sm:$0xf0] }
 0x99f   :  { %v8651_v3 = vadd.f32 %v8650_v44, %v8562_v5  ;;  %v10544_v47 = vor.u32 %v11006_v52, %v10541_v38 }
 0x9a0   :  { %8815 = vmatmul.bf16.gmra.mxu1 %v10528_v55 }
 0x9a5   :  { %v8729_v17 = vpop.f32.mrf.mxu0  ;;  %v8778_v51 = vpop.f32.mrf.mxu1 }
 0x9a6   :  { %v16867_v30 = vadd.f32 %v8729_v17, %v8641_v29  ;;  %v16870_v61 = vadd.f32 %v8778_v51, %v16796_v28  ;;  %v8653_v16 = vpop.f32.mrf.mxu3  ;;  %v8569_v28 = vpop.f32.mrf.mxu2 }
 0x9a7   :  { %v8654_v36 = vadd.f32 %v8653_v16, %v8565_v2  ;;  %v8570_v8 = vadd.f32 %v8569_v28, %v16743_v40 }
 0x9ad   :  { %v8732_v50 = vpop.f32.mrf.mxu0  ;;  %v8781_v5 = vpop.f32.mrf.mxu1 }
 0x9ae   :  { %v16873_v55 = vadd.f32 %v8732_v50, %v8644_v19  ;;  %v16876_v49 = vadd.f32 %v8781_v5, %v16802_v9  ;;  %v8655_v29 = vpop.f32.mrf.mxu3  ;;  %v11010_v19 = vld [vmem:[#allocation5 + $0x14c] sm:$0xf] }
 0x9af   :  { %v8656_v22 = vadd.f32 %v8655_v29, %v8567_v32  ;;  %v10560_v52 = vor.u32 %v11010_v19, %v10557_v56  ;;  %v11014_v5 = vld [vmem:[#allocation5 + $0x16c] sm:$0xf]  ;;  %v10573_v29 = vld [vmem:[#allocation5 + $0x178] sm:$0xf0] }
 0x9b0   :  { %8820 = vmatmul.bf16.gmra.mxu1 %v10544_v47  ;;  %v10576_v28 = vor.u32 %v11014_v5, %v10573_v29  ;;  %v11018_v56 = vld [vmem:[#allocation5 + $0x18c] sm:$0xf]  ;;  %v10605_v29 = vld [vmem:[#allocation5 + $0x1b8] sm:$0xf0] }
 0x9b5   :  { %v8734_v44 = vpop.f32.mrf.mxu0  ;;  %v8783_v2 = vpop.f32.mrf.mxu1 }
 0x9b6   :  { %v16879_v17 = vadd.f32 %v8734_v44, %v8646_v26  ;;  %v16882_v51 = vadd.f32 %v8783_v2, %v16809_v57  ;;  %v8658_v48 = vpop.f32.mrf.mxu3 }
 0x9b7   :  { %v8659_v16 = vadd.f32 %v8658_v48, %v8570_v8 }
 0x9bd   :  { %v8737_v9 = vpop.f32.mrf.mxu0  ;;  %v8786_v38 = vpop.f32.mrf.mxu1 }
 0x9be   :  { %v16884_v50 = vadd.f32 %v8737_v9, %v8649_v13  ;;  %v16887_v47 = vadd.f32 %v8786_v38, %v16816_v21 }
 0x9c0   :  { %8825 = vmatmul.bf16.gmra.mxu1 %v10560_v52  ;;  %v10589_v52 = vld [vmem:[#allocation5 + $0x198] sm:$0xf0] }
 0x9c1   :  { %v10592_v38 = vor.u32 %v11018_v56, %v10589_v52  ;;  %v8545_v52 = vadd.f32 %v16826_v37, %v16675_v7 }
 0x9c5   :  { %v8739_v40 = vpop.f32.mrf.mxu0  ;;  %v8788_v32 = vpop.f32.mrf.mxu1 }
 0x9c6   :  { %v16889_v26 = vadd.f32 %v8739_v40, %v8651_v3  ;;  %v16892_v57 = vadd.f32 %v8788_v32, %v16822_v42  ;;  %v8530_v42 = vadd.f32 %v16782_v14, %v16730_v24  ;;  %v11026_v14 = vld [vmem:[#allocation5 + $0x1cc] sm:$0xf] }
 0x9c8   :  { %v8619_v9 = vadd.f32 %v16806_v59, %v8530_v42  ;;  %v10637_v42 = vld [vmem:[#allocation5 + $0x1f8] sm:$0xf0] }
 0x9cd   :  { %v8742_v8 = vpop.f32.mrf.mxu0  ;;  %v8791_v44 = vpop.f32.mrf.mxu1 }
 0x9ce   :  { %v16894_v2 = vadd.f32 %v8742_v8, %v8654_v36  ;;  %v16897_v13 = vadd.f32 %v8791_v44, %v16828_v23  ;;  %v8708_v36 = vadd.f32 %v16836_v58, %v8619_v9  ;;  %v10621_v44 = vld [vmem:[#allocation5 + $0x1d8] sm:$0xf0]  ;;  %v8547_v9 = vadd.f32 %v16834_v31, %v16655_v1 }
 0x9cf   :  { %v10624_v59 = vor.u32 %v11026_v14, %v10621_v44  ;;  %v8537_v1 = vadd.f32 %v16804_v25, %v16703_v33  ;;  %v17756_v44 = vld [vmem:[#allocation61_spill] sm:$0xff] }
 0x9d0   :  { %8830 = vmatmul.bf16.gmra.mxu1 %v10576_v28 }
 0x9d5   :  { %v8744_v21 = vpop.f32.mrf.mxu0  ;;  %v8793_v48 = vpop.f32.mrf.mxu1 }
 0x9d6   :  { %v16899_v19 = vadd.f32 %v8744_v21, %v8656_v22  ;;  %v16902_v3 = vadd.f32 %v8793_v48, %v16832_v54  ;;  %v11022_v54 = vld [vmem:[#allocation5 + $0x1ac] sm:$0xf] }
 0x9d7   :  { %v10608_v28 = vor.u32 %v11022_v54, %v10605_v29  ;;  %v11030_v48 = vld [vmem:[#allocation5 + $0x1ec] sm:$0xf] }
 0x9dd   :  { %v8747_v23 = vpop.f32.mrf.mxu0  ;;  %v8796_v40 = vpop.f32.mrf.mxu1 }
 0x9de   :  { %v16908_v32 = vadd.f32 %v8747_v23, %v8659_v16  ;;  %v16910_v5 = vadd.f32 %v8796_v40, %v8708_v36  ;;  %v10640_v16 = vor.u32 %v11030_v48, %v10637_v42  ;;  %v8542_v36 = vadd.f32 %v16818_v20, %v16667_v39 }
 0x9df   :  { %v8636_v23 = vadd.f32 %v16846_v12, %v8547_v9  ;;  %v8540_v40 = vadd.f32 %v16811_v60, %v16658_v18  ;;  %v8535_v12 = vadd.f32 %v16798_v15, %v16692_v34  ;;  %v8626_v18 = vadd.f32 %v16824_v41, %v8537_v1 }
 0x9e0   :  { %8835 = vmatmul.bf16.gmra.mxu1 %v10592_v38  ;;  %v8634_v38 = vadd.f32 %v16842_v0, %v8545_v52  ;;  %v8631_v54 = vadd.f32 %v16838_v27, %v8542_v36  ;;  %v8860_v9 = vmax.f32 %v16887_v47, 0.0 }
 0x9e1   :  { %v8725_v7 = vadd.f32 %v16858_v35, %v8636_v23  ;;  %v8629_v31 = vadd.f32 %v16830_v10, %v8540_v40  ;;  %v8532_v35 = vadd.f32 %v16792_v4, %v16686_v43  ;;  %v8624_v33 = vadd.f32 %v16820_v63, %v8535_v12  ;;  %v8571_v40 = vpop.f32.mrf.mxu2 }
 0x9e2   :  { %v8723_v29 = vadd.f32 %v16855_v62, %v8634_v38  ;;  %v8720_v39 = vadd.f32 %v16852_v46, %v8631_v54  ;;  %v8715_v25 = vadd.f32 %v16848_v45, %v8626_v18  ;;  %v8660_v54 = vpop.f32.mrf.mxu3 }
 0x9e3   :  { %v8718_v60 = vadd.f32 %v16850_v11, %v8629_v31  ;;  %v8713_v34 = vadd.f32 %v17756_v44, %v8624_v33 }
 0x9e5   :  { %v8798_v22 = vpop.f32.mrf.mxu1 }
 0x9e9   :  { %v8574_v1 = vpop.f32.mrf.mxu2 }
 0x9ed   :  { %v8801_v8 = vpop.f32.mrf.mxu1 }
 0x9ee   :  { %v8802_v48 = vadd.f32 %v8801_v8, %v8713_v34  ;;  %v8863_v8 = vmax.f32 %v16902_v3, 0.0  ;;  %v8857_v3 = vmax.f32 %v16870_v61, 0.0  ;;  %v8890_v61 = vld [vmem:[%s17022_s11 + $0x10] sm:$0x1] }
 0x9f0   :  { %8840 = vmatmul.bf16.gmra.mxu1 %v10608_v28  ;;  %v17755_v28 = vld [vmem:[#allocation111_spill] sm:$0xff]  ;;  %v8866_v45 = vmax.f32 %v8802_v48, 0.0 }
 0x9f1   :  { %v8621_v14 = vadd.f32 %v17755_v28, %v8532_v35 }
 0x9f5   :  { %v8803_v24 = vpop.f32.mrf.mxu1 }
 0x9f6   :  { %v8804_v15 = vadd.f32 %v8803_v24, %v8715_v25  ;;  %v8864_v24 = vmax.f32 %v16910_v5, 0.0  ;;  %v8858_v5 = vmax.f32 %v16876_v49, 0.0 }
 0x9f8   :  { %v8867_v63 = vmax.f32 %v8804_v15, 0.0 }
 0x9fd   :  { %v8806_v21 = vpop.f32.mrf.mxu1 }
 0x9fe   :  { %v8807_v10 = vadd.f32 %v8806_v21, %v8718_v60 }
 0xa00   :  { %8845 = vmatmul.bf16.gmra.mxu1 %v10624_v59  ;;  %v17757_v59 = vld [vmem:[#allocation67_spill] sm:$0xff]  ;;  %v8868_v42 = vmax.f32 %v8807_v10, 0.0 }
 0xa05   :  { %v8808_v58 = vpop.f32.mrf.mxu1 }
 0xa06   :  { %v8809_v27 = vadd.f32 %v8808_v58, %v8720_v39  ;;  %v8710_v58 = vadd.f32 %v17757_v59, %v8621_v14  ;;  %v17759_v59 = vld [vmem:[#allocation103_spill] sm:$0xff] }
 0xa08   :  { %v8869_v41 = vmax.f32 %v8809_v27, 0.0  ;;  %v8799_v4 = vadd.f32 %v8798_v22, %v8710_v58  ;;  %v8861_v22 = vmax.f32 %v16892_v57, 0.0  ;;  %v8856_v57 = vmax.f32 %v16864_v53, 0.0 }
 0xa0a   :  { %v8865_v21 = vmax.f32 %v8799_v4, 0.0 }
 0xa0d   :  { %v8811_v56 = vpop.f32.mrf.mxu1 }
 0xa0e   :  { %v8812_v20 = vadd.f32 %v8811_v56, %v8723_v29  ;;  %v8749_v29 = vpop.f32.mrf.mxu0 }
 0xa10   :  { %8850 = vmatmul.bf16.gmra.mxu1 %v10640_v16  ;;  %v8870_v46 = vmax.f32 %v8812_v20, 0.0 }
 0xa15   :  { %v8813_v37 = vpop.f32.mrf.mxu1 }
 0xa16   :  { %v8814_v0 = vadd.f32 %v8813_v37, %v8725_v7  ;;  %v8663_v37 = vpop.f32.mrf.mxu3  ;;  %v8752_v20 = vpop.f32.mrf.mxu0 }
 0xa18   :  { %v8871_v62 = vmax.f32 %v8814_v0, 0.0 }
 0xa1a   :  { %8904 = vmatpush.msra.mxu2 %v8871_v62 }
 0xa1c   :  { %8905 = vmatpush.msra.mxu2 %v8870_v46 }
 0xa1d   :  { %v8816_v11 = vpop.f32.mrf.mxu1 }
 0xa1e   :  { %v16941_v43 = vadd.f32 %v8816_v11, %v16861_v6  ;;  %8906 = vmatpush.msra.mxu2 %v8869_v41  ;;  %v8862_v6 = vmax.f32 %v16897_v13, 0.0  ;;  %v8665_v12 = vpop.f32.mrf.mxu3  ;;  %v8754_v18 = vpop.f32.mrf.mxu0  ;;  %v17758_v41 = vld [vmem:[#allocation121_spill] sm:$0xff] }
 0xa20   :  { %8907 = vmatpush.msra.mxu2 %v8868_v42  ;;  %v17760_v42 = vld [vmem:[#allocation120_spill] sm:$0xff] }
 0xa22   :  { %8908 = vmatpush.msra.mxu2 %v8867_v63 }
 0xa24   :  { %8909 = vmatpush.msra.mxu2 %v8866_v45 }
 0xa25   :  { %v8818_v16 = vpop.f32.mrf.mxu1 }
 0xa26   :  { %v16945_v56 = vadd.f32 %v8818_v16, %v16867_v30  ;;  %8910 = vmatpush.msra.mxu2 %v8865_v21  ;;  %v8859_v30 = vmax.f32 %v16882_v51, 0.0  ;;  %v8668_v27 = vpop.f32.mrf.mxu3  ;;  %v8757_v62 = vpop.f32.mrf.mxu0  ;;  %v17761_v21 = vld [vmem:[#allocation122_spill] sm:$0xff] }
 0xa28   :  { %8911 = vmatpush.msra.mxu2 %v8864_v24 }
 0xa2a   :  { %8912 = vmatpush.msra.mxu2 %v8863_v8 }
 0xa2c   :  { %8913 = vmatpush.msra.mxu2 %v8862_v6 }
 0xa2d   :  { %v8821_v52 = vpop.f32.mrf.mxu1 }
 0xa2e   :  { %v16952_v36 = vadd.f32 %v8821_v52, %v16873_v55  ;;  %8914 = vmatpush.msra.mxu2 %v8861_v22  ;;  %v8888_v55 = vld [vmem:[%s17022_s11] sm:$0xff]  ;;  %v8670_v25 = vpop.f32.mrf.mxu3  ;;  %v17762_v22 = vld [vmem:[#allocation124_spill] sm:$0xff] }
 0xa30   :  { %8915 = vmatpush.msra.mxu2 %v8860_v9 }
 0xa32   :  { %8916 = vmatpush.msra.mxu2 %v8859_v30 }
 0xa34   :  { %8917 = vmatpush.msra.mxu2 %v8858_v5 }
 0xa35   :  { %v8823_v13 = vpop.f32.mrf.mxu1 }
 0xa36   :  { %v16959_v38 = vadd.f32 %v8823_v13, %v16879_v17  ;;  %8918 = vmatpush.msra.mxu2 %v8857_v3  ;;  %v8673_v28 = vpop.f32.mrf.mxu3 }
 0xa38   :  { %8919 = vmatpush.msra.mxu2 %v8856_v57  ;;  %v17763_v57 = vld [vmem:[#allocation57_spill] sm:$0xff] }
 0xa39   :  { %8920 = vmatmul.f32.vlgmr.msra.gmra.mxu2 %v8888_v55  ;;  %v8575_v55 = vadd.f32 %v8574_v1, %v17763_v57 }
 0xa3d   :  { %v8826_v51 = vpop.f32.mrf.mxu1 }
 0xa3e   :  { %v16965_v49 = vadd.f32 %v8826_v51, %v16884_v50  ;;  %v8675_v15 = vpop.f32.mrf.mxu3 }
 0xa41   :  { %8923 = vmatmul.f32.gmra.mxu2 %v8890_v61 }
 0xa45   :  { %v8828_v53 = vpop.f32.mrf.mxu1 }
 0xa46   :  { %v16971_v17 = vadd.f32 %v8828_v53, %v16889_v26  ;;  %v8576_v26 = vpop.f32.mrf.mxu2 }
 0xa47   :  { %v8577_v52 = vadd.f32 %v8576_v26, %v17762_v22 }
 0xa49   :  { %v8666_v51 = vadd.f32 %v8665_v12, %v8577_v52 }
 0xa4d   :  { %v8831_v47 = vpop.f32.mrf.mxu1 }
 0xa4e   :  { %v16974_v23 = vadd.f32 %v8831_v47, %v16894_v2  ;;  %v8579_v60 = vpop.f32.mrf.mxu2 }
 0xa4f   :  { %v8580_v16 = vadd.f32 %v8579_v60, %v17761_v21  ;;  %v8755_v60 = vadd.f32 %v8754_v18, %v8666_v51  ;;  %v8875_v18 = vmax.f32 %v16959_v38, 0.0  ;;  %v8891_v38 = vld [vmem:[%s17022_s11 + $0x18] sm:$0x1] }
 0xa51   :  { %v8669_v30 = vadd.f32 %v8668_v27, %v8580_v16 }
 0xa53   :  { %v8758_v61 = vadd.f32 %v8757_v62, %v8669_v30 }
 0xa55   :  { %v8833_v7 = vpop.f32.mrf.mxu1 }
 0xa56   :  { %v16977_v50 = vadd.f32 %v8833_v7, %v16899_v19  ;;  %v8581_v33 = vpop.f32.mrf.mxu2  ;;  %v8759_v19 = vpop.f32.mrf.mxu0  ;;  %v17764_v7 = vld [vmem:[#allocation108_spill] sm:$0xff] }
 0xa57   :  { %v8582_v4 = vadd.f32 %v8581_v33, %v17760_v42  ;;  %v8664_v33 = vadd.f32 %v8663_v37, %v8575_v55 }
 0xa59   :  { %v8671_v24 = vadd.f32 %v8670_v25, %v8582_v4  ;;  %v8753_v26 = vadd.f32 %v8752_v20, %v8664_v33  ;;  %v8878_v20 = vmax.f32 %v16974_v23, 0.0 }
 0xa5b   :  { %v8760_v5 = vadd.f32 %v8759_v19, %v8671_v24 }
 0xa5d   :  { %v8836_v31 = vpop.f32.mrf.mxu1 }
 0xa5e   :  { %v16980_v39 = vadd.f32 %v8836_v31, %v16908_v32  ;;  %v8584_v46 = vpop.f32.mrf.mxu2  ;;  %v8762_v44 = vpop.f32.mrf.mxu0  ;;  %v8572_v31 = vadd.f32 %v8571_v40, %v17764_v7 }
 0xa5f   :  { %v8585_v11 = vadd.f32 %v8584_v46, %v17758_v41 }
 0xa60   :  { %v8880_v37 = vmax.f32 %v16980_v39, 0.0  ;;  %v8873_v39 = vmax.f32 %v16945_v56, 0.0 }
 0xa61   :  { %v8674_v63 = vadd.f32 %v8673_v28, %v8585_v11  ;;  %v8661_v28 = vadd.f32 %v8660_v54, %v8572_v31  ;;  %v8879_v54 = vmax.f32 %v16977_v50, 0.0  ;;  %v8872_v50 = vmax.f32 %v16941_v43, 0.0 }
 0xa63   :  { %v8763_v8 = vadd.f32 %v8762_v44, %v8674_v63  ;;  %v8750_v19 = vadd.f32 %v8749_v29, %v8661_v28  ;;  %v8877_v29 = vmax.f32 %v16971_v17, 0.0  ;;  %v8889_v17 = vld [vmem:[%s17022_s11 + $0x8] sm:$0xff] }
 0xa65   :  { %v8838_v0 = vpop.f32.mrf.mxu1 }
 0xa66   :  { %v8586_v32 = vpop.f32.mrf.mxu2  ;;  %v8764_v48 = vpop.f32.mrf.mxu0  ;;  %v8839_v1 = vadd.f32 %v8838_v0, %v8750_v19  ;;  %v8876_v0 = vmax.f32 %v16965_v49, 0.0 }
 0xa67   :  { %v8587_v58 = vadd.f32 %v8586_v32, %v17759_v59 }
 0xa68   :  { %v8881_v40 = vmax.f32 %v8839_v1, 0.0 }
 0xa69   :  { %v8676_v45 = vadd.f32 %v8675_v15, %v8587_v58 }
 0xa6b   :  { %v8765_v6 = vadd.f32 %v8764_v48, %v8676_v45 }
 0xa6d   :  { %v8841_v2 = vpop.f32.mrf.mxu1 }
 0xa6e   :  { %v8842_v32 = vadd.f32 %v8841_v2, %v8753_v26  ;;  %v8874_v2 = vmax.f32 %v16952_v36, 0.0  ;;  %v8897_v36 = vpop.permute.xlu2 %8896 }
 0xa70   :  { %v8882_v62 = vmax.f32 %v8842_v32, 0.0 }
 0xa75   :  { %v8843_v35 = vpop.f32.mrf.mxu1 }
 0xa76   :  { %v8844_v44 = vadd.f32 %v8843_v35, %v8755_v60 }
 0xa78   :  { %v8883_v12 = vmax.f32 %v8844_v44, 0.0 }
 0xa7d   :  { %v8846_v10 = vpop.f32.mrf.mxu1 }
 0xa7e   :  { %v8847_v25 = vadd.f32 %v8846_v10, %v8758_v61  ;;  %v8902_v10 = vpop.permute.xlu1 %8901 }
 0xa85   :  { %v8848_v14 = vpop.f32.mrf.mxu1 }
 0xa86   :  { %v8849_v53 = vadd.f32 %v8848_v14, %v8760_v5 }
 0xa88   :  { %v8885_v27 = vmax.f32 %v8849_v53, 0.0 }
 0xa8d   :  { %v8851_v34 = vpop.f32.mrf.mxu1 }
 0xa8e   :  { %v8852_v3 = vadd.f32 %v8851_v34, %v8763_v8  ;;  %v8884_v34 = vmax.f32 %v8847_v25, 0.0 }
 0xa90   :  { %v8886_v46 = vmax.f32 %v8852_v3, 0.0 }
 0xa95   :  { %v8853_v9 = vpop.f32.mrf.mxu1 }
 0xa96   :  { %v8854_v13 = vadd.f32 %v8853_v9, %v8765_v6 }
 0xa98   :  { %v8887_v47 = vmax.f32 %v8854_v13, 0.0 }
 0xa9a   :  { %8927 = vmatpush.msra.mxu3 %v8887_v47 }
 0xa9c   :  { %8928 = vmatpush.msra.mxu3 %v8886_v46 }
 0xa9e   :  { %8929 = vmatpush.msra.mxu3 %v8885_v27 }
 0xaa0   :  { %8930 = vmatpush.msra.mxu3 %v8884_v34 }
 0xaa2   :  { %8931 = vmatpush.msra.mxu3 %v8883_v12 }
 0xaa4   :  { %8932 = vmatpush.msra.mxu3 %v8882_v62 }
 0xaa6   :  { %8933 = vmatpush.msra.mxu3 %v8881_v40 }
 0xaa8   :  { %8934 = vmatpush.msra.mxu3 %v8880_v37 }
 0xaaa   :  { %8935 = vmatpush.msra.mxu3 %v8879_v54 }
 0xaac   :  { %8936 = vmatpush.msra.mxu3 %v8878_v20 }
 0xaae   :  { %8937 = vmatpush.msra.mxu3 %v8877_v29 }
 0xab0   :  { %8938 = vmatpush.msra.mxu3 %v8876_v0 }
 0xab2   :  { %8939 = vmatpush.msra.mxu3 %v8875_v18 }
 0xab4   :  { %8940 = vmatpush.msra.mxu3 %v8874_v2 }
 0xab6   :  { %8941 = vmatpush.msra.mxu3 %v8873_v39 }
 0xab8   :  { %8942 = vmatpush.msra.mxu3 %v8872_v50 }
 0xab9   :  { %8943 = vmatmul.f32.vlgmr.msra.gmra.mxu3 %v8889_v17 }
 0xabc   :  { %v8921_v49 = vpop.f32.mrf.mxu2 }
 0xabd   :  { %v8922_v23 = vadd.f32 %v8921_v49, %v8897_v36 }
 0xac1   :  { %8946 = vmatmul.f32.gmra.mxu3 %v8891_v38 }
 0xac4   :  { %v8924_v43 = vpop.f32.mrf.mxu2 }
 0xac5   :  { %v8925_v14 = vadd.f32 %v8924_v43, %v8902_v10 }
 0xb3c   :  { %v8944_v35 = vpop.f32.mrf.mxu3 }
 0xb3d   :  { %v8945_v56 = vadd.f32 %v8944_v35, %v8922_v23 }
 0xb3f   :  { %8951 = vst.msk [vmem:[%s17024_s13] sm:$0xff] %vm81_vm1, %v8945_v56 }
 0xb44   :  { %v8947_v15 = vpop.f32.mrf.mxu3 }
 0xb45   :  { %v8948_v41 = vadd.f32 %v8947_v15, %v8925_v14 }
 0xb47   :  { %8953 = vst.msk [vmem:[%s17024_s13 + $0x8] sm:$0x1] %vm8952_vm4, %v8948_v41 }
 0xb48   :  { %8958 = vsyncpa [#allocation4], 1 }
 0xb49   :  { %8959 = vsyncpa [#allocation6], 1 }

</bundles_post_ra>
